<compile_context>
chip_gen: v5e
topology: v5e:2x2
jax: 0.10.0
libtpu: 0.0.40
codegen_flags: <defaults>
</compile_context>

<pallas_src>
import math

import jax
import jax.numpy as jnp
from jax.experimental import pallas as pl
from jax.experimental.pallas import tpu as pltpu

# ---- small synthetic configuration (stands in for CLIP-ViT-B/32 + GPT2) ----
BATCH = 2
IMG_C, IMG_HW, PATCH = 3, 32, 8
N_PATCH = (IMG_HW // PATCH) ** 2             # 16 patches
CLIP_DIM = 64                                 # stands for 768 (ViT hidden)
CLIP_HEADS = 2
CLIP_LAYERS = 2
CLIP_PROJ = 32                                # stands for 512 (visual_output_size)
CLIP_SEQ = N_PATCH + 1                        # 17 (CLS + patches)
CLIP_SEQ_PAD = 24                             # padded to a sublane multiple of 8
PREFIX_LEN = 8                                # prefix_length default
MLP_HIDDEN = 64                               # mlp_hidden_size default
LM_DIM = 32                                   # stands for 768 (lm_embedding_size)
LM_HEADS = 2
LM_LAYERS = 2
VOCAB = 128                                   # stands for 50257 (lane-dense logits)
MAX_POS = 64
SEQ_TOK = 8


# --------------------------- in-kernel helpers -------------------------------
def _ln(x, g, b, eps=1e-5):
    x = x.astype(jnp.float32)
    mu = jnp.mean(x, axis=-1, keepdims=True)
    var = jnp.mean(jnp.square(x - mu), axis=-1, keepdims=True)
    return (x - mu) * jax.lax.rsqrt(var + eps) * g + b


def _mm(x, w):
    """bf16 MXU inputs, f32 accumulation (weights already stored bf16 -> no-op cast)."""
    return jnp.dot(x.astype(jnp.bfloat16), w.astype(jnp.bfloat16),
                   preferred_element_type=jnp.float32)


def _mm_tb(x, w):
    """x @ w.T without materializing the transpose (MXU trans_b path)."""
    return jax.lax.dot_general(
        x.astype(jnp.bfloat16), w.astype(jnp.bfloat16),
        dimension_numbers=(((1,), (1,)), ((), ())),
        preferred_element_type=jnp.float32)


def _attention(x, layer, n_heads, d_head, qkv_w_ref, qkv_b_ref, out_w_ref, mask):
    """Multi-head self-attention on a batch-folded [N, D] block.

    One fused [N,D]x[D,3D] QKV matmul; per-head q/k/v via static lane slices;
    head merge + output projection fused as lane-concat + one [N,D]x[D,D]
    matmul.  `mask` is an [N,N] boolean (block-diagonal batch mask, plus
    causal / key-padding where relevant)."""
    N, D = x.shape
    qkv = _mm(x, qkv_w_ref[layer]) + qkv_b_ref[layer]            # [N, 3D] f32
    scale = 1.0 / math.sqrt(d_head)
    heads = []
    for h in range(n_heads):
        q = qkv[:, h * d_head:(h + 1) * d_head] * scale          # scale folded into q
        k = qkv[:, D + h * d_head: D + (h + 1) * d_head]
        v = qkv[:, 2 * D + h * d_head: 2 * D + (h + 1) * d_head]
        s = _mm_tb(q, k)                                         # [N, N]
        s = jnp.where(mask, s, jnp.float32(-1e9))
        m = jnp.max(s, axis=-1, keepdims=True)
        p = jnp.exp(s - m)
        p = p * pl.reciprocal(jnp.sum(p, axis=-1, keepdims=True), approx=True)
        heads.append(_mm(p, v))                                  # [N, Dh]
    attn = jnp.concatenate(heads, axis=-1)                       # [N, D] (lane concat)
    return _mm(attn, out_w_ref[layer])                           # fused merge + out-proj


# ------------------------------ fused kernels --------------------------------
def _clip_stack_kernel(
        patches_ref, patch_w_ref, clspos_ref, rowc_ref, colc_ref, sel_ref,
        pre_g_ref, pre_b_ref,
        ln1_g_ref, ln1_b_ref, qkv_w_ref, qkv_b_ref,
        out_w_ref, out_b_ref, ln2_g_ref, ln2_b_ref,
        fc1_w_ref, fc1_b_ref, fc2_w_ref, fc2_b_ref,
        post_g_ref, post_b_ref, vis_w_ref,
        map1_w_ref, map1_b_ref, map2_w_ref, map2_b_ref,
        o_ref):
    # Patch embedding: Conv2d(stride=patch, bias=False) == matmul on extracted
    # patches.  CLS slot and pad rows are zero patch-rows; the CLS embedding is
    # folded into the positional table (clspos), so no in-kernel concat.
    x = _mm(patches_ref[...], patch_w_ref[...]) + clspos_ref[...]    # [N, D] f32
    x = _ln(x, pre_g_ref[...], pre_b_ref[...])                       # pre_layrnorm
    # Block-diagonal (same-batch) mask; padded key columns carry colc == -1.
    mask = rowc_ref[...] == colc_ref[...]                            # [N,1]==[1,N] -> [N,N]
    for l in range(CLIP_LAYERS):                                     # toy depth: unrolled
        a = _ln(x, ln1_g_ref[l], ln1_b_ref[l])
        x = x + _attention(a, l, CLIP_HEADS, CLIP_DIM // CLIP_HEADS,
                           qkv_w_ref, qkv_b_ref, out_w_ref, mask) + out_b_ref[l]
        m = _ln(x, ln2_g_ref[l], ln2_b_ref[l])
        f = _mm(m, fc1_w_ref[l]) + fc1_b_ref[l]
        f = f * jax.nn.sigmoid(1.702 * f)                            # quick_gelu
        x = x + _mm(f, fc2_w_ref[l]) + fc2_b_ref[l]
    # Pooled output = CLS row of each batch block, gathered via a one-hot MXU
    # matmul (exact one-hot rows; no sublane relayout).
    pooled = _mm(sel_ref[...], x)                                    # [B, D]
    pooled = _ln(pooled, post_g_ref[...], post_b_ref[...])           # post_layernorm
    vis = _mm(pooled, vis_w_ref[...])                                # clip_head (bias-free)
    hid = jnp.maximum(_mm(vis, map1_w_ref[...]) + map1_b_ref[...], 0.0)   # mapper fc1+relu
    # TODO(synk): mapper nn.Dropout(p=0.2) is an eval-mode identity here.
    img = _mm(hid, map2_w_ref[...]) + map2_b_ref[...]                # mapper fc2
    o_ref[...] = img.astype(o_ref.dtype)                             # [B, PREFIX*E]


def _gpt2_stack_kernel(
        emb_ref, wpe_ref, rowc_ref, colc_ref,
        ln1_g_ref, ln1_b_ref, qkv_w_ref, qkv_b_ref,
        out_w_ref, out_b_ref, ln2_g_ref, ln2_b_ref,
        fc_w_ref, fc_b_ref, proj_w_ref, proj_b_ref,
        lnf_g_ref, lnf_b_ref, wte_ref, o_ref):
    h = emb_ref[...].astype(jnp.float32) + wpe_ref[...]              # [N, E]
    N = h.shape[0]
    # Causal (within-batch) + block-diagonal + padding mask, built in-kernel
    # from iotas and tiny [N,1]/[1,N] batch-id vectors (padded keys = -1).
    # NOTE: a query whose own key is masked gets a uniform softmax row (its
    # logits are discarded downstream anyway).
    row = jax.lax.broadcasted_iota(jnp.int32, (N, N), 0)
    col = jax.lax.broadcasted_iota(jnp.int32, (N, N), 1)
    allowed = (col <= row) & (rowc_ref[...] == colc_ref[...])
    for l in range(LM_LAYERS):                                       # toy depth: unrolled
        a = _ln(h, ln1_g_ref[l], ln1_b_ref[l])
        h = h + _attention(a, l, LM_HEADS, LM_DIM // LM_HEADS,
                           qkv_w_ref, qkv_b_ref, out_w_ref, allowed) + out_b_ref[l]
        m = _ln(h, ln2_g_ref[l], ln2_b_ref[l])
        f = _mm(m, fc_w_ref[l]) + fc_b_ref[l]                        # c_fc
        f = 0.5 * f * (1.0 + jnp.tanh(0.7978845608028654 * (f + 0.044715 * f * f * f)))
        h = h + _mm(f, proj_w_ref[l]) + proj_b_ref[l]                # c_proj
    h = _ln(h, lnf_g_ref[...], lnf_b_ref[...])
    o_ref[...] = _mm_tb(h, wte_ref[...]).astype(o_ref.dtype)         # tied lm_head


# ------------------------------ parameters -----------------------------------
def init_params(key):
    ks = iter(jax.random.split(key, 32))

    def wf(*shape):    # f32: embeddings added to the f32 residual stream
        return jax.random.normal(next(ks), shape, jnp.float32) * 0.02

    def wb(*shape):    # bf16: matmul weight slabs (half DMA + VMEM, MXU-native)
        return (jax.random.normal(next(ks), shape, jnp.float32) * 0.02).astype(jnp.bfloat16)

    def zeros(*shape):
        return jnp.zeros(shape, jnp.float32)

    def ones(*shape):
        return jnp.ones(shape, jnp.float32)

    Dc, Lc = CLIP_DIM, CLIP_LAYERS
    De, Le = LM_DIM, LM_LAYERS
    K = IMG_C * PATCH * PATCH
    clip = dict(
        patch_w=wb(K, Dc),                     # Conv2d(3, D, patch, patch, bias=False)
        cls=wf(1, Dc),
        pos=wf(CLIP_SEQ, Dc),
        pre_ln_g=ones(1, Dc), pre_ln_b=zeros(1, Dc),
        ln1_g=ones(Lc, Dc), ln1_b=zeros(Lc, Dc),
        qkv_w=wb(Lc, Dc, 3 * Dc), qkv_b=zeros(Lc, 1, 3 * Dc),   # fused QKV slab
        out_w=wb(Lc, Dc, Dc), out_b=zeros(Lc, Dc),              # out_proj (head-major rows)
        ln2_g=ones(Lc, Dc), ln2_b=zeros(Lc, Dc),
        fc1_w=wb(Lc, Dc, 4 * Dc), fc1_b=zeros(Lc, 4 * Dc),
        fc2_w=wb(Lc, 4 * Dc, Dc), fc2_b=zeros(Lc, Dc),
        post_ln_g=ones(1, Dc), post_ln_b=zeros(1, Dc),
        visual_proj=wb(Dc, CLIP_PROJ),                          # clip_head: Linear(bias=False)
        map1_w=wb(CLIP_PROJ, MLP_HIDDEN), map1_b=zeros(1, MLP_HIDDEN),   # MLP mapper
        map2_w=wb(MLP_HIDDEN, PREFIX_LEN * De), map2_b=zeros(1, PREFIX_LEN * De),
    )
    gpt2 = dict(
        wte=wb(VOCAB, De),                                       # tied embedding / lm_head
        wpe=wf(MAX_POS, De),
        ln1_g=ones(Le, De), ln1_b=zeros(Le, De),
        qkv_w=wb(Le, De, 3 * De), qkv_b=zeros(Le, 1, 3 * De),    # fused c_attn slab
        out_w=wb(Le, De, De), out_b=zeros(Le, De),
        ln2_g=ones(Le, De), ln2_b=zeros(Le, De),
        fc_w=wb(Le, De, 4 * De), fc_b=zeros(Le, 4 * De),
        proj_w=wb(Le, 4 * De, De), proj_b=zeros(Le, De),
        lnf_g=ones(1, De), lnf_b=zeros(1, De),
    )
    return dict(clip=clip, gpt2=gpt2)


# ------------------------------ wrappers --------------------------------------
def _whole(a):
    """Whole-array block (grid has a single step, so weights/activations are
    DMA'd into VMEM exactly once)."""
    n = a.ndim
    return pl.BlockSpec(a.shape, lambda i, _n=n: (0,) * _n)


def clip_encode(clip_params, images):
    """Fused CLIP vision stack + visual_projection + MLP mapper -> [B, PREFIX, E] bf16."""
    c = clip_params
    B = images.shape[0]
    hp = IMG_HW // PATCH
    K = IMG_C * PATCH * PATCH
    S, Sp = CLIP_SEQ, CLIP_SEQ_PAD
    N = B * Sp
    # NCHW -> [B, Np, C*p*p] patch extraction (layout glue; conv == in-kernel matmul).
    patches = images.reshape(B, IMG_C, hp, PATCH, hp, PATCH)
    patches = patches.transpose(0, 2, 4, 1, 3, 5).reshape(B, N_PATCH, K)
    # Zero row for CLS slot (front) and zero pad rows (back): 17 -> 24 per batch.
    patches = jnp.pad(patches, ((0, 0), (1, Sp - S), (0, 0)))
    patches = patches.reshape(N, K).astype(jnp.bfloat16)            # batch folded, bf16 input
    # CLS embedding folded into the positional table; pad rows zero.
    cls_pos = jnp.concatenate([c["pos"][0:1] + c["cls"], c["pos"][1:]], axis=0)
    cls_pos = jnp.tile(jnp.pad(cls_pos, ((0, Sp - S), (0, 0))), (B, 1))   # [N, D]
    # Batch-id vectors for the block-diagonal mask; padded keys marked -1.
    bid = jnp.repeat(jnp.arange(B, dtype=jnp.int32), Sp)
    valid = jnp.tile(jnp.arange(Sp, dtype=jnp.int32) < S, (B,))
    rowc = bid.reshape(N, 1)
    colc = jnp.where(valid, bid, -1).reshape(1, N)
    # One-hot selector of the CLS row of each batch block (pooled output).
    sel = (jnp.arange(N, dtype=jnp.int32)[None, :]
           == (jnp.arange(B, dtype=jnp.int32) * Sp)[:, None]).astype(jnp.float32)

    inputs = [
        patches, c["patch_w"], cls_pos, rowc, colc, sel,
        c["pre_ln_g"], c["pre_ln_b"],
        c["ln1_g"], c["ln1_b"], c["qkv_w"], c["qkv_b"],
        c["out_w"], c["out_b"], c["ln2_g"], c["ln2_b"],
        c["fc1_w"], c["fc1_b"], c["fc2_w"], c["fc2_b"],
        c["post_ln_g"], c["post_ln_b"], c["visual_proj"],
        c["map1_w"], c["map1_b"], c["map2_w"], c["map2_b"],
    ]
    out = pl.pallas_call(
        _clip_stack_kernel,
        out_shape=jax.ShapeDtypeStruct((B, PREFIX_LEN * LM_DIM), jnp.bfloat16),
        grid=(1,),
        in_specs=[_whole(a) for a in inputs],
        out_specs=pl.BlockSpec((B, PREFIX_LEN * LM_DIM), lambda i: (0, 0)),
        compiler_params=pltpu.CompilerParams(dimension_semantics=("arbitrary",)),
    )(*inputs)
    return out.reshape(B, PREFIX_LEN, LM_DIM)


def gpt2_forward(gpt_params, inputs_embeds, mask):
    """Fused GPT2 stack: wpe add -> L blocks -> ln_f -> tied lm_head logits (bf16)."""
    g = gpt_params
    B, S, E = inputs_embeds.shape
    N = B * S
    emb = inputs_embeds.reshape(N, E)                               # batch folded
    wpe = jnp.tile(g["wpe"][:S], (B, 1))                            # [N, E]
    bid = jnp.repeat(jnp.arange(B, dtype=jnp.int32), S)
    rowc = bid.reshape(N, 1)
    colc = jnp.where(mask.reshape(N) > 0.5, bid, -1).reshape(1, N).astype(jnp.int32)

    inputs = [
        emb, wpe, rowc, colc,
        g["ln1_g"], g["ln1_b"], g["qkv_w"], g["qkv_b"],
        g["out_w"], g["out_b"], g["ln2_g"], g["ln2_b"],
        g["fc_w"], g["fc_b"], g["proj_w"], g["proj_b"],
        g["lnf_g"], g["lnf_b"], g["wte"],
    ]
    logits = pl.pallas_call(
        _gpt2_stack_kernel,
        out_shape=jax.ShapeDtypeStruct((N, VOCAB), jnp.bfloat16),
        grid=(1,),
        in_specs=[_whole(a) for a in inputs],
        out_specs=pl.BlockSpec((N, VOCAB), lambda i: (0, 0)),
        compiler_params=pltpu.CompilerParams(dimension_semantics=("arbitrary",)),
    )(*inputs)
    return logits.reshape(B, S, VOCAB)


def captioning_forward(params, tokens, images, mask):
    # get_image_embeds(): CLIP pooled -> visual_projection -> MLP mapper -> view
    image_embeds = clip_encode(params["clip"], images)                 # [B, PREFIX, E] bf16
    # forward(): wte(tokens) gather (XLA glue), concat prefix + text, GPT2 with mask
    embedding_text = jnp.take(params["gpt2"]["wte"], tokens, axis=0)   # bf16 embedding gather
    embedding_cat = jnp.concatenate([image_embeds, embedding_text], axis=1)
    return gpt2_forward(params["gpt2"], embedding_cat, mask)


if __name__ == "__main__":
    key = jax.random.PRNGKey(0)
    kp, kt, ki = jax.random.split(key, 3)
    params = init_params(kp)
    tokens = jax.random.randint(kt, (BATCH, SEQ_TOK), 0, VOCAB, dtype=jnp.int32)
    images = jax.random.normal(ki, (BATCH, IMG_C, IMG_HW, IMG_HW), jnp.float32)
    mask = jnp.ones((BATCH, PREFIX_LEN + SEQ_TOK), jnp.float32)

    logits = jax.jit(captioning_forward)(params, tokens, images, mask)
    jax.block_until_ready(logits)
    assert logits.shape == (BATCH, PREFIX_LEN + SEQ_TOK, VOCAB), logits.shape
    assert bool(jnp.all(jnp.isfinite(logits.astype(jnp.float32))))
    print("KERNEL_OK")
</pallas_src>

<mosaic_0001>
module attributes {stable_mosaic.version = 11 : i64} {
  func.func @_clip_stack_kernel(%arg0: i32, %arg1: memref<48x192xbf16, #tpu.memory_space<vmem>>, %arg2: memref<192x64xbf16, #tpu.memory_space<vmem>>, %arg3: memref<48x64xf32, #tpu.memory_space<vmem>>, %arg4: memref<48x1xi32, #tpu.memory_space<vmem>>, %arg5: memref<1x48xi32, #tpu.memory_space<vmem>>, %arg6: memref<2x48xf32, #tpu.memory_space<vmem>>, %arg7: memref<1x64xf32, #tpu.memory_space<vmem>>, %arg8: memref<1x64xf32, #tpu.memory_space<vmem>>, %arg9: memref<2x64xf32, #tpu.memory_space<vmem>>, %arg10: memref<2x64xf32, #tpu.memory_space<vmem>>, %arg11: memref<2x64x192xbf16, #tpu.memory_space<vmem>>, %arg12: memref<2x1x192xf32, #tpu.memory_space<vmem>>, %arg13: memref<2x64x64xbf16, #tpu.memory_space<vmem>>, %arg14: memref<2x64xf32, #tpu.memory_space<vmem>>, %arg15: memref<2x64xf32, #tpu.memory_space<vmem>>, %arg16: memref<2x64xf32, #tpu.memory_space<vmem>>, %arg17: memref<2x64x256xbf16, #tpu.memory_space<vmem>>, %arg18: memref<2x256xf32, #tpu.memory_space<vmem>>, %arg19: memref<2x256x64xbf16, #tpu.memory_space<vmem>>, %arg20: memref<2x64xf32, #tpu.memory_space<vmem>>, %arg21: memref<1x64xf32, #tpu.memory_space<vmem>>, %arg22: memref<1x64xf32, #tpu.memory_space<vmem>>, %arg23: memref<64x32xbf16, #tpu.memory_space<vmem>>, %arg24: memref<32x64xbf16, #tpu.memory_space<vmem>>, %arg25: memref<1x64xf32, #tpu.memory_space<vmem>>, %arg26: memref<64x256xbf16, #tpu.memory_space<vmem>>, %arg27: memref<1x256xf32, #tpu.memory_space<vmem>>, %arg28: memref<2x256xbf16, #tpu.memory_space<vmem>>) attributes {dimension_semantics = [#tpu.dimension_semantics<arbitrary>], iteration_bounds = array<i64: 1>, scalar_prefetch = 0 : i64, scratch_operands = 0 : i64, tpu.core_type = #tpu.core_type<tc>, window_params = [{pipeline_mode = #tpu.pipeline_mode<synchronous>, transform_indices = @transform_0, window_bounds = array<i64: 48, 192>}, {pipeline_mode = #tpu.pipeline_mode<synchronous>, transform_indices = @transform_1, window_bounds = array<i64: 192, 64>}, {pipeline_mode = #tpu.pipeline_mode<synchronous>, transform_indices = @transform_2, window_bounds = array<i64: 48, 64>}, {pipeline_mode = #tpu.pipeline_mode<synchronous>, transform_indices = @transform_3, window_bounds = array<i64: 48, 1>}, {pipeline_mode = #tpu.pipeline_mode<synchronous>, transform_indices = @transform_4, window_bounds = array<i64: 1, 48>}, {pipeline_mode = #tpu.pipeline_mode<synchronous>, transform_indices = @transform_5, window_bounds = array<i64: 2, 48>}, {pipeline_mode = #tpu.pipeline_mode<synchronous>, transform_indices = @transform_6, window_bounds = array<i64: 1, 64>}, {pipeline_mode = #tpu.pipeline_mode<synchronous>, transform_indices = @transform_7, window_bounds = array<i64: 1, 64>}, {pipeline_mode = #tpu.pipeline_mode<synchronous>, transform_indices = @transform_8, window_bounds = array<i64: 2, 64>}, {pipeline_mode = #tpu.pipeline_mode<synchronous>, transform_indices = @transform_9, window_bounds = array<i64: 2, 64>}, {pipeline_mode = #tpu.pipeline_mode<synchronous>, transform_indices = @transform_10, window_bounds = array<i64: 2, 64, 192>}, {pipeline_mode = #tpu.pipeline_mode<synchronous>, transform_indices = @transform_11, window_bounds = array<i64: 2, 1, 192>}, {pipeline_mode = #tpu.pipeline_mode<synchronous>, transform_indices = @transform_12, window_bounds = array<i64: 2, 64, 64>}, {pipeline_mode = #tpu.pipeline_mode<synchronous>, transform_indices = @transform_13, window_bounds = array<i64: 2, 64>}, {pipeline_mode = #tpu.pipeline_mode<synchronous>, transform_indices = @transform_14, window_bounds = array<i64: 2, 64>}, {pipeline_mode = #tpu.pipeline_mode<synchronous>, transform_indices = @transform_15, window_bounds = array<i64: 2, 64>}, {pipeline_mode = #tpu.pipeline_mode<synchronous>, transform_indices = @transform_16, window_bounds = array<i64: 2, 64, 256>}, {pipeline_mode = #tpu.pipeline_mode<synchronous>, transform_indices = @transform_17, window_bounds = array<i64: 2, 256>}, {pipeline_mode = #tpu.pipeline_mode<synchronous>, transform_indices = @transform_18, window_bounds = array<i64: 2, 256, 64>}, {pipeline_mode = #tpu.pipeline_mode<synchronous>, transform_indices = @transform_19, window_bounds = array<i64: 2, 64>}, {pipeline_mode = #tpu.pipeline_mode<synchronous>, transform_indices = @transform_20, window_bounds = array<i64: 1, 64>}, {pipeline_mode = #tpu.pipeline_mode<synchronous>, transform_indices = @transform_21, window_bounds = array<i64: 1, 64>}, {pipeline_mode = #tpu.pipeline_mode<synchronous>, transform_indices = @transform_22, window_bounds = array<i64: 64, 32>}, {pipeline_mode = #tpu.pipeline_mode<synchronous>, transform_indices = @transform_23, window_bounds = array<i64: 32, 64>}, {pipeline_mode = #tpu.pipeline_mode<synchronous>, transform_indices = @transform_24, window_bounds = array<i64: 1, 64>}, {pipeline_mode = #tpu.pipeline_mode<synchronous>, transform_indices = @transform_25, window_bounds = array<i64: 64, 256>}, {pipeline_mode = #tpu.pipeline_mode<synchronous>, transform_indices = @transform_26, window_bounds = array<i64: 1, 256>}, {pipeline_mode = #tpu.pipeline_mode<synchronous>, transform_indices = @transform_27, window_bounds = array<i64: 2, 256>}]} {
    %c0 = arith.constant 0 : index
    %c0_0 = arith.constant 0 : index
    %0 = vector.load %arg1[%c0, %c0_0] : memref<48x192xbf16, #tpu.memory_space<vmem>>, vector<48x192xbf16>
    %c0_1 = arith.constant 0 : index
    %c0_2 = arith.constant 0 : index
    %1 = vector.load %arg2[%c0_1, %c0_2] : memref<192x64xbf16, #tpu.memory_space<vmem>>, vector<192x64xbf16>
    %cst = arith.constant dense<0.000000e+00> : vector<48x64xf32>
    %2 = tpu.matmul %0, %1, %cst {dimension_numbers = #tpu.dot_dimension_numbers<[1], [0], [0], [1], [0, 0, 1, 1], [], []>} : vector<48x192xbf16>, vector<192x64xbf16>, vector<48x64xf32> -> vector<48x64xf32>
    %c0_3 = arith.constant 0 : index
    %c0_4 = arith.constant 0 : index
    %3 = vector.load %arg3[%c0_3, %c0_4] : memref<48x64xf32, #tpu.memory_space<vmem>>, vector<48x64xf32>
    %4 = arith.addf %2, %3 : vector<48x64xf32>
    %c0_5 = arith.constant 0 : index
    %c0_6 = arith.constant 0 : index
    %5 = vector.load %arg7[%c0_5, %c0_6] : memref<1x64xf32, #tpu.memory_space<vmem>>, vector<1x64xf32>
    %c0_7 = arith.constant 0 : index
    %c0_8 = arith.constant 0 : index
    %6 = vector.load %arg8[%c0_7, %c0_8] : memref<1x64xf32, #tpu.memory_space<vmem>>, vector<1x64xf32>
    %cst_9 = arith.constant dense<0.000000e+00> : vector<48xf32>
    %7 = vector.multi_reduction <add>, %4, %cst_9 [1] : vector<48x64xf32> to vector<48xf32>
    %8 = vector.shape_cast %7 : vector<48xf32> to vector<48x1xf32>
    %cst_10 = arith.constant 6.400000e+01 : f32
    %9 = vector.broadcast %cst_10 : f32 to vector<48x1xf32>
    %10 = arith.divf %8, %9 : vector<48x1xf32>
    %11 = vector.broadcast %10 : vector<48x1xf32> to vector<48x64xf32>
    %12 = arith.subf %4, %11 : vector<48x64xf32>
    %13 = arith.mulf %12, %12 : vector<48x64xf32>
    %cst_11 = arith.constant dense<0.000000e+00> : vector<48xf32>
    %14 = vector.multi_reduction <add>, %13, %cst_11 [1] : vector<48x64xf32> to vector<48xf32>
    %15 = vector.shape_cast %14 : vector<48xf32> to vector<48x1xf32>
    %cst_12 = arith.constant 6.400000e+01 : f32
    %16 = vector.broadcast %cst_12 : f32 to vector<48x1xf32>
    %17 = arith.divf %15, %16 : vector<48x1xf32>
    %18 = vector.broadcast %10 : vector<48x1xf32> to vector<48x64xf32>
    %19 = arith.subf %4, %18 : vector<48x64xf32>
    %cst_13 = arith.constant 9.99999974E-6 : f32
    %20 = vector.broadcast %cst_13 : f32 to vector<48x1xf32>
    %21 = arith.addf %17, %20 : vector<48x1xf32>
    %22 = math.rsqrt %21 : vector<48x1xf32>
    %23 = vector.broadcast %22 : vector<48x1xf32> to vector<48x64xf32>
    %24 = arith.mulf %19, %23 : vector<48x64xf32>
    %25 = vector.broadcast %5 : vector<1x64xf32> to vector<48x64xf32>
    %26 = arith.mulf %24, %25 : vector<48x64xf32>
    %27 = vector.broadcast %6 : vector<1x64xf32> to vector<48x64xf32>
    %28 = arith.addf %26, %27 : vector<48x64xf32>
    %c0_14 = arith.constant 0 : index
    %c0_15 = arith.constant 0 : index
    %29 = vector.load %arg4[%c0_14, %c0_15] : memref<48x1xi32, #tpu.memory_space<vmem>>, vector<48x1xi32>
    %c0_16 = arith.constant 0 : index
    %c0_17 = arith.constant 0 : index
    %30 = vector.load %arg5[%c0_16, %c0_17] : memref<1x48xi32, #tpu.memory_space<vmem>>, vector<1x48xi32>
    %31 = vector.broadcast %29 : vector<48x1xi32> to vector<48x48xi32>
    %32 = vector.broadcast %30 : vector<1x48xi32> to vector<48x48xi32>
    %33 = arith.cmpi eq, %31, %32 : vector<48x48xi32>
    %c0_18 = arith.constant 0 : index
    %c0_19 = arith.constant 0 : index
    %34 = vector.load %arg9[%c0_18, %c0_19] : memref<2x64xf32, #tpu.memory_space<vmem>>, vector<1x64xf32>
    %35 = vector.shape_cast %34 : vector<1x64xf32> to vector<64xf32>
    %c0_20 = arith.constant 0 : index
    %c0_21 = arith.constant 0 : index
    %36 = vector.load %arg10[%c0_20, %c0_21] : memref<2x64xf32, #tpu.memory_space<vmem>>, vector<1x64xf32>
    %37 = vector.shape_cast %36 : vector<1x64xf32> to vector<64xf32>
    %cst_22 = arith.constant dense<0.000000e+00> : vector<48xf32>
    %38 = vector.multi_reduction <add>, %28, %cst_22 [1] : vector<48x64xf32> to vector<48xf32>
    %39 = vector.shape_cast %38 : vector<48xf32> to vector<48x1xf32>
    %cst_23 = arith.constant 6.400000e+01 : f32
    %40 = vector.broadcast %cst_23 : f32 to vector<48x1xf32>
    %41 = arith.divf %39, %40 : vector<48x1xf32>
    %42 = vector.broadcast %41 : vector<48x1xf32> to vector<48x64xf32>
    %43 = arith.subf %28, %42 : vector<48x64xf32>
    %44 = arith.mulf %43, %43 : vector<48x64xf32>
    %cst_24 = arith.constant dense<0.000000e+00> : vector<48xf32>
    %45 = vector.multi_reduction <add>, %44, %cst_24 [1] : vector<48x64xf32> to vector<48xf32>
    %46 = vector.shape_cast %45 : vector<48xf32> to vector<48x1xf32>
    %cst_25 = arith.constant 6.400000e+01 : f32
    %47 = vector.broadcast %cst_25 : f32 to vector<48x1xf32>
    %48 = arith.divf %46, %47 : vector<48x1xf32>
    %49 = vector.broadcast %41 : vector<48x1xf32> to vector<48x64xf32>
    %50 = arith.subf %28, %49 : vector<48x64xf32>
    %cst_26 = arith.constant 9.99999974E-6 : f32
    %51 = vector.broadcast %cst_26 : f32 to vector<48x1xf32>
    %52 = arith.addf %48, %51 : vector<48x1xf32>
    %53 = math.rsqrt %52 : vector<48x1xf32>
    %54 = vector.broadcast %53 : vector<48x1xf32> to vector<48x64xf32>
    %55 = arith.mulf %50, %54 : vector<48x64xf32>
    %56 = vector.shape_cast %35 : vector<64xf32> to vector<1x64xf32>
    %57 = vector.broadcast %56 : vector<1x64xf32> to vector<48x64xf32>
    %58 = arith.mulf %55, %57 : vector<48x64xf32>
    %59 = vector.shape_cast %37 : vector<64xf32> to vector<1x64xf32>
    %60 = vector.broadcast %59 : vector<1x64xf32> to vector<48x64xf32>
    %61 = arith.addf %58, %60 : vector<48x64xf32>
    %c0_27 = arith.constant 0 : index
    %c0_28 = arith.constant 0 : index
    %c0_29 = arith.constant 0 : index
    %62 = vector.load %arg11[%c0_27, %c0_28, %c0_29] : memref<2x64x192xbf16, #tpu.memory_space<vmem>>, vector<1x64x192xbf16>
    %63 = vector.shape_cast %62 : vector<1x64x192xbf16> to vector<64x192xbf16>
    %64 = arith.truncf %61 : vector<48x64xf32> to vector<48x64xbf16>
    %cst_30 = arith.constant dense<0.000000e+00> : vector<48x192xf32>
    %65 = tpu.matmul %64, %63, %cst_30 {dimension_numbers = #tpu.dot_dimension_numbers<[1], [0], [0], [1], [0, 0, 1, 1], [], []>} : vector<48x64xbf16>, vector<64x192xbf16>, vector<48x192xf32> -> vector<48x192xf32>
    %c0_31 = arith.constant 0 : index
    %c0_32 = arith.constant 0 : index
    %c0_33 = arith.constant 0 : index
    %66 = vector.load %arg12[%c0_31, %c0_32, %c0_33] : memref<2x1x192xf32, #tpu.memory_space<vmem>>, vector<1x1x192xf32>
    %67 = vector.shape_cast %66 : vector<1x1x192xf32> to vector<1x192xf32>
    %68 = vector.broadcast %67 : vector<1x192xf32> to vector<48x192xf32>
    %69 = arith.addf %65, %68 : vector<48x192xf32>
    %70 = vector.extract_strided_slice %69 {offsets = [0, 0], sizes = [48, 32], strides = [1, 1]} : vector<48x192xf32> to vector<48x32xf32>
    %cst_34 = arith.constant 0.176776692 : f32
    %71 = vector.broadcast %cst_34 : f32 to vector<48x32xf32>
    %72 = arith.mulf %70, %71 : vector<48x32xf32>
    %73 = vector.extract_strided_slice %69 {offsets = [0, 64], sizes = [48, 32], strides = [1, 1]} : vector<48x192xf32> to vector<48x32xf32>
    %74 = vector.extract_strided_slice %69 {offsets = [0, 128], sizes = [48, 32], strides = [1, 1]} : vector<48x192xf32> to vector<48x32xf32>
    %75 = arith.truncf %72 : vector<48x32xf32> to vector<48x32xbf16>
    %76 = arith.truncf %73 : vector<48x32xf32> to vector<48x32xbf16>
    %cst_35 = arith.constant dense<0.000000e+00> : vector<48x48xf32>
    %77 = tpu.matmul %75, %76, %cst_35 {dimension_numbers = #tpu.dot_dimension_numbers<[1], [1], [0], [0], [0, 0, 1, 0], [], []>} : vector<48x32xbf16>, vector<48x32xbf16>, vector<48x48xf32> -> vector<48x48xf32>
    %cst_36 = arith.constant -1.000000e+09 : f32
    %78 = vector.broadcast %cst_36 : f32 to vector<48x48xf32>
    %79 = arith.select %33, %77, %78 : vector<48x48xi1>, vector<48x48xf32>
    %cst_37 = arith.constant dense<0xFF800000> : vector<48xf32>
    %80 = vector.multi_reduction <maximumf>, %79, %cst_37 [1] : vector<48x48xf32> to vector<48xf32>
    %81 = vector.shape_cast %80 : vector<48xf32> to vector<48x1xf32>
    %82 = vector.broadcast %81 : vector<48x1xf32> to vector<48x48xf32>
    %83 = arith.subf %79, %82 : vector<48x48xf32>
    %84 = math.exp %83 : vector<48x48xf32>
    %cst_38 = arith.constant dense<0.000000e+00> : vector<48xf32>
    %85 = vector.multi_reduction <add>, %84, %cst_38 [1] : vector<48x48xf32> to vector<48xf32>
    %86 = vector.shape_cast %85 : vector<48xf32> to vector<48x1xf32>
    %87 = tpu.reciprocal %86 {approx = true} : vector<48x1xf32> -> vector<48x1xf32>
    %88 = vector.broadcast %87 : vector<48x1xf32> to vector<48x48xf32>
    %89 = arith.mulf %84, %88 : vector<48x48xf32>
    %90 = arith.truncf %89 : vector<48x48xf32> to vector<48x48xbf16>
    %91 = arith.truncf %74 : vector<48x32xf32> to vector<48x32xbf16>
    %cst_39 = arith.constant dense<0.000000e+00> : vector<48x32xf32>
    %92 = tpu.matmul %90, %91, %cst_39 {dimension_numbers = #tpu.dot_dimension_numbers<[1], [0], [0], [1], [0, 0, 1, 1], [], []>} : vector<48x48xbf16>, vector<48x32xbf16>, vector<48x32xf32> -> vector<48x32xf32>
    %93 = vector.extract_strided_slice %69 {offsets = [0, 32], sizes = [48, 32], strides = [1, 1]} : vector<48x192xf32> to vector<48x32xf32>
    %cst_40 = arith.constant 0.176776692 : f32
    %94 = vector.broadcast %cst_40 : f32 to vector<48x32xf32>
    %95 = arith.mulf %93, %94 : vector<48x32xf32>
    %96 = vector.extract_strided_slice %69 {offsets = [0, 96], sizes = [48, 32], strides = [1, 1]} : vector<48x192xf32> to vector<48x32xf32>
    %97 = vector.extract_strided_slice %69 {offsets = [0, 160], sizes = [48, 32], strides = [1, 1]} : vector<48x192xf32> to vector<48x32xf32>
    %98 = arith.truncf %95 : vector<48x32xf32> to vector<48x32xbf16>
    %99 = arith.truncf %96 : vector<48x32xf32> to vector<48x32xbf16>
    %cst_41 = arith.constant dense<0.000000e+00> : vector<48x48xf32>
    %100 = tpu.matmul %98, %99, %cst_41 {dimension_numbers = #tpu.dot_dimension_numbers<[1], [1], [0], [0], [0, 0, 1, 0], [], []>} : vector<48x32xbf16>, vector<48x32xbf16>, vector<48x48xf32> -> vector<48x48xf32>
    %cst_42 = arith.constant -1.000000e+09 : f32
    %101 = vector.broadcast %cst_42 : f32 to vector<48x48xf32>
    %102 = arith.select %33, %100, %101 : vector<48x48xi1>, vector<48x48xf32>
    %cst_43 = arith.constant dense<0xFF800000> : vector<48xf32>
    %103 = vector.multi_reduction <maximumf>, %102, %cst_43 [1] : vector<48x48xf32> to vector<48xf32>
    %104 = vector.shape_cast %103 : vector<48xf32> to vector<48x1xf32>
    %105 = vector.broadcast %104 : vector<48x1xf32> to vector<48x48xf32>
    %106 = arith.subf %102, %105 : vector<48x48xf32>
    %107 = math.exp %106 : vector<48x48xf32>
    %cst_44 = arith.constant dense<0.000000e+00> : vector<48xf32>
    %108 = vector.multi_reduction <add>, %107, %cst_44 [1] : vector<48x48xf32> to vector<48xf32>
    %109 = vector.shape_cast %108 : vector<48xf32> to vector<48x1xf32>
    %110 = tpu.reciprocal %109 {approx = true} : vector<48x1xf32> -> vector<48x1xf32>
    %111 = vector.broadcast %110 : vector<48x1xf32> to vector<48x48xf32>
    %112 = arith.mulf %107, %111 : vector<48x48xf32>
    %113 = arith.truncf %112 : vector<48x48xf32> to vector<48x48xbf16>
    %114 = arith.truncf %97 : vector<48x32xf32> to vector<48x32xbf16>
    %cst_45 = arith.constant dense<0.000000e+00> : vector<48x32xf32>
    %115 = tpu.matmul %113, %114, %cst_45 {dimension_numbers = #tpu.dot_dimension_numbers<[1], [0], [0], [1], [0, 0, 1, 1], [], []>} : vector<48x48xbf16>, vector<48x32xbf16>, vector<48x32xf32> -> vector<48x32xf32>
    %116 = tpu.concatenate %92, %115 in 1 : vector<48x32xf32>, vector<48x32xf32> -> vector<48x64xf32>
    %c0_46 = arith.constant 0 : index
    %c0_47 = arith.constant 0 : index
    %c0_48 = arith.constant 0 : index
    %117 = vector.load %arg13[%c0_46, %c0_47, %c0_48] : memref<2x64x64xbf16, #tpu.memory_space<vmem>>, vector<1x64x64xbf16>
    %118 = vector.shape_cast %117 : vector<1x64x64xbf16> to vector<64x64xbf16>
    %119 = arith.truncf %116 : vector<48x64xf32> to vector<48x64xbf16>
    %cst_49 = arith.constant dense<0.000000e+00> : vector<48x64xf32>
    %120 = tpu.matmul %119, %118, %cst_49 {dimension_numbers = #tpu.dot_dimension_numbers<[1], [0], [0], [1], [0, 0, 1, 1], [], []>} : vector<48x64xbf16>, vector<64x64xbf16>, vector<48x64xf32> -> vector<48x64xf32>
    %121 = arith.addf %28, %120 : vector<48x64xf32>
    %c0_50 = arith.constant 0 : index
    %c0_51 = arith.constant 0 : index
    %122 = vector.load %arg14[%c0_50, %c0_51] : memref<2x64xf32, #tpu.memory_space<vmem>>, vector<1x64xf32>
    %123 = vector.shape_cast %122 : vector<1x64xf32> to vector<64xf32>
    %124 = vector.shape_cast %123 : vector<64xf32> to vector<1x64xf32>
    %125 = vector.broadcast %124 : vector<1x64xf32> to vector<48x64xf32>
    %126 = arith.addf %121, %125 : vector<48x64xf32>
    %c0_52 = arith.constant 0 : index
    %c0_53 = arith.constant 0 : index
    %127 = vector.load %arg15[%c0_52, %c0_53] : memref<2x64xf32, #tpu.memory_space<vmem>>, vector<1x64xf32>
    %128 = vector.shape_cast %127 : vector<1x64xf32> to vector<64xf32>
    %c0_54 = arith.constant 0 : index
    %c0_55 = arith.constant 0 : index
    %129 = vector.load %arg16[%c0_54, %c0_55] : memref<2x64xf32, #tpu.memory_space<vmem>>, vector<1x64xf32>
    %130 = vector.shape_cast %129 : vector<1x64xf32> to vector<64xf32>
    %cst_56 = arith.constant dense<0.000000e+00> : vector<48xf32>
    %131 = vector.multi_reduction <add>, %126, %cst_56 [1] : vector<48x64xf32> to vector<48xf32>
    %132 = vector.shape_cast %131 : vector<48xf32> to vector<48x1xf32>
    %cst_57 = arith.constant 6.400000e+01 : f32
    %133 = vector.broadcast %cst_57 : f32 to vector<48x1xf32>
    %134 = arith.divf %132, %133 : vector<48x1xf32>
    %135 = vector.broadcast %134 : vector<48x1xf32> to vector<48x64xf32>
    %136 = arith.subf %126, %135 : vector<48x64xf32>
    %137 = arith.mulf %136, %136 : vector<48x64xf32>
    %cst_58 = arith.constant dense<0.000000e+00> : vector<48xf32>
    %138 = vector.multi_reduction <add>, %137, %cst_58 [1] : vector<48x64xf32> to vector<48xf32>
    %139 = vector.shape_cast %138 : vector<48xf32> to vector<48x1xf32>
    %cst_59 = arith.constant 6.400000e+01 : f32
    %140 = vector.broadcast %cst_59 : f32 to vector<48x1xf32>
    %141 = arith.divf %139, %140 : vector<48x1xf32>
    %142 = vector.broadcast %134 : vector<48x1xf32> to vector<48x64xf32>
    %143 = arith.subf %126, %142 : vector<48x64xf32>
    %cst_60 = arith.constant 9.99999974E-6 : f32
    %144 = vector.broadcast %cst_60 : f32 to vector<48x1xf32>
    %145 = arith.addf %141, %144 : vector<48x1xf32>
    %146 = math.rsqrt %145 : vector<48x1xf32>
    %147 = vector.broadcast %146 : vector<48x1xf32> to vector<48x64xf32>
    %148 = arith.mulf %143, %147 : vector<48x64xf32>
    %149 = vector.shape_cast %128 : vector<64xf32> to vector<1x64xf32>
    %150 = vector.broadcast %149 : vector<1x64xf32> to vector<48x64xf32>
    %151 = arith.mulf %148, %150 : vector<48x64xf32>
    %152 = vector.shape_cast %130 : vector<64xf32> to vector<1x64xf32>
    %153 = vector.broadcast %152 : vector<1x64xf32> to vector<48x64xf32>
    %154 = arith.addf %151, %153 : vector<48x64xf32>
    %c0_61 = arith.constant 0 : index
    %c0_62 = arith.constant 0 : index
    %c0_63 = arith.constant 0 : index
    %155 = vector.load %arg17[%c0_61, %c0_62, %c0_63] : memref<2x64x256xbf16, #tpu.memory_space<vmem>>, vector<1x64x256xbf16>
    %156 = vector.shape_cast %155 : vector<1x64x256xbf16> to vector<64x256xbf16>
    %157 = arith.truncf %154 : vector<48x64xf32> to vector<48x64xbf16>
    %cst_64 = arith.constant dense<0.000000e+00> : vector<48x256xf32>
    %158 = tpu.matmul %157, %156, %cst_64 {dimension_numbers = #tpu.dot_dimension_numbers<[1], [0], [0], [1], [0, 0, 1, 1], [], []>} : vector<48x64xbf16>, vector<64x256xbf16>, vector<48x256xf32> -> vector<48x256xf32>
    %c0_65 = arith.constant 0 : index
    %c0_66 = arith.constant 0 : index
    %159 = vector.load %arg18[%c0_65, %c0_66] : memref<2x256xf32, #tpu.memory_space<vmem>>, vector<1x256xf32>
    %160 = vector.shape_cast %159 : vector<1x256xf32> to vector<256xf32>
    %161 = vector.shape_cast %160 : vector<256xf32> to vector<1x256xf32>
    %162 = vector.broadcast %161 : vector<1x256xf32> to vector<48x256xf32>
    %163 = arith.addf %158, %162 : vector<48x256xf32>
    %cst_67 = arith.constant 1.702000e+00 : f32
    %164 = vector.broadcast %cst_67 : f32 to vector<48x256xf32>
    %165 = arith.mulf %164, %163 : vector<48x256xf32>
    %166 = arith.negf %165 : vector<48x256xf32>
    %167 = math.exp %166 : vector<48x256xf32>
    %cst_68 = arith.constant 1.000000e+00 : f32
    %168 = vector.broadcast %cst_68 : f32 to vector<48x256xf32>
    %169 = arith.addf %168, %167 : vector<48x256xf32>
    %170 = arith.divf %168, %169 : vector<48x256xf32>
    %171 = arith.mulf %163, %170 : vector<48x256xf32>
    %c0_69 = arith.constant 0 : index
    %c0_70 = arith.constant 0 : index
    %c0_71 = arith.constant 0 : index
    %172 = vector.load %arg19[%c0_69, %c0_70, %c0_71] : memref<2x256x64xbf16, #tpu.memory_space<vmem>>, vector<1x256x64xbf16>
    %173 = vector.shape_cast %172 : vector<1x256x64xbf16> to vector<256x64xbf16>
    %174 = arith.truncf %171 : vector<48x256xf32> to vector<48x256xbf16>
    %cst_72 = arith.constant dense<0.000000e+00> : vector<48x64xf32>
    %175 = tpu.matmul %174, %173, %cst_72 {dimension_numbers = #tpu.dot_dimension_numbers<[1], [0], [0], [1], [0, 0, 1, 1], [], []>} : vector<48x256xbf16>, vector<256x64xbf16>, vector<48x64xf32> -> vector<48x64xf32>
    %176 = arith.addf %126, %175 : vector<48x64xf32>
    %c0_73 = arith.constant 0 : index
    %c0_74 = arith.constant 0 : index
    %177 = vector.load %arg20[%c0_73, %c0_74] : memref<2x64xf32, #tpu.memory_space<vmem>>, vector<1x64xf32>
    %178 = vector.shape_cast %177 : vector<1x64xf32> to vector<64xf32>
    %179 = vector.shape_cast %178 : vector<64xf32> to vector<1x64xf32>
    %180 = vector.broadcast %179 : vector<1x64xf32> to vector<48x64xf32>
    %181 = arith.addf %176, %180 : vector<48x64xf32>
    %c1 = arith.constant 1 : index
    %c0_75 = arith.constant 0 : index
    %182 = vector.load %arg9[%c1, %c0_75] : memref<2x64xf32, #tpu.memory_space<vmem>>, vector<1x64xf32>
    %183 = vector.shape_cast %182 : vector<1x64xf32> to vector<64xf32>
    %c1_76 = arith.constant 1 : index
    %c0_77 = arith.constant 0 : index
    %184 = vector.load %arg10[%c1_76, %c0_77] : memref<2x64xf32, #tpu.memory_space<vmem>>, vector<1x64xf32>
    %185 = vector.shape_cast %184 : vector<1x64xf32> to vector<64xf32>
    %cst_78 = arith.constant dense<0.000000e+00> : vector<48xf32>
    %186 = vector.multi_reduction <add>, %181, %cst_78 [1] : vector<48x64xf32> to vector<48xf32>
    %187 = vector.shape_cast %186 : vector<48xf32> to vector<48x1xf32>
    %cst_79 = arith.constant 6.400000e+01 : f32
    %188 = vector.broadcast %cst_79 : f32 to vector<48x1xf32>
    %189 = arith.divf %187, %188 : vector<48x1xf32>
    %190 = vector.broadcast %189 : vector<48x1xf32> to vector<48x64xf32>
    %191 = arith.subf %181, %190 : vector<48x64xf32>
    %192 = arith.mulf %191, %191 : vector<48x64xf32>
    %cst_80 = arith.constant dense<0.000000e+00> : vector<48xf32>
    %193 = vector.multi_reduction <add>, %192, %cst_80 [1] : vector<48x64xf32> to vector<48xf32>
    %194 = vector.shape_cast %193 : vector<48xf32> to vector<48x1xf32>
    %cst_81 = arith.constant 6.400000e+01 : f32
    %195 = vector.broadcast %cst_81 : f32 to vector<48x1xf32>
    %196 = arith.divf %194, %195 : vector<48x1xf32>
    %197 = vector.broadcast %189 : vector<48x1xf32> to vector<48x64xf32>
    %198 = arith.subf %181, %197 : vector<48x64xf32>
    %cst_82 = arith.constant 9.99999974E-6 : f32
    %199 = vector.broadcast %cst_82 : f32 to vector<48x1xf32>
    %200 = arith.addf %196, %199 : vector<48x1xf32>
    %201 = math.rsqrt %200 : vector<48x1xf32>
    %202 = vector.broadcast %201 : vector<48x1xf32> to vector<48x64xf32>
    %203 = arith.mulf %198, %202 : vector<48x64xf32>
    %204 = vector.shape_cast %183 : vector<64xf32> to vector<1x64xf32>
    %205 = vector.broadcast %204 : vector<1x64xf32> to vector<48x64xf32>
    %206 = arith.mulf %203, %205 : vector<48x64xf32>
    %207 = vector.shape_cast %185 : vector<64xf32> to vector<1x64xf32>
    %208 = vector.broadcast %207 : vector<1x64xf32> to vector<48x64xf32>
    %209 = arith.addf %206, %208 : vector<48x64xf32>
    %c1_83 = arith.constant 1 : index
    %c0_84 = arith.constant 0 : index
    %c0_85 = arith.constant 0 : index
    %210 = vector.load %arg11[%c1_83, %c0_84, %c0_85] : memref<2x64x192xbf16, #tpu.memory_space<vmem>>, vector<1x64x192xbf16>
    %211 = vector.shape_cast %210 : vector<1x64x192xbf16> to vector<64x192xbf16>
    %212 = arith.truncf %209 : vector<48x64xf32> to vector<48x64xbf16>
    %cst_86 = arith.constant dense<0.000000e+00> : vector<48x192xf32>
    %213 = tpu.matmul %212, %211, %cst_86 {dimension_numbers = #tpu.dot_dimension_numbers<[1], [0], [0], [1], [0, 0, 1, 1], [], []>} : vector<48x64xbf16>, vector<64x192xbf16>, vector<48x192xf32> -> vector<48x192xf32>
    %c1_87 = arith.constant 1 : index
    %c0_88 = arith.constant 0 : index
    %c0_89 = arith.constant 0 : index
    %214 = vector.load %arg12[%c1_87, %c0_88, %c0_89] : memref<2x1x192xf32, #tpu.memory_space<vmem>>, vector<1x1x192xf32>
    %215 = vector.shape_cast %214 : vector<1x1x192xf32> to vector<1x192xf32>
    %216 = vector.broadcast %215 : vector<1x192xf32> to vector<48x192xf32>
    %217 = arith.addf %213, %216 : vector<48x192xf32>
    %218 = vector.extract_strided_slice %217 {offsets = [0, 0], sizes = [48, 32], strides = [1, 1]} : vector<48x192xf32> to vector<48x32xf32>
    %cst_90 = arith.constant 0.176776692 : f32
    %219 = vector.broadcast %cst_90 : f32 to vector<48x32xf32>
    %220 = arith.mulf %218, %219 : vector<48x32xf32>
    %221 = vector.extract_strided_slice %217 {offsets = [0, 64], sizes = [48, 32], strides = [1, 1]} : vector<48x192xf32> to vector<48x32xf32>
    %222 = vector.extract_strided_slice %217 {offsets = [0, 128], sizes = [48, 32], strides = [1, 1]} : vector<48x192xf32> to vector<48x32xf32>
    %223 = arith.truncf %220 : vector<48x32xf32> to vector<48x32xbf16>
    %224 = arith.truncf %221 : vector<48x32xf32> to vector<48x32xbf16>
    %cst_91 = arith.constant dense<0.000000e+00> : vector<48x48xf32>
    %225 = tpu.matmul %223, %224, %cst_91 {dimension_numbers = #tpu.dot_dimension_numbers<[1], [1], [0], [0], [0, 0, 1, 0], [], []>} : vector<48x32xbf16>, vector<48x32xbf16>, vector<48x48xf32> -> vector<48x48xf32>
    %cst_92 = arith.constant -1.000000e+09 : f32
    %226 = vector.broadcast %cst_92 : f32 to vector<48x48xf32>
    %227 = arith.select %33, %225, %226 : vector<48x48xi1>, vector<48x48xf32>
    %cst_93 = arith.constant dense<0xFF800000> : vector<48xf32>
    %228 = vector.multi_reduction <maximumf>, %227, %cst_93 [1] : vector<48x48xf32> to vector<48xf32>
    %229 = vector.shape_cast %228 : vector<48xf32> to vector<48x1xf32>
    %230 = vector.broadcast %229 : vector<48x1xf32> to vector<48x48xf32>
    %231 = arith.subf %227, %230 : vector<48x48xf32>
    %232 = math.exp %231 : vector<48x48xf32>
    %cst_94 = arith.constant dense<0.000000e+00> : vector<48xf32>
    %233 = vector.multi_reduction <add>, %232, %cst_94 [1] : vector<48x48xf32> to vector<48xf32>
    %234 = vector.shape_cast %233 : vector<48xf32> to vector<48x1xf32>
    %235 = tpu.reciprocal %234 {approx = true} : vector<48x1xf32> -> vector<48x1xf32>
    %236 = vector.broadcast %235 : vector<48x1xf32> to vector<48x48xf32>
    %237 = arith.mulf %232, %236 : vector<48x48xf32>
    %238 = arith.truncf %237 : vector<48x48xf32> to vector<48x48xbf16>
    %239 = arith.truncf %222 : vector<48x32xf32> to vector<48x32xbf16>
    %cst_95 = arith.constant dense<0.000000e+00> : vector<48x32xf32>
    %240 = tpu.matmul %238, %239, %cst_95 {dimension_numbers = #tpu.dot_dimension_numbers<[1], [0], [0], [1], [0, 0, 1, 1], [], []>} : vector<48x48xbf16>, vector<48x32xbf16>, vector<48x32xf32> -> vector<48x32xf32>
    %241 = vector.extract_strided_slice %217 {offsets = [0, 32], sizes = [48, 32], strides = [1, 1]} : vector<48x192xf32> to vector<48x32xf32>
    %cst_96 = arith.constant 0.176776692 : f32
    %242 = vector.broadcast %cst_96 : f32 to vector<48x32xf32>
    %243 = arith.mulf %241, %242 : vector<48x32xf32>
    %244 = vector.extract_strided_slice %217 {offsets = [0, 96], sizes = [48, 32], strides = [1, 1]} : vector<48x192xf32> to vector<48x32xf32>
    %245 = vector.extract_strided_slice %217 {offsets = [0, 160], sizes = [48, 32], strides = [1, 1]} : vector<48x192xf32> to vector<48x32xf32>
    %246 = arith.truncf %243 : vector<48x32xf32> to vector<48x32xbf16>
    %247 = arith.truncf %244 : vector<48x32xf32> to vector<48x32xbf16>
    %cst_97 = arith.constant dense<0.000000e+00> : vector<48x48xf32>
    %248 = tpu.matmul %246, %247, %cst_97 {dimension_numbers = #tpu.dot_dimension_numbers<[1], [1], [0], [0], [0, 0, 1, 0], [], []>} : vector<48x32xbf16>, vector<48x32xbf16>, vector<48x48xf32> -> vector<48x48xf32>
    %cst_98 = arith.constant -1.000000e+09 : f32
    %249 = vector.broadcast %cst_98 : f32 to vector<48x48xf32>
    %250 = arith.select %33, %248, %249 : vector<48x48xi1>, vector<48x48xf32>
    %cst_99 = arith.constant dense<0xFF800000> : vector<48xf32>
    %251 = vector.multi_reduction <maximumf>, %250, %cst_99 [1] : vector<48x48xf32> to vector<48xf32>
    %252 = vector.shape_cast %251 : vector<48xf32> to vector<48x1xf32>
    %253 = vector.broadcast %252 : vector<48x1xf32> to vector<48x48xf32>
    %254 = arith.subf %250, %253 : vector<48x48xf32>
    %255 = math.exp %254 : vector<48x48xf32>
    %cst_100 = arith.constant dense<0.000000e+00> : vector<48xf32>
    %256 = vector.multi_reduction <add>, %255, %cst_100 [1] : vector<48x48xf32> to vector<48xf32>
    %257 = vector.shape_cast %256 : vector<48xf32> to vector<48x1xf32>
    %258 = tpu.reciprocal %257 {approx = true} : vector<48x1xf32> -> vector<48x1xf32>
    %259 = vector.broadcast %258 : vector<48x1xf32> to vector<48x48xf32>
    %260 = arith.mulf %255, %259 : vector<48x48xf32>
    %261 = arith.truncf %260 : vector<48x48xf32> to vector<48x48xbf16>
    %262 = arith.truncf %245 : vector<48x32xf32> to vector<48x32xbf16>
    %cst_101 = arith.constant dense<0.000000e+00> : vector<48x32xf32>
    %263 = tpu.matmul %261, %262, %cst_101 {dimension_numbers = #tpu.dot_dimension_numbers<[1], [0], [0], [1], [0, 0, 1, 1], [], []>} : vector<48x48xbf16>, vector<48x32xbf16>, vector<48x32xf32> -> vector<48x32xf32>
    %264 = tpu.concatenate %240, %263 in 1 : vector<48x32xf32>, vector<48x32xf32> -> vector<48x64xf32>
    %c1_102 = arith.constant 1 : index
    %c0_103 = arith.constant 0 : index
    %c0_104 = arith.constant 0 : index
    %265 = vector.load %arg13[%c1_102, %c0_103, %c0_104] : memref<2x64x64xbf16, #tpu.memory_space<vmem>>, vector<1x64x64xbf16>
    %266 = vector.shape_cast %265 : vector<1x64x64xbf16> to vector<64x64xbf16>
    %267 = arith.truncf %264 : vector<48x64xf32> to vector<48x64xbf16>
    %cst_105 = arith.constant dense<0.000000e+00> : vector<48x64xf32>
    %268 = tpu.matmul %267, %266, %cst_105 {dimension_numbers = #tpu.dot_dimension_numbers<[1], [0], [0], [1], [0, 0, 1, 1], [], []>} : vector<48x64xbf16>, vector<64x64xbf16>, vector<48x64xf32> -> vector<48x64xf32>
    %269 = arith.addf %181, %268 : vector<48x64xf32>
    %c1_106 = arith.constant 1 : index
    %c0_107 = arith.constant 0 : index
    %270 = vector.load %arg14[%c1_106, %c0_107] : memref<2x64xf32, #tpu.memory_space<vmem>>, vector<1x64xf32>
    %271 = vector.shape_cast %270 : vector<1x64xf32> to vector<64xf32>
    %272 = vector.shape_cast %271 : vector<64xf32> to vector<1x64xf32>
    %273 = vector.broadcast %272 : vector<1x64xf32> to vector<48x64xf32>
    %274 = arith.addf %269, %273 : vector<48x64xf32>
    %c1_108 = arith.constant 1 : index
    %c0_109 = arith.constant 0 : index
    %275 = vector.load %arg15[%c1_108, %c0_109] : memref<2x64xf32, #tpu.memory_space<vmem>>, vector<1x64xf32>
    %276 = vector.shape_cast %275 : vector<1x64xf32> to vector<64xf32>
    %c1_110 = arith.constant 1 : index
    %c0_111 = arith.constant 0 : index
    %277 = vector.load %arg16[%c1_110, %c0_111] : memref<2x64xf32, #tpu.memory_space<vmem>>, vector<1x64xf32>
    %278 = vector.shape_cast %277 : vector<1x64xf32> to vector<64xf32>
    %cst_112 = arith.constant dense<0.000000e+00> : vector<48xf32>
    %279 = vector.multi_reduction <add>, %274, %cst_112 [1] : vector<48x64xf32> to vector<48xf32>
    %280 = vector.shape_cast %279 : vector<48xf32> to vector<48x1xf32>
    %cst_113 = arith.constant 6.400000e+01 : f32
    %281 = vector.broadcast %cst_113 : f32 to vector<48x1xf32>
    %282 = arith.divf %280, %281 : vector<48x1xf32>
    %283 = vector.broadcast %282 : vector<48x1xf32> to vector<48x64xf32>
    %284 = arith.subf %274, %283 : vector<48x64xf32>
    %285 = arith.mulf %284, %284 : vector<48x64xf32>
    %cst_114 = arith.constant dense<0.000000e+00> : vector<48xf32>
    %286 = vector.multi_reduction <add>, %285, %cst_114 [1] : vector<48x64xf32> to vector<48xf32>
    %287 = vector.shape_cast %286 : vector<48xf32> to vector<48x1xf32>
    %cst_115 = arith.constant 6.400000e+01 : f32
    %288 = vector.broadcast %cst_115 : f32 to vector<48x1xf32>
    %289 = arith.divf %287, %288 : vector<48x1xf32>
    %290 = vector.broadcast %282 : vector<48x1xf32> to vector<48x64xf32>
    %291 = arith.subf %274, %290 : vector<48x64xf32>
    %cst_116 = arith.constant 9.99999974E-6 : f32
    %292 = vector.broadcast %cst_116 : f32 to vector<48x1xf32>
    %293 = arith.addf %289, %292 : vector<48x1xf32>
    %294 = math.rsqrt %293 : vector<48x1xf32>
    %295 = vector.broadcast %294 : vector<48x1xf32> to vector<48x64xf32>
    %296 = arith.mulf %291, %295 : vector<48x64xf32>
    %297 = vector.shape_cast %276 : vector<64xf32> to vector<1x64xf32>
    %298 = vector.broadcast %297 : vector<1x64xf32> to vector<48x64xf32>
    %299 = arith.mulf %296, %298 : vector<48x64xf32>
    %300 = vector.shape_cast %278 : vector<64xf32> to vector<1x64xf32>
    %301 = vector.broadcast %300 : vector<1x64xf32> to vector<48x64xf32>
    %302 = arith.addf %299, %301 : vector<48x64xf32>
    %c1_117 = arith.constant 1 : index
    %c0_118 = arith.constant 0 : index
    %c0_119 = arith.constant 0 : index
    %303 = vector.load %arg17[%c1_117, %c0_118, %c0_119] : memref<2x64x256xbf16, #tpu.memory_space<vmem>>, vector<1x64x256xbf16>
    %304 = vector.shape_cast %303 : vector<1x64x256xbf16> to vector<64x256xbf16>
    %305 = arith.truncf %302 : vector<48x64xf32> to vector<48x64xbf16>
    %cst_120 = arith.constant dense<0.000000e+00> : vector<48x256xf32>
    %306 = tpu.matmul %305, %304, %cst_120 {dimension_numbers = #tpu.dot_dimension_numbers<[1], [0], [0], [1], [0, 0, 1, 1], [], []>} : vector<48x64xbf16>, vector<64x256xbf16>, vector<48x256xf32> -> vector<48x256xf32>
    %c1_121 = arith.constant 1 : index
    %c0_122 = arith.constant 0 : index
    %307 = vector.load %arg18[%c1_121, %c0_122] : memref<2x256xf32, #tpu.memory_space<vmem>>, vector<1x256xf32>
    %308 = vector.shape_cast %307 : vector<1x256xf32> to vector<256xf32>
    %309 = vector.shape_cast %308 : vector<256xf32> to vector<1x256xf32>
    %310 = vector.broadcast %309 : vector<1x256xf32> to vector<48x256xf32>
    %311 = arith.addf %306, %310 : vector<48x256xf32>
    %cst_123 = arith.constant 1.702000e+00 : f32
    %312 = vector.broadcast %cst_123 : f32 to vector<48x256xf32>
    %313 = arith.mulf %312, %311 : vector<48x256xf32>
    %314 = arith.negf %313 : vector<48x256xf32>
    %315 = math.exp %314 : vector<48x256xf32>
    %cst_124 = arith.constant 1.000000e+00 : f32
    %316 = vector.broadcast %cst_124 : f32 to vector<48x256xf32>
    %317 = arith.addf %316, %315 : vector<48x256xf32>
    %318 = arith.divf %316, %317 : vector<48x256xf32>
    %319 = arith.mulf %311, %318 : vector<48x256xf32>
    %c1_125 = arith.constant 1 : index
    %c0_126 = arith.constant 0 : index
    %c0_127 = arith.constant 0 : index
    %320 = vector.load %arg19[%c1_125, %c0_126, %c0_127] : memref<2x256x64xbf16, #tpu.memory_space<vmem>>, vector<1x256x64xbf16>
    %321 = vector.shape_cast %320 : vector<1x256x64xbf16> to vector<256x64xbf16>
    %322 = arith.truncf %319 : vector<48x256xf32> to vector<48x256xbf16>
    %cst_128 = arith.constant dense<0.000000e+00> : vector<48x64xf32>
    %323 = tpu.matmul %322, %321, %cst_128 {dimension_numbers = #tpu.dot_dimension_numbers<[1], [0], [0], [1], [0, 0, 1, 1], [], []>} : vector<48x256xbf16>, vector<256x64xbf16>, vector<48x64xf32> -> vector<48x64xf32>
    %324 = arith.addf %274, %323 : vector<48x64xf32>
    %c1_129 = arith.constant 1 : index
    %c0_130 = arith.constant 0 : index
    %325 = vector.load %arg20[%c1_129, %c0_130] : memref<2x64xf32, #tpu.memory_space<vmem>>, vector<1x64xf32>
    %326 = vector.shape_cast %325 : vector<1x64xf32> to vector<64xf32>
    %327 = vector.shape_cast %326 : vector<64xf32> to vector<1x64xf32>
    %328 = vector.broadcast %327 : vector<1x64xf32> to vector<48x64xf32>
    %329 = arith.addf %324, %328 : vector<48x64xf32>
    %c0_131 = arith.constant 0 : index
    %c0_132 = arith.constant 0 : index
    %330 = vector.load %arg6[%c0_131, %c0_132] : memref<2x48xf32, #tpu.memory_space<vmem>>, vector<2x48xf32>
    %331 = arith.truncf %330 : vector<2x48xf32> to vector<2x48xbf16>
    %332 = arith.truncf %329 : vector<48x64xf32> to vector<48x64xbf16>
    %cst_133 = arith.constant dense<0.000000e+00> : vector<2x64xf32>
    %333 = tpu.matmul %331, %332, %cst_133 {dimension_numbers = #tpu.dot_dimension_numbers<[1], [0], [0], [1], [0, 0, 1, 1], [], []>} : vector<2x48xbf16>, vector<48x64xbf16>, vector<2x64xf32> -> vector<2x64xf32>
    %c0_134 = arith.constant 0 : index
    %c0_135 = arith.constant 0 : index
    %334 = vector.load %arg21[%c0_134, %c0_135] : memref<1x64xf32, #tpu.memory_space<vmem>>, vector<1x64xf32>
    %c0_136 = arith.constant 0 : index
    %c0_137 = arith.constant 0 : index
    %335 = vector.load %arg22[%c0_136, %c0_137] : memref<1x64xf32, #tpu.memory_space<vmem>>, vector<1x64xf32>
    %cst_138 = arith.constant dense<0.000000e+00> : vector<2xf32>
    %336 = vector.multi_reduction <add>, %333, %cst_138 [1] : vector<2x64xf32> to vector<2xf32>
    %337 = vector.shape_cast %336 : vector<2xf32> to vector<2x1xf32>
    %cst_139 = arith.constant 6.400000e+01 : f32
    %338 = vector.broadcast %cst_139 : f32 to vector<2x1xf32>
    %339 = arith.divf %337, %338 : vector<2x1xf32>
    %340 = vector.broadcast %339 : vector<2x1xf32> to vector<2x64xf32>
    %341 = arith.subf %333, %340 : vector<2x64xf32>
    %342 = arith.mulf %341, %341 : vector<2x64xf32>
    %cst_140 = arith.constant dense<0.000000e+00> : vector<2xf32>
    %343 = vector.multi_reduction <add>, %342, %cst_140 [1] : vector<2x64xf32> to vector<2xf32>
    %344 = vector.shape_cast %343 : vector<2xf32> to vector<2x1xf32>
    %cst_141 = arith.constant 6.400000e+01 : f32
    %345 = vector.broadcast %cst_141 : f32 to vector<2x1xf32>
    %346 = arith.divf %344, %345 : vector<2x1xf32>
    %347 = vector.broadcast %339 : vector<2x1xf32> to vector<2x64xf32>
    %348 = arith.subf %333, %347 : vector<2x64xf32>
    %cst_142 = arith.constant 9.99999974E-6 : f32
    %349 = vector.broadcast %cst_142 : f32 to vector<2x1xf32>
    %350 = arith.addf %346, %349 : vector<2x1xf32>
    %351 = math.rsqrt %350 : vector<2x1xf32>
    %352 = vector.broadcast %351 : vector<2x1xf32> to vector<2x64xf32>
    %353 = arith.mulf %348, %352 : vector<2x64xf32>
    %354 = vector.broadcast %334 : vector<1x64xf32> to vector<2x64xf32>
    %355 = arith.mulf %353, %354 : vector<2x64xf32>
    %356 = vector.broadcast %335 : vector<1x64xf32> to vector<2x64xf32>
    %357 = arith.addf %355, %356 : vector<2x64xf32>
    %c0_143 = arith.constant 0 : index
    %c0_144 = arith.constant 0 : index
    %358 = vector.load %arg23[%c0_143, %c0_144] : memref<64x32xbf16, #tpu.memory_space<vmem>>, vector<64x32xbf16>
    %359 = arith.truncf %357 : vector<2x64xf32> to vector<2x64xbf16>
    %cst_145 = arith.constant dense<0.000000e+00> : vector<2x32xf32>
    %360 = tpu.matmul %359, %358, %cst_145 {dimension_numbers = #tpu.dot_dimension_numbers<[1], [0], [0], [1], [0, 0, 1, 1], [], []>} : vector<2x64xbf16>, vector<64x32xbf16>, vector<2x32xf32> -> vector<2x32xf32>
    %c0_146 = arith.constant 0 : index
    %c0_147 = arith.constant 0 : index
    %361 = vector.load %arg24[%c0_146, %c0_147] : memref<32x64xbf16, #tpu.memory_space<vmem>>, vector<32x64xbf16>
    %362 = arith.truncf %360 : vector<2x32xf32> to vector<2x32xbf16>
    %cst_148 = arith.constant dense<0.000000e+00> : vector<2x64xf32>
    %363 = tpu.matmul %362, %361, %cst_148 {dimension_numbers = #tpu.dot_dimension_numbers<[1], [0], [0], [1], [0, 0, 1, 1], [], []>} : vector<2x32xbf16>, vector<32x64xbf16>, vector<2x64xf32> -> vector<2x64xf32>
    %c0_149 = arith.constant 0 : index
    %c0_150 = arith.constant 0 : index
    %364 = vector.load %arg25[%c0_149, %c0_150] : memref<1x64xf32, #tpu.memory_space<vmem>>, vector<1x64xf32>
    %365 = vector.broadcast %364 : vector<1x64xf32> to vector<2x64xf32>
    %366 = arith.addf %363, %365 : vector<2x64xf32>
    %cst_151 = arith.constant 0.000000e+00 : f32
    %367 = vector.broadcast %cst_151 : f32 to vector<2x64xf32>
    %368 = arith.maximumf %366, %367 : vector<2x64xf32>
    %c0_152 = arith.constant 0 : index
    %c0_153 = arith.constant 0 : index
    %369 = vector.load %arg26[%c0_152, %c0_153] : memref<64x256xbf16, #tpu.memory_space<vmem>>, vector<64x256xbf16>
    %370 = arith.truncf %368 : vector<2x64xf32> to vector<2x64xbf16>
    %cst_154 = arith.constant dense<0.000000e+00> : vector<2x256xf32>
    %371 = tpu.matmul %370, %369, %cst_154 {dimension_numbers = #tpu.dot_dimension_numbers<[1], [0], [0], [1], [0, 0, 1, 1], [], []>} : vector<2x64xbf16>, vector<64x256xbf16>, vector<2x256xf32> -> vector<2x256xf32>
    %c0_155 = arith.constant 0 : index
    %c0_156 = arith.constant 0 : index
    %372 = vector.load %arg27[%c0_155, %c0_156] : memref<1x256xf32, #tpu.memory_space<vmem>>, vector<1x256xf32>
    %373 = vector.broadcast %372 : vector<1x256xf32> to vector<2x256xf32>
    %374 = arith.addf %371, %373 : vector<2x256xf32>
    %375 = arith.truncf %374 : vector<2x256xf32> to vector<2x256xbf16>
    %c0_157 = arith.constant 0 : index
    %c0_158 = arith.constant 0 : index
    %376 = vector.load %arg28[%c0_157, %c0_158] : memref<2x256xbf16, #tpu.memory_space<vmem>>, vector<2x256xbf16>
    tpu.vector_store %arg28[%c0_157, %c0_158], %375 {strides = array<i32>} : memref<2x256xbf16, #tpu.memory_space<vmem>>, vector<2x256xbf16>,
    return
  }
  func.func @transform_0(%arg0: i32) -> (i32, i32) {
    %c0_i32 = arith.constant 0 : i32
    %c0_i32_0 = arith.constant 0 : i32
    %c0_i32_1 = arith.constant 0 : i32
    return %c0_i32, %c0_i32_0 : i32, i32
  }
  func.func @transform_1(%arg0: i32) -> (i32, i32) {
    %c0_i32 = arith.constant 0 : i32
    %c0_i32_0 = arith.constant 0 : i32
    %c0_i32_1 = arith.constant 0 : i32
    return %c0_i32, %c0_i32_0 : i32, i32
  }
  func.func @transform_2(%arg0: i32) -> (i32, i32) {
    %c0_i32 = arith.constant 0 : i32
    %c0_i32_0 = arith.constant 0 : i32
    %c0_i32_1 = arith.constant 0 : i32
    return %c0_i32, %c0_i32_0 : i32, i32
  }
  func.func @transform_3(%arg0: i32) -> (i32, i32) {
    %c0_i32 = arith.constant 0 : i32
    %c0_i32_0 = arith.constant 0 : i32
    %c0_i32_1 = arith.constant 0 : i32
    return %c0_i32, %c0_i32_0 : i32, i32
  }
  func.func @transform_4(%arg0: i32) -> (i32, i32) {
    %c0_i32 = arith.constant 0 : i32
    %c0_i32_0 = arith.constant 0 : i32
    %c0_i32_1 = arith.constant 0 : i32
    return %c0_i32, %c0_i32_0 : i32, i32
  }
  func.func @transform_5(%arg0: i32) -> (i32, i32) {
    %c0_i32 = arith.constant 0 : i32
    %c0_i32_0 = arith.constant 0 : i32
    %c0_i32_1 = arith.constant 0 : i32
    return %c0_i32, %c0_i32_0 : i32, i32
  }
  func.func @transform_6(%arg0: i32) -> (i32, i32) {
    %c0_i32 = arith.constant 0 : i32
    %c0_i32_0 = arith.constant 0 : i32
    %c0_i32_1 = arith.constant 0 : i32
    return %c0_i32, %c0_i32_0 : i32, i32
  }
  func.func @transform_7(%arg0: i32) -> (i32, i32) {
    %c0_i32 = arith.constant 0 : i32
    %c0_i32_0 = arith.constant 0 : i32
    %c0_i32_1 = arith.constant 0 : i32
    return %c0_i32, %c0_i32_0 : i32, i32
  }
  func.func @transform_8(%arg0: i32) -> (i32, i32) {
    %c0_i32 = arith.constant 0 : i32
    %c0_i32_0 = arith.constant 0 : i32
    %c0_i32_1 = arith.constant 0 : i32
    return %c0_i32, %c0_i32_0 : i32, i32
  }
  func.func @transform_9(%arg0: i32) -> (i32, i32) {
    %c0_i32 = arith.constant 0 : i32
    %c0_i32_0 = arith.constant 0 : i32
    %c0_i32_1 = arith.constant 0 : i32
    return %c0_i32, %c0_i32_0 : i32, i32
  }
  func.func @transform_10(%arg0: i32) -> (i32, i32, i32) {
    %c0_i32 = arith.constant 0 : i32
    %c0_i32_0 = arith.constant 0 : i32
    %c0_i32_1 = arith.constant 0 : i32
    %c0_i32_2 = arith.constant 0 : i32
    return %c0_i32, %c0_i32_0, %c0_i32_1 : i32, i32, i32
  }
  func.func @transform_11(%arg0: i32) -> (i32, i32, i32) {
    %c0_i32 = arith.constant 0 : i32
    %c0_i32_0 = arith.constant 0 : i32
    %c0_i32_1 = arith.constant 0 : i32
    %c0_i32_2 = arith.constant 0 : i32
    return %c0_i32, %c0_i32_0, %c0_i32_1 : i32, i32, i32
  }
  func.func @transform_12(%arg0: i32) -> (i32, i32, i32) {
    %c0_i32 = arith.constant 0 : i32
    %c0_i32_0 = arith.constant 0 : i32
    %c0_i32_1 = arith.constant 0 : i32
    %c0_i32_2 = arith.constant 0 : i32
    return %c0_i32, %c0_i32_0, %c0_i32_1 : i32, i32, i32
  }
  func.func @transform_13(%arg0: i32) -> (i32, i32) {
    %c0_i32 = arith.constant 0 : i32
    %c0_i32_0 = arith.constant 0 : i32
    %c0_i32_1 = arith.constant 0 : i32
    return %c0_i32, %c0_i32_0 : i32, i32
  }
  func.func @transform_14(%arg0: i32) -> (i32, i32) {
    %c0_i32 = arith.constant 0 : i32
    %c0_i32_0 = arith.constant 0 : i32
    %c0_i32_1 = arith.constant 0 : i32
    return %c0_i32, %c0_i32_0 : i32, i32
  }
  func.func @transform_15(%arg0: i32) -> (i32, i32) {
    %c0_i32 = arith.constant 0 : i32
    %c0_i32_0 = arith.constant 0 : i32
    %c0_i32_1 = arith.constant 0 : i32
    return %c0_i32, %c0_i32_0 : i32, i32
  }
  func.func @transform_16(%arg0: i32) -> (i32, i32, i32) {
    %c0_i32 = arith.constant 0 : i32
    %c0_i32_0 = arith.constant 0 : i32
    %c0_i32_1 = arith.constant 0 : i32
    %c0_i32_2 = arith.constant 0 : i32
    return %c0_i32, %c0_i32_0, %c0_i32_1 : i32, i32, i32
  }
  func.func @transform_17(%arg0: i32) -> (i32, i32) {
    %c0_i32 = arith.constant 0 : i32
    %c0_i32_0 = arith.constant 0 : i32
    %c0_i32_1 = arith.constant 0 : i32
    return %c0_i32, %c0_i32_0 : i32, i32
  }
  func.func @transform_18(%arg0: i32) -> (i32, i32, i32) {
    %c0_i32 = arith.constant 0 : i32
    %c0_i32_0 = arith.constant 0 : i32
    %c0_i32_1 = arith.constant 0 : i32
    %c0_i32_2 = arith.constant 0 : i32
    return %c0_i32, %c0_i32_0, %c0_i32_1 : i32, i32, i32
  }
  func.func @transform_19(%arg0: i32) -> (i32, i32) {
    %c0_i32 = arith.constant 0 : i32
    %c0_i32_0 = arith.constant 0 : i32
    %c0_i32_1 = arith.constant 0 : i32
    return %c0_i32, %c0_i32_0 : i32, i32
  }
  func.func @transform_20(%arg0: i32) -> (i32, i32) {
    %c0_i32 = arith.constant 0 : i32
    %c0_i32_0 = arith.constant 0 : i32
    %c0_i32_1 = arith.constant 0 : i32
    return %c0_i32, %c0_i32_0 : i32, i32
  }
  func.func @transform_21(%arg0: i32) -> (i32, i32) {
    %c0_i32 = arith.constant 0 : i32
    %c0_i32_0 = arith.constant 0 : i32
    %c0_i32_1 = arith.constant 0 : i32
    return %c0_i32, %c0_i32_0 : i32, i32
  }
  func.func @transform_22(%arg0: i32) -> (i32, i32) {
    %c0_i32 = arith.constant 0 : i32
    %c0_i32_0 = arith.constant 0 : i32
    %c0_i32_1 = arith.constant 0 : i32
    return %c0_i32, %c0_i32_0 : i32, i32
  }
  func.func @transform_23(%arg0: i32) -> (i32, i32) {
    %c0_i32 = arith.constant 0 : i32
    %c0_i32_0 = arith.constant 0 : i32
    %c0_i32_1 = arith.constant 0 : i32
    return %c0_i32, %c0_i32_0 : i32, i32
  }
  func.func @transform_24(%arg0: i32) -> (i32, i32) {
    %c0_i32 = arith.constant 0 : i32
    %c0_i32_0 = arith.constant 0 : i32
    %c0_i32_1 = arith.constant 0 : i32
    return %c0_i32, %c0_i32_0 : i32, i32
  }
  func.func @transform_25(%arg0: i32) -> (i32, i32) {
    %c0_i32 = arith.constant 0 : i32
    %c0_i32_0 = arith.constant 0 : i32
    %c0_i32_1 = arith.constant 0 : i32
    return %c0_i32, %c0_i32_0 : i32, i32
  }
  func.func @transform_26(%arg0: i32) -> (i32, i32) {
    %c0_i32 = arith.constant 0 : i32
    %c0_i32_0 = arith.constant 0 : i32
    %c0_i32_1 = arith.constant 0 : i32
    return %c0_i32, %c0_i32_0 : i32, i32
  }
  func.func @transform_27(%arg0: i32) -> (i32, i32) {
    %c0_i32 = arith.constant 0 : i32
    %c0_i32_0 = arith.constant 0 : i32
    %c0_i32_1 = arith.constant 0 : i32
    return %c0_i32, %c0_i32_0 : i32, i32
  }
}

module attributes {stable_mosaic.version = 11 : i64} {
  func.func @_gpt2_stack_kernel(%arg0: i32, %arg1: memref<32x32xbf16, #tpu.memory_space<vmem>>, %arg2: memref<32x32xf32, #tpu.memory_space<vmem>>, %arg3: memref<32x1xi32, #tpu.memory_space<vmem>>, %arg4: memref<1x32xi32, #tpu.memory_space<vmem>>, %arg5: memref<2x32xf32, #tpu.memory_space<vmem>>, %arg6: memref<2x32xf32, #tpu.memory_space<vmem>>, %arg7: memref<2x32x96xbf16, #tpu.memory_space<vmem>>, %arg8: memref<2x1x96xf32, #tpu.memory_space<vmem>>, %arg9: memref<2x32x32xbf16, #tpu.memory_space<vmem>>, %arg10: memref<2x32xf32, #tpu.memory_space<vmem>>, %arg11: memref<2x32xf32, #tpu.memory_space<vmem>>, %arg12: memref<2x32xf32, #tpu.memory_space<vmem>>, %arg13: memref<2x32x128xbf16, #tpu.memory_space<vmem>>, %arg14: memref<2x128xf32, #tpu.memory_space<vmem>>, %arg15: memref<2x128x32xbf16, #tpu.memory_space<vmem>>, %arg16: memref<2x32xf32, #tpu.memory_space<vmem>>, %arg17: memref<1x32xf32, #tpu.memory_space<vmem>>, %arg18: memref<1x32xf32, #tpu.memory_space<vmem>>, %arg19: memref<128x32xbf16, #tpu.memory_space<vmem>>, %arg20: memref<32x128xbf16, #tpu.memory_space<vmem>>) attributes {dimension_semantics = [#tpu.dimension_semantics<arbitrary>], iteration_bounds = array<i64: 1>, scalar_prefetch = 0 : i64, scratch_operands = 0 : i64, tpu.core_type = #tpu.core_type<tc>, window_params = [{pipeline_mode = #tpu.pipeline_mode<synchronous>, transform_indices = @transform_0, window_bounds = array<i64: 32, 32>}, {pipeline_mode = #tpu.pipeline_mode<synchronous>, transform_indices = @transform_1, window_bounds = array<i64: 32, 32>}, {pipeline_mode = #tpu.pipeline_mode<synchronous>, transform_indices = @transform_2, window_bounds = array<i64: 32, 1>}, {pipeline_mode = #tpu.pipeline_mode<synchronous>, transform_indices = @transform_3, window_bounds = array<i64: 1, 32>}, {pipeline_mode = #tpu.pipeline_mode<synchronous>, transform_indices = @transform_4, window_bounds = array<i64: 2, 32>}, {pipeline_mode = #tpu.pipeline_mode<synchronous>, transform_indices = @transform_5, window_bounds = array<i64: 2, 32>}, {pipeline_mode = #tpu.pipeline_mode<synchronous>, transform_indices = @transform_6, window_bounds = array<i64: 2, 32, 96>}, {pipeline_mode = #tpu.pipeline_mode<synchronous>, transform_indices = @transform_7, window_bounds = array<i64: 2, 1, 96>}, {pipeline_mode = #tpu.pipeline_mode<synchronous>, transform_indices = @transform_8, window_bounds = array<i64: 2, 32, 32>}, {pipeline_mode = #tpu.pipeline_mode<synchronous>, transform_indices = @transform_9, window_bounds = array<i64: 2, 32>}, {pipeline_mode = #tpu.pipeline_mode<synchronous>, transform_indices = @transform_10, window_bounds = array<i64: 2, 32>}, {pipeline_mode = #tpu.pipeline_mode<synchronous>, transform_indices = @transform_11, window_bounds = array<i64: 2, 32>}, {pipeline_mode = #tpu.pipeline_mode<synchronous>, transform_indices = @transform_12, window_bounds = array<i64: 2, 32, 128>}, {pipeline_mode = #tpu.pipeline_mode<synchronous>, transform_indices = @transform_13, window_bounds = array<i64: 2, 128>}, {pipeline_mode = #tpu.pipeline_mode<synchronous>, transform_indices = @transform_14, window_bounds = array<i64: 2, 128, 32>}, {pipeline_mode = #tpu.pipeline_mode<synchronous>, transform_indices = @transform_15, window_bounds = array<i64: 2, 32>}, {pipeline_mode = #tpu.pipeline_mode<synchronous>, transform_indices = @transform_16, window_bounds = array<i64: 1, 32>}, {pipeline_mode = #tpu.pipeline_mode<synchronous>, transform_indices = @transform_17, window_bounds = array<i64: 1, 32>}, {pipeline_mode = #tpu.pipeline_mode<synchronous>, transform_indices = @transform_18, window_bounds = array<i64: 128, 32>}, {pipeline_mode = #tpu.pipeline_mode<synchronous>, transform_indices = @transform_19, window_bounds = array<i64: 32, 128>}]} {
    %c0 = arith.constant 0 : index
    %c0_0 = arith.constant 0 : index
    %0 = vector.load %arg1[%c0, %c0_0] : memref<32x32xbf16, #tpu.memory_space<vmem>>, vector<32x32xbf16>
    %1 = arith.extf %0 : vector<32x32xbf16> to vector<32x32xf32>
    %c0_1 = arith.constant 0 : index
    %c0_2 = arith.constant 0 : index
    %2 = vector.load %arg2[%c0_1, %c0_2] : memref<32x32xf32, #tpu.memory_space<vmem>>, vector<32x32xf32>
    %3 = arith.addf %1, %2 : vector<32x32xf32>
    %4 = tpu.iota {dimensions = array<i32: 0>} : vector<32x32xi32>
    %5 = tpu.iota {dimensions = array<i32: 1>} : vector<32x32xi32>
    %6 = arith.cmpi sle, %5, %4 : vector<32x32xi32>
    %c0_3 = arith.constant 0 : index
    %c0_4 = arith.constant 0 : index
    %7 = vector.load %arg3[%c0_3, %c0_4] : memref<32x1xi32, #tpu.memory_space<vmem>>, vector<32x1xi32>
    %c0_5 = arith.constant 0 : index
    %c0_6 = arith.constant 0 : index
    %8 = vector.load %arg4[%c0_5, %c0_6] : memref<1x32xi32, #tpu.memory_space<vmem>>, vector<1x32xi32>
    %9 = vector.broadcast %7 : vector<32x1xi32> to vector<32x32xi32>
    %10 = vector.broadcast %8 : vector<1x32xi32> to vector<32x32xi32>
    %11 = arith.cmpi eq, %9, %10 : vector<32x32xi32>
    %12 = arith.andi %6, %11 : vector<32x32xi1>
    %c0_7 = arith.constant 0 : index
    %c0_8 = arith.constant 0 : index
    %13 = vector.load %arg5[%c0_7, %c0_8] : memref<2x32xf32, #tpu.memory_space<vmem>>, vector<1x32xf32>
    %14 = vector.shape_cast %13 : vector<1x32xf32> to vector<32xf32>
    %c0_9 = arith.constant 0 : index
    %c0_10 = arith.constant 0 : index
    %15 = vector.load %arg6[%c0_9, %c0_10] : memref<2x32xf32, #tpu.memory_space<vmem>>, vector<1x32xf32>
    %16 = vector.shape_cast %15 : vector<1x32xf32> to vector<32xf32>
    %cst = arith.constant dense<0.000000e+00> : vector<32xf32>
    %17 = vector.multi_reduction <add>, %3, %cst [1] : vector<32x32xf32> to vector<32xf32>
    %18 = vector.shape_cast %17 : vector<32xf32> to vector<32x1xf32>
    %cst_11 = arith.constant 3.200000e+01 : f32
    %19 = vector.broadcast %cst_11 : f32 to vector<32x1xf32>
    %20 = arith.divf %18, %19 : vector<32x1xf32>
    %21 = vector.broadcast %20 : vector<32x1xf32> to vector<32x32xf32>
    %22 = arith.subf %3, %21 : vector<32x32xf32>
    %23 = arith.mulf %22, %22 : vector<32x32xf32>
    %cst_12 = arith.constant dense<0.000000e+00> : vector<32xf32>
    %24 = vector.multi_reduction <add>, %23, %cst_12 [1] : vector<32x32xf32> to vector<32xf32>
    %25 = vector.shape_cast %24 : vector<32xf32> to vector<32x1xf32>
    %cst_13 = arith.constant 3.200000e+01 : f32
    %26 = vector.broadcast %cst_13 : f32 to vector<32x1xf32>
    %27 = arith.divf %25, %26 : vector<32x1xf32>
    %28 = vector.broadcast %20 : vector<32x1xf32> to vector<32x32xf32>
    %29 = arith.subf %3, %28 : vector<32x32xf32>
    %cst_14 = arith.constant 9.99999974E-6 : f32
    %30 = vector.broadcast %cst_14 : f32 to vector<32x1xf32>
    %31 = arith.addf %27, %30 : vector<32x1xf32>
    %32 = math.rsqrt %31 : vector<32x1xf32>
    %33 = vector.broadcast %32 : vector<32x1xf32> to vector<32x32xf32>
    %34 = arith.mulf %29, %33 : vector<32x32xf32>
    %35 = vector.shape_cast %14 : vector<32xf32> to vector<1x32xf32>
    %36 = vector.broadcast %35 : vector<1x32xf32> to vector<32x32xf32>
    %37 = arith.mulf %34, %36 : vector<32x32xf32>
    %38 = vector.shape_cast %16 : vector<32xf32> to vector<1x32xf32>
    %39 = vector.broadcast %38 : vector<1x32xf32> to vector<32x32xf32>
    %40 = arith.addf %37, %39 : vector<32x32xf32>
    %c0_15 = arith.constant 0 : index
    %c0_16 = arith.constant 0 : index
    %c0_17 = arith.constant 0 : index
    %41 = vector.load %arg7[%c0_15, %c0_16, %c0_17] : memref<2x32x96xbf16, #tpu.memory_space<vmem>>, vector<1x32x96xbf16>
    %42 = vector.shape_cast %41 : vector<1x32x96xbf16> to vector<32x96xbf16>
    %43 = arith.truncf %40 : vector<32x32xf32> to vector<32x32xbf16>
    %cst_18 = arith.constant dense<0.000000e+00> : vector<32x96xf32>
    %44 = tpu.matmul %43, %42, %cst_18 {dimension_numbers = #tpu.dot_dimension_numbers<[1], [0], [0], [1], [0, 0, 1, 1], [], []>} : vector<32x32xbf16>, vector<32x96xbf16>, vector<32x96xf32> -> vector<32x96xf32>
    %c0_19 = arith.constant 0 : index
    %c0_20 = arith.constant 0 : index
    %c0_21 = arith.constant 0 : index
    %45 = vector.load %arg8[%c0_19, %c0_20, %c0_21] : memref<2x1x96xf32, #tpu.memory_space<vmem>>, vector<1x1x96xf32>
    %46 = vector.shape_cast %45 : vector<1x1x96xf32> to vector<1x96xf32>
    %47 = vector.broadcast %46 : vector<1x96xf32> to vector<32x96xf32>
    %48 = arith.addf %44, %47 : vector<32x96xf32>
    %49 = vector.extract_strided_slice %48 {offsets = [0, 0], sizes = [32, 16], strides = [1, 1]} : vector<32x96xf32> to vector<32x16xf32>
    %cst_22 = arith.constant 2.500000e-01 : f32
    %50 = vector.broadcast %cst_22 : f32 to vector<32x16xf32>
    %51 = arith.mulf %49, %50 : vector<32x16xf32>
    %52 = vector.extract_strided_slice %48 {offsets = [0, 32], sizes = [32, 16], strides = [1, 1]} : vector<32x96xf32> to vector<32x16xf32>
    %53 = vector.extract_strided_slice %48 {offsets = [0, 64], sizes = [32, 16], strides = [1, 1]} : vector<32x96xf32> to vector<32x16xf32>
    %54 = arith.truncf %51 : vector<32x16xf32> to vector<32x16xbf16>
    %55 = arith.truncf %52 : vector<32x16xf32> to vector<32x16xbf16>
    %cst_23 = arith.constant dense<0.000000e+00> : vector<32x32xf32>
    %56 = tpu.matmul %54, %55, %cst_23 {dimension_numbers = #tpu.dot_dimension_numbers<[1], [1], [0], [0], [0, 0, 1, 0], [], []>} : vector<32x16xbf16>, vector<32x16xbf16>, vector<32x32xf32> -> vector<32x32xf32>
    %cst_24 = arith.constant -1.000000e+09 : f32
    %57 = vector.broadcast %cst_24 : f32 to vector<32x32xf32>
    %58 = arith.select %12, %56, %57 : vector<32x32xi1>, vector<32x32xf32>
    %cst_25 = arith.constant dense<0xFF800000> : vector<32xf32>
    %59 = vector.multi_reduction <maximumf>, %58, %cst_25 [1] : vector<32x32xf32> to vector<32xf32>
    %60 = vector.shape_cast %59 : vector<32xf32> to vector<32x1xf32>
    %61 = vector.broadcast %60 : vector<32x1xf32> to vector<32x32xf32>
    %62 = arith.subf %58, %61 : vector<32x32xf32>
    %63 = math.exp %62 : vector<32x32xf32>
    %cst_26 = arith.constant dense<0.000000e+00> : vector<32xf32>
    %64 = vector.multi_reduction <add>, %63, %cst_26 [1] : vector<32x32xf32> to vector<32xf32>
    %65 = vector.shape_cast %64 : vector<32xf32> to vector<32x1xf32>
    %66 = tpu.reciprocal %65 {approx = true} : vector<32x1xf32> -> vector<32x1xf32>
    %67 = vector.broadcast %66 : vector<32x1xf32> to vector<32x32xf32>
    %68 = arith.mulf %63, %67 : vector<32x32xf32>
    %69 = arith.truncf %68 : vector<32x32xf32> to vector<32x32xbf16>
    %70 = arith.truncf %53 : vector<32x16xf32> to vector<32x16xbf16>
    %cst_27 = arith.constant dense<0.000000e+00> : vector<32x16xf32>
    %71 = tpu.matmul %69, %70, %cst_27 {dimension_numbers = #tpu.dot_dimension_numbers<[1], [0], [0], [1], [0, 0, 1, 1], [], []>} : vector<32x32xbf16>, vector<32x16xbf16>, vector<32x16xf32> -> vector<32x16xf32>
    %72 = vector.extract_strided_slice %48 {offsets = [0, 16], sizes = [32, 16], strides = [1, 1]} : vector<32x96xf32> to vector<32x16xf32>
    %cst_28 = arith.constant 2.500000e-01 : f32
    %73 = vector.broadcast %cst_28 : f32 to vector<32x16xf32>
    %74 = arith.mulf %72, %73 : vector<32x16xf32>
    %75 = vector.extract_strided_slice %48 {offsets = [0, 48], sizes = [32, 16], strides = [1, 1]} : vector<32x96xf32> to vector<32x16xf32>
    %76 = vector.extract_strided_slice %48 {offsets = [0, 80], sizes = [32, 16], strides = [1, 1]} : vector<32x96xf32> to vector<32x16xf32>
    %77 = arith.truncf %74 : vector<32x16xf32> to vector<32x16xbf16>
    %78 = arith.truncf %75 : vector<32x16xf32> to vector<32x16xbf16>
    %cst_29 = arith.constant dense<0.000000e+00> : vector<32x32xf32>
    %79 = tpu.matmul %77, %78, %cst_29 {dimension_numbers = #tpu.dot_dimension_numbers<[1], [1], [0], [0], [0, 0, 1, 0], [], []>} : vector<32x16xbf16>, vector<32x16xbf16>, vector<32x32xf32> -> vector<32x32xf32>
    %cst_30 = arith.constant -1.000000e+09 : f32
    %80 = vector.broadcast %cst_30 : f32 to vector<32x32xf32>
    %81 = arith.select %12, %79, %80 : vector<32x32xi1>, vector<32x32xf32>
    %cst_31 = arith.constant dense<0xFF800000> : vector<32xf32>
    %82 = vector.multi_reduction <maximumf>, %81, %cst_31 [1] : vector<32x32xf32> to vector<32xf32>
    %83 = vector.shape_cast %82 : vector<32xf32> to vector<32x1xf32>
    %84 = vector.broadcast %83 : vector<32x1xf32> to vector<32x32xf32>
    %85 = arith.subf %81, %84 : vector<32x32xf32>
    %86 = math.exp %85 : vector<32x32xf32>
    %cst_32 = arith.constant dense<0.000000e+00> : vector<32xf32>
    %87 = vector.multi_reduction <add>, %86, %cst_32 [1] : vector<32x32xf32> to vector<32xf32>
    %88 = vector.shape_cast %87 : vector<32xf32> to vector<32x1xf32>
    %89 = tpu.reciprocal %88 {approx = true} : vector<32x1xf32> -> vector<32x1xf32>
    %90 = vector.broadcast %89 : vector<32x1xf32> to vector<32x32xf32>
    %91 = arith.mulf %86, %90 : vector<32x32xf32>
    %92 = arith.truncf %91 : vector<32x32xf32> to vector<32x32xbf16>
    %93 = arith.truncf %76 : vector<32x16xf32> to vector<32x16xbf16>
    %cst_33 = arith.constant dense<0.000000e+00> : vector<32x16xf32>
    %94 = tpu.matmul %92, %93, %cst_33 {dimension_numbers = #tpu.dot_dimension_numbers<[1], [0], [0], [1], [0, 0, 1, 1], [], []>} : vector<32x32xbf16>, vector<32x16xbf16>, vector<32x16xf32> -> vector<32x16xf32>
    %95 = tpu.concatenate %71, %94 in 1 : vector<32x16xf32>, vector<32x16xf32> -> vector<32x32xf32>
    %c0_34 = arith.constant 0 : index
    %c0_35 = arith.constant 0 : index
    %c0_36 = arith.constant 0 : index
    %96 = vector.load %arg9[%c0_34, %c0_35, %c0_36] : memref<2x32x32xbf16, #tpu.memory_space<vmem>>, vector<1x32x32xbf16>
    %97 = vector.shape_cast %96 : vector<1x32x32xbf16> to vector<32x32xbf16>
    %98 = arith.truncf %95 : vector<32x32xf32> to vector<32x32xbf16>
    %cst_37 = arith.constant dense<0.000000e+00> : vector<32x32xf32>
    %99 = tpu.matmul %98, %97, %cst_37 {dimension_numbers = #tpu.dot_dimension_numbers<[1], [0], [0], [1], [0, 0, 1, 1], [], []>} : vector<32x32xbf16>, vector<32x32xbf16>, vector<32x32xf32> -> vector<32x32xf32>
    %100 = arith.addf %3, %99 : vector<32x32xf32>
    %c0_38 = arith.constant 0 : index
    %c0_39 = arith.constant 0 : index
    %101 = vector.load %arg10[%c0_38, %c0_39] : memref<2x32xf32, #tpu.memory_space<vmem>>, vector<1x32xf32>
    %102 = vector.shape_cast %101 : vector<1x32xf32> to vector<32xf32>
    %103 = vector.shape_cast %102 : vector<32xf32> to vector<1x32xf32>
    %104 = vector.broadcast %103 : vector<1x32xf32> to vector<32x32xf32>
    %105 = arith.addf %100, %104 : vector<32x32xf32>
    %c0_40 = arith.constant 0 : index
    %c0_41 = arith.constant 0 : index
    %106 = vector.load %arg11[%c0_40, %c0_41] : memref<2x32xf32, #tpu.memory_space<vmem>>, vector<1x32xf32>
    %107 = vector.shape_cast %106 : vector<1x32xf32> to vector<32xf32>
    %c0_42 = arith.constant 0 : index
    %c0_43 = arith.constant 0 : index
    %108 = vector.load %arg12[%c0_42, %c0_43] : memref<2x32xf32, #tpu.memory_space<vmem>>, vector<1x32xf32>
    %109 = vector.shape_cast %108 : vector<1x32xf32> to vector<32xf32>
    %cst_44 = arith.constant dense<0.000000e+00> : vector<32xf32>
    %110 = vector.multi_reduction <add>, %105, %cst_44 [1] : vector<32x32xf32> to vector<32xf32>
    %111 = vector.shape_cast %110 : vector<32xf32> to vector<32x1xf32>
    %cst_45 = arith.constant 3.200000e+01 : f32
    %112 = vector.broadcast %cst_45 : f32 to vector<32x1xf32>
    %113 = arith.divf %111, %112 : vector<32x1xf32>
    %114 = vector.broadcast %113 : vector<32x1xf32> to vector<32x32xf32>
    %115 = arith.subf %105, %114 : vector<32x32xf32>
    %116 = arith.mulf %115, %115 : vector<32x32xf32>
    %cst_46 = arith.constant dense<0.000000e+00> : vector<32xf32>
    %117 = vector.multi_reduction <add>, %116, %cst_46 [1] : vector<32x32xf32> to vector<32xf32>
    %118 = vector.shape_cast %117 : vector<32xf32> to vector<32x1xf32>
    %cst_47 = arith.constant 3.200000e+01 : f32
    %119 = vector.broadcast %cst_47 : f32 to vector<32x1xf32>
    %120 = arith.divf %118, %119 : vector<32x1xf32>
    %121 = vector.broadcast %113 : vector<32x1xf32> to vector<32x32xf32>
    %122 = arith.subf %105, %121 : vector<32x32xf32>
    %cst_48 = arith.constant 9.99999974E-6 : f32
    %123 = vector.broadcast %cst_48 : f32 to vector<32x1xf32>
    %124 = arith.addf %120, %123 : vector<32x1xf32>
    %125 = math.rsqrt %124 : vector<32x1xf32>
    %126 = vector.broadcast %125 : vector<32x1xf32> to vector<32x32xf32>
    %127 = arith.mulf %122, %126 : vector<32x32xf32>
    %128 = vector.shape_cast %107 : vector<32xf32> to vector<1x32xf32>
    %129 = vector.broadcast %128 : vector<1x32xf32> to vector<32x32xf32>
    %130 = arith.mulf %127, %129 : vector<32x32xf32>
    %131 = vector.shape_cast %109 : vector<32xf32> to vector<1x32xf32>
    %132 = vector.broadcast %131 : vector<1x32xf32> to vector<32x32xf32>
    %133 = arith.addf %130, %132 : vector<32x32xf32>
    %c0_49 = arith.constant 0 : index
    %c0_50 = arith.constant 0 : index
    %c0_51 = arith.constant 0 : index
    %134 = vector.load %arg13[%c0_49, %c0_50, %c0_51] : memref<2x32x128xbf16, #tpu.memory_space<vmem>>, vector<1x32x128xbf16>
    %135 = vector.shape_cast %134 : vector<1x32x128xbf16> to vector<32x128xbf16>
    %136 = arith.truncf %133 : vector<32x32xf32> to vector<32x32xbf16>
    %cst_52 = arith.constant dense<0.000000e+00> : vector<32x128xf32>
    %137 = tpu.matmul %136, %135, %cst_52 {dimension_numbers = #tpu.dot_dimension_numbers<[1], [0], [0], [1], [0, 0, 1, 1], [], []>} : vector<32x32xbf16>, vector<32x128xbf16>, vector<32x128xf32> -> vector<32x128xf32>
    %c0_53 = arith.constant 0 : index
    %c0_54 = arith.constant 0 : index
    %138 = vector.load %arg14[%c0_53, %c0_54] : memref<2x128xf32, #tpu.memory_space<vmem>>, vector<1x128xf32>
    %139 = vector.shape_cast %138 : vector<1x128xf32> to vector<128xf32>
    %140 = vector.shape_cast %139 : vector<128xf32> to vector<1x128xf32>
    %141 = vector.broadcast %140 : vector<1x128xf32> to vector<32x128xf32>
    %142 = arith.addf %137, %141 : vector<32x128xf32>
    %cst_55 = arith.constant 5.000000e-01 : f32
    %143 = vector.broadcast %cst_55 : f32 to vector<32x128xf32>
    %144 = arith.mulf %143, %142 : vector<32x128xf32>
    %cst_56 = arith.constant 4.471500e-02 : f32
    %145 = vector.broadcast %cst_56 : f32 to vector<32x128xf32>
    %146 = arith.mulf %145, %142 : vector<32x128xf32>
    %147 = arith.mulf %146, %142 : vector<32x128xf32>
    %148 = arith.mulf %147, %142 : vector<32x128xf32>
    %149 = arith.addf %142, %148 : vector<32x128xf32>
    %cst_57 = arith.constant 0.797884583 : f32
    %150 = vector.broadcast %cst_57 : f32 to vector<32x128xf32>
    %151 = arith.mulf %150, %149 : vector<32x128xf32>
    %152 = math.tanh %151 : vector<32x128xf32>
    %cst_58 = arith.constant 1.000000e+00 : f32
    %153 = vector.broadcast %cst_58 : f32 to vector<32x128xf32>
    %154 = arith.addf %153, %152 : vector<32x128xf32>
    %155 = arith.mulf %144, %154 : vector<32x128xf32>
    %c0_59 = arith.constant 0 : index
    %c0_60 = arith.constant 0 : index
    %c0_61 = arith.constant 0 : index
    %156 = vector.load %arg15[%c0_59, %c0_60, %c0_61] : memref<2x128x32xbf16, #tpu.memory_space<vmem>>, vector<1x128x32xbf16>
    %157 = vector.shape_cast %156 : vector<1x128x32xbf16> to vector<128x32xbf16>
    %158 = arith.truncf %155 : vector<32x128xf32> to vector<32x128xbf16>
    %cst_62 = arith.constant dense<0.000000e+00> : vector<32x32xf32>
    %159 = tpu.matmul %158, %157, %cst_62 {dimension_numbers = #tpu.dot_dimension_numbers<[1], [0], [0], [1], [0, 0, 1, 1], [], []>} : vector<32x128xbf16>, vector<128x32xbf16>, vector<32x32xf32> -> vector<32x32xf32>
    %160 = arith.addf %105, %159 : vector<32x32xf32>
    %c0_63 = arith.constant 0 : index
    %c0_64 = arith.constant 0 : index
    %161 = vector.load %arg16[%c0_63, %c0_64] : memref<2x32xf32, #tpu.memory_space<vmem>>, vector<1x32xf32>
    %162 = vector.shape_cast %161 : vector<1x32xf32> to vector<32xf32>
    %163 = vector.shape_cast %162 : vector<32xf32> to vector<1x32xf32>
    %164 = vector.broadcast %163 : vector<1x32xf32> to vector<32x32xf32>
    %165 = arith.addf %160, %164 : vector<32x32xf32>
    %c1 = arith.constant 1 : index
    %c0_65 = arith.constant 0 : index
    %166 = vector.load %arg5[%c1, %c0_65] : memref<2x32xf32, #tpu.memory_space<vmem>>, vector<1x32xf32>
    %167 = vector.shape_cast %166 : vector<1x32xf32> to vector<32xf32>
    %c1_66 = arith.constant 1 : index
    %c0_67 = arith.constant 0 : index
    %168 = vector.load %arg6[%c1_66, %c0_67] : memref<2x32xf32, #tpu.memory_space<vmem>>, vector<1x32xf32>
    %169 = vector.shape_cast %168 : vector<1x32xf32> to vector<32xf32>
    %cst_68 = arith.constant dense<0.000000e+00> : vector<32xf32>
    %170 = vector.multi_reduction <add>, %165, %cst_68 [1] : vector<32x32xf32> to vector<32xf32>
    %171 = vector.shape_cast %170 : vector<32xf32> to vector<32x1xf32>
    %cst_69 = arith.constant 3.200000e+01 : f32
    %172 = vector.broadcast %cst_69 : f32 to vector<32x1xf32>
    %173 = arith.divf %171, %172 : vector<32x1xf32>
    %174 = vector.broadcast %173 : vector<32x1xf32> to vector<32x32xf32>
    %175 = arith.subf %165, %174 : vector<32x32xf32>
    %176 = arith.mulf %175, %175 : vector<32x32xf32>
    %cst_70 = arith.constant dense<0.000000e+00> : vector<32xf32>
    %177 = vector.multi_reduction <add>, %176, %cst_70 [1] : vector<32x32xf32> to vector<32xf32>
    %178 = vector.shape_cast %177 : vector<32xf32> to vector<32x1xf32>
    %cst_71 = arith.constant 3.200000e+01 : f32
    %179 = vector.broadcast %cst_71 : f32 to vector<32x1xf32>
    %180 = arith.divf %178, %179 : vector<32x1xf32>
    %181 = vector.broadcast %173 : vector<32x1xf32> to vector<32x32xf32>
    %182 = arith.subf %165, %181 : vector<32x32xf32>
    %cst_72 = arith.constant 9.99999974E-6 : f32
    %183 = vector.broadcast %cst_72 : f32 to vector<32x1xf32>
    %184 = arith.addf %180, %183 : vector<32x1xf32>
    %185 = math.rsqrt %184 : vector<32x1xf32>
    %186 = vector.broadcast %185 : vector<32x1xf32> to vector<32x32xf32>
    %187 = arith.mulf %182, %186 : vector<32x32xf32>
    %188 = vector.shape_cast %167 : vector<32xf32> to vector<1x32xf32>
    %189 = vector.broadcast %188 : vector<1x32xf32> to vector<32x32xf32>
    %190 = arith.mulf %187, %189 : vector<32x32xf32>
    %191 = vector.shape_cast %169 : vector<32xf32> to vector<1x32xf32>
    %192 = vector.broadcast %191 : vector<1x32xf32> to vector<32x32xf32>
    %193 = arith.addf %190, %192 : vector<32x32xf32>
    %c1_73 = arith.constant 1 : index
    %c0_74 = arith.constant 0 : index
    %c0_75 = arith.constant 0 : index
    %194 = vector.load %arg7[%c1_73, %c0_74, %c0_75] : memref<2x32x96xbf16, #tpu.memory_space<vmem>>, vector<1x32x96xbf16>
    %195 = vector.shape_cast %194 : vector<1x32x96xbf16> to vector<32x96xbf16>
    %196 = arith.truncf %193 : vector<32x32xf32> to vector<32x32xbf16>
    %cst_76 = arith.constant dense<0.000000e+00> : vector<32x96xf32>
    %197 = tpu.matmul %196, %195, %cst_76 {dimension_numbers = #tpu.dot_dimension_numbers<[1], [0], [0], [1], [0, 0, 1, 1], [], []>} : vector<32x32xbf16>, vector<32x96xbf16>, vector<32x96xf32> -> vector<32x96xf32>
    %c1_77 = arith.constant 1 : index
    %c0_78 = arith.constant 0 : index
    %c0_79 = arith.constant 0 : index
    %198 = vector.load %arg8[%c1_77, %c0_78, %c0_79] : memref<2x1x96xf32, #tpu.memory_space<vmem>>, vector<1x1x96xf32>
    %199 = vector.shape_cast %198 : vector<1x1x96xf32> to vector<1x96xf32>
    %200 = vector.broadcast %199 : vector<1x96xf32> to vector<32x96xf32>
    %201 = arith.addf %197, %200 : vector<32x96xf32>
    %202 = vector.extract_strided_slice %201 {offsets = [0, 0], sizes = [32, 16], strides = [1, 1]} : vector<32x96xf32> to vector<32x16xf32>
    %cst_80 = arith.constant 2.500000e-01 : f32
    %203 = vector.broadcast %cst_80 : f32 to vector<32x16xf32>
    %204 = arith.mulf %202, %203 : vector<32x16xf32>
    %205 = vector.extract_strided_slice %201 {offsets = [0, 32], sizes = [32, 16], strides = [1, 1]} : vector<32x96xf32> to vector<32x16xf32>
    %206 = vector.extract_strided_slice %201 {offsets = [0, 64], sizes = [32, 16], strides = [1, 1]} : vector<32x96xf32> to vector<32x16xf32>
    %207 = arith.truncf %204 : vector<32x16xf32> to vector<32x16xbf16>
    %208 = arith.truncf %205 : vector<32x16xf32> to vector<32x16xbf16>
    %cst_81 = arith.constant dense<0.000000e+00> : vector<32x32xf32>
    %209 = tpu.matmul %207, %208, %cst_81 {dimension_numbers = #tpu.dot_dimension_numbers<[1], [1], [0], [0], [0, 0, 1, 0], [], []>} : vector<32x16xbf16>, vector<32x16xbf16>, vector<32x32xf32> -> vector<32x32xf32>
    %cst_82 = arith.constant -1.000000e+09 : f32
    %210 = vector.broadcast %cst_82 : f32 to vector<32x32xf32>
    %211 = arith.select %12, %209, %210 : vector<32x32xi1>, vector<32x32xf32>
    %cst_83 = arith.constant dense<0xFF800000> : vector<32xf32>
    %212 = vector.multi_reduction <maximumf>, %211, %cst_83 [1] : vector<32x32xf32> to vector<32xf32>
    %213 = vector.shape_cast %212 : vector<32xf32> to vector<32x1xf32>
    %214 = vector.broadcast %213 : vector<32x1xf32> to vector<32x32xf32>
    %215 = arith.subf %211, %214 : vector<32x32xf32>
    %216 = math.exp %215 : vector<32x32xf32>
    %cst_84 = arith.constant dense<0.000000e+00> : vector<32xf32>
    %217 = vector.multi_reduction <add>, %216, %cst_84 [1] : vector<32x32xf32> to vector<32xf32>
    %218 = vector.shape_cast %217 : vector<32xf32> to vector<32x1xf32>
    %219 = tpu.reciprocal %218 {approx = true} : vector<32x1xf32> -> vector<32x1xf32>
    %220 = vector.broadcast %219 : vector<32x1xf32> to vector<32x32xf32>
    %221 = arith.mulf %216, %220 : vector<32x32xf32>
    %222 = arith.truncf %221 : vector<32x32xf32> to vector<32x32xbf16>
    %223 = arith.truncf %206 : vector<32x16xf32> to vector<32x16xbf16>
    %cst_85 = arith.constant dense<0.000000e+00> : vector<32x16xf32>
    %224 = tpu.matmul %222, %223, %cst_85 {dimension_numbers = #tpu.dot_dimension_numbers<[1], [0], [0], [1], [0, 0, 1, 1], [], []>} : vector<32x32xbf16>, vector<32x16xbf16>, vector<32x16xf32> -> vector<32x16xf32>
    %225 = vector.extract_strided_slice %201 {offsets = [0, 16], sizes = [32, 16], strides = [1, 1]} : vector<32x96xf32> to vector<32x16xf32>
    %cst_86 = arith.constant 2.500000e-01 : f32
    %226 = vector.broadcast %cst_86 : f32 to vector<32x16xf32>
    %227 = arith.mulf %225, %226 : vector<32x16xf32>
    %228 = vector.extract_strided_slice %201 {offsets = [0, 48], sizes = [32, 16], strides = [1, 1]} : vector<32x96xf32> to vector<32x16xf32>
    %229 = vector.extract_strided_slice %201 {offsets = [0, 80], sizes = [32, 16], strides = [1, 1]} : vector<32x96xf32> to vector<32x16xf32>
    %230 = arith.truncf %227 : vector<32x16xf32> to vector<32x16xbf16>
    %231 = arith.truncf %228 : vector<32x16xf32> to vector<32x16xbf16>
    %cst_87 = arith.constant dense<0.000000e+00> : vector<32x32xf32>
    %232 = tpu.matmul %230, %231, %cst_87 {dimension_numbers = #tpu.dot_dimension_numbers<[1], [1], [0], [0], [0, 0, 1, 0], [], []>} : vector<32x16xbf16>, vector<32x16xbf16>, vector<32x32xf32> -> vector<32x32xf32>
    %cst_88 = arith.constant -1.000000e+09 : f32
    %233 = vector.broadcast %cst_88 : f32 to vector<32x32xf32>
    %234 = arith.select %12, %232, %233 : vector<32x32xi1>, vector<32x32xf32>
    %cst_89 = arith.constant dense<0xFF800000> : vector<32xf32>
    %235 = vector.multi_reduction <maximumf>, %234, %cst_89 [1] : vector<32x32xf32> to vector<32xf32>
    %236 = vector.shape_cast %235 : vector<32xf32> to vector<32x1xf32>
    %237 = vector.broadcast %236 : vector<32x1xf32> to vector<32x32xf32>
    %238 = arith.subf %234, %237 : vector<32x32xf32>
    %239 = math.exp %238 : vector<32x32xf32>
    %cst_90 = arith.constant dense<0.000000e+00> : vector<32xf32>
    %240 = vector.multi_reduction <add>, %239, %cst_90 [1] : vector<32x32xf32> to vector<32xf32>
    %241 = vector.shape_cast %240 : vector<32xf32> to vector<32x1xf32>
    %242 = tpu.reciprocal %241 {approx = true} : vector<32x1xf32> -> vector<32x1xf32>
    %243 = vector.broadcast %242 : vector<32x1xf32> to vector<32x32xf32>
    %244 = arith.mulf %239, %243 : vector<32x32xf32>
    %245 = arith.truncf %244 : vector<32x32xf32> to vector<32x32xbf16>
    %246 = arith.truncf %229 : vector<32x16xf32> to vector<32x16xbf16>
    %cst_91 = arith.constant dense<0.000000e+00> : vector<32x16xf32>
    %247 = tpu.matmul %245, %246, %cst_91 {dimension_numbers = #tpu.dot_dimension_numbers<[1], [0], [0], [1], [0, 0, 1, 1], [], []>} : vector<32x32xbf16>, vector<32x16xbf16>, vector<32x16xf32> -> vector<32x16xf32>
    %248 = tpu.concatenate %224, %247 in 1 : vector<32x16xf32>, vector<32x16xf32> -> vector<32x32xf32>
    %c1_92 = arith.constant 1 : index
    %c0_93 = arith.constant 0 : index
    %c0_94 = arith.constant 0 : index
    %249 = vector.load %arg9[%c1_92, %c0_93, %c0_94] : memref<2x32x32xbf16, #tpu.memory_space<vmem>>, vector<1x32x32xbf16>
    %250 = vector.shape_cast %249 : vector<1x32x32xbf16> to vector<32x32xbf16>
    %251 = arith.truncf %248 : vector<32x32xf32> to vector<32x32xbf16>
    %cst_95 = arith.constant dense<0.000000e+00> : vector<32x32xf32>
    %252 = tpu.matmul %251, %250, %cst_95 {dimension_numbers = #tpu.dot_dimension_numbers<[1], [0], [0], [1], [0, 0, 1, 1], [], []>} : vector<32x32xbf16>, vector<32x32xbf16>, vector<32x32xf32> -> vector<32x32xf32>
    %253 = arith.addf %165, %252 : vector<32x32xf32>
    %c1_96 = arith.constant 1 : index
    %c0_97 = arith.constant 0 : index
    %254 = vector.load %arg10[%c1_96, %c0_97] : memref<2x32xf32, #tpu.memory_space<vmem>>, vector<1x32xf32>
    %255 = vector.shape_cast %254 : vector<1x32xf32> to vector<32xf32>
    %256 = vector.shape_cast %255 : vector<32xf32> to vector<1x32xf32>
    %257 = vector.broadcast %256 : vector<1x32xf32> to vector<32x32xf32>
    %258 = arith.addf %253, %257 : vector<32x32xf32>
    %c1_98 = arith.constant 1 : index
    %c0_99 = arith.constant 0 : index
    %259 = vector.load %arg11[%c1_98, %c0_99] : memref<2x32xf32, #tpu.memory_space<vmem>>, vector<1x32xf32>
    %260 = vector.shape_cast %259 : vector<1x32xf32> to vector<32xf32>
    %c1_100 = arith.constant 1 : index
    %c0_101 = arith.constant 0 : index
    %261 = vector.load %arg12[%c1_100, %c0_101] : memref<2x32xf32, #tpu.memory_space<vmem>>, vector<1x32xf32>
    %262 = vector.shape_cast %261 : vector<1x32xf32> to vector<32xf32>
    %cst_102 = arith.constant dense<0.000000e+00> : vector<32xf32>
    %263 = vector.multi_reduction <add>, %258, %cst_102 [1] : vector<32x32xf32> to vector<32xf32>
    %264 = vector.shape_cast %263 : vector<32xf32> to vector<32x1xf32>
    %cst_103 = arith.constant 3.200000e+01 : f32
    %265 = vector.broadcast %cst_103 : f32 to vector<32x1xf32>
    %266 = arith.divf %264, %265 : vector<32x1xf32>
    %267 = vector.broadcast %266 : vector<32x1xf32> to vector<32x32xf32>
    %268 = arith.subf %258, %267 : vector<32x32xf32>
    %269 = arith.mulf %268, %268 : vector<32x32xf32>
    %cst_104 = arith.constant dense<0.000000e+00> : vector<32xf32>
    %270 = vector.multi_reduction <add>, %269, %cst_104 [1] : vector<32x32xf32> to vector<32xf32>
    %271 = vector.shape_cast %270 : vector<32xf32> to vector<32x1xf32>
    %cst_105 = arith.constant 3.200000e+01 : f32
    %272 = vector.broadcast %cst_105 : f32 to vector<32x1xf32>
    %273 = arith.divf %271, %272 : vector<32x1xf32>
    %274 = vector.broadcast %266 : vector<32x1xf32> to vector<32x32xf32>
    %275 = arith.subf %258, %274 : vector<32x32xf32>
    %cst_106 = arith.constant 9.99999974E-6 : f32
    %276 = vector.broadcast %cst_106 : f32 to vector<32x1xf32>
    %277 = arith.addf %273, %276 : vector<32x1xf32>
    %278 = math.rsqrt %277 : vector<32x1xf32>
    %279 = vector.broadcast %278 : vector<32x1xf32> to vector<32x32xf32>
    %280 = arith.mulf %275, %279 : vector<32x32xf32>
    %281 = vector.shape_cast %260 : vector<32xf32> to vector<1x32xf32>
    %282 = vector.broadcast %281 : vector<1x32xf32> to vector<32x32xf32>
    %283 = arith.mulf %280, %282 : vector<32x32xf32>
    %284 = vector.shape_cast %262 : vector<32xf32> to vector<1x32xf32>
    %285 = vector.broadcast %284 : vector<1x32xf32> to vector<32x32xf32>
    %286 = arith.addf %283, %285 : vector<32x32xf32>
    %c1_107 = arith.constant 1 : index
    %c0_108 = arith.constant 0 : index
    %c0_109 = arith.constant 0 : index
    %287 = vector.load %arg13[%c1_107, %c0_108, %c0_109] : memref<2x32x128xbf16, #tpu.memory_space<vmem>>, vector<1x32x128xbf16>
    %288 = vector.shape_cast %287 : vector<1x32x128xbf16> to vector<32x128xbf16>
    %289 = arith.truncf %286 : vector<32x32xf32> to vector<32x32xbf16>
    %cst_110 = arith.constant dense<0.000000e+00> : vector<32x128xf32>
    %290 = tpu.matmul %289, %288, %cst_110 {dimension_numbers = #tpu.dot_dimension_numbers<[1], [0], [0], [1], [0, 0, 1, 1], [], []>} : vector<32x32xbf16>, vector<32x128xbf16>, vector<32x128xf32> -> vector<32x128xf32>
    %c1_111 = arith.constant 1 : index
    %c0_112 = arith.constant 0 : index
    %291 = vector.load %arg14[%c1_111, %c0_112] : memref<2x128xf32, #tpu.memory_space<vmem>>, vector<1x128xf32>
    %292 = vector.shape_cast %291 : vector<1x128xf32> to vector<128xf32>
    %293 = vector.shape_cast %292 : vector<128xf32> to vector<1x128xf32>
    %294 = vector.broadcast %293 : vector<1x128xf32> to vector<32x128xf32>
    %295 = arith.addf %290, %294 : vector<32x128xf32>
    %cst_113 = arith.constant 5.000000e-01 : f32
    %296 = vector.broadcast %cst_113 : f32 to vector<32x128xf32>
    %297 = arith.mulf %296, %295 : vector<32x128xf32>
    %cst_114 = arith.constant 4.471500e-02 : f32
    %298 = vector.broadcast %cst_114 : f32 to vector<32x128xf32>
    %299 = arith.mulf %298, %295 : vector<32x128xf32>
    %300 = arith.mulf %299, %295 : vector<32x128xf32>
    %301 = arith.mulf %300, %295 : vector<32x128xf32>
    %302 = arith.addf %295, %301 : vector<32x128xf32>
    %cst_115 = arith.constant 0.797884583 : f32
    %303 = vector.broadcast %cst_115 : f32 to vector<32x128xf32>
    %304 = arith.mulf %303, %302 : vector<32x128xf32>
    %305 = math.tanh %304 : vector<32x128xf32>
    %cst_116 = arith.constant 1.000000e+00 : f32
    %306 = vector.broadcast %cst_116 : f32 to vector<32x128xf32>
    %307 = arith.addf %306, %305 : vector<32x128xf32>
    %308 = arith.mulf %297, %307 : vector<32x128xf32>
    %c1_117 = arith.constant 1 : index
    %c0_118 = arith.constant 0 : index
    %c0_119 = arith.constant 0 : index
    %309 = vector.load %arg15[%c1_117, %c0_118, %c0_119] : memref<2x128x32xbf16, #tpu.memory_space<vmem>>, vector<1x128x32xbf16>
    %310 = vector.shape_cast %309 : vector<1x128x32xbf16> to vector<128x32xbf16>
    %311 = arith.truncf %308 : vector<32x128xf32> to vector<32x128xbf16>
    %cst_120 = arith.constant dense<0.000000e+00> : vector<32x32xf32>
    %312 = tpu.matmul %311, %310, %cst_120 {dimension_numbers = #tpu.dot_dimension_numbers<[1], [0], [0], [1], [0, 0, 1, 1], [], []>} : vector<32x128xbf16>, vector<128x32xbf16>, vector<32x32xf32> -> vector<32x32xf32>
    %313 = arith.addf %258, %312 : vector<32x32xf32>
    %c1_121 = arith.constant 1 : index
    %c0_122 = arith.constant 0 : index
    %314 = vector.load %arg16[%c1_121, %c0_122] : memref<2x32xf32, #tpu.memory_space<vmem>>, vector<1x32xf32>
    %315 = vector.shape_cast %314 : vector<1x32xf32> to vector<32xf32>
    %316 = vector.shape_cast %315 : vector<32xf32> to vector<1x32xf32>
    %317 = vector.broadcast %316 : vector<1x32xf32> to vector<32x32xf32>
    %318 = arith.addf %313, %317 : vector<32x32xf32>
    %c0_123 = arith.constant 0 : index
    %c0_124 = arith.constant 0 : index
    %319 = vector.load %arg17[%c0_123, %c0_124] : memref<1x32xf32, #tpu.memory_space<vmem>>, vector<1x32xf32>
    %c0_125 = arith.constant 0 : index
    %c0_126 = arith.constant 0 : index
    %320 = vector.load %arg18[%c0_125, %c0_126] : memref<1x32xf32, #tpu.memory_space<vmem>>, vector<1x32xf32>
    %cst_127 = arith.constant dense<0.000000e+00> : vector<32xf32>
    %321 = vector.multi_reduction <add>, %318, %cst_127 [1] : vector<32x32xf32> to vector<32xf32>
    %322 = vector.shape_cast %321 : vector<32xf32> to vector<32x1xf32>
    %cst_128 = arith.constant 3.200000e+01 : f32
    %323 = vector.broadcast %cst_128 : f32 to vector<32x1xf32>
    %324 = arith.divf %322, %323 : vector<32x1xf32>
    %325 = vector.broadcast %324 : vector<32x1xf32> to vector<32x32xf32>
    %326 = arith.subf %318, %325 : vector<32x32xf32>
    %327 = arith.mulf %326, %326 : vector<32x32xf32>
    %cst_129 = arith.constant dense<0.000000e+00> : vector<32xf32>
    %328 = vector.multi_reduction <add>, %327, %cst_129 [1] : vector<32x32xf32> to vector<32xf32>
    %329 = vector.shape_cast %328 : vector<32xf32> to vector<32x1xf32>
    %cst_130 = arith.constant 3.200000e+01 : f32
    %330 = vector.broadcast %cst_130 : f32 to vector<32x1xf32>
    %331 = arith.divf %329, %330 : vector<32x1xf32>
    %332 = vector.broadcast %324 : vector<32x1xf32> to vector<32x32xf32>
    %333 = arith.subf %318, %332 : vector<32x32xf32>
    %cst_131 = arith.constant 9.99999974E-6 : f32
    %334 = vector.broadcast %cst_131 : f32 to vector<32x1xf32>
    %335 = arith.addf %331, %334 : vector<32x1xf32>
    %336 = math.rsqrt %335 : vector<32x1xf32>
    %337 = vector.broadcast %336 : vector<32x1xf32> to vector<32x32xf32>
    %338 = arith.mulf %333, %337 : vector<32x32xf32>
    %339 = vector.broadcast %319 : vector<1x32xf32> to vector<32x32xf32>
    %340 = arith.mulf %338, %339 : vector<32x32xf32>
    %341 = vector.broadcast %320 : vector<1x32xf32> to vector<32x32xf32>
    %342 = arith.addf %340, %341 : vector<32x32xf32>
    %c0_132 = arith.constant 0 : index
    %c0_133 = arith.constant 0 : index
    %343 = vector.load %arg19[%c0_132, %c0_133] : memref<128x32xbf16, #tpu.memory_space<vmem>>, vector<128x32xbf16>
    %344 = arith.truncf %342 : vector<32x32xf32> to vector<32x32xbf16>
    %cst_134 = arith.constant dense<0.000000e+00> : vector<32x128xf32>
    %345 = tpu.matmul %344, %343, %cst_134 {dimension_numbers = #tpu.dot_dimension_numbers<[1], [1], [0], [0], [0, 0, 1, 0], [], []>} : vector<32x32xbf16>, vector<128x32xbf16>, vector<32x128xf32> -> vector<32x128xf32>
    %346 = arith.truncf %345 : vector<32x128xf32> to vector<32x128xbf16>
    %c0_135 = arith.constant 0 : index
    %c0_136 = arith.constant 0 : index
    %347 = vector.load %arg20[%c0_135, %c0_136] : memref<32x128xbf16, #tpu.memory_space<vmem>>, vector<32x128xbf16>
    tpu.vector_store %arg20[%c0_135, %c0_136], %346 {strides = array<i32>} : memref<32x128xbf16, #tpu.memory_space<vmem>>, vector<32x128xbf16>,
    return
  }
  func.func @transform_0(%arg0: i32) -> (i32, i32) {
    %c0_i32 = arith.constant 0 : i32
    %c0_i32_0 = arith.constant 0 : i32
    %c0_i32_1 = arith.constant 0 : i32
    return %c0_i32, %c0_i32_0 : i32, i32
  }
  func.func @transform_1(%arg0: i32) -> (i32, i32) {
    %c0_i32 = arith.constant 0 : i32
    %c0_i32_0 = arith.constant 0 : i32
    %c0_i32_1 = arith.constant 0 : i32
    return %c0_i32, %c0_i32_0 : i32, i32
  }
  func.func @transform_2(%arg0: i32) -> (i32, i32) {
    %c0_i32 = arith.constant 0 : i32
    %c0_i32_0 = arith.constant 0 : i32
    %c0_i32_1 = arith.constant 0 : i32
    return %c0_i32, %c0_i32_0 : i32, i32
  }
  func.func @transform_3(%arg0: i32) -> (i32, i32) {
    %c0_i32 = arith.constant 0 : i32
    %c0_i32_0 = arith.constant 0 : i32
    %c0_i32_1 = arith.constant 0 : i32
    return %c0_i32, %c0_i32_0 : i32, i32
  }
  func.func @transform_4(%arg0: i32) -> (i32, i32) {
    %c0_i32 = arith.constant 0 : i32
    %c0_i32_0 = arith.constant 0 : i32
    %c0_i32_1 = arith.constant 0 : i32
    return %c0_i32, %c0_i32_0 : i32, i32
  }
  func.func @transform_5(%arg0: i32) -> (i32, i32) {
    %c0_i32 = arith.constant 0 : i32
    %c0_i32_0 = arith.constant 0 : i32
    %c0_i32_1 = arith.constant 0 : i32
    return %c0_i32, %c0_i32_0 : i32, i32
  }
  func.func @transform_6(%arg0: i32) -> (i32, i32, i32) {
    %c0_i32 = arith.constant 0 : i32
    %c0_i32_0 = arith.constant 0 : i32
    %c0_i32_1 = arith.constant 0 : i32
    %c0_i32_2 = arith.constant 0 : i32
    return %c0_i32, %c0_i32_0, %c0_i32_1 : i32, i32, i32
  }
  func.func @transform_7(%arg0: i32) -> (i32, i32, i32) {
    %c0_i32 = arith.constant 0 : i32
    %c0_i32_0 = arith.constant 0 : i32
    %c0_i32_1 = arith.constant 0 : i32
    %c0_i32_2 = arith.constant 0 : i32
    return %c0_i32, %c0_i32_0, %c0_i32_1 : i32, i32, i32
  }
  func.func @transform_8(%arg0: i32) -> (i32, i32, i32) {
    %c0_i32 = arith.constant 0 : i32
    %c0_i32_0 = arith.constant 0 : i32
    %c0_i32_1 = arith.constant 0 : i32
    %c0_i32_2 = arith.constant 0 : i32
    return %c0_i32, %c0_i32_0, %c0_i32_1 : i32, i32, i32
  }
  func.func @transform_9(%arg0: i32) -> (i32, i32) {
    %c0_i32 = arith.constant 0 : i32
    %c0_i32_0 = arith.constant 0 : i32
    %c0_i32_1 = arith.constant 0 : i32
    return %c0_i32, %c0_i32_0 : i32, i32
  }
  func.func @transform_10(%arg0: i32) -> (i32, i32) {
    %c0_i32 = arith.constant 0 : i32
    %c0_i32_0 = arith.constant 0 : i32
    %c0_i32_1 = arith.constant 0 : i32
    return %c0_i32, %c0_i32_0 : i32, i32
  }
  func.func @transform_11(%arg0: i32) -> (i32, i32) {
    %c0_i32 = arith.constant 0 : i32
    %c0_i32_0 = arith.constant 0 : i32
    %c0_i32_1 = arith.constant 0 : i32
    return %c0_i32, %c0_i32_0 : i32, i32
  }
  func.func @transform_12(%arg0: i32) -> (i32, i32, i32) {
    %c0_i32 = arith.constant 0 : i32
    %c0_i32_0 = arith.constant 0 : i32
    %c0_i32_1 = arith.constant 0 : i32
    %c0_i32_2 = arith.constant 0 : i32
    return %c0_i32, %c0_i32_0, %c0_i32_1 : i32, i32, i32
  }
  func.func @transform_13(%arg0: i32) -> (i32, i32) {
    %c0_i32 = arith.constant 0 : i32
    %c0_i32_0 = arith.constant 0 : i32
    %c0_i32_1 = arith.constant 0 : i32
    return %c0_i32, %c0_i32_0 : i32, i32
  }
  func.func @transform_14(%arg0: i32) -> (i32, i32, i32) {
    %c0_i32 = arith.constant 0 : i32
    %c0_i32_0 = arith.constant 0 : i32
    %c0_i32_1 = arith.constant 0 : i32
    %c0_i32_2 = arith.constant 0 : i32
    return %c0_i32, %c0_i32_0, %c0_i32_1 : i32, i32, i32
  }
  func.func @transform_15(%arg0: i32) -> (i32, i32) {
    %c0_i32 = arith.constant 0 : i32
    %c0_i32_0 = arith.constant 0 : i32
    %c0_i32_1 = arith.constant 0 : i32
    return %c0_i32, %c0_i32_0 : i32, i32
  }
  func.func @transform_16(%arg0: i32) -> (i32, i32) {
    %c0_i32 = arith.constant 0 : i32
    %c0_i32_0 = arith.constant 0 : i32
    %c0_i32_1 = arith.constant 0 : i32
    return %c0_i32, %c0_i32_0 : i32, i32
  }
  func.func @transform_17(%arg0: i32) -> (i32, i32) {
    %c0_i32 = arith.constant 0 : i32
    %c0_i32_0 = arith.constant 0 : i32
    %c0_i32_1 = arith.constant 0 : i32
    return %c0_i32, %c0_i32_0 : i32, i32
  }
  func.func @transform_18(%arg0: i32) -> (i32, i32) {
    %c0_i32 = arith.constant 0 : i32
    %c0_i32_0 = arith.constant 0 : i32
    %c0_i32_1 = arith.constant 0 : i32
    return %c0_i32, %c0_i32_0 : i32, i32
  }
  func.func @transform_19(%arg0: i32) -> (i32, i32) {
    %c0_i32 = arith.constant 0 : i32
    %c0_i32_0 = arith.constant 0 : i32
    %c0_i32_1 = arith.constant 0 : i32
    return %c0_i32, %c0_i32_0 : i32, i32
  }
}

</mosaic_0001>

<bundles_post_ra>
// kernel: captioning_forward.3
= control target key start
LH: loop header
LB: loop body
LE: loop exit
PB: predicated region body
PF: predicated region fallthrough
CT: control target
= control target key end

     0   :  { %s3080_s0 = inlined_call_operand.vmem [shape: bf16[32,32], index: 0, kind: input, shape index: {}]   ;;  %s3081_s1 = inlined_call_operand.vmem [shape: f32[32,32], index: 1, kind: input, shape index: {}]   ;;  %s3082_s2 = inlined_call_operand.vmem [shape: s32[32,1], index: 2, kind: input, shape index: {}]   ;;  %s3083_s3 = inlined_call_operand.vmem [shape: s32[1,32], index: 3, kind: input, shape index: {}]   ;;  %s3084_s4 = inlined_call_operand.vmem [shape: f32[2,32], index: 4, kind: input, shape index: {}]   ;;  %s3085_s5 = inlined_call_operand.vmem [shape: f32[2,32], index: 5, kind: input, shape index: {}]   ;;  %s3086_s6 = inlined_call_operand.vmem [shape: bf16[2,32,96], index: 6, kind: input, shape index: {}]   ;;  %s3087_s7 = inlined_call_operand.vmem [shape: f32[2,1,96], index: 7, kind: input, shape index: {}]   ;;  %s3088_s8 = inlined_call_operand.vmem [shape: bf16[2,32,32], index: 8, kind: input, shape index: {}]   ;;  %s3089_s9 = inlined_call_operand.vmem [shape: f32[2,32], index: 9, kind: input, shape index: {}]   ;;  %s3090_s10 = inlined_call_operand.vmem [shape: f32[2,32], index: 10, kind: input, shape index: {}]   ;;  %s3091_s11 = inlined_call_operand.vmem [shape: f32[2,32], index: 11, kind: input, shape index: {}]   ;;  %s3092_s12 = inlined_call_operand.vmem [shape: bf16[2,32,128], index: 12, kind: input, shape index: {}]   ;;  %s3093_s13 = inlined_call_operand.vmem [shape: f32[2,128], index: 13, kind: input, shape index: {}]   ;;  %s3094_s14 = inlined_call_operand.vmem [shape: bf16[2,128,32], index: 14, kind: input, shape index: {}]   ;;  %s3095_s15 = inlined_call_operand.vmem [shape: f32[2,32], index: 15, kind: input, shape index: {}]   ;;  %s3096_s16 = inlined_call_operand.vmem [shape: f32[1,32], index: 16, kind: input, shape index: {}]   ;;  %s3097_s17 = inlined_call_operand.vmem [shape: f32[1,32], index: 17, kind: input, shape index: {}]   ;;  %s3098_s18 = inlined_call_operand.vmem [shape: bf16[128,32], index: 18, kind: input, shape index: {}]   ;;  %s3099_s19 = inlined_call_operand.hbm [shape: bf16[32,128], index: 19, kind: output, shape index: {}]  }
   0x1   :  { %3106 = sst [smem:[#allocation5_spill]] %s3080_s0 }
   0x2   :  { %3107 = sst [smem:[#allocation6_spill]] %s3081_s1 }
   0x3   :  { %3108 = sst [smem:[#allocation7_spill]] %s3082_s2 }
   0x4   :  { %3109 = sst [smem:[#allocation8_spill]] %s3083_s3 }
   0x5   :  { %3110 = sst [smem:[#allocation9_spill]] %s3093_s13 }
   0x6   :  { %s3111_s20 = sld [smem:[#allocation5_spill]]  ;;  %vm119_vm0 = vcmask 261120  }
   0x7   :  { %s3112_s13 = sld [smem:[#allocation6_spill]] }
   0xc   :  { %v2113_v0 = vld [vmem:[%s3111_s20 + $0x8] sm:$0xff]   ;;  %v2096_v2 = vld [vmem:[%s3111_s20] sm:$0xff]  }
   0xd   :  { %v74_v1 = vld [vmem:[%s3112_s13 + $0x10] sm:$0xff]  ;;  %v2101_v3 = vunpack.c.l.bf16 %v2113_v0  ;;  %v2097_v4 = vunpack.c.l.bf16 %v2096_v2  ;;  %v72_v5 = vld [vmem:[%s3112_s13] sm:$0xff]  ;;  %v75_v6 = vld [vmem:[%s3112_s13 + $0x18] sm:$0xff]  ;;  %v2102_v10 = vunpack.c.h.bf16 %v2113_v0  ;;  %v2098_v11 = vunpack.c.h.bf16 %v2096_v2 }
   0xe   :  { %v73_v7 = vld [vmem:[%s3112_s13 + $0x8] sm:$0xff] }
   0xf   :  { %v2447_v8 = vadd.f32 %v2101_v3, %v74_v1  ;;  %v2449_v9 = vadd.f32 %v2097_v4, %v72_v5  ;;  %v2455_v14 = vadd.f32 %v2102_v10, %v75_v6  ;;  %v2457_v15 = vadd.f32 %v2098_v11, %v73_v7 }
  0x11   :  { %v126_v12 = vsel %vm119_vm0, %v2447_v8, 0.0  ;;  %v120_v13 = vsel %vm119_vm0, %v2449_v9, 0.0 }
  0x12   :  { %127 = vadd.xlane.f32.xlu0 %v126_v12  ;;  %121 = vadd.xlane.f32.xlu1 %v120_v13 }
  0x13   :  { %24 = vsyncpa [#allocation3], 0  ;;  %v129_v16 = vsel %vm119_vm0, %v2455_v14, 0.0  ;;  %v123_v17 = vsel %vm119_vm0, %v2457_v15, 0.0  ;;  %v2319_v18 = vmov 32.0   ;;  %v2060_v45 = vld [vmem:[%s3086_s6 + $0x8] sm:$0xff] }
  0x14   :  { %2171 = vrcp.f32 %v2319_v18  ;;  %259 = vmatpush.bf16.msra.mxu2 %v2060_v45  ;;  %2115 = vmatpush.bf16.msra.mxu3 %v2060_v45  ;;  %v2059_v50 = vld [vmem:[%s3086_s6] sm:$0xff]  ;;  %s2320_s23 = smov 80   ;;  %s2321_s24 = smov 112   ;;  %vm286_vm14 = vcmask 130048  }
  0x15   :  { %s2322_s25 = smov 96   ;;  %s3113_s27 = sld [smem:[#allocation7_spill]] }
  0x16   :  { %s3114_s22 = sld [smem:[#allocation8_spill]]  ;;  %s2324_s2 = smov 48  }
  0x17   :  { %s2325_s3 = smov 64   ;;  %s3104_s26 = smov 16  }
  0x18   :  { %260 = vmatpush.bf16.msra.mxu2 %v2059_v50  ;;  %2116 = vmatpush.bf16.msra.mxu3 %v2059_v50  ;;  %s2327_s13 = smov [#allocation2]   ;;  %s2328_s28 = smov 4  }
  0x1a   :  { %130 = vadd.xlane.f32.xlu0 %v129_v16  ;;  %124 = vadd.xlane.f32.xlu1 %v123_v17  ;;  %v2172_v19 = vpop.eup %2171 }
  0x1b   :  { %v133_v20 = vmul.f32 32.0, %v2172_v19  ;;  %vm137_vm1 = vweird.f32 %v2172_v19 }
  0x1d   :  { %v134_v21 = vsub.f32 1.0, %v133_v20 }
  0x1f   :  { %v135_v22 = vmul.f32 %v2172_v19, %v134_v21 }
  0x21   :  { %v136_v23 = vadd.f32 %v2172_v19, %v135_v22 }
  0x23   :  { %v2463_v24 = vsel %vm137_vm1, %v2172_v19, %v136_v23 }
  0x85   :  { %v128_v25 = vpop.xlane.xlu0 %127  ;;  %v122_v26 = vpop.xlane.xlu1 %121 }
  0x86   :  { %v141_v27 = vmul.f32 %v2463_v24, %v128_v25  ;;  %v139_v28 = vmul.f32 %v2463_v24, %v122_v26  ;;  %v2152_v25 = vld [vmem:[%s3084_s4] ss:$0 sm:$0xff] }
  0x88   :  { %v2468_v29 = vsub.f32 %v2447_v8, %v141_v27  ;;  %v2471_v30 = vsub.f32 %v2449_v9, %v139_v28 }
  0x8a   :  { %v149_v31 = vmul.f32 %v2468_v29, %v2468_v29  ;;  %v147_v32 = vmul.f32 %v2471_v30, %v2471_v30 }
  0x8c   :  { %v157_v33 = vsel %vm119_vm0, %v149_v31, 0.0  ;;  %v151_v34 = vsel %vm119_vm0, %v147_v32, 0.0 }
  0x8d   :  { %158 = vadd.xlane.f32.xlu2 %v157_v33  ;;  %v131_v35 = vpop.xlane.xlu0 %130  ;;  %152 = vadd.xlane.f32.xlu0 %v151_v34  ;;  %v125_v36 = vpop.xlane.xlu1 %124 }
  0x8e   :  { %v142_v37 = vmul.f32 %v2463_v24, %v131_v35  ;;  %v140_v38 = vmul.f32 %v2463_v24, %v125_v36 }
  0x90   :  { %v2482_v39 = vsub.f32 %v2455_v14, %v142_v37  ;;  %v2485_v40 = vsub.f32 %v2457_v15, %v140_v38 }
  0x92   :  { %v150_v41 = vmul.f32 %v2482_v39, %v2482_v39  ;;  %v148_v42 = vmul.f32 %v2485_v40, %v2485_v40 }
  0x94   :  { %v160_v43 = vsel %vm119_vm0, %v150_v41, 0.0  ;;  %v154_v44 = vsel %vm119_vm0, %v148_v42, 0.0 }
  0x95   :  { %161 = vadd.xlane.f32.xlu2 %v160_v43  ;;  %155 = vadd.xlane.f32.xlu1 %v154_v44 }
 0x100   :  { %v159_v46 = vpop.xlane.xlu2 %158  ;;  %v153_v47 = vpop.xlane.xlu0 %152 }
 0x101   :  { %v165_v48 = vmul.f32 %v159_v46, %v2463_v24  ;;  %v163_v49 = vmul.f32 %v153_v47, %v2463_v24  ;;  %v2154_v47 = vld [vmem:[%s3087_s7] ss:$0 sm:$0xff] }
 0x103   :  { %v169_v51 = vadd.f32 1e-05, %v165_v48  ;;  %v167_v52 = vadd.f32 1e-05, %v163_v49 }
 0x105   :  { %2173 = vrsqrt.f32 %v169_v51  ;;  %vm197_vm2 = vweird.f32 %v169_v51  ;;  %vm177_vm6 = vweird.f32 %v167_v52 }
 0x106   :  { %2175 = vrsqrt.f32 %v167_v52 }
 0x108   :  { %v162_v53 = vpop.xlane.xlu2 %161  ;;  %v156_v54 = vpop.xlane.xlu1 %155 }
 0x109   :  { %v166_v55 = vmul.f32 %v162_v53, %v2463_v24  ;;  %v164_v56 = vmul.f32 %v156_v54, %v2463_v24 }
 0x10b   :  { %v2174_v57 = vpop.eup %2173  ;;  %v170_v58 = vadd.f32 1e-05, %v166_v55  ;;  %v168_v59 = vadd.f32 1e-05, %v164_v56 }
 0x10c   :  { %v2176_v60 = vpop.eup %2175  ;;  %v192_v61 = vmul.f32 %v2174_v57, %v169_v51  ;;  %vm198_vm3 = vweird.f32 %v2174_v57 }
 0x10d   :  { %v172_v62 = vmul.f32 %v2176_v60, %v167_v52  ;;  %2177 = vrsqrt.f32 %v170_v58  ;;  %vm178_vm4 = vweird.f32 %v2176_v60  ;;  %vm199_vm5 = vmor %vm197_vm2, %vm198_vm3  ;;  %vm207_vm8 = vweird.f32 %v170_v58 }
 0x10e   :  { %v193_v63 = vmul.f32 %v2174_v57, %v192_v61  ;;  %2179 = vrsqrt.f32 %v168_v59  ;;  %vm179_vm7 = vmor %vm177_vm6, %vm178_vm4  ;;  %vm187_vm12 = vweird.f32 %v168_v59 }
 0x10f   :  { %v173_v0 = vmul.f32 %v2176_v60, %v172_v62 }
 0x110   :  { %v194_v1 = vmul.f32 0.5, %v193_v63  ;;  %v91_v63 = vld [vmem:[%s3113_s27] sm:$0xff] }
 0x111   :  { %v174_v2 = vmul.f32 0.5, %v173_v0  ;;  %v2323_v0 = vmov 0  }
 0x112   :  { %v195_v3 = vsub.f32 1.5, %v194_v1  ;;  %2129 = vset.pattern.permute.xlu1 %v2323_v0  ;;  %2130 = vset.pattern.permute.xlu0 %v2323_v0  ;;  %v94_v1 = vld [vmem:[%s3113_s27 + $0x18] sm:$0xff] }
 0x113   :  { %v2178_v4 = vpop.eup %2177  ;;  %v175_v5 = vsub.f32 1.5, %v174_v2  ;;  %2131 = vset.pattern.permute.xlu2 %v2323_v0  ;;  %v92_v2 = vld [vmem:[%s3113_s27 + $0x8] sm:$0xff] }
 0x114   :  { %v2180_v6 = vpop.eup %2179  ;;  %v196_v7 = vmul.f32 %v2174_v57, %v195_v3  ;;  %v202_v10 = vmul.f32 %v2178_v4, %v170_v58  ;;  %vm208_vm9 = vweird.f32 %v2178_v4 }
 0x115   :  { %v176_v11 = vmul.f32 %v2176_v60, %v175_v5  ;;  %v182_v12 = vmul.f32 %v2180_v6, %v168_v59  ;;  %vm188_vm10 = vweird.f32 %v2180_v6  ;;  %vm209_vm11 = vmor %vm207_vm8, %vm208_vm9 }
 0x116   :  { %v203_v13 = vmul.f32 %v2178_v4, %v202_v10  ;;  %v200_v17 = vsel %vm199_vm5, %v2174_v57, %v196_v7  ;;  %vm189_vm13 = vmor %vm187_vm12, %vm188_vm10 }
 0x117   :  { %v183_v16 = vmul.f32 %v2180_v6, %v182_v12  ;;  %v180_v19 = vsel %vm179_vm7, %v2176_v60, %v176_v11  ;;  %v213_v22 = vmul.f32 %v200_v17, %v2468_v29  ;;  %v2153_v29 = vld [vmem:[%s3085_s5] ss:$0 sm:$0xff]  ;;  %v93_v11 = vld [vmem:[%s3113_s27 + $0x10] sm:$0xff] }
 0x118   :  { %v204_v18 = vmul.f32 0.5, %v203_v13  ;;  %v211_v26 = vmul.f32 %v180_v19, %v2471_v30  ;;  %v2155_v19 = vld [vmem:[%s3114_s22] ss:$0 sm:$0xff] }
 0x119   :  { %v184_v20 = vmul.f32 0.5, %v183_v16  ;;  %v218_v34 = vmul.f32 %v2152_v25, %v213_v22  ;;  %v80_v16 = vlaneseq }
 0x11a   :  { %v205_v21 = vsub.f32 1.5, %v204_v18  ;;  %v216_v36 = vmul.f32 %v2152_v25, %v211_v26 }
 0x11b   :  { %v185_v23 = vsub.f32 1.5, %v184_v20  ;;  %v223_v30 = vadd.f32 %v2153_v29, %v218_v34  ;;  %v81_v17 = vshrl.u32 %v80_v16, 7  ;;  %v86_v18 = vand.u32 127, %v80_v16 }
 0x11c   :  { %v206_v27 = vmul.f32 %v2178_v4, %v205_v21  ;;  %v221_v42 = vadd.f32 %v2153_v29, %v216_v36 }
 0x11d   :  { %v186_v28 = vmul.f32 %v2180_v6, %v185_v23  ;;  %vm87_vm15 = vcmp.le.s32.totalorder %v86_v18, %v81_v17  ;;  %v82_v26 = vadd.s32 8, %v81_v17  ;;  %v83_v34 = vadd.s32 16, %v81_v17 }
 0x11e   :  { %v210_v31 = vsel %vm209_vm11, %v2178_v4, %v206_v27 }
 0x11f   :  { %v214_v32 = vmul.f32 %v210_v31, %v2482_v39  ;;  %v190_v33 = vsel %vm189_vm13, %v2180_v6, %v186_v28  ;;  %vm88_vm3 = vcmp.le.s32.totalorder %v86_v18, %v82_v26  ;;  %vm89_vm6 = vcmp.le.s32.totalorder %v86_v18, %v83_v34 }
 0x120   :  { %v212_v35 = vmul.f32 %v190_v33, %v2485_v40 }
 0x121   :  { %v219_v37 = vmul.f32 %v2152_v25, %v214_v32 }
 0x122   :  { %v217_v38 = vmul.f32 %v2152_v25, %v212_v35 }
 0x123   :  { %v224_v41 = vadd.f32 %v2153_v29, %v219_v37 }
 0x124   :  { %v222_v43 = vadd.f32 %v2153_v29, %v217_v38 }
 0x125   :  { %v230_v44 = vpack.c.bf16 %v224_v41, %v223_v30 }
 0x126   :  { %v229_v45 = vpack.c.bf16 %v222_v43, %v221_v42 }
 0x127   :  { %1865 = vmatmul.msk.bf16.vlgmr.msra.gmra.mxu3 %vm119_vm0, %v230_v44  ;;  %v84_v44 = vadd.s32 24, %v81_v17 }
 0x128   :  { %1864 = vmatmul.msk.bf16.vlgmr.msra.gmra.mxu2 %vm119_vm0, %v229_v45 }
 0x129   :  { %vm90_vm9 = vcmp.le.s32.totalorder %v86_v18, %v84_v44 }
 0x1aa   :  { %v267_v39 = vpop.f32.mrf.mxu3 }
 0x1ab   :  { %v262_v46 = vpop.f32.mrf.mxu2  ;;  %v268_v49 = vadd.f32 %v2154_v47, %v267_v39 }
 0x1ac   :  { %v263_v40 = vadd.f32 %v2154_v47, %v262_v46 }
 0x1ad   :  { %v274_v59 = vmul.f32 0.25, %v268_v49 }
 0x1ae   :  { %v272_v54 = vmul.f32 0.25, %v263_v40 }
 0x1b2   :  { %v269_v48 = vpop.f32.mrf.mxu3 }
 0x1b3   :  { %v264_v50 = vpop.f32.mrf.mxu2  ;;  %v270_v51 = vadd.f32 %v2154_v47, %v269_v48 }
 0x1b4   :  { %v265_v52 = vadd.f32 %v2154_v47, %v264_v50 }
 0x1b5   :  { %v2518_v53 = vpack.c.bf16 %v270_v51, %v268_v49  ;;  %v275_v58 = vmul.f32 0.25, %v270_v51 }
 0x1b6   :  { %v273_v55 = vmul.f32 0.25, %v265_v52  ;;  %v2520_v56 = vpack.c.bf16 %v265_v52, %v263_v40 }
 0x1b7   :  { %407 = vrot.lane.b32.xlu2 %v2518_v53, %s2320_s23  ;;  %v277_v60 = vpack.c.bf16 %v275_v58, %v274_v59 }
 0x1b8   :  { %405 = vrot.lane.b32.xlu0 %v2520_v56, %s2320_s23  ;;  %v276_v57 = vpack.c.bf16 %v273_v55, %v272_v54 }
 0x1ba   :  { %401 = vrot.lane.b32.xlu1 %v276_v57, %s2321_s24 }
 0x1bf   :  { %403 = vrot.lane.b32.xlu2 %v277_v60, %s2321_s24 }
 0x1c0   :  { %284 = vrot.lane.b32.xlu0 %v2518_v53, %s2322_s25 }
 0x1c2   :  { %97 = vperm.xlu1 %2129, %v91_v63  }
 0x1c7   :  { %282 = vrot.lane.b32.xlu2 %v2520_v56, %s2322_s25 }
 0x1c8   :  { %100 = vperm.xlu0 %2130, %v92_v2  }
 0x1ca   :  { %106 = vperm.xlu1 %2129, %v94_v1  }
 0x1cf   :  { %103 = vperm.xlu2 %2131, %v93_v11  }
 0x211   :  { %v408_v61 = vpop.permute.xlu2 %407 }
 0x212   :  { %v419_v62 = vsel %vm286_vm14, %v408_v61, 0 }
 0x213   :  { %427 = vmatpush.bf16.xpose.msrb.mxu3 %v419_v62 }
 0x219   :  { %v404_v5 = vpop.permute.xlu2 %403 }
 0x221   :  { %v283_v12 = vpop.permute.xlu2 %282 }
 0x222   :  { %v294_v13 = vsel %vm286_vm14, %v283_v12, 0 }
 0x229   :  { %v104_v35 = vpop.permute.xlu2 %103 }
 0x22a   :  { %v406_v3 = vpop.permute.xlu0 %405  ;;  %vm111_vm7 = vcmp.eq.s32.totalorder %v104_v35, %v2155_v19 }
 0x22b   :  { %v416_v4 = vsel %vm286_vm14, %v406_v3, 0  ;;  %vm2578_vm8 = vmand %vm89_vm6, %vm111_vm7 }
 0x22c   :  { %428 = vmatpush.bf16.xpose.msrb.mxu3 %v416_v4  ;;  %v402_v6 = vpop.permute.xlu1 %401 }
 0x232   :  { %v285_v7 = vpop.permute.xlu0 %284 }
 0x233   :  { %1870 = vmatmul.msk.bf16.vlgmr.msrb.gmra.mxu3 %vm286_vm14, %v402_v6  ;;  %v297_v10 = vsel %vm286_vm14, %v285_v7, 0 }
 0x234   :  { %305 = vmatpush.bf16.xpose.msra.mxu1 %v297_v10  ;;  %v98_v20 = vpop.permute.xlu1 %97 }
 0x235   :  { %vm109_vm1 = vcmp.eq.s32.totalorder %v98_v20, %v2155_v19 }
 0x236   :  { %vm2555_vm2 = vmand %vm87_vm15, %vm109_vm1 }
 0x23a   :  { %v101_v27 = vpop.permute.xlu0 %100 }
 0x23b   :  { %vm110_vm4 = vcmp.eq.s32.totalorder %v101_v27, %v2155_v19 }
 0x23c   :  { %306 = vmatpush.bf16.xpose.msra.mxu1 %v294_v13  ;;  %vm2565_vm5 = vmand %vm88_vm3, %vm110_vm4  ;;  %v107_v39 = vpop.permute.xlu1 %106 }
 0x23d   :  { %vm112_vm10 = vcmp.eq.s32.totalorder %v107_v39, %v2155_v19 }
 0x23e   :  { %vm2588_vm11 = vmand %vm90_vm9, %vm112_vm10 }
 0x243   :  { %1866 = vmatmul.msk.bf16.vlgmr.msra.gmra.mxu1 %vm286_vm14, %v276_v57  ;;  %1871 = vmatmul.msk.bf16.gmra.mxu3 %vm286_vm14, %v404_v5 }
 0x253   :  { %1867 = vmatmul.msk.bf16.gmra.mxu1 %vm286_vm14, %v277_v60 }
 0x2b6   :  { %v430_v22 = vpop.f32.mrf.mxu3 }
 0x2b7   :  { %v440_v23 = vsel %vm2555_vm2, %v430_v22, -1e+09 }
 0x2b8   :  { %v444_v25 = vsel %vm119_vm0, %v440_v23, -inf }
 0x2b9   :  { %445 = vmax.xlane.f32.xlu2 %v444_v25 }
 0x2be   :  { %v432_v28 = vpop.f32.mrf.mxu3 }
 0x2bf   :  { %v441_v36 = vsel %vm2565_vm5, %v432_v28, -1e+09 }
 0x2c0   :  { %v308_v31 = vpop.f32.mrf.mxu1  ;;  %v447_v41 = vsel %vm119_vm0, %v441_v36, -inf }
 0x2c1   :  { %v318_v32 = vsel %vm2555_vm2, %v308_v31, -1e+09 }
 0x2c2   :  { %v322_v33 = vsel %vm119_vm0, %v318_v32, -inf }
 0x2c3   :  { %323 = vmax.xlane.f32.xlu1 %v322_v33 }
 0x2c6   :  { %v435_v30 = vpop.f32.mrf.mxu3 }
 0x2c7   :  { %v442_v45 = vsel %vm2578_vm8, %v435_v30, -1e+09 }
 0x2c8   :  { %v310_v37 = vpop.f32.mrf.mxu1  ;;  %v450_v40 = vsel %vm119_vm0, %v442_v45, -inf }
 0x2c9   :  { %v2573_v38 = vsel %vm2565_vm5, %v310_v37, -1e+09 }
 0x2ca   :  { %v325_v42 = vsel %vm119_vm0, %v2573_v38, -inf }
 0x2cb   :  { %448 = vmax.xlane.f32.xlu1 %v447_v41  ;;  %326 = vmax.xlane.f32.xlu0 %v325_v42 }
 0x2ce   :  { %v437_v49 = vpop.f32.mrf.mxu3 }
 0x2cf   :  { %v443_v51 = vsel %vm2588_vm11, %v437_v49, -1e+09 }
 0x2d0   :  { %v313_v46 = vpop.f32.mrf.mxu1  ;;  %v453_v52 = vsel %vm119_vm0, %v443_v51, -inf }
 0x2d1   :  { %v320_v47 = vsel %vm2578_vm8, %v313_v46, -1e+09 }
 0x2d2   :  { %v328_v48 = vsel %vm119_vm0, %v320_v47, -inf }
 0x2d3   :  { %451 = vmax.xlane.f32.xlu0 %v450_v40  ;;  %329 = vmax.xlane.f32.xlu2 %v328_v48 }
 0x2d8   :  { %v315_v54 = vpop.f32.mrf.mxu1 }
 0x2d9   :  { %v321_v55 = vsel %vm2588_vm11, %v315_v54, -1e+09 }
 0x2da   :  { %v331_v57 = vsel %vm119_vm0, %v321_v55, -inf }
 0x2db   :  { %454 = vmax.xlane.f32.xlu2 %v453_v52 }
 0x2e4   :  { %492 = vrot.lane.b32.xlu1 %v2518_v53, %s2324_s2 }
 0x30e   :  { %332 = vmax.xlane.f32.xlu1 %v331_v57 }
 0x327   :  { %370 = vrot.lane.b32.xlu1 %v2518_v53, %s2325_s3 }
 0x32c   :  { %v446_v58 = vpop.xlane.xlu2 %445 }
 0x32d   :  { %v456_v59 = vsub.f32 %v440_v23, %v446_v58 }
 0x32f   :  { %v460_v60 = vmul.f32 1.442695, %v456_v59 }
 0x331   :  { %2181 = vpow2.f32 %v460_v60 }
 0x336   :  { %v324_v61 = vpop.xlane.xlu1 %323 }
 0x337   :  { %v2602_v62 = vpop.eup %2181  ;;  %v334_v63 = vsub.f32 %v318_v32, %v324_v61 }
 0x338   :  { %v468_v0 = vsel %vm119_vm0, %v2602_v62, 0.0 }
 0x339   :  { %v338_v1 = vmul.f32 1.442695, %v334_v63  ;;  %469 = vadd.xlane.f32.xlu0 %v468_v0 }
 0x33b   :  { %2183 = vpow2.f32 %v338_v1 }
 0x33e   :  { %v449_v2 = vpop.xlane.xlu1 %448  ;;  %v327_v3 = vpop.xlane.xlu0 %326 }
 0x33f   :  { %v457_v4 = vsub.f32 %v441_v36, %v449_v2  ;;  %v335_v33 = vsub.f32 %v2573_v38, %v327_v3 }
 0x341   :  { %v2606_v5 = vpop.eup %2183  ;;  %v462_v53 = vmul.f32 1.442695, %v457_v4  ;;  %v340_v34 = vmul.f32 1.442695, %v335_v33 }
 0x342   :  { %v346_v6 = vsel %vm119_vm0, %v2606_v5, 0.0 }
 0x343   :  { %2185 = vpow2.f32 %v462_v53  ;;  %347 = vadd.xlane.f32.xlu2 %v346_v6 }
 0x346   :  { %v452_v7 = vpop.xlane.xlu0 %451  ;;  %v330_v10 = vpop.xlane.xlu2 %329 }
 0x347   :  { %v458_v11 = vsub.f32 %v442_v45, %v452_v7  ;;  %v336_v12 = vsub.f32 %v320_v47, %v330_v10 }
 0x349   :  { %v2186_v13 = vpop.eup %2185  ;;  %v464_v16 = vmul.f32 1.442695, %v458_v11  ;;  %v342_v17 = vmul.f32 1.442695, %v336_v12 }
 0x34a   :  { %v471_v18 = vsel %vm119_vm0, %v2186_v13, 0.0 }
 0x34b   :  { %2187 = vpow2.f32 %v464_v16  ;;  %472 = vadd.xlane.f32.xlu2 %v471_v18 }
 0x34c   :  { %2189 = vpow2.f32 %v342_v17 }
 0x34d   :  { %490 = vrot.lane.b32.xlu0 %v2520_v56, %s2324_s2 }
 0x34e   :  { %v455_v19 = vpop.xlane.xlu2 %454 }
 0x34f   :  { %v459_v20 = vsub.f32 %v443_v51, %v455_v19 }
 0x351   :  { %v2188_v22 = vpop.eup %2187  ;;  %v466_v23 = vmul.f32 1.442695, %v459_v20  ;;  %v2062_v20 = vld [vmem:[%s3088_s8 + $0x8] sm:$0xff] }
 0x352   :  { %v2613_v25 = vpop.eup %2189  ;;  %v474_v26 = vsel %vm119_vm0, %v2188_v22, 0.0 }
 0x353   :  { %2191 = vpow2.f32 %v466_v23  ;;  %475 = vadd.xlane.f32.xlu2 %v474_v26  ;;  %v352_v27 = vsel %vm119_vm0, %v2613_v25, 0.0 }
 0x354   :  { %353 = vadd.xlane.f32.xlu1 %v352_v27  ;;  %2193 = vpow2.f32 %v340_v34 }
 0x356   :  { %v493_v28 = vpop.permute.xlu1 %492 }
 0x357   :  { %508 = vmatpush.bf16.msra.mxu0 %v493_v28  ;;  %2117 = vmatpush.bf16.msrb.mxu1 %v493_v28 }
 0x359   :  { %v2192_v31 = vpop.eup %2191 }
 0x35a   :  { %v477_v32 = vsel %vm119_vm0, %v2192_v31, 0.0  ;;  %v2194_v35 = vpop.eup %2193 }
 0x35b   :  { %478 = vadd.xlane.f32.xlu2 %v477_v32  ;;  %v349_v36 = vsel %vm119_vm0, %v2194_v35, 0.0 }
 0x373   :  { %368 = vrot.lane.b32.xlu2 %v2520_v56, %s2325_s3 }
 0x377   :  { %350 = vadd.xlane.f32.xlu0 %v349_v36 }
 0x381   :  { %v333_v37 = vpop.xlane.xlu1 %332 }
 0x382   :  { %v337_v30 = vsub.f32 %v321_v55, %v333_v37 }
 0x384   :  { %v344_v41 = vmul.f32 1.442695, %v337_v30 }
 0x386   :  { %2195 = vpow2.f32 %v344_v41 }
 0x38c   :  { %v2196_v42 = vpop.eup %2195 }
 0x38d   :  { %v355_v45 = vsel %vm119_vm0, %v2196_v42, 0.0 }
 0x399   :  { %v371_v44 = vpop.permute.xlu1 %370 }
 0x39a   :  { %386 = vmatpush.bf16.msrb.mxu2 %v371_v44 }
 0x39c   :  { %356 = vadd.xlane.f32.xlu2 %v355_v45  ;;  %v2156_v45 = vld [vmem:[%s3089_s9] ss:$0 sm:$0xff] }
 0x3ac   :  { %v470_v39 = vpop.xlane.xlu0 %469 }
 0x3ad   :  { %2197 = vrcp.f32 %v470_v39 }
 0x3b3   :  { %v2198_v56 = vpop.eup %2197 }
 0x3b4   :  { %v484_v49 = vmul.f32 %v2198_v56, %v2602_v62 }
 0x3b6   :  { %v348_v38 = vpop.xlane.xlu2 %347 }
 0x3be   :  { %v473_v46 = vpop.xlane.xlu2 %472 }
 0x3bf   :  { %2199 = vrcp.f32 %v473_v46  ;;  %v491_v47 = vpop.permute.xlu0 %490 }
 0x3c0   :  { %509 = vmatpush.bf16.msra.mxu0 %v491_v47  ;;  %2118 = vmatpush.bf16.msrb.mxu1 %v491_v47 }
 0x3c5   :  { %v2200_v40 = vpop.eup %2199 }
 0x3c6   :  { %v476_v48 = vpop.xlane.xlu2 %475  ;;  %v485_v51 = vmul.f32 %v2200_v40, %v2186_v13 }
 0x3c7   :  { %2201 = vrcp.f32 %v476_v48  ;;  %v354_v4 = vpop.xlane.xlu1 %353 }
 0x3c8   :  { %v488_v52 = vpack.c.bf16 %v485_v51, %v484_v49 }
 0x3ca   :  { %1872 = vmatmul.msk.bf16.vlgmr.msra.gmra.mxu0 %vm119_vm0, %v488_v52 }
 0x3cd   :  { %v2202_v55 = vpop.eup %2201 }
 0x3ce   :  { %v479_v54 = vpop.xlane.xlu2 %478  ;;  %v486_v58 = vmul.f32 %v2202_v55, %v2188_v22  ;;  %v2061_v22 = vld [vmem:[%s3088_s8] sm:$0xff] }
 0x3cf   :  { %2203 = vrcp.f32 %v479_v54 }
 0x3d0   :  { %2205 = vrcp.f32 %v348_v38 }
 0x3d5   :  { %v2204_v57 = vpop.eup %2203 }
 0x3d6   :  { %v487_v59 = vmul.f32 %v2204_v57, %v2192_v31  ;;  %v369_v60 = vpop.permute.xlu2 %368  ;;  %v2206_v62 = vpop.eup %2205 }
 0x3d7   :  { %387 = vmatpush.bf16.msrb.mxu2 %v369_v60  ;;  %v362_v1 = vmul.f32 %v2206_v62, %v2606_v5 }
 0x3d8   :  { %v489_v61 = vpack.c.bf16 %v487_v59, %v486_v58 }
 0x3da   :  { %1873 = vmatmul.msk.bf16.vlgmr.msrb.gmra.mxu1 %vm119_vm0, %v489_v61 }
 0x3db   :  { %571 = vmatpush.bf16.msra.mxu2 %v2062_v20  ;;  %v2063_v20 = vld [vmem:[%s3092_s12] sm:$0xff] }
 0x3df   :  { %572 = vmatpush.bf16.msra.mxu2 %v2061_v22 }
 0x3ea   :  { %v351_v63 = vpop.xlane.xlu0 %350 }
 0x3eb   :  { %2207 = vrcp.f32 %v351_v63 }
 0x3ec   :  { %2209 = vrcp.f32 %v354_v4 }
 0x3f1   :  { %v2208_v0 = vpop.eup %2207 }
 0x3f2   :  { %v363_v2 = vmul.f32 %v2208_v0, %v2194_v35  ;;  %v2210_v6 = vpop.eup %2209 }
 0x3f3   :  { %v364_v10 = vmul.f32 %v2210_v6, %v2613_v25 }
 0x3f4   :  { %v366_v3 = vpack.c.bf16 %v363_v2, %v362_v1 }
 0x3f6   :  { %1868 = vmatmul.msk.bf16.vlgmr.msrb.gmra.mxu2 %vm119_vm0, %v366_v3 }
 0x40f   :  { %v357_v53 = vpop.xlane.xlu2 %356 }
 0x410   :  { %2211 = vrcp.f32 %v357_v53 }
 0x416   :  { %v2212_v7 = vpop.eup %2211 }
 0x417   :  { %v365_v11 = vmul.f32 %v2212_v7, %v2196_v42 }
 0x419   :  { %v367_v12 = vpack.c.bf16 %v365_v11, %v364_v10 }
 0x41b   :  { %1869 = vmatmul.msk.bf16.gmra.mxu2 %vm119_vm0, %v367_v12 }
 0x447   :  { %v511_v13 = vpop.f32.mrf.mxu0 }
 0x44f   :  { %v513_v16 = vpop.f32.mrf.mxu0 }
 0x450   :  { %v2132_v17 = vpack.i.bf16 %v513_v16, %v511_v13 }
 0x452   :  { %2133 = vrot.lane.b32.xlu0 %v2132_v17, %s3104_s26  ;;  %v2064_v17 = vld [vmem:[%s3092_s12 + $0x8] sm:$0xff] }
 0x453   :  { %726 = vmatpush.bf16.msra.mxu1 %v2064_v17 }
 0x457   :  { %v516_v5 = vpop.f32.mrf.mxu1  ;;  %727 = vmatpush.bf16.msra.mxu1 %v2063_v20 }
 0x45f   :  { %v518_v18 = vpop.f32.mrf.mxu1 }
 0x460   :  { %v2137_v19 = vpack.i.bf16 %v518_v18, %v516_v5 }
 0x462   :  { %2138 = vrot.lane.b32.xlu1 %v2137_v19, %s3104_s26  ;;  %s3123_s26 = sld [smem:[#allocation9_spill]] }
 0x479   :  { %v389_v23 = vpop.f32.mrf.mxu2 }
 0x481   :  { %v391_v25 = vpop.f32.mrf.mxu2 }
 0x49e   :  { %v394_v34 = vpop.f32.mrf.mxu2 }
 0x4a6   :  { %v396_v30 = vpop.f32.mrf.mxu2 }
 0x4c4   :  { %v2134_v26 = vpop.permute.xlu0 %2133 }
 0x4c5   :  { %v2136_v27 = vunpack.i.h.bf16 %v2134_v26  ;;  %v2135_v28 = vunpack.i.l.bf16 %v2134_v26 }
 0x4c7   :  { %v537_v31 = vsel %vm286_vm14, %v389_v23, %v2135_v28  ;;  %v538_v32 = vsel %vm286_vm14, %v391_v25, %v2136_v27 }
 0x4c8   :  { %v545_v33 = vpack.c.bf16 %v538_v32, %v537_v31 }
 0x4ca   :  { %1882 = vmatmul.msk.bf16.vlgmr.msra.gmra.mxu2 %vm119_vm0, %v545_v33 }
 0x4d4   :  { %v2139_v35 = vpop.permute.xlu1 %2138 }
 0x4d5   :  { %v2141_v36 = vunpack.i.h.bf16 %v2139_v35  ;;  %v2140_v37 = vunpack.i.l.bf16 %v2139_v35 }
 0x4d7   :  { %v539_v41 = vsel %vm286_vm14, %v394_v34, %v2140_v37  ;;  %v540_v42 = vsel %vm286_vm14, %v396_v30, %v2141_v36 }
 0x4d8   :  { %v546_v44 = vpack.c.bf16 %v540_v42, %v539_v41 }
 0x4da   :  { %1883 = vmatmul.msk.bf16.gmra.mxu2 %vm119_vm0, %v546_v44 }
 0x54d   :  { %v574_v38 = vpop.f32.mrf.mxu2 }
 0x54e   :  { %v584_v39 = vadd.f32 %v574_v38, %v2449_v9 }
 0x550   :  { %v2649_v46 = vadd.f32 %v2156_v45, %v584_v39 }
 0x552   :  { %v596_v47 = vsel %vm119_vm0, %v2649_v46, 0.0 }
 0x553   :  { %597 = vadd.xlane.f32.xlu0 %v596_v47 }
 0x555   :  { %v576_v56 = vpop.f32.mrf.mxu2 }
 0x556   :  { %v585_v40 = vadd.f32 %v576_v56, %v2457_v15  ;;  %v2157_v56 = vld [vmem:[%s3090_s10] ss:$0 sm:$0xff] }
 0x558   :  { %v2654_v48 = vadd.f32 %v2156_v45, %v585_v40 }
 0x55a   :  { %v599_v49 = vsel %vm119_vm0, %v2654_v48, 0.0 }
 0x55b   :  { %600 = vadd.xlane.f32.xlu2 %v599_v49 }
 0x55d   :  { %v579_v51 = vpop.f32.mrf.mxu2 }
 0x55e   :  { %v586_v52 = vadd.f32 %v579_v51, %v2447_v8 }
 0x560   :  { %v2659_v54 = vadd.f32 %v2156_v45, %v586_v52 }
 0x562   :  { %v602_v9 = vsel %vm119_vm0, %v2659_v54, 0.0 }
 0x563   :  { %603 = vadd.xlane.f32.xlu1 %v602_v9 }
 0x565   :  { %v581_v55 = vpop.f32.mrf.mxu2 }
 0x566   :  { %v587_v57 = vadd.f32 %v581_v55, %v2455_v14 }
 0x568   :  { %v2664_v58 = vadd.f32 %v2156_v45, %v587_v57  ;;  %v2158_v57 = vld [vmem:[%s3091_s11] ss:$0 sm:$0xff] }
 0x56a   :  { %v605_v15 = vsel %vm119_vm0, %v2664_v58, 0.0 }
 0x56b   :  { %606 = vadd.xlane.f32.xlu2 %v605_v15 }
 0x5c6   :  { %v598_v59 = vpop.xlane.xlu0 %597 }
 0x5c7   :  { %v608_v60 = vmul.f32 %v598_v59, %v2463_v24 }
 0x5c9   :  { %v612_v8 = vsub.f32 %v2649_v46, %v608_v60 }
 0x5cb   :  { %v616_v61 = vmul.f32 %v612_v8, %v612_v8 }
 0x5cd   :  { %v620_v63 = vsel %vm119_vm0, %v616_v61, 0.0 }
 0x5ce   :  { %v601_v62 = vpop.xlane.xlu2 %600  ;;  %621 = vadd.xlane.f32.xlu2 %v620_v63 }
 0x5cf   :  { %v609_v0 = vmul.f32 %v601_v62, %v2463_v24 }
 0x5d1   :  { %v2673_v14 = vsub.f32 %v2654_v48, %v609_v0 }
 0x5d3   :  { %v617_v1 = vmul.f32 %v2673_v14, %v2673_v14 }
 0x5d5   :  { %v623_v2 = vsel %vm119_vm0, %v617_v1, 0.0 }
 0x5d6   :  { %v604_v3 = vpop.xlane.xlu1 %603  ;;  %624 = vadd.xlane.f32.xlu2 %v623_v2 }
 0x5d7   :  { %v610_v4 = vmul.f32 %v604_v3, %v2463_v24 }
 0x5d9   :  { %v2680_v53 = vsub.f32 %v2659_v54, %v610_v4 }
 0x5db   :  { %v618_v6 = vmul.f32 %v2680_v53, %v2680_v53 }
 0x5dd   :  { %v626_v7 = vsel %vm119_vm0, %v618_v6, 0.0 }
 0x5de   :  { %627 = vadd.xlane.f32.xlu0 %v626_v7  ;;  %v607_v10 = vpop.xlane.xlu2 %606 }
 0x5df   :  { %v611_v11 = vmul.f32 %v607_v10, %v2463_v24 }
 0x5e1   :  { %v2687_v12 = vsub.f32 %v2664_v58, %v611_v11 }
 0x5e3   :  { %v619_v13 = vmul.f32 %v2687_v12, %v2687_v12 }
 0x5e5   :  { %v629_v16 = vsel %vm119_vm0, %v619_v13, 0.0 }
 0x5e6   :  { %630 = vadd.xlane.f32.xlu2 %v629_v16 }
 0x641   :  { %v622_v5 = vpop.xlane.xlu2 %621 }
 0x642   :  { %v632_v18 = vmul.f32 %v622_v5, %v2463_v24 }
 0x644   :  { %v636_v19 = vadd.f32 1e-05, %v632_v18 }
 0x646   :  { %2213 = vrsqrt.f32 %v636_v19  ;;  %vm646_vm13 = vweird.f32 %v636_v19 }
 0x649   :  { %v625_v22 = vpop.xlane.xlu2 %624 }
 0x64a   :  { %v633_v23 = vmul.f32 %v625_v22, %v2463_v24  ;;  %v2072_v22 = vld [vmem:[%s3094_s14 + $0x38] sm:$0xff] }
 0x64b   :  { %841 = vmatpush.bf16.msra.mxu3 %v2072_v22  ;;  %v2160_v22 = vld [vmem:[%s3095_s15] ss:$0 sm:$0xff] }
 0x64c   :  { %v2214_v25 = vpop.eup %2213  ;;  %v637_v26 = vadd.f32 1e-05, %v633_v23  ;;  %v2069_v23 = vld [vmem:[%s3094_s14 + $0x20] sm:$0xff] }
 0x64d   :  { %v641_v27 = vmul.f32 %v2214_v25, %v636_v19  ;;  %vm647_vm12 = vweird.f32 %v2214_v25 }
 0x64e   :  { %2215 = vrsqrt.f32 %v637_v26  ;;  %vm648_vm15 = vmor %vm646_vm13, %vm647_vm12  ;;  %vm656_vm3 = vweird.f32 %v637_v26 }
 0x64f   :  { %v642_v28 = vmul.f32 %v2214_v25, %v641_v27  ;;  %v2066_v27 = vld [vmem:[%s3094_s14 + $0x8] sm:$0xff] }
 0x651   :  { %v643_v31 = vmul.f32 0.5, %v642_v28  ;;  %v628_v32 = vpop.xlane.xlu0 %627  ;;  %v2065_v28 = vld [vmem:[%s3094_s14] sm:$0xff] }
 0x652   :  { %v634_v33 = vmul.f32 %v628_v32, %v2463_v24 }
 0x653   :  { %v644_v34 = vsub.f32 1.5, %v643_v31  ;;  %v2159_v31 = vld [vmem:[%s3123_s26] ss:$0 sm:$0xff] }
 0x654   :  { %v2216_v35 = vpop.eup %2215  ;;  %v638_v36 = vadd.f32 1e-05, %v634_v33 }
 0x655   :  { %v645_v37 = vmul.f32 %v2214_v25, %v644_v34  ;;  %v651_v30 = vmul.f32 %v2216_v35, %v637_v26  ;;  %vm657_vm1 = vweird.f32 %v2216_v35  ;;  %v2067_v26 = vld [vmem:[%s3094_s14 + $0x10] sm:$0xff] }
 0x656   :  { %2217 = vrsqrt.f32 %v638_v36  ;;  %vm658_vm4 = vmor %vm656_vm3, %vm657_vm1  ;;  %vm666_vm7 = vweird.f32 %v638_v36 }
 0x657   :  { %v652_v41 = vmul.f32 %v2216_v35, %v651_v30  ;;  %v649_v42 = vsel %vm648_vm15, %v2214_v25, %v645_v37  ;;  %v2068_v25 = vld [vmem:[%s3094_s14 + $0x18] sm:$0xff] }
 0x658   :  { %v680_v40 = vmul.f32 %v649_v42, %v612_v8 }
 0x659   :  { %v653_v44 = vmul.f32 0.5, %v652_v41  ;;  %v631_v45 = vpop.xlane.xlu2 %630 }
 0x65a   :  { %v635_v38 = vmul.f32 %v631_v45, %v2463_v24  ;;  %v685_v15 = vmul.f32 %v2157_v56, %v680_v40 }
 0x65b   :  { %v654_v39 = vsub.f32 1.5, %v653_v44 }
 0x65c   :  { %v2218_v47 = vpop.eup %2217  ;;  %v639_v49 = vadd.f32 1e-05, %v635_v38  ;;  %v690_v8 = vadd.f32 %v2158_v57, %v685_v15 }
 0x65d   :  { %v655_v51 = vmul.f32 %v2216_v35, %v654_v39  ;;  %v661_v52 = vmul.f32 %v2218_v47, %v638_v36  ;;  %vm667_vm6 = vweird.f32 %v2218_v47 }
 0x65e   :  { %2219 = vrsqrt.f32 %v639_v49  ;;  %vm668_vm9 = vmor %vm666_vm7, %vm667_vm6  ;;  %vm676_vm12 = vweird.f32 %v639_v49 }
 0x65f   :  { %v659_v9 = vsel %vm658_vm4, %v2216_v35, %v655_v51  ;;  %v662_v55 = vmul.f32 %v2218_v47, %v661_v52 }
 0x660   :  { %v681_v59 = vmul.f32 %v659_v9, %v2673_v14 }
 0x661   :  { %v663_v60 = vmul.f32 0.5, %v662_v55 }
 0x662   :  { %v686_v61 = vmul.f32 %v2157_v56, %v681_v59 }
 0x663   :  { %v664_v63 = vsub.f32 1.5, %v663_v60 }
 0x664   :  { %v2220_v62 = vpop.eup %2219  ;;  %v691_v0 = vadd.f32 %v2158_v57, %v686_v61 }
 0x665   :  { %v665_v1 = vmul.f32 %v2218_v47, %v664_v63  ;;  %v671_v2 = vmul.f32 %v2220_v62, %v639_v49  ;;  %vm677_vm10 = vweird.f32 %v2220_v62 }
 0x666   :  { %v698_v3 = vpack.c.bf16 %v691_v0, %v690_v8  ;;  %vm678_vm13 = vmor %vm676_vm12, %vm677_vm10 }
 0x667   :  { %v672_v4 = vmul.f32 %v2220_v62, %v671_v2  ;;  %v669_v6 = vsel %vm668_vm9, %v2218_v47, %v665_v1 }
 0x668   :  { %1892 = vmatmul.msk.bf16.vlgmr.msra.gmra.mxu1 %vm119_vm0, %v698_v3  ;;  %v682_v14 = vmul.f32 %v669_v6, %v2680_v53  ;;  %v2071_v53 = vld [vmem:[%s3094_s14 + $0x30] sm:$0xff] }
 0x669   :  { %v673_v7 = vmul.f32 0.5, %v672_v4  ;;  %842 = vmatpush.bf16.msra.mxu3 %v2071_v53 }
 0x66a   :  { %v687_v17 = vmul.f32 %v2157_v56, %v682_v14 }
 0x66b   :  { %v674_v10 = vsub.f32 1.5, %v673_v7 }
 0x66c   :  { %v692_v18 = vadd.f32 %v2158_v57, %v687_v17 }
 0x66d   :  { %v675_v11 = vmul.f32 %v2220_v62, %v674_v10 }
 0x66f   :  { %v679_v13 = vsel %vm678_vm13, %v2220_v62, %v675_v11 }
 0x670   :  { %v683_v16 = vmul.f32 %v679_v13, %v2687_v12  ;;  %v2070_v12 = vld [vmem:[%s3094_s14 + $0x28] sm:$0xff] }
 0x671   :  { %843 = vmatpush.bf16.msra.mxu3 %v2070_v12 }
 0x672   :  { %v688_v5 = vmul.f32 %v2157_v56, %v683_v16 }
 0x674   :  { %v693_v19 = vadd.f32 %v2158_v57, %v688_v5 }
 0x675   :  { %844 = vmatpush.bf16.msra.mxu3 %v2069_v23 }
 0x676   :  { %v699_v20 = vpack.c.bf16 %v693_v19, %v692_v18 }
 0x678   :  { %1893 = vmatmul.msk.bf16.gmra.mxu1 %vm119_vm0, %v699_v20 }
 0x679   :  { %845 = vmatpush.bf16.msra.mxu3 %v2068_v25 }
 0x67d   :  { %846 = vmatpush.bf16.msra.mxu3 %v2067_v26 }
 0x681   :  { %847 = vmatpush.bf16.msra.mxu3 %v2066_v27 }
 0x685   :  { %848 = vmatpush.bf16.msra.mxu3 %v2065_v28 }
 0x6e5   :  { %v729_v32 = vpop.f32.mrf.mxu1 }
 0x6e6   :  { %v730_v33 = vadd.f32 %v2159_v31, %v729_v32 }
 0x6e8   :  { %v743_v34 = vmul.f32 0.044715, %v730_v33  ;;  %v739_v63 = vmul.f32 0.5, %v730_v33 }
 0x6ea   :  { %v747_v35 = vmul.f32 %v743_v34, %v730_v33 }
 0x6ec   :  { %v751_v36 = vmul.f32 %v747_v35, %v730_v33 }
 0x6ed   :  { %v731_v37 = vpop.f32.mrf.mxu1 }
 0x6ee   :  { %v755_v30 = vadd.f32 %v751_v36, %v730_v33  ;;  %v732_v41 = vadd.f32 %v2159_v31, %v731_v37 }
 0x6f0   :  { %v744_v42 = vmul.f32 0.044715, %v732_v41  ;;  %v759_v44 = vmul.f32 0.7978846, %v755_v30  ;;  %v740_v62 = vmul.f32 0.5, %v732_v41 }
 0x6f2   :  { %v748_v45 = vmul.f32 %v744_v42, %v732_v41  ;;  %2221 = vtanh.f32 %v759_v44 }
 0x6f4   :  { %v752_v38 = vmul.f32 %v748_v45, %v732_v41 }
 0x6f5   :  { %v734_v39 = vpop.f32.mrf.mxu1 }
 0x6f6   :  { %v756_v47 = vadd.f32 %v752_v38, %v732_v41  ;;  %v735_v56 = vadd.f32 %v2159_v31, %v734_v39 }
 0x6f8   :  { %v760_v40 = vmul.f32 0.7978846, %v756_v47  ;;  %v745_v49 = vmul.f32 0.044715, %v735_v56  ;;  %v2222_v52 = vpop.eup %2221  ;;  %v741_v16 = vmul.f32 0.5, %v735_v56 }
 0x6f9   :  { %v767_v59 = vadd.f32 1.0, %v2222_v52 }
 0x6fa   :  { %2223 = vtanh.f32 %v760_v40  ;;  %v749_v51 = vmul.f32 %v745_v49, %v735_v56 }
 0x6fb   :  { %v771_v2 = vmul.f32 %v767_v59, %v739_v63 }
 0x6fc   :  { %v753_v9 = vmul.f32 %v749_v51, %v735_v56 }
 0x6fd   :  { %v736_v55 = vpop.f32.mrf.mxu1 }
 0x6fe   :  { %v737_v57 = vadd.f32 %v2159_v31, %v736_v55  ;;  %v757_v15 = vadd.f32 %v753_v9, %v735_v56 }
 0x700   :  { %v2224_v60 = vpop.eup %2223  ;;  %v746_v61 = vmul.f32 0.044715, %v737_v57  ;;  %v761_v1 = vmul.f32 0.7978846, %v757_v15  ;;  %v742_v17 = vmul.f32 0.5, %v737_v57 }
 0x701   :  { %v768_v8 = vadd.f32 1.0, %v2224_v60  ;;  %v2074_v60 = vld [vmem:[%s3086_s6 + $0x18] sm:$0xff] }
 0x702   :  { %v750_v0 = vmul.f32 %v746_v61, %v737_v57  ;;  %2225 = vtanh.f32 %v761_v1  ;;  %1006 = vmatpush.bf16.msrb.mxu0 %v2074_v60 }
 0x703   :  { %v772_v3 = vmul.f32 %v768_v8, %v740_v62  ;;  %v2073_v8 = vld [vmem:[%s3086_s6 + $0x10] sm:$0xff] }
 0x704   :  { %v754_v4 = vmul.f32 %v750_v0, %v737_v57 }
 0x705   :  { %v791_v6 = vpack.c.bf16 %v772_v3, %v771_v2 }
 0x706   :  { %v758_v7 = vadd.f32 %v754_v4, %v737_v57  ;;  %1007 = vmatpush.bf16.msrb.mxu0 %v2073_v8 }
 0x707   :  { %849 = vmatmul.bf16.vlgmr.msra.gmra.mxu3 %v791_v6 }
 0x708   :  { %v762_v10 = vmul.f32 0.7978846, %v758_v7  ;;  %v2226_v14 = vpop.eup %2225 }
 0x709   :  { %v769_v11 = vadd.f32 1.0, %v2226_v14 }
 0x70a   :  { %2227 = vtanh.f32 %v762_v10 }
 0x70b   :  { %v773_v18 = vmul.f32 %v769_v11, %v741_v16 }
 0x710   :  { %v2228_v13 = vpop.eup %2227 }
 0x711   :  { %v770_v5 = vadd.f32 1.0, %v2228_v13 }
 0x713   :  { %v774_v19 = vmul.f32 %v770_v5, %v742_v17 }
 0x715   :  { %v792_v20 = vpack.c.bf16 %v774_v19, %v773_v18 }
 0x717   :  { %854 = vmatmul.bf16.gmra.mxu3 %v792_v20 }
 0x78a   :  { %v850_v53 = vpop.f32.mrf.mxu3 }
 0x78b   :  { %v860_v12 = vadd.f32 %v850_v53, %v2649_v46 }
 0x78d   :  { %v2744_v23 = vadd.f32 %v2160_v22, %v860_v12 }
 0x78f   :  { %v872_v25 = vsel %vm119_vm0, %v2744_v23, 0.0 }
 0x790   :  { %873 = vadd.xlane.f32.xlu0 %v872_v25 }
 0x792   :  { %v852_v26 = vpop.f32.mrf.mxu3 }
 0x793   :  { %v861_v27 = vadd.f32 %v852_v26, %v2654_v48 }
 0x795   :  { %v2749_v28 = vadd.f32 %v2160_v22, %v861_v27 }
 0x797   :  { %v875_v31 = vsel %vm119_vm0, %v2749_v28, 0.0 }
 0x798   :  { %876 = vadd.xlane.f32.xlu2 %v875_v31  ;;  %v2161_v31 = vld [vmem:[%s3084_s4 + $0x1] ss:$0 sm:$0xff] }
 0x79a   :  { %v855_v32 = vpop.f32.mrf.mxu3 }
 0x79b   :  { %v862_v33 = vadd.f32 %v855_v32, %v2659_v54 }
 0x79d   :  { %v2754_v34 = vadd.f32 %v2160_v22, %v862_v33 }
 0x79f   :  { %v878_v46 = vsel %vm119_vm0, %v2754_v34, 0.0 }
 0x7a0   :  { %879 = vadd.xlane.f32.xlu1 %v878_v46 }
 0x7a2   :  { %v857_v35 = vpop.f32.mrf.mxu3 }
 0x7a3   :  { %v863_v36 = vadd.f32 %v857_v35, %v2664_v58 }
 0x7a5   :  { %v2759_v37 = vadd.f32 %v2160_v22, %v863_v36 }
 0x7a7   :  { %v881_v48 = vsel %vm119_vm0, %v2759_v37, 0.0 }
 0x7a8   :  { %882 = vadd.xlane.f32.xlu0 %v881_v48 }
 0x803   :  { %v874_v30 = vpop.xlane.xlu0 %873 }
 0x804   :  { %v884_v41 = vmul.f32 %v874_v30, %v2463_v24  ;;  %v2162_v30 = vld [vmem:[%s3085_s5 + $0x1] ss:$0 sm:$0xff] }
 0x806   :  { %v888_v54 = vsub.f32 %v2744_v23, %v884_v41 }
 0x808   :  { %v892_v42 = vmul.f32 %v888_v54, %v888_v54 }
 0x80a   :  { %v896_v44 = vsel %vm119_vm0, %v892_v42, 0.0 }
 0x80b   :  { %897 = vadd.xlane.f32.xlu2 %v896_v44  ;;  %v877_v45 = vpop.xlane.xlu2 %876 }
 0x80c   :  { %v885_v38 = vmul.f32 %v877_v45, %v2463_v24 }
 0x80e   :  { %v889_v58 = vsub.f32 %v2749_v28, %v885_v38 }
 0x810   :  { %v893_v39 = vmul.f32 %v889_v58, %v889_v58 }
 0x812   :  { %v899_v47 = vsel %vm119_vm0, %v893_v39, 0.0 }
 0x813   :  { %v880_v56 = vpop.xlane.xlu1 %879  ;;  %900 = vadd.xlane.f32.xlu1 %v899_v47 }
 0x814   :  { %v886_v40 = vmul.f32 %v880_v56, %v2463_v24 }
 0x816   :  { %v2771_v49 = vsub.f32 %v2754_v34, %v886_v40 }
 0x818   :  { %v894_v51 = vmul.f32 %v2771_v49, %v2771_v49 }
 0x81a   :  { %v902_v52 = vsel %vm119_vm0, %v894_v51, 0.0 }
 0x81b   :  { %903 = vadd.xlane.f32.xlu0 %v902_v52  ;;  %v883_v9 = vpop.xlane.xlu0 %882 }
 0x81c   :  { %v887_v55 = vmul.f32 %v883_v9, %v2463_v24 }
 0x81e   :  { %v2778_v57 = vsub.f32 %v2759_v37, %v887_v55 }
 0x820   :  { %v895_v15 = vmul.f32 %v2778_v57, %v2778_v57 }
 0x822   :  { %v905_v59 = vsel %vm119_vm0, %v895_v15, 0.0 }
 0x823   :  { %906 = vadd.xlane.f32.xlu2 %v905_v59 }
 0x87e   :  { %v898_v61 = vpop.xlane.xlu2 %897 }
 0x87f   :  { %v908_v63 = vmul.f32 %v898_v61, %v2463_v24 }
 0x881   :  { %v912_v62 = vadd.f32 1e-05, %v908_v63 }
 0x883   :  { %2229 = vrsqrt.f32 %v912_v62  ;;  %vm922_vm1 = vweird.f32 %v912_v62 }
 0x886   :  { %v901_v0 = vpop.xlane.xlu1 %900 }
 0x887   :  { %v909_v1 = vmul.f32 %v901_v0, %v2463_v24 }
 0x889   :  { %v2230_v2 = vpop.eup %2229  ;;  %v913_v3 = vadd.f32 1e-05, %v909_v1  ;;  %v2163_v1 = vld [vmem:[%s3087_s7 + $0x1] ss:$0 sm:$0xff]  ;;  %s3124_s7 = smov 16  }
 0x88a   :  { %v917_v4 = vmul.f32 %v2230_v2, %v912_v62  ;;  %vm923_vm15 = vweird.f32 %v2230_v2 }
 0x88b   :  { %2231 = vrsqrt.f32 %v913_v3  ;;  %vm924_vm3 = vmor %vm922_vm1, %vm923_vm15  ;;  %vm932_vm6 = vweird.f32 %v913_v3 }
 0x88c   :  { %v918_v6 = vmul.f32 %v2230_v2, %v917_v4 }
 0x88e   :  { %v919_v7 = vmul.f32 0.5, %v918_v6  ;;  %v904_v10 = vpop.xlane.xlu0 %903 }
 0x88f   :  { %v910_v14 = vmul.f32 %v904_v10, %v2463_v24 }
 0x890   :  { %v920_v11 = vsub.f32 1.5, %v919_v7 }
 0x891   :  { %v2232_v13 = vpop.eup %2231  ;;  %v914_v16 = vadd.f32 1e-05, %v910_v14 }
 0x892   :  { %v921_v17 = vmul.f32 %v2230_v2, %v920_v11  ;;  %v927_v5 = vmul.f32 %v2232_v13, %v913_v3  ;;  %vm933_vm4 = vweird.f32 %v2232_v13 }
 0x893   :  { %2233 = vrsqrt.f32 %v914_v16  ;;  %vm934_vm7 = vmor %vm932_vm6, %vm933_vm4  ;;  %vm942_vm10 = vweird.f32 %v914_v16 }
 0x894   :  { %v928_v18 = vmul.f32 %v2232_v13, %v927_v5  ;;  %v925_v19 = vsel %vm924_vm3, %v2230_v2, %v921_v17 }
 0x895   :  { %v956_v26 = vmul.f32 %v925_v19, %v888_v54 }
 0x896   :  { %v929_v20 = vmul.f32 0.5, %v928_v18  ;;  %v907_v22 = vpop.xlane.xlu2 %906 }
 0x897   :  { %v911_v53 = vmul.f32 %v907_v22, %v2463_v24  ;;  %v961_v48 = vmul.f32 %v2161_v31, %v956_v26 }
 0x898   :  { %v930_v12 = vsub.f32 1.5, %v929_v20 }
 0x899   :  { %v2234_v25 = vpop.eup %2233  ;;  %v915_v27 = vadd.f32 1e-05, %v911_v53  ;;  %v966_v45 = vadd.f32 %v2162_v30, %v961_v48 }
 0x89a   :  { %v931_v32 = vmul.f32 %v2232_v13, %v930_v12  ;;  %v937_v33 = vmul.f32 %v2234_v25, %v914_v16  ;;  %vm943_vm9 = vweird.f32 %v2234_v25 }
 0x89b   :  { %2235 = vrsqrt.f32 %v915_v27  ;;  %vm944_vm12 = vmor %vm942_vm10, %vm943_vm9  ;;  %vm952_vm15 = vweird.f32 %v915_v27 }
 0x89c   :  { %v935_v46 = vsel %vm934_vm7, %v2232_v13, %v931_v32  ;;  %v938_v35 = vmul.f32 %v2234_v25, %v937_v33 }
 0x89d   :  { %v957_v36 = vmul.f32 %v935_v46, %v889_v58 }
 0x89e   :  { %v939_v41 = vmul.f32 0.5, %v938_v35 }
 0x89f   :  { %v962_v54 = vmul.f32 %v2161_v31, %v957_v36 }
 0x8a0   :  { %v940_v42 = vsub.f32 1.5, %v939_v41 }
 0x8a1   :  { %v2236_v44 = vpop.eup %2235  ;;  %v967_v38 = vadd.f32 %v2162_v30, %v962_v54 }
 0x8a2   :  { %v941_v39 = vmul.f32 %v2234_v25, %v940_v42  ;;  %v947_v47 = vmul.f32 %v2236_v44, %v915_v27  ;;  %vm953_vm13 = vweird.f32 %v2236_v44 }
 0x8a3   :  { %v975_v56 = vpack.c.bf16 %v967_v38, %v966_v45  ;;  %vm954_vm1 = vmor %vm952_vm15, %vm953_vm13 }
 0x8a4   :  { %v948_v40 = vmul.f32 %v2236_v44, %v947_v47  ;;  %v945_v58 = vsel %vm944_vm12, %v2234_v25, %v941_v39 }
 0x8a5   :  { %1939 = vmatmul.msk.bf16.vlgmr.msrb.gmra.mxu0 %vm119_vm0, %v975_v56  ;;  %v958_v9 = vmul.f32 %v945_v58, %v2771_v49 }
 0x8a6   :  { %v949_v51 = vmul.f32 0.5, %v948_v40 }
 0x8a7   :  { %v963_v60 = vmul.f32 %v2161_v31, %v958_v9 }
 0x8a8   :  { %v950_v52 = vsub.f32 1.5, %v949_v51 }
 0x8a9   :  { %v968_v63 = vadd.f32 %v2162_v30, %v963_v60 }
 0x8aa   :  { %v951_v55 = vmul.f32 %v2236_v44, %v950_v52 }
 0x8ac   :  { %v955_v15 = vsel %vm954_vm1, %v2236_v44, %v951_v55 }
 0x8ad   :  { %v959_v59 = vmul.f32 %v955_v15, %v2778_v57 }
 0x8af   :  { %v964_v61 = vmul.f32 %v2161_v31, %v959_v59 }
 0x8b1   :  { %v969_v62 = vadd.f32 %v2162_v30, %v964_v61 }
 0x8b3   :  { %v976_v8 = vpack.c.bf16 %v969_v62, %v968_v63 }
 0x8b5   :  { %1940 = vmatmul.msk.bf16.gmra.mxu0 %vm119_vm0, %v976_v8 }
 0x922   :  { %v1009_v0 = vpop.f32.mrf.mxu0 }
 0x923   :  { %v1010_v2 = vadd.f32 %v2163_v1, %v1009_v0 }
 0x925   :  { %v1019_v4 = vmul.f32 0.25, %v1010_v2 }
 0x92a   :  { %v1011_v49 = vpop.f32.mrf.mxu0 }
 0x92b   :  { %v1012_v3 = vadd.f32 %v2163_v1, %v1011_v49 }
 0x92d   :  { %v1020_v6 = vmul.f32 0.25, %v1012_v3  ;;  %v2806_v7 = vpack.c.bf16 %v1012_v3, %v1010_v2 }
 0x92f   :  { %1151 = vrot.lane.b32.xlu0 %v2806_v7, %s2320_s23  ;;  %v1023_v57 = vpack.c.bf16 %v1020_v6, %v1019_v4 }
 0x931   :  { %1147 = vrot.lane.b32.xlu2 %v1023_v57, %s2321_s24 }
 0x932   :  { %v1014_v10 = vpop.f32.mrf.mxu0 }
 0x933   :  { %v1015_v14 = vadd.f32 %v2163_v1, %v1014_v10 }
 0x935   :  { %v1021_v16 = vmul.f32 0.25, %v1015_v14 }
 0x939   :  { %1029 = vrot.lane.b32.xlu2 %v2806_v7, %s2322_s25 }
 0x93a   :  { %v1016_v11 = vpop.f32.mrf.mxu0 }
 0x93b   :  { %v1017_v13 = vadd.f32 %v2163_v1, %v1016_v11 }
 0x93d   :  { %v1022_v17 = vmul.f32 0.25, %v1017_v13  ;;  %v2813_v5 = vpack.c.bf16 %v1017_v13, %v1015_v14 }
 0x93f   :  { %1153 = vrot.lane.b32.xlu1 %v2813_v5, %s2320_s23  ;;  %v1024_v18 = vpack.c.bf16 %v1022_v17, %v1021_v16 }
 0x941   :  { %1149 = vrot.lane.b32.xlu0 %v1024_v18, %s2321_s24 }
 0x947   :  { %1031 = vrot.lane.b32.xlu1 %v2813_v5, %s2322_s25 }
 0x98b   :  { %v1148_v22 = vpop.permute.xlu2 %1147 }
 0x993   :  { %v1030_v27 = vpop.permute.xlu2 %1029 }
 0x994   :  { %v1040_v31 = vsel %vm286_vm14, %v1030_v27, 0 }
 0x9a1   :  { %v1152_v53 = vpop.permute.xlu0 %1151 }
 0x9a2   :  { %v1162_v25 = vsel %vm286_vm14, %v1152_v53, 0 }
 0x9b1   :  { %v1154_v19 = vpop.permute.xlu1 %1153 }
 0x9b2   :  { %v1165_v20 = vsel %vm286_vm14, %v1154_v19, 0 }
 0x9b3   :  { %1173 = vmatpush.bf16.xpose.msrb.mxu3 %v1165_v20  ;;  %v1150_v32 = vpop.permute.xlu0 %1149 }
 0x9b9   :  { %v1032_v12 = vpop.permute.xlu1 %1031 }
 0x9ba   :  { %v1043_v26 = vsel %vm286_vm14, %v1032_v12, 0 }
 0x9bb   :  { %1051 = vmatpush.bf16.xpose.msrb.mxu2 %v1043_v26  ;;  %1174 = vmatpush.bf16.xpose.msrb.mxu3 %v1162_v25 }
 0x9c2   :  { %1945 = vmatmul.msk.bf16.vlgmr.msrb.gmra.mxu3 %vm286_vm14, %v1148_v22 }
 0x9c3   :  { %1052 = vmatpush.bf16.xpose.msrb.mxu2 %v1040_v31 }
 0x9ca   :  { %1941 = vmatmul.msk.bf16.vlgmr.msrb.gmra.mxu2 %vm286_vm14, %v1023_v57 }
 0x9d2   :  { %1946 = vmatmul.msk.bf16.gmra.mxu3 %vm286_vm14, %v1150_v32 }
 0x9da   :  { %1942 = vmatmul.msk.bf16.gmra.mxu2 %vm286_vm14, %v1024_v18 }
 0xa45   :  { %v1176_v33 = vpop.f32.mrf.mxu3 }
 0xa46   :  { %v1186_v46 = vsel %vm2555_vm2, %v1176_v33, -1e+09 }
 0xa47   :  { %v1190_v35 = vsel %vm119_vm0, %v1186_v46, -inf }
 0xa48   :  { %1191 = vmax.xlane.f32.xlu0 %v1190_v35 }
 0xa4d   :  { %v1054_v36 = vpop.f32.mrf.mxu2  ;;  %v1178_v48 = vpop.f32.mrf.mxu3 }
 0xa4e   :  { %v1064_v30 = vsel %vm2555_vm2, %v1054_v36, -1e+09  ;;  %v1187_v41 = vsel %vm2565_vm5, %v1178_v48, -1e+09 }
 0xa4f   :  { %v1193_v54 = vsel %vm119_vm0, %v1187_v41, -inf  ;;  %v1068_v42 = vsel %vm119_vm0, %v1064_v30, -inf }
 0xa50   :  { %1194 = vmax.xlane.f32.xlu1 %v1193_v54  ;;  %1069 = vmax.xlane.f32.xlu2 %v1068_v42 }
 0xa55   :  { %v1056_v44 = vpop.f32.mrf.mxu2  ;;  %v1181_v45 = vpop.f32.mrf.mxu3 }
 0xa56   :  { %v2839_v38 = vsel %vm2565_vm5, %v1056_v44, -1e+09  ;;  %v1188_v39 = vsel %vm2578_vm8, %v1181_v45, -1e+09 }
 0xa57   :  { %v1196_v21 = vsel %vm119_vm0, %v1188_v39, -inf  ;;  %v1071_v47 = vsel %vm119_vm0, %v2839_v38, -inf }
 0xa58   :  { %1197 = vmax.xlane.f32.xlu2 %v1196_v21  ;;  %1072 = vmax.xlane.f32.xlu1 %v1071_v47 }
 0xa5d   :  { %v1059_v56 = vpop.f32.mrf.mxu2  ;;  %v1183_v40 = vpop.f32.mrf.mxu3 }
 0xa5e   :  { %v1066_v58 = vsel %vm2578_vm8, %v1059_v56, -1e+09  ;;  %v1189_v29 = vsel %vm2588_vm11, %v1183_v40, -1e+09 }
 0xa5f   :  { %v1199_v51 = vsel %vm119_vm0, %v1189_v29, -inf  ;;  %v1074_v52 = vsel %vm119_vm0, %v1066_v58, -inf }
 0xa60   :  { %1200 = vmax.xlane.f32.xlu0 %v1199_v51  ;;  %1075 = vmax.xlane.f32.xlu1 %v1074_v52 }
 0xa65   :  { %v1061_v9 = vpop.f32.mrf.mxu2 }
 0xa66   :  { %v1067_v55 = vsel %vm2588_vm11, %v1061_v9, -1e+09 }
 0xa67   :  { %v1077_v15 = vsel %vm119_vm0, %v1067_v55, -inf }
 0xa68   :  { %1078 = vmax.xlane.f32.xlu0 %v1077_v15 }
 0xa79   :  { %1236 = vrot.lane.b32.xlu1 %v2806_v7, %s2324_s2 }
 0xa81   :  { %1116 = vrot.lane.b32.xlu1 %v2813_v5, %s2325_s3 }
 0xabb   :  { %v1192_v43 = vpop.xlane.xlu0 %1191 }
 0xabc   :  { %v1202_v59 = vsub.f32 %v1186_v46, %v1192_v43 }
 0xabe   :  { %v1206_v60 = vmul.f32 1.442695, %v1202_v59 }
 0xac0   :  { %2237 = vpow2.f32 %v1206_v60 }
 0xac3   :  { %v1195_v61 = vpop.xlane.xlu1 %1194  ;;  %v1070_v63 = vpop.xlane.xlu2 %1069 }
 0xac4   :  { %v1203_v62 = vsub.f32 %v1187_v41, %v1195_v61  ;;  %v1080_v8 = vsub.f32 %v1064_v30, %v1070_v63 }
 0xac6   :  { %v2859_v0 = vpop.eup %2237  ;;  %v1208_v50 = vmul.f32 1.442695, %v1203_v62  ;;  %v1084_v1 = vmul.f32 1.442695, %v1080_v8 }
 0xac7   :  { %v1214_v2 = vsel %vm119_vm0, %v2859_v0, 0.0 }
 0xac8   :  { %2239 = vpow2.f32 %v1208_v50  ;;  %1215 = vadd.xlane.f32.xlu0 %v1214_v2 }
 0xac9   :  { %2241 = vpow2.f32 %v1084_v1 }
 0xacb   :  { %v1198_v49 = vpop.xlane.xlu2 %1197  ;;  %v1073_v3 = vpop.xlane.xlu1 %1072 }
 0xacc   :  { %v1204_v4 = vsub.f32 %v1188_v39, %v1198_v49  ;;  %v1081_v33 = vsub.f32 %v2839_v38, %v1073_v3 }
 0xace   :  { %v2240_v6 = vpop.eup %2239  ;;  %v1210_v57 = vmul.f32 1.442695, %v1204_v4  ;;  %v1086_v46 = vmul.f32 1.442695, %v1081_v33 }
 0xacf   :  { %v2863_v10 = vpop.eup %2241  ;;  %v1217_v14 = vsel %vm119_vm0, %v2240_v6, 0.0 }
 0xad0   :  { %2243 = vpow2.f32 %v1210_v57  ;;  %1218 = vadd.xlane.f32.xlu2 %v1217_v14  ;;  %v1092_v11 = vsel %vm119_vm0, %v2863_v10, 0.0 }
 0xad1   :  { %1093 = vadd.xlane.f32.xlu0 %v1092_v11 }
 0xad3   :  { %v1201_v13 = vpop.xlane.xlu0 %1200  ;;  %v1076_v16 = vpop.xlane.xlu1 %1075 }
 0xad4   :  { %v1205_v17 = vsub.f32 %v1189_v29, %v1201_v13  ;;  %v1082_v18 = vsub.f32 %v1066_v58, %v1076_v16  ;;  %v2076_v13 = vld [vmem:[%s3088_s8 + $0x18] sm:$0xff]  ;;  %v2075_v16 = vld [vmem:[%s3088_s8 + $0x10] sm:$0xff]  ;;  %s1844_s8 = sshll.u32 %s3099_s19, 4  ;;  %s1845_s8 = int_to_ptr.hbm [resolvable:$true] %s1844_s8 }
 0xad5   :  { %1318 = vmatpush.bf16.msra.mxu2 %v2076_v13 }
 0xad6   :  { %v2244_v19 = vpop.eup %2243  ;;  %v1212_v20 = vmul.f32 1.442695, %v1205_v17  ;;  %v1088_v22 = vmul.f32 1.442695, %v1082_v18 }
 0xad7   :  { %v1220_v53 = vsel %vm119_vm0, %v2244_v19, 0.0 }
 0xad8   :  { %2245 = vpow2.f32 %v1212_v20 }
 0xad9   :  { %2247 = vpow2.f32 %v1088_v22  ;;  %1221 = vadd.xlane.f32.xlu0 %v1220_v53  ;;  %1319 = vmatpush.bf16.msra.mxu2 %v2075_v16 }
 0xada   :  { %2249 = vpow2.f32 %v1086_v46 }
 0xadb   :  { %v1079_v35 = vpop.xlane.xlu0 %1078 }
 0xadc   :  { %v1083_v48 = vsub.f32 %v1067_v55, %v1079_v35 }
 0xade   :  { %v2246_v12 = vpop.eup %2245  ;;  %v1090_v41 = vmul.f32 1.442695, %v1083_v48  ;;  %v2164_v48 = vld [vmem:[%s3089_s9 + $0x1] ss:$0 sm:$0xff]  ;;  %s1842_s9 = sshll.u32 %s2327_s13, 4  ;;  %s1843_s9 = int_to_ptr.vmem [resolvable:$true] %s1842_s9 }
 0xadf   :  { %v2869_v25 = vpop.eup %2247  ;;  %v1223_v26 = vsel %vm119_vm0, %v2246_v12, 0.0 }
 0xae0   :  { %v1098_v27 = vsel %vm119_vm0, %v2869_v25, 0.0  ;;  %v2250_v36 = vpop.eup %2249  ;;  %2251 = vpow2.f32 %v1090_v41 }
 0xae1   :  { %1099 = vadd.xlane.f32.xlu1 %v1098_v27  ;;  %1224 = vadd.xlane.f32.xlu0 %v1223_v26  ;;  %v1095_v30 = vsel %vm119_vm0, %v2250_v36, 0.0 }
 0xae6   :  { %v2252_v54 = vpop.eup %2251 }
 0xae8   :  { %1238 = vrot.lane.b32.xlu2 %v2813_v5, %s2324_s2  ;;  %v1101_v5 = vsel %vm119_vm0, %v2252_v54, 0.0 }
 0xaeb   :  { %v1237_v31 = vpop.permute.xlu1 %1236 }
 0xaf3   :  { %v1117_v32 = vpop.permute.xlu1 %1116 }
 0xaf4   :  { %1132 = vmatpush.bf16.msrb.mxu1 %v1117_v32 }
 0xaf5   :  { %1114 = vrot.lane.b32.xlu0 %v2806_v7, %s2325_s3 }
 0xb11   :  { %1096 = vadd.xlane.f32.xlu2 %v1095_v30 }
 0xb1f   :  { %1102 = vadd.xlane.f32.xlu0 %v1101_v5 }
 0xb3b   :  { %v1216_v42 = vpop.xlane.xlu0 %1215 }
 0xb43   :  { %v1219_v44 = vpop.xlane.xlu2 %1218 }
 0xb44   :  { %2253 = vrcp.f32 %v1219_v44  ;;  %v1094_v7 = vpop.xlane.xlu0 %1093 }
 0xb45   :  { %2255 = vrcp.f32 %v1216_v42 }
 0xb4a   :  { %v2254_v45 = vpop.eup %2253 }
 0xb4b   :  { %v1239_v38 = vpop.permute.xlu2 %1238  ;;  %v2256_v39 = vpop.eup %2255  ;;  %v1231_v47 = vmul.f32 %v2254_v45, %v2240_v6 }
 0xb4c   :  { %v1222_v21 = vpop.xlane.xlu0 %1221  ;;  %1254 = vmatpush.bf16.msra.mxu0 %v1239_v38  ;;  %v1230_v56 = vmul.f32 %v2256_v39, %v2859_v0 }
 0xb4d   :  { %2257 = vrcp.f32 %v1222_v21 }
 0xb4e   :  { %v1234_v40 = vpack.c.bf16 %v1231_v47, %v1230_v56 }
 0xb50   :  { %1255 = vmatpush.bf16.msra.mxu0 %v1237_v31 }
 0xb53   :  { %1947 = vmatmul.msk.bf16.vlgmr.msra.gmra.mxu0 %vm119_vm0, %v1234_v40  ;;  %v2258_v29 = vpop.eup %2257 }
 0xb54   :  { %v1225_v58 = vpop.xlane.xlu0 %1224  ;;  %v1232_v9 = vmul.f32 %v2258_v29, %v2244_v19  ;;  %v1100_v8 = vpop.xlane.xlu1 %1099 }
 0xb55   :  { %2259 = vrcp.f32 %v1225_v58 }
 0xb56   :  { %2261 = vrcp.f32 %v1094_v7 }
 0xb5b   :  { %v2260_v51 = vpop.eup %2259 }
 0xb5c   :  { %v1233_v52 = vmul.f32 %v2260_v51, %v2246_v12  ;;  %v2262_v59 = vpop.eup %2261 }
 0xb5d   :  { %v1108_v61 = vmul.f32 %v2262_v59, %v2863_v10 }
 0xb5e   :  { %v1235_v55 = vpack.c.bf16 %v1233_v52, %v1232_v9 }
 0xb63   :  { %1948 = vmatmul.msk.bf16.gmra.mxu0 %vm119_vm0, %v1235_v55 }
 0xb67   :  { %v1115_v15 = vpop.permute.xlu0 %1114 }
 0xb68   :  { %1133 = vmatpush.bf16.msrb.mxu1 %v1115_v15 }
 0xb84   :  { %v1097_v43 = vpop.xlane.xlu2 %1096 }
 0xb85   :  { %2263 = vrcp.f32 %v1097_v43 }
 0xb86   :  { %2265 = vrcp.f32 %v1100_v8 }
 0xb8b   :  { %v2264_v60 = vpop.eup %2263 }
 0xb8c   :  { %v1109_v63 = vmul.f32 %v2264_v60, %v2250_v36  ;;  %v2266_v50 = vpop.eup %2265 }
 0xb8d   :  { %v1110_v49 = vmul.f32 %v2266_v50, %v2869_v25 }
 0xb8e   :  { %v1112_v62 = vpack.c.bf16 %v1109_v63, %v1108_v61 }
 0xb90   :  { %1943 = vmatmul.msk.bf16.vlgmr.msrb.gmra.mxu1 %vm119_vm0, %v1112_v62 }
 0xb92   :  { %v1103_v0 = vpop.xlane.xlu0 %1102 }
 0xb93   :  { %2267 = vrcp.f32 %v1103_v0 }
 0xb99   :  { %v2268_v1 = vpop.eup %2267 }
 0xb9a   :  { %v1111_v2 = vmul.f32 %v2268_v1, %v2252_v54 }
 0xb9c   :  { %v1113_v3 = vpack.c.bf16 %v1111_v2, %v1110_v49 }
 0xba0   :  { %1944 = vmatmul.msk.bf16.gmra.mxu1 %vm119_vm0, %v1113_v3  ;;  %v2078_v3 = vld [vmem:[%s3092_s12 + $0x18] sm:$0xff] }
 0xba1   :  { %1474 = vmatpush.bf16.msra.mxu1 %v2078_v3  ;;  %v2086_v3 = vld [vmem:[%s3094_s14 + $0x78] sm:$0xff] }
 0xba2   :  { %1590 = vmatpush.bf16.msra.mxu3 %v2086_v3 }
 0xbd0   :  { %v1257_v4 = vpop.f32.mrf.mxu0 }
 0xbd8   :  { %v1259_v6 = vpop.f32.mrf.mxu0 }
 0xbd9   :  { %v2142_v57 = vpack.i.bf16 %v1259_v6, %v1257_v4 }
 0xbdb   :  { %2143 = vrot.lane.b32.xlu2 %v2142_v57, %s3124_s7  ;;  %v2077_v57 = vld [vmem:[%s3092_s12 + $0x10] sm:$0xff] }
 0xbdc   :  { %1475 = vmatpush.bf16.msra.mxu1 %v2077_v57  ;;  %v2081_v57 = vld [vmem:[%s3094_s14 + $0x50] sm:$0xff] }
 0xbe0   :  { %v1262_v10 = vpop.f32.mrf.mxu0 }
 0xbe8   :  { %v1264_v14 = vpop.f32.mrf.mxu0 }
 0xbe9   :  { %v2147_v11 = vpack.i.bf16 %v1264_v14, %v1262_v10 }
 0xbeb   :  { %2148 = vrot.lane.b32.xlu1 %v2147_v11, %s3124_s7 }
 0xc0d   :  { %v1135_v17 = vpop.f32.mrf.mxu1 }
 0xc15   :  { %v1137_v22 = vpop.f32.mrf.mxu1 }
 0xc1d   :  { %v1140_v26 = vpop.f32.mrf.mxu1 }
 0xc25   :  { %v1142_v33 = vpop.f32.mrf.mxu1 }
 0xc35   :  { %v2144_v18 = vpop.permute.xlu2 %2143 }
 0xc36   :  { %v2146_v19 = vunpack.i.h.bf16 %v2144_v18  ;;  %v2145_v20 = vunpack.i.l.bf16 %v2144_v18 }
 0xc38   :  { %v1283_v53 = vsel %vm286_vm14, %v1135_v17, %v2145_v20  ;;  %v1284_v12 = vsel %vm286_vm14, %v1137_v22, %v2146_v19 }
 0xc39   :  { %v1292_v25 = vpack.c.bf16 %v1284_v12, %v1283_v53 }
 0xc3b   :  { %1961 = vmatmul.msk.bf16.vlgmr.msra.gmra.mxu2 %vm119_vm0, %v1292_v25 }
 0xc5d   :  { %v2149_v27 = vpop.permute.xlu1 %2148 }
 0xc5e   :  { %v2151_v31 = vunpack.i.h.bf16 %v2149_v27  ;;  %v2150_v32 = vunpack.i.l.bf16 %v2149_v27 }
 0xc60   :  { %v1285_v46 = vsel %vm286_vm14, %v1140_v26, %v2150_v32  ;;  %v1286_v35 = vsel %vm286_vm14, %v1142_v33, %v2151_v31  ;;  %v2165_v31 = vld [vmem:[%s3090_s10 + $0x1] ss:$0 sm:$0xff] }
 0xc61   :  { %v1293_v36 = vpack.c.bf16 %v1286_v35, %v1285_v46  ;;  %v2166_v35 = vld [vmem:[%s3091_s11 + $0x1] ss:$0 sm:$0xff] }
 0xc63   :  { %1962 = vmatmul.msk.bf16.gmra.mxu2 %vm119_vm0, %v1293_v36 }
 0xcbe   :  { %v1321_v30 = vpop.f32.mrf.mxu2 }
 0xcbf   :  { %v1331_v41 = vadd.f32 %v1321_v30, %v2744_v23 }
 0xcc1   :  { %v2906_v54 = vadd.f32 %v2164_v48, %v1331_v41 }
 0xcc3   :  { %v1343_v5 = vsel %vm119_vm0, %v2906_v54, 0.0 }
 0xcc4   :  { %1344 = vadd.xlane.f32.xlu2 %v1343_v5 }
 0xcc6   :  { %v1323_v42 = vpop.f32.mrf.mxu2 }
 0xcc7   :  { %v1332_v44 = vadd.f32 %v1323_v42, %v2749_v28 }
 0xcc9   :  { %v2911_v7 = vadd.f32 %v2164_v48, %v1332_v44 }
 0xccb   :  { %v1346_v45 = vsel %vm119_vm0, %v2911_v7, 0.0 }
 0xccc   :  { %1347 = vadd.xlane.f32.xlu0 %v1346_v45 }
 0xce6   :  { %v1326_v38 = vpop.f32.mrf.mxu2 }
 0xce7   :  { %v1333_v39 = vadd.f32 %v1326_v38, %v2754_v34 }
 0xce9   :  { %v2916_v21 = vadd.f32 %v2164_v48, %v1333_v39 }
 0xceb   :  { %v1349_v23 = vsel %vm119_vm0, %v2916_v21, 0.0 }
 0xcec   :  { %1350 = vadd.xlane.f32.xlu0 %v1349_v23 }
 0xcee   :  { %v1328_v47 = vpop.f32.mrf.mxu2 }
 0xcef   :  { %v1334_v56 = vadd.f32 %v1328_v47, %v2759_v37 }
 0xcf1   :  { %v2921_v40 = vadd.f32 %v2164_v48, %v1334_v56 }
 0xcf3   :  { %v1352_v28 = vsel %vm119_vm0, %v2921_v40, 0.0 }
 0xcf4   :  { %1353 = vadd.xlane.f32.xlu1 %v1352_v28 }
 0xd37   :  { %v1345_v58 = vpop.xlane.xlu2 %1344 }
 0xd38   :  { %v1355_v29 = vmul.f32 %v1345_v58, %v2463_v24 }
 0xd3a   :  { %v1359_v34 = vsub.f32 %v2906_v54, %v1355_v29 }
 0xd3c   :  { %v1363_v51 = vmul.f32 %v1359_v34, %v1359_v34 }
 0xd3e   :  { %v1367_v52 = vsel %vm119_vm0, %v1363_v51, 0.0 }
 0xd3f   :  { %1368 = vadd.xlane.f32.xlu0 %v1367_v52  ;;  %v1348_v9 = vpop.xlane.xlu0 %1347 }
 0xd40   :  { %v1356_v55 = vmul.f32 %v1348_v9, %v2463_v24 }
 0xd42   :  { %v1360_v37 = vsub.f32 %v2911_v7, %v1356_v55 }
 0xd44   :  { %v1364_v15 = vmul.f32 %v1360_v37, %v1360_v37 }
 0xd46   :  { %v1370_v43 = vsel %vm119_vm0, %v1364_v15, 0.0 }
 0xd47   :  { %1371 = vadd.xlane.f32.xlu0 %v1370_v43 }
 0xd5f   :  { %v1351_v59 = vpop.xlane.xlu0 %1350 }
 0xd60   :  { %v1357_v60 = vmul.f32 %v1351_v59, %v2463_v24 }
 0xd62   :  { %v2933_v61 = vsub.f32 %v2916_v21, %v1357_v60 }
 0xd64   :  { %v1365_v63 = vmul.f32 %v2933_v61, %v2933_v61 }
 0xd66   :  { %v1373_v62 = vsel %vm119_vm0, %v1365_v63, 0.0 }
 0xd67   :  { %v1354_v8 = vpop.xlane.xlu1 %1353  ;;  %1374 = vadd.xlane.f32.xlu0 %v1373_v62 }
 0xd68   :  { %v1358_v0 = vmul.f32 %v1354_v8, %v2463_v24 }
 0xd6a   :  { %v2940_v50 = vsub.f32 %v2921_v40, %v1358_v0 }
 0xd6c   :  { %v1366_v1 = vmul.f32 %v2940_v50, %v2940_v50 }
 0xd6e   :  { %v1376_v2 = vsel %vm119_vm0, %v1366_v1, 0.0 }
 0xd6f   :  { %1377 = vadd.xlane.f32.xlu2 %v1376_v2 }
 0xdb2   :  { %v1369_v49 = vpop.xlane.xlu0 %1368 }
 0xdb3   :  { %v1379_v4 = vmul.f32 %v1369_v49, %v2463_v24 }
 0xdb5   :  { %v1383_v6 = vadd.f32 1e-05, %v1379_v4  ;;  %v2083_v4 = vld [vmem:[%s3094_s14 + $0x60] sm:$0xff] }
 0xdb7   :  { %2269 = vrsqrt.f32 %v1383_v6  ;;  %vm1393_vm2 = vweird.f32 %v1383_v6 }
 0xdba   :  { %v1372_v10 = vpop.xlane.xlu0 %1371 }
 0xdbb   :  { %v1380_v14 = vmul.f32 %v1372_v10, %v2463_v24  ;;  %v2080_v10 = vld [vmem:[%s3094_s14 + $0x48] sm:$0xff] }
 0xdbd   :  { %v2270_v11 = vpop.eup %2269  ;;  %v1384_v13 = vadd.f32 1e-05, %v1380_v14  ;;  %v2167_v14 = vld [vmem:[%s3123_s26 + $0x1] ss:$0 sm:$0xff] }
 0xdbe   :  { %v1388_v16 = vmul.f32 %v2270_v11, %v1383_v6  ;;  %vm1394_vm14 = vweird.f32 %v2270_v11  ;;  %v2082_v6 = vld [vmem:[%s3094_s14 + $0x58] sm:$0xff] }
 0xdbf   :  { %2271 = vrsqrt.f32 %v1384_v13  ;;  %vm1395_vm5 = vmor %vm1393_vm2, %vm1394_vm14  ;;  %vm1403_vm11 = vweird.f32 %v1384_v13 }
 0xdc0   :  { %v1389_v17 = vmul.f32 %v2270_v11, %v1388_v16 }
 0xdc2   :  { %v1390_v18 = vmul.f32 0.5, %v1389_v17 }
 0xdc4   :  { %v1391_v19 = vsub.f32 1.5, %v1390_v18 }
 0xdc5   :  { %v2272_v20 = vpop.eup %2271 }
 0xdc6   :  { %v1392_v22 = vmul.f32 %v2270_v11, %v1391_v19  ;;  %v1398_v53 = vmul.f32 %v2272_v20, %v1384_v13  ;;  %vm1404_vm8 = vweird.f32 %v2272_v20 }
 0xdc7   :  { %vm1405_vm3 = vmor %vm1403_vm11, %vm1404_vm8 }
 0xdc8   :  { %v1399_v12 = vmul.f32 %v2272_v20, %v1398_v53  ;;  %v1396_v25 = vsel %vm1395_vm5, %v2270_v11, %v1392_v22  ;;  %v2079_v11 = vld [vmem:[%s3094_s14 + $0x40] sm:$0xff] }
 0xdc9   :  { %v1427_v32 = vmul.f32 %v1396_v25, %v1359_v34 }
 0xdca   :  { %v1400_v26 = vmul.f32 0.5, %v1399_v12 }
 0xdcb   :  { %v1432_v36 = vmul.f32 %v2165_v31, %v1427_v32 }
 0xdcc   :  { %v1401_v27 = vsub.f32 1.5, %v1400_v26 }
 0xdcd   :  { %v1437_v41 = vadd.f32 %v2166_v35, %v1432_v36 }
 0xdce   :  { %v1402_v33 = vmul.f32 %v2272_v20, %v1401_v27 }
 0xdd0   :  { %v1406_v46 = vsel %vm1405_vm3, %v2272_v20, %v1402_v33 }
 0xdd1   :  { %v1428_v48 = vmul.f32 %v1406_v46, %v1360_v37 }
 0xdd3   :  { %v1433_v30 = vmul.f32 %v2165_v31, %v1428_v48 }
 0xdd5   :  { %v1438_v5 = vadd.f32 %v2166_v35, %v1433_v30 }
 0xdd7   :  { %v1446_v42 = vpack.c.bf16 %v1438_v5, %v1437_v41 }
 0xdd9   :  { %1975 = vmatmul.msk.bf16.vlgmr.msra.gmra.mxu1 %vm119_vm0, %v1446_v42 }
 0xdda   :  { %v1375_v44 = vpop.xlane.xlu0 %1374 }
 0xddb   :  { %v1381_v45 = vmul.f32 %v1375_v44, %v2463_v24 }
 0xddd   :  { %v1385_v38 = vadd.f32 1e-05, %v1381_v45 }
 0xddf   :  { %2273 = vrsqrt.f32 %v1385_v38  ;;  %vm1413_vm6 = vweird.f32 %v1385_v38 }
 0xde2   :  { %v1378_v39 = vpop.xlane.xlu2 %1377 }
 0xde3   :  { %v1382_v23 = vmul.f32 %v1378_v39, %v2463_v24 }
 0xde5   :  { %v2274_v47 = vpop.eup %2273  ;;  %v1386_v56 = vadd.f32 1e-05, %v1382_v23 }
 0xde6   :  { %v1408_v28 = vmul.f32 %v2274_v47, %v1385_v38  ;;  %vm1414_vm4 = vweird.f32 %v2274_v47 }
 0xde7   :  { %2275 = vrsqrt.f32 %v1386_v56  ;;  %vm1415_vm7 = vmor %vm1413_vm6, %vm1414_vm4  ;;  %vm1423_vm10 = vweird.f32 %v1386_v56 }
 0xde8   :  { %v1409_v58 = vmul.f32 %v2274_v47, %v1408_v28 }
 0xdea   :  { %v1410_v29 = vmul.f32 0.5, %v1409_v58 }
 0xdec   :  { %v1411_v34 = vsub.f32 1.5, %v1410_v29 }
 0xded   :  { %v2276_v51 = vpop.eup %2275 }
 0xdee   :  { %v1412_v52 = vmul.f32 %v2274_v47, %v1411_v34  ;;  %v1418_v9 = vmul.f32 %v2276_v51, %v1386_v56  ;;  %vm1424_vm9 = vweird.f32 %v2276_v51 }
 0xdef   :  { %vm1425_vm12 = vmor %vm1423_vm10, %vm1424_vm9 }
 0xdf0   :  { %v1419_v55 = vmul.f32 %v2276_v51, %v1418_v9  ;;  %v1416_v37 = vsel %vm1415_vm7, %v2274_v47, %v1412_v52 }
 0xdf1   :  { %v1429_v59 = vmul.f32 %v1416_v37, %v2933_v61  ;;  %v2085_v61 = vld [vmem:[%s3094_s14 + $0x70] sm:$0xff] }
 0xdf2   :  { %v1420_v15 = vmul.f32 0.5, %v1419_v55  ;;  %1591 = vmatpush.bf16.msra.mxu3 %v2085_v61 }
 0xdf3   :  { %v1434_v8 = vmul.f32 %v2165_v31, %v1429_v59 }
 0xdf4   :  { %v1421_v43 = vsub.f32 1.5, %v1420_v15 }
 0xdf5   :  { %v1439_v1 = vadd.f32 %v2166_v35, %v1434_v8 }
 0xdf6   :  { %v1422_v60 = vmul.f32 %v2276_v51, %v1421_v43 }
 0xdf8   :  { %v1426_v63 = vsel %vm1425_vm12, %v2276_v51, %v1422_v60 }
 0xdf9   :  { %v1430_v62 = vmul.f32 %v1426_v63, %v2940_v50  ;;  %v2084_v50 = vld [vmem:[%s3094_s14 + $0x68] sm:$0xff] }
 0xdfa   :  { %1592 = vmatpush.bf16.msra.mxu3 %v2084_v50 }
 0xdfb   :  { %v1435_v0 = vmul.f32 %v2165_v31, %v1430_v62 }
 0xdfd   :  { %v1440_v2 = vadd.f32 %v2166_v35, %v1435_v0  ;;  %v2168_v0 = vld [vmem:[%s3095_s15 + $0x1] ss:$0 sm:$0xff] }
 0xdfe   :  { %1593 = vmatpush.bf16.msra.mxu3 %v2083_v4 }
 0xdff   :  { %v1447_v49 = vpack.c.bf16 %v1440_v2, %v1439_v1 }
 0xe01   :  { %1976 = vmatmul.msk.bf16.gmra.mxu1 %vm119_vm0, %v1447_v49 }
 0xe02   :  { %1594 = vmatpush.bf16.msra.mxu3 %v2082_v6 }
 0xe06   :  { %1595 = vmatpush.bf16.msra.mxu3 %v2081_v57 }
 0xe0a   :  { %1596 = vmatpush.bf16.msra.mxu3 %v2080_v10 }
 0xe0e   :  { %1597 = vmatpush.bf16.msra.mxu3 %v2079_v11 }
 0xe56   :  { %v1477_v13 = vpop.f32.mrf.mxu1 }
 0xe57   :  { %v1478_v16 = vadd.f32 %v2167_v14, %v1477_v13 }
 0xe59   :  { %v1491_v17 = vmul.f32 0.044715, %v1478_v16  ;;  %v1487_v36 = vmul.f32 0.5, %v1478_v16 }
 0xe5b   :  { %v1495_v18 = vmul.f32 %v1491_v17, %v1478_v16 }
 0xe5d   :  { %v1499_v19 = vmul.f32 %v1495_v18, %v1478_v16 }
 0xe5e   :  { %v1479_v20 = vpop.f32.mrf.mxu1 }
 0xe5f   :  { %v1503_v22 = vadd.f32 %v1499_v19, %v1478_v16  ;;  %v1480_v53 = vadd.f32 %v2167_v14, %v1479_v20 }
 0xe61   :  { %v1492_v12 = vmul.f32 0.044715, %v1480_v53  ;;  %v1507_v25 = vmul.f32 0.7978846, %v1503_v22  ;;  %v1488_v48 = vmul.f32 0.5, %v1480_v53 }
 0xe63   :  { %v1496_v26 = vmul.f32 %v1492_v12, %v1480_v53  ;;  %2277 = vtanh.f32 %v1507_v25 }
 0xe65   :  { %v1500_v27 = vmul.f32 %v1496_v26, %v1480_v53  ;;  %v2094_v26 = vld [vmem:[%s3098_s18 + $0x38] sm:$0xff] }
 0xe67   :  { %v1504_v31 = vadd.f32 %v1500_v27, %v1480_v53  ;;  %v1809_v27 = vsel %vm119_vm0, %v2094_v26, 0 }
 0xe68   :  { %1811 = vmatpush.bf16.xpose.msrb.mxu0 %v1809_v27 }
 0xe69   :  { %v1508_v32 = vmul.f32 0.7978846, %v1504_v31  ;;  %v2278_v33 = vpop.eup %2277  ;;  %v2093_v31 = vld [vmem:[%s3098_s18 + $0x30] sm:$0xff] }
 0xe6a   :  { %v1515_v46 = vadd.f32 1.0, %v2278_v33  ;;  %v2092_v33 = vld [vmem:[%s3098_s18 + $0x28] sm:$0xff] }
 0xe6b   :  { %2279 = vtanh.f32 %v1508_v32  ;;  %v1806_v32 = vsel %vm119_vm0, %v2093_v31, 0 }
 0xe6c   :  { %v1519_v41 = vmul.f32 %v1515_v46, %v1487_v36 }
 0xe70   :  { %1812 = vmatpush.bf16.xpose.msrb.mxu0 %v1806_v32 }
 0xe71   :  { %v2280_v35 = vpop.eup %2279 }
 0xe72   :  { %v1516_v30 = vadd.f32 1.0, %v2280_v35  ;;  %v1803_v35 = vsel %vm119_vm0, %v2092_v33, 0 }
 0xe74   :  { %v1520_v5 = vmul.f32 %v1516_v30, %v1488_v48  ;;  %v2091_v30 = vld [vmem:[%s3098_s18 + $0x20] sm:$0xff] }
 0xe76   :  { %v1540_v42 = vpack.c.bf16 %v1520_v5, %v1519_v41 }
 0xe78   :  { %1598 = vmatmul.bf16.vlgmr.msra.gmra.mxu3 %v1540_v42  ;;  %1813 = vmatpush.bf16.xpose.msrb.mxu0 %v1803_v35 }
 0xe7e   :  { %v1482_v44 = vpop.f32.mrf.mxu1 }
 0xe7f   :  { %v1483_v45 = vadd.f32 %v2167_v14, %v1482_v44  ;;  %v1800_v44 = vsel %vm119_vm0, %v2091_v30, 0 }
 0xe80   :  { %1814 = vmatpush.bf16.xpose.msrb.mxu0 %v1800_v44 }
 0xe81   :  { %v1493_v38 = vmul.f32 0.044715, %v1483_v45  ;;  %v1489_v43 = vmul.f32 0.5, %v1483_v45 }
 0xe83   :  { %v1497_v39 = vmul.f32 %v1493_v38, %v1483_v45 }
 0xe85   :  { %v1501_v23 = vmul.f32 %v1497_v39, %v1483_v45 }
 0xe86   :  { %v1484_v47 = vpop.f32.mrf.mxu1 }
 0xe87   :  { %v1485_v56 = vadd.f32 %v2167_v14, %v1484_v47  ;;  %v1505_v28 = vadd.f32 %v1501_v23, %v1483_v45  ;;  %v2090_v47 = vld [vmem:[%s3098_s18 + $0x18] sm:$0xff] }
 0xe89   :  { %v1494_v58 = vmul.f32 0.044715, %v1485_v56  ;;  %v1509_v34 = vmul.f32 0.7978846, %v1505_v28  ;;  %v1490_v59 = vmul.f32 0.5, %v1485_v56  ;;  %v2089_v28 = vld [vmem:[%s3098_s18 + $0x10] sm:$0xff] }
 0xe8b   :  { %v1498_v29 = vmul.f32 %v1494_v58, %v1485_v56  ;;  %2281 = vtanh.f32 %v1509_v34  ;;  %v1794_v58 = vsel %vm119_vm0, %v2089_v28, 0 }
 0xe8d   :  { %v1502_v51 = vmul.f32 %v1498_v29, %v1485_v56  ;;  %v2088_v29 = vld [vmem:[%s3098_s18 + $0x8] sm:$0xff] }
 0xe8e   :  { %v1791_v34 = vsel %vm119_vm0, %v2088_v29, 0 }
 0xe8f   :  { %v1506_v52 = vadd.f32 %v1502_v51, %v1485_v56  ;;  %v1797_v56 = vsel %vm119_vm0, %v2090_v47, 0  ;;  %v2087_v51 = vld [vmem:[%s3098_s18] sm:$0xff] }
 0xe90   :  { %1815 = vmatpush.bf16.xpose.msrb.mxu0 %v1797_v56 }
 0xe91   :  { %v1510_v9 = vmul.f32 0.7978846, %v1506_v52  ;;  %v2282_v55 = vpop.eup %2281 }
 0xe92   :  { %v1517_v37 = vadd.f32 1.0, %v2282_v55  ;;  %v1788_v55 = vsel %vm119_vm0, %v2087_v51, 0 }
 0xe93   :  { %2283 = vtanh.f32 %v1510_v9 }
 0xe94   :  { %v1521_v63 = vmul.f32 %v1517_v37, %v1489_v43 }
 0xe98   :  { %1816 = vmatpush.bf16.xpose.msrb.mxu0 %v1794_v58 }
 0xe99   :  { %v2284_v15 = vpop.eup %2283 }
 0xe9a   :  { %v1518_v60 = vadd.f32 1.0, %v2284_v15 }
 0xe9c   :  { %v1522_v62 = vmul.f32 %v1518_v60, %v1490_v59 }
 0xe9e   :  { %v1541_v8 = vpack.c.bf16 %v1522_v62, %v1521_v63 }
 0xea0   :  { %1603 = vmatmul.bf16.gmra.mxu3 %v1541_v8  ;;  %1817 = vmatpush.bf16.xpose.msrb.mxu0 %v1791_v34 }
 0xea8   :  { %1818 = vmatpush.bf16.xpose.msrb.mxu0 %v1788_v55 }
 0xefb   :  { %v1599_v1 = vpop.f32.mrf.mxu3 }
 0xefc   :  { %v1609_v2 = vadd.f32 %v1599_v1, %v2906_v54 }
 0xefe   :  { %v1615_v49 = vadd.f32 %v2168_v0, %v1609_v2 }
 0xf00   :  { %v1621_v3 = vsel %vm119_vm0, %v1615_v49, 0.0 }
 0xf01   :  { %1622 = vadd.xlane.f32.xlu0 %v1621_v3 }
 0xf03   :  { %v1601_v61 = vpop.f32.mrf.mxu3 }
 0xf04   :  { %v1610_v50 = vadd.f32 %v1601_v61, %v2911_v7 }
 0xf06   :  { %v1616_v4 = vadd.f32 %v2168_v0, %v1610_v50 }
 0xf08   :  { %v1624_v6 = vsel %vm119_vm0, %v1616_v4, 0.0 }
 0xf09   :  { %1625 = vadd.xlane.f32.xlu2 %v1624_v6  ;;  %v2169_v6 = vld [vmem:[%s3096_s16] ss:$0 sm:$0xff] }
 0xf23   :  { %v1604_v57 = vpop.f32.mrf.mxu3 }
 0xf24   :  { %v1611_v10 = vadd.f32 %v1604_v57, %v2916_v21 }
 0xf26   :  { %v1617_v14 = vadd.f32 %v2168_v0, %v1611_v10 }
 0xf28   :  { %v1627_v11 = vsel %vm119_vm0, %v1617_v14, 0.0 }
 0xf29   :  { %1628 = vadd.xlane.f32.xlu0 %v1627_v11  ;;  %v2170_v11 = vld [vmem:[%s3097_s17] ss:$0 sm:$0xff] }
 0xf2b   :  { %v1606_v13 = vpop.f32.mrf.mxu3 }
 0xf2c   :  { %v1612_v54 = vadd.f32 %v1606_v13, %v2921_v40 }
 0xf2e   :  { %v1618_v16 = vadd.f32 %v2168_v0, %v1612_v54 }
 0xf30   :  { %v1630_v17 = vsel %vm119_vm0, %v1618_v16, 0.0 }
 0xf31   :  { %1631 = vadd.xlane.f32.xlu1 %v1630_v17 }
 0xf74   :  { %v1623_v18 = vpop.xlane.xlu0 %1622 }
 0xf75   :  { %v1633_v7 = vmul.f32 %v1623_v18, %v2463_v24 }
 0xf77   :  { %v3004_v19 = vsub.f32 %v1615_v49, %v1633_v7 }
 0xf79   :  { %v1641_v20 = vmul.f32 %v3004_v19, %v3004_v19 }
 0xf7b   :  { %v1645_v21 = vsel %vm119_vm0, %v1641_v20, 0.0 }
 0xf7c   :  { %v1626_v22 = vpop.xlane.xlu2 %1625  ;;  %1646 = vadd.xlane.f32.xlu2 %v1645_v21 }
 0xf7d   :  { %v1634_v53 = vmul.f32 %v1626_v22, %v2463_v24 }
 0xf7f   :  { %v3010_v12 = vsub.f32 %v1616_v4, %v1634_v53 }
 0xf81   :  { %v1642_v40 = vmul.f32 %v3010_v12, %v3010_v12 }
 0xf83   :  { %v1648_v25 = vsel %vm119_vm0, %v1642_v40, 0.0 }
 0xf84   :  { %1649 = vadd.xlane.f32.xlu0 %v1648_v25 }
 0xf9c   :  { %v1629_v46 = vpop.xlane.xlu0 %1628 }
 0xf9d   :  { %v1635_v36 = vmul.f32 %v1629_v46, %v2463_v24 }
 0xf9f   :  { %v3028_v48 = vsub.f32 %v1617_v14, %v1635_v36 }
 0xfa1   :  { %v1643_v41 = vmul.f32 %v3028_v48, %v3028_v48 }
 0xfa3   :  { %v1651_v5 = vsel %vm119_vm0, %v1643_v41, 0.0 }
 0xfa4   :  { %v1632_v42 = vpop.xlane.xlu1 %1631  ;;  %1652 = vadd.xlane.f32.xlu1 %v1651_v5 }
 0xfa5   :  { %v1636_v45 = vmul.f32 %v1632_v42, %v2463_v24 }
 0xfa7   :  { %v3038_v38 = vsub.f32 %v1618_v16, %v1636_v45 }
 0xfa9   :  { %v1644_v39 = vmul.f32 %v3038_v38, %v3038_v38 }
 0xfab   :  { %v1654_v23 = vsel %vm119_vm0, %v1644_v39, 0.0 }
 0xfac   :  { %1655 = vadd.xlane.f32.xlu2 %v1654_v23 }
 0xfef   :  { %v1647_v52 = vpop.xlane.xlu2 %1646 }
 0xff0   :  { %v1657_v9 = vmul.f32 %v1647_v52, %v2463_v24 }
 0xff2   :  { %v1661_v37 = vadd.f32 1e-05, %v1657_v9 }
 0xff4   :  { %2285 = vrsqrt.f32 %v1661_v37  ;;  %vm1671_vm15 = vweird.f32 %v1661_v37 }
 0xff7   :  { %v1650_v15 = vpop.xlane.xlu0 %1649 }
 0xff8   :  { %v1658_v43 = vmul.f32 %v1650_v15, %v2463_v24 }
 0xffa   :  { %v2286_v59 = vpop.eup %2285  ;;  %v1662_v60 = vadd.f32 1e-05, %v1658_v43 }
 0xffb   :  { %v1666_v63 = vmul.f32 %v2286_v59, %v1661_v37  ;;  %vm1672_vm13 = vweird.f32 %v2286_v59 }
 0xffc   :  { %2287 = vrsqrt.f32 %v1662_v60  ;;  %vm1673_vm1 = vmor %vm1671_vm15, %vm1672_vm13  ;;  %vm1681_vm2 = vweird.f32 %v1662_v60 }
 0xffd   :  { %v1667_v62 = vmul.f32 %v2286_v59, %v1666_v63 }
 0xfff   :  { %v1668_v8 = vmul.f32 0.5, %v1667_v62 }
0x1001   :  { %v1669_v0 = vsub.f32 1.5, %v1668_v8 }
0x1002   :  { %v2288_v1 = vpop.eup %2287 }
0x1003   :  { %v1670_v2 = vmul.f32 %v2286_v59, %v1669_v0  ;;  %v1676_v49 = vmul.f32 %v2288_v1, %v1662_v60  ;;  %vm1682_vm14 = vweird.f32 %v2288_v1 }
0x1004   :  { %vm1683_vm5 = vmor %vm1681_vm2, %vm1682_vm14 }
0x1005   :  { %v1677_v3 = vmul.f32 %v2288_v1, %v1676_v49  ;;  %v1674_v61 = vsel %vm1673_vm1, %v2286_v59, %v1670_v2 }
0x1006   :  { %v1705_v57 = vmul.f32 %v1674_v61, %v3004_v19 }
0x1007   :  { %v1678_v50 = vmul.f32 0.5, %v1677_v3 }
0x1008   :  { %v1712_v13 = vmul.f32 %v2169_v6, %v1705_v57 }
0x1009   :  { %v1679_v4 = vsub.f32 1.5, %v1678_v50 }
0x100a   :  { %v1719_v17 = vadd.f32 %v2170_v11, %v1712_v13 }
0x100b   :  { %v1680_v10 = vmul.f32 %v2288_v1, %v1679_v4 }
0x100d   :  { %v1684_v14 = vsel %vm1683_vm5, %v2288_v1, %v1680_v10 }
0x100e   :  { %v1706_v54 = vmul.f32 %v1684_v14, %v3010_v12 }
0x1010   :  { %v1713_v16 = vmul.f32 %v2169_v6, %v1706_v54 }
0x1012   :  { %v1720_v18 = vadd.f32 %v2170_v11, %v1713_v16 }
0x1014   :  { %v1739_v7 = vpack.c.bf16 %v1720_v18, %v1719_v17 }
0x1016   :  { %2057 = vmatmul.msk.bf16.vlgmr.msrb.gmra.mxu0 %vm119_vm0, %v1739_v7 }
0x1017   :  { %v1653_v20 = vpop.xlane.xlu1 %1652 }
0x1018   :  { %v1659_v19 = vmul.f32 %v1653_v20, %v2463_v24 }
0x101a   :  { %v1663_v21 = vadd.f32 1e-05, %v1659_v19 }
0x101c   :  { %2289 = vrsqrt.f32 %v1663_v21  ;;  %vm1691_vm11 = vweird.f32 %v1663_v21 }
0x101f   :  { %v1656_v22 = vpop.xlane.xlu2 %1655 }
0x1020   :  { %v1660_v53 = vmul.f32 %v1656_v22, %v2463_v24 }
0x1022   :  { %v2290_v40 = vpop.eup %2289  ;;  %v1664_v25 = vadd.f32 1e-05, %v1660_v53 }
0x1023   :  { %v1686_v26 = vmul.f32 %v2290_v40, %v1663_v21  ;;  %vm1692_vm8 = vweird.f32 %v2290_v40 }
0x1024   :  { %2291 = vrsqrt.f32 %v1664_v25  ;;  %vm1693_vm3 = vmor %vm1691_vm11, %vm1692_vm8  ;;  %vm1701_vm6 = vweird.f32 %v1664_v25 }
0x1025   :  { %v1687_v27 = vmul.f32 %v2290_v40, %v1686_v26 }
0x1027   :  { %v1688_v12 = vmul.f32 0.5, %v1687_v27 }
0x1029   :  { %v1689_v31 = vsub.f32 1.5, %v1688_v12 }
0x102a   :  { %v2292_v32 = vpop.eup %2291 }
0x102b   :  { %v1690_v33 = vmul.f32 %v2290_v40, %v1689_v31  ;;  %v1696_v46 = vmul.f32 %v2292_v32, %v1664_v25  ;;  %vm1702_vm4 = vweird.f32 %v2292_v32 }
0x102c   :  { %vm1703_vm7 = vmor %vm1701_vm6, %vm1702_vm4 }
0x102d   :  { %v1697_v35 = vmul.f32 %v2292_v32, %v1696_v46  ;;  %v1694_v36 = vsel %vm1693_vm3, %v2290_v40, %v1690_v33 }
0x102e   :  { %v1707_v24 = vmul.f32 %v1694_v36, %v3028_v48 }
0x102f   :  { %v1698_v30 = vmul.f32 0.5, %v1697_v35 }
0x1030   :  { %v1714_v45 = vmul.f32 %v2169_v6, %v1707_v24 }
0x1031   :  { %v1699_v41 = vsub.f32 1.5, %v1698_v30 }
0x1032   :  { %v1721_v23 = vadd.f32 %v2170_v11, %v1714_v45 }
0x1033   :  { %v1700_v5 = vmul.f32 %v2292_v32, %v1699_v41 }
0x1035   :  { %v1704_v42 = vsel %vm1703_vm7, %v2292_v32, %v1700_v5 }
0x1036   :  { %v1708_v44 = vmul.f32 %v1704_v42, %v3038_v38 }
0x1038   :  { %v1715_v39 = vmul.f32 %v2169_v6, %v1708_v44 }
0x103a   :  { %v1722_v47 = vadd.f32 %v2170_v11, %v1715_v39 }
0x103c   :  { %v1740_v56 = vpack.c.bf16 %v1722_v47, %v1721_v23 }
0x103e   :  { %2058 = vmatmul.msk.bf16.gmra.mxu0 %vm119_vm0, %v1740_v56 }
0x1093   :  { %v1820_v28 = vpop.f32.mrf.mxu0 }
0x109b   :  { %v1822_v58 = vpop.f32.mrf.mxu0 }
0x109c   :  { %v2106_v29 = vpack.c.bf16 %v1822_v58, %v1820_v28 }
0x109e   :  { %2107 = vst [vmem:[#allocation2] sm:$0xff] %v2106_v29  }
0x10bb   :  { %v1825_v34 = vpop.f32.mrf.mxu0 }
0x10c3   :  { %v1827_v48 = vpop.f32.mrf.mxu0 }
0x10c4   :  { %v2111_v38 = vpack.c.bf16 %v1827_v48, %v1825_v34 }
0x10c6   :  { %2114 = vst [vmem:[#allocation2 + $0x8] sm:$0xff] %v2111_v38  }
0x10c7   :  { %1850 = dma.vmem_to_hbm [thread:$0]  %s1843_s9, 256, %s1845_s8, [#allocation3], %s2325_s3, %s2325_s3, %s2328_s28  }
0x10c8   :  { %2317 = dma.done.wait [#allocation3], 256  }
0x10c9   :  { %2318 = vsyncadd [#allocation3], 4294967040 }
0x10ca   :  { %1855 = vsyncpa [#allocation3], 1 }

// kernel: captioning_forward.2
= control target key start
LH: loop header
LB: loop body
LE: loop exit
PB: predicated region body
PF: predicated region fallthrough
CT: control target
= control target key end

     0   :  { %vm222_vm0 = vcmask 523264   ;;  %s6472_s1 = inlined_call_operand.vmem [shape: bf16[192,64], index: 1, kind: input, shape index: {}]   ;;  %s6473_s0 = inlined_call_operand.vmem [shape: bf16[48,192], index: 0, kind: input, shape index: {}]   ;;  %s6474_s2 = inlined_call_operand.vmem [shape: f32[48,64], index: 2, kind: input, shape index: {}]   ;;  %s6475_s6 = inlined_call_operand.vmem [shape: f32[1,64], index: 6, kind: input, shape index: {}]   ;;  %s6476_s7 = inlined_call_operand.vmem [shape: f32[1,64], index: 7, kind: input, shape index: {}]   ;;  %s6477_s8 = inlined_call_operand.vmem [shape: f32[2,64], index: 8, kind: input, shape index: {}]   ;;  %s6478_s9 = inlined_call_operand.vmem [shape: f32[2,64], index: 9, kind: input, shape index: {}]   ;;  %s6479_s10 = inlined_call_operand.vmem [shape: bf16[2,64,192], index: 10, kind: input, shape index: {}]   ;;  %s6480_s11 = inlined_call_operand.vmem [shape: f32[2,1,192], index: 11, kind: input, shape index: {}]   ;;  %s6481_s4 = inlined_call_operand.vmem [shape: s32[1,48], index: 4, kind: input, shape index: {}]   ;;  %s6482_s3 = inlined_call_operand.vmem [shape: s32[48,1], index: 3, kind: input, shape index: {}]   ;;  %s6483_s12 = inlined_call_operand.vmem [shape: bf16[2,64,64], index: 12, kind: input, shape index: {}]   ;;  %s6484_s13 = inlined_call_operand.vmem [shape: f32[2,64], index: 13, kind: input, shape index: {}]   ;;  %s6485_s14 = inlined_call_operand.vmem [shape: f32[2,64], index: 14, kind: input, shape index: {}]   ;;  %s6486_s15 = inlined_call_operand.vmem [shape: f32[2,64], index: 15, kind: input, shape index: {}]   ;;  %s6487_s16 = inlined_call_operand.vmem [shape: bf16[2,64,256], index: 16, kind: input, shape index: {}]   ;;  %s6488_s18 = inlined_call_operand.vmem [shape: bf16[2,256,64], index: 18, kind: input, shape index: {}]   ;;  %s6489_s17 = inlined_call_operand.vmem [shape: f32[2,256], index: 17, kind: input, shape index: {}]   ;;  %s6490_s19 = inlined_call_operand.vmem [shape: f32[2,64], index: 19, kind: input, shape index: {}]   ;;  %s6491_s5 = inlined_call_operand.vmem [shape: f32[2,48], index: 5, kind: input, shape index: {}]   ;;  %s6492_s20 = inlined_call_operand.vmem [shape: f32[1,64], index: 20, kind: input, shape index: {}]   ;;  %s6493_s21 = inlined_call_operand.vmem [shape: f32[1,64], index: 21, kind: input, shape index: {}]   ;;  %s6494_s22 = inlined_call_operand.vmem [shape: bf16[64,32], index: 22, kind: input, shape index: {}]   ;;  %s6495_s23 = inlined_call_operand.vmem [shape: bf16[32,64], index: 23, kind: input, shape index: {}]   ;;  %s6496_s24 = inlined_call_operand.vmem [shape: f32[1,64], index: 24, kind: input, shape index: {}]   ;;  %s6497_s25 = inlined_call_operand.vmem [shape: bf16[64,256], index: 25, kind: input, shape index: {}]   ;;  %s6498_s26 = inlined_call_operand.vmem [shape: f32[1,256], index: 26, kind: input, shape index: {}]   ;;  %s6499_s27 = inlined_call_operand.vmem [shape: bf16[2,256], index: 27, kind: output, shape index: {}]  }
   0x1   :  { %6518 = sst [smem:[#allocation2_spill]] %s6472_s1 }
   0x2   :  { %6519 = sst [smem:[#allocation3_spill]] %s6473_s0 }
   0x3   :  { %6520 = sst [smem:[#allocation4_spill]] %s6474_s2 }
   0x4   :  { %6521 = sst [smem:[#allocation5_spill]] %s6475_s6 }
   0x5   :  { %6522 = sst [smem:[#allocation6_spill]] %s6476_s7 }
   0x6   :  { %6523 = sst [smem:[#allocation7_spill]] %s6477_s8 }
   0x7   :  { %6524 = sst [smem:[#allocation8_spill]] %s6478_s9 }
   0x8   :  { %6525 = sst [smem:[#allocation9_spill]] %s6479_s10 }
   0x9   :  { %6526 = sst [smem:[#allocation10_spill]] %s6480_s11 }
   0xa   :  { %6527 = sst [smem:[#allocation11_spill]] %s6481_s4 }
   0xb   :  { %6528 = sst [smem:[#allocation12_spill]] %s6482_s3 }
   0xc   :  { %6529 = sst [smem:[#allocation13_spill]] %s6483_s12  ;;  %s6511_s12 = smov 96  }
   0xd   :  { %s6530_s11 = sld [smem:[#allocation2_spill]] }
   0xe   :  { %s6531_s8 = sld [smem:[#allocation3_spill]] }
   0xf   :  { %s6533_s29 = sld [smem:[#allocation5_spill]] }
  0x10   :  { %s6534_s9 = sld [smem:[#allocation6_spill]] }
  0x11   :  { %s6535_s2 = sld [smem:[#allocation9_spill]] }
  0x12   :  { %s6536_s4 = sld [smem:[#allocation7_spill]] }
  0x13   :  { %v4160_v0 = vld [vmem:[%s6530_s11 + $0x38] sm:$0xff]  ;;  %v4159_v2 = vld [vmem:[%s6530_s11 + $0x30] sm:$0xff]  ;;  %v4158_v4 = vld [vmem:[%s6530_s11 + $0x28] sm:$0xff]  ;;  %s6537_s3 = sld [smem:[#allocation8_spill]] }
  0x14   :  { %v4164_v1 = vld [vmem:[%s6530_s11 + $0x58] sm:$0xff]  ;;  %232 = vmatpush.bf16.msra.mxu0 %v4160_v0  ;;  %v4163_v3 = vld [vmem:[%s6530_s11 + $0x50] sm:$0xff]  ;;  %v4162_v5 = vld [vmem:[%s6530_s11 + $0x48] sm:$0xff]  ;;  %s6539_s7 = sld [smem:[#allocation12_spill]] }
  0x15   :  { %260 = vmatpush.bf16.msra.mxu1 %v4164_v1  ;;  %v4157_v6 = vld [vmem:[%s6530_s11 + $0x20] sm:$0xff]  ;;  %v3591_v9 = vld [vmem:[%s6531_s8 + $0x8] sm:$0xf0]  ;;  %v4156_v10 = vld [vmem:[%s6530_s11 + $0x18] sm:$0xff]  ;;  %s6540_s6 = sld [smem:[#allocation11_spill]] }
  0x16   :  { %v4161_v7 = vld [vmem:[%s6530_s11 + $0x40] sm:$0xff]  ;;  %v4155_v12 = vld [vmem:[%s6530_s11 + $0x10] sm:$0xff]  ;;  %v4154_v13 = vld [vmem:[%s6530_s11 + $0x8] sm:$0xff]  ;;  %s6541_s30 = sld [smem:[#allocation13_spill]] }
  0x17   :  { %v4147_v8 = vld [vmem:[%s6531_s8 + $0x4] sm:$0xf]  ;;  %v3589_v15 = vld [vmem:[%s6531_s8] sm:$0xf]  ;;  %v4148_v16 = vld [vmem:[%s6531_s8 + $0x4] sm:$0xf0] }
  0x18   :  { %233 = vmatpush.bf16.msra.mxu0 %v4159_v2  ;;  %v3594_v11 = vor.u32 %v4147_v8, %v3591_v9  ;;  %v4153_v14 = vld [vmem:[%s6530_s11] sm:$0xff]  ;;  %v4149_v17 = vld [vmem:[%s6531_s8 + $0x14] sm:$0xf]  ;;  %v3599_v18 = vld [vmem:[%s6531_s8 + $0x18] sm:$0xf0]  ;;  %v3590_v19 = vor.u32 %v4148_v16, %v3589_v15  ;;  %s6532_s11 = sld [smem:[#allocation4_spill]] }
  0x19   :  { %261 = vmatpush.bf16.msra.mxu1 %v4163_v3  ;;  %v3602_v20 = vor.u32 %v4149_v17, %v3599_v18  ;;  %v3597_v21 = vld [vmem:[%s6531_s8 + $0x10] sm:$0xf]  ;;  %v4150_v22 = vld [vmem:[%s6531_s8 + $0x14] sm:$0xf0]  ;;  %v4151_v23 = vld [vmem:[%s6531_s8 + $0x24] sm:$0xf] }
  0x1a   :  { %v3607_v24 = vld [vmem:[%s6531_s8 + $0x28] sm:$0xf0]  ;;  %v3598_v25 = vor.u32 %v4150_v22, %v3597_v21  ;;  %v3605_v27 = vld [vmem:[%s6531_s8 + $0x20] sm:$0xf]  ;;  %v4152_v28 = vld [vmem:[%s6531_s8 + $0x24] sm:$0xf0] }
  0x1b   :  { %v3610_v26 = vor.u32 %v4151_v23, %v3607_v24  ;;  %v3606_v29 = vor.u32 %v4152_v28, %v3605_v27  ;;  %v4563_v2 = vmov 64.0   ;;  %s6509_s8 = smov 64  }
  0x1c   :  { %234 = vmatpush.bf16.msra.mxu0 %v4158_v4  ;;  %4307 = vrcp.f32 %v4563_v2 }
  0x1d   :  { %262 = vmatpush.bf16.msra.mxu1 %v4162_v5 }
  0x1e   :  { %v117_v31 = vld [vmem:[%s6532_s11] sm:$0xff]  ;;  %v118_v37 = vld [vmem:[%s6532_s11 + $0x8] sm:$0xff]  ;;  %v119_v43 = vld [vmem:[%s6532_s11 + $0x10] sm:$0xff] }
  0x1f   :  { %v120_v49 = vld [vmem:[%s6532_s11 + $0x18] sm:$0xff]  ;;  %v121_v54 = vld [vmem:[%s6532_s11 + $0x20] sm:$0xff]  ;;  %v122_v60 = vld [vmem:[%s6532_s11 + $0x28] sm:$0xff]  ;;  %s6538_s11 = sld [smem:[#allocation10_spill]] }
  0x20   :  { %235 = vmatpush.bf16.msra.mxu0 %v4157_v6 }
  0x21   :  { %263 = vmatpush.bf16.msra.mxu1 %v4161_v7 }
  0x22   :  { %v4308_v3 = vpop.eup %4307 }
  0x23   :  { %v301_v4 = vmul.f32 64.0, %v4308_v3  ;;  %vm305_vm1 = vweird.f32 %v4308_v3 }
  0x24   :  { %236 = vmatpush.bf16.msra.mxu0 %v4156_v10  ;;  %3659 = vmatmul.msk.bf16.vlgmr.msra.gmra.mxu1 %vm222_vm0, %v3594_v11 }
  0x25   :  { %v302_v5 = vsub.f32 1.0, %v301_v4 }
  0x27   :  { %v303_v6 = vmul.f32 %v4308_v3, %v302_v5 }
  0x28   :  { %237 = vmatpush.bf16.msra.mxu0 %v4155_v12 }
  0x29   :  { %v304_v7 = vadd.f32 %v4308_v3, %v303_v6 }
  0x2b   :  { %v4807_v8 = vsel %vm305_vm1, %v4308_v3, %v304_v7 }
  0x2c   :  { %238 = vmatpush.bf16.msra.mxu0 %v4154_v13 }
  0x30   :  { %239 = vmatpush.bf16.msra.mxu0 %v4153_v14 }
  0x33   :  { %240 = vmatmul.bf16.vlgmr.msra.gmra.mxu0 %v3590_v19 }
  0x34   :  { %3660 = vmatmul.msk.bf16.gmra.mxu1 %vm222_vm0, %v3602_v20 }
  0x43   :  { %245 = vmatmul.bf16.gmra.mxu0 %v3598_v25 }
  0x44   :  { %3661 = vmatmul.msk.bf16.gmra.mxu1 %vm222_vm0, %v3610_v26 }
  0x53   :  { %250 = vmatmul.bf16.gmra.mxu0 %v3606_v29 }
  0xa1   :  { %v265_v30 = vpop.f32.mrf.mxu1 }
  0xa9   :  { %v267_v34 = vpop.f32.mrf.mxu1 }
  0xb0   :  { %v241_v32 = vpop.f32.mrf.mxu0 }
  0xb1   :  { %v242_v33 = vadd.f32 %v241_v32, %v117_v31  ;;  %v270_v41 = vpop.f32.mrf.mxu1 }
  0xb3   :  { %v266_v35 = vadd.f32 %v265_v30, %v242_v33 }
  0xb5   :  { %v282_v36 = vsel %vm222_vm0, %v266_v35, 0.0 }
  0xb6   :  { %283 = vadd.xlane.f32.xlu0 %v282_v36 }
  0xb8   :  { %v243_v38 = vpop.f32.mrf.mxu0 }
  0xb9   :  { %v244_v39 = vadd.f32 %v243_v38, %v118_v37  ;;  %v272_v48 = vpop.f32.mrf.mxu1 }
  0xbb   :  { %v268_v40 = vadd.f32 %v267_v34, %v244_v39 }
  0xbd   :  { %v285_v42 = vsel %vm222_vm0, %v268_v40, 0.0 }
  0xbe   :  { %286 = vadd.xlane.f32.xlu0 %v285_v42 }
  0xc0   :  { %v246_v44 = vpop.f32.mrf.mxu0 }
  0xc1   :  { %v247_v45 = vadd.f32 %v246_v44, %v119_v43  ;;  %v275_v55 = vpop.f32.mrf.mxu1 }
  0xc3   :  { %v271_v46 = vadd.f32 %v270_v41, %v247_v45 }
  0xc5   :  { %v288_v47 = vsel %vm222_vm0, %v271_v46, 0.0 }
  0xc6   :  { %289 = vadd.xlane.f32.xlu1 %v288_v47 }
  0xc8   :  { %v248_v50 = vpop.f32.mrf.mxu0 }
  0xc9   :  { %v249_v51 = vadd.f32 %v248_v50, %v120_v49  ;;  %v277_v63 = vpop.f32.mrf.mxu1 }
  0xcb   :  { %v273_v52 = vadd.f32 %v272_v48, %v249_v51 }
  0xcd   :  { %v291_v53 = vsel %vm222_vm0, %v273_v52, 0.0 }
  0xce   :  { %292 = vadd.xlane.f32.xlu1 %v291_v53 }
  0xd0   :  { %v251_v56 = vpop.f32.mrf.mxu0 }
  0xd1   :  { %v252_v57 = vadd.f32 %v251_v56, %v121_v54  ;;  %v4847_v56 = vld [vmem:[%s6533_s29] ss:$0 sm:$0xff] }
  0xd3   :  { %v276_v58 = vadd.f32 %v275_v55, %v252_v57 }
  0xd5   :  { %v294_v59 = vsel %vm222_vm0, %v276_v58, 0.0 }
  0xd6   :  { %295 = vadd.xlane.f32.xlu2 %v294_v59 }
  0xd8   :  { %v253_v61 = vpop.f32.mrf.mxu0 }
  0xd9   :  { %v254_v62 = vadd.f32 %v253_v61, %v122_v60  ;;  %v4852_v60 = vld [vmem:[%s6534_s9] ss:$0 sm:$0xff]  ;;  %s6513_s9 = smov 32  }
  0xdb   :  { %v278_v0 = vadd.f32 %v277_v63, %v254_v62 }
  0xdd   :  { %v297_v1 = vsel %vm222_vm0, %v278_v0, 0.0 }
  0xde   :  { %298 = vadd.xlane.f32.xlu2 %v297_v1 }
 0x129   :  { %v284_v9 = vpop.xlane.xlu0 %283 }
 0x12a   :  { %v307_v10 = vmul.f32 %v4807_v8, %v284_v9 }
 0x12c   :  { %v313_v11 = vsub.f32 %v266_v35, %v307_v10 }
 0x12e   :  { %v319_v12 = vmul.f32 %v313_v11, %v313_v11 }
 0x130   :  { %v325_v13 = vsel %vm222_vm0, %v319_v12, 0.0 }
 0x131   :  { %326 = vadd.xlane.f32.xlu0 %v325_v13  ;;  %v287_v14 = vpop.xlane.xlu0 %286 }
 0x132   :  { %v308_v15 = vmul.f32 %v4807_v8, %v287_v14 }
 0x134   :  { %v4812_v16 = vsub.f32 %v268_v40, %v308_v15 }
 0x136   :  { %v320_v17 = vmul.f32 %v4812_v16, %v4812_v16 }
 0x138   :  { %v328_v18 = vsel %vm222_vm0, %v320_v17, 0.0 }
 0x139   :  { %v290_v19 = vpop.xlane.xlu1 %289  ;;  %329 = vadd.xlane.f32.xlu1 %v328_v18 }
 0x13a   :  { %v309_v20 = vmul.f32 %v4807_v8, %v290_v19 }
 0x13c   :  { %v4818_v21 = vsub.f32 %v271_v46, %v309_v20 }
 0x13e   :  { %v321_v22 = vmul.f32 %v4818_v21, %v4818_v21 }
 0x140   :  { %v331_v23 = vsel %vm222_vm0, %v321_v22, 0.0 }
 0x141   :  { %332 = vadd.xlane.f32.xlu2 %v331_v23  ;;  %v293_v24 = vpop.xlane.xlu1 %292 }
 0x142   :  { %v310_v25 = vmul.f32 %v4807_v8, %v293_v24 }
 0x144   :  { %v4824_v26 = vsub.f32 %v273_v52, %v310_v25 }
 0x146   :  { %v322_v27 = vmul.f32 %v4824_v26, %v4824_v26 }
 0x148   :  { %v334_v28 = vsel %vm222_vm0, %v322_v27, 0.0 }
 0x149   :  { %v296_v29 = vpop.xlane.xlu2 %295  ;;  %335 = vadd.xlane.f32.xlu0 %v334_v28 }
 0x14a   :  { %v311_v30 = vmul.f32 %v4807_v8, %v296_v29 }
 0x14c   :  { %v4830_v31 = vsub.f32 %v276_v58, %v311_v30 }
 0x14e   :  { %v323_v32 = vmul.f32 %v4830_v31, %v4830_v31 }
 0x150   :  { %v337_v33 = vsel %vm222_vm0, %v323_v32, 0.0 }
 0x151   :  { %v299_v34 = vpop.xlane.xlu2 %298  ;;  %338 = vadd.xlane.f32.xlu1 %v337_v33 }
 0x152   :  { %v312_v35 = vmul.f32 %v4807_v8, %v299_v34 }
 0x154   :  { %v4836_v36 = vsub.f32 %v278_v0, %v312_v35 }
 0x156   :  { %v324_v37 = vmul.f32 %v4836_v36, %v4836_v36 }
 0x158   :  { %v340_v38 = vsel %vm222_vm0, %v324_v37, 0.0 }
 0x159   :  { %341 = vadd.xlane.f32.xlu2 %v340_v38 }
 0x1a4   :  { %v327_v39 = vpop.xlane.xlu0 %326 }
 0x1a5   :  { %v343_v40 = vmul.f32 %v327_v39, %v4807_v8 }
 0x1a7   :  { %v349_v41 = vadd.f32 1e-05, %v343_v40 }
 0x1a9   :  { %4309 = vrsqrt.f32 %v349_v41  ;;  %vm361_vm3 = vweird.f32 %v349_v41 }
 0x1ac   :  { %v330_v42 = vpop.xlane.xlu1 %329 }
 0x1ad   :  { %v344_v43 = vmul.f32 %v330_v42, %v4807_v8 }
 0x1af   :  { %v4310_v44 = vpop.eup %4309  ;;  %v350_v45 = vadd.f32 1e-05, %v344_v43 }
 0x1b0   :  { %v356_v46 = vmul.f32 %v4310_v44, %v349_v41  ;;  %vm362_vm2 = vweird.f32 %v4310_v44 }
 0x1b1   :  { %4311 = vrsqrt.f32 %v350_v45  ;;  %vm363_vm4 = vmor %vm361_vm3, %vm362_vm2  ;;  %vm371_vm6 = vweird.f32 %v350_v45 }
 0x1b2   :  { %v357_v47 = vmul.f32 %v4310_v44, %v356_v46 }
 0x1b4   :  { %v358_v48 = vmul.f32 0.5, %v357_v47  ;;  %v333_v49 = vpop.xlane.xlu2 %332 }
 0x1b5   :  { %v345_v50 = vmul.f32 %v333_v49, %v4807_v8 }
 0x1b6   :  { %v359_v51 = vsub.f32 1.5, %v358_v48 }
 0x1b7   :  { %v4312_v52 = vpop.eup %4311  ;;  %v351_v53 = vadd.f32 1e-05, %v345_v50 }
 0x1b8   :  { %v360_v54 = vmul.f32 %v4310_v44, %v359_v51  ;;  %v366_v55 = vmul.f32 %v4312_v52, %v350_v45  ;;  %vm372_vm5 = vweird.f32 %v4312_v52 }
 0x1b9   :  { %4313 = vrsqrt.f32 %v351_v53  ;;  %vm373_vm7 = vmor %vm371_vm6, %vm372_vm5  ;;  %vm381_vm9 = vweird.f32 %v351_v53 }
 0x1ba   :  { %v364_v57 = vsel %vm363_vm4, %v4310_v44, %v360_v54  ;;  %v367_v58 = vmul.f32 %v4312_v52, %v366_v55 }
 0x1bb   :  { %v415_v59 = vmul.f32 %v364_v57, %v313_v11 }
 0x1bc   :  { %v368_v61 = vmul.f32 0.5, %v367_v58  ;;  %v336_v62 = vpop.xlane.xlu0 %335 }
 0x1bd   :  { %v346_v63 = vmul.f32 %v336_v62, %v4807_v8  ;;  %v424_v0 = vmul.f32 %v4847_v56, %v415_v59 }
 0x1be   :  { %v369_v1 = vsub.f32 1.5, %v368_v61 }
 0x1bf   :  { %v4314_v2 = vpop.eup %4313  ;;  %v352_v3 = vadd.f32 1e-05, %v346_v63  ;;  %v4857_v4 = vadd.f32 %v4852_v60, %v424_v0 }
 0x1c0   :  { %v370_v5 = vmul.f32 %v4312_v52, %v369_v1  ;;  %v376_v6 = vmul.f32 %v4314_v2, %v351_v53  ;;  %vm382_vm8 = vweird.f32 %v4314_v2 }
 0x1c1   :  { %4315 = vrsqrt.f32 %v352_v3  ;;  %v473_v7 = vsel %vm222_vm0, %v4857_v4, 0.0  ;;  %vm383_vm10 = vmor %vm381_vm9, %vm382_vm8  ;;  %vm391_vm12 = vweird.f32 %v352_v3 }
 0x1c2   :  { %v374_v9 = vsel %vm373_vm7, %v4312_v52, %v370_v5  ;;  %v377_v10 = vmul.f32 %v4314_v2, %v376_v6  ;;  %474 = vadd.xlane.f32.xlu0 %v473_v7 }
 0x1c3   :  { %v416_v11 = vmul.f32 %v374_v9, %v4812_v16 }
 0x1c4   :  { %v378_v12 = vmul.f32 0.5, %v377_v10  ;;  %v339_v13 = vpop.xlane.xlu1 %338 }
 0x1c5   :  { %v347_v14 = vmul.f32 %v339_v13, %v4807_v8  ;;  %v425_v15 = vmul.f32 %v4847_v56, %v416_v11 }
 0x1c6   :  { %v379_v17 = vsub.f32 1.5, %v378_v12 }
 0x1c7   :  { %v4316_v18 = vpop.eup %4315  ;;  %v353_v19 = vadd.f32 1e-05, %v347_v14  ;;  %v4865_v20 = vadd.f32 %v4852_v60, %v425_v15 }
 0x1c8   :  { %v380_v22 = vmul.f32 %v4314_v2, %v379_v17  ;;  %v386_v23 = vmul.f32 %v4316_v18, %v352_v3  ;;  %vm392_vm11 = vweird.f32 %v4316_v18 }
 0x1c9   :  { %4317 = vrsqrt.f32 %v353_v19  ;;  %v476_v16 = vsel %vm222_vm0, %v4865_v20, 0.0  ;;  %vm393_vm13 = vmor %vm391_vm12, %vm392_vm11  ;;  %vm401_vm15 = vweird.f32 %v353_v19 }
 0x1ca   :  { %v384_v24 = vsel %vm383_vm10, %v4314_v2, %v380_v22  ;;  %v387_v25 = vmul.f32 %v4316_v18, %v386_v23  ;;  %477 = vadd.xlane.f32.xlu1 %v476_v16 }
 0x1cb   :  { %v417_v27 = vmul.f32 %v384_v24, %v4818_v21 }
 0x1cc   :  { %v388_v28 = vmul.f32 0.5, %v387_v25  ;;  %v342_v29 = vpop.xlane.xlu2 %341 }
 0x1cd   :  { %v348_v30 = vmul.f32 %v342_v29, %v4807_v8  ;;  %v426_v32 = vmul.f32 %v4847_v56, %v417_v27 }
 0x1ce   :  { %v389_v33 = vsub.f32 1.5, %v388_v28 }
 0x1cf   :  { %v4318_v34 = vpop.eup %4317  ;;  %v354_v35 = vadd.f32 1e-05, %v348_v30  ;;  %v4873_v37 = vadd.f32 %v4852_v60, %v426_v32 }
 0x1d0   :  { %v390_v38 = vmul.f32 %v4316_v18, %v389_v33  ;;  %v396_v39 = vmul.f32 %v4318_v34, %v353_v19  ;;  %vm402_vm14 = vweird.f32 %v4318_v34 }
 0x1d1   :  { %4319 = vrsqrt.f32 %v354_v35  ;;  %v479_v21 = vsel %vm222_vm0, %v4873_v37, 0.0  ;;  %vm403_vm1 = vmor %vm401_vm15, %vm402_vm14  ;;  %vm411_vm3 = vweird.f32 %v354_v35 }
 0x1d2   :  { %v394_v40 = vsel %vm393_vm13, %v4316_v18, %v390_v38  ;;  %v397_v41 = vmul.f32 %v4318_v34, %v396_v39  ;;  %480 = vadd.xlane.f32.xlu2 %v479_v21  ;;  %v4171_v38 = vld [vmem:[%s6535_s2 + $0x34] sm:$0xf]  ;;  %v3690_v21 = vld [vmem:[%s6535_s2 + $0x38] sm:$0xf0] }
 0x1d3   :  { %v418_v42 = vmul.f32 %v394_v40, %v4824_v26  ;;  %v3693_v40 = vor.u32 %v4171_v38, %v3690_v21 }
 0x1d4   :  { %v398_v43 = vmul.f32 0.5, %v397_v41  ;;  %v3680_v41 = vld [vmem:[%s6535_s2 + $0x20] sm:$0xf] }
 0x1d5   :  { %v427_v44 = vmul.f32 %v4847_v56, %v418_v42  ;;  %713 = vmatpush.bf16.msra.mxu3 %v3693_v40  ;;  %v4170_v42 = vld [vmem:[%s6535_s2 + $0x24] sm:$0xf0] }
 0x1d6   :  { %v399_v45 = vsub.f32 1.5, %v398_v43  ;;  %v4169_v43 = vld [vmem:[%s6535_s2 + $0x24] sm:$0xf] }
 0x1d7   :  { %v4320_v46 = vpop.eup %4319  ;;  %v4880_v47 = vadd.f32 %v4852_v60, %v427_v44  ;;  %v3681_v44 = vor.u32 %v4170_v42, %v3680_v41 }
 0x1d8   :  { %v400_v48 = vmul.f32 %v4318_v34, %v399_v45  ;;  %v406_v49 = vmul.f32 %v4320_v46, %v354_v35  ;;  %vm412_vm2 = vweird.f32 %v4320_v46  ;;  %v4172_v35 = vld [vmem:[%s6535_s2 + $0x34] sm:$0xf0]  ;;  %v3682_v45 = vld [vmem:[%s6535_s2 + $0x28] sm:$0xf0] }
 0x1d9   :  { %v482_v50 = vsel %vm222_vm0, %v4880_v47, 0.0  ;;  %vm413_vm4 = vmor %vm411_vm3, %vm412_vm2 }
 0x1da   :  { %v404_v51 = vsel %vm403_vm1, %v4318_v34, %v400_v48  ;;  %v407_v52 = vmul.f32 %v4320_v46, %v406_v49  ;;  %483 = vadd.xlane.f32.xlu0 %v482_v50  ;;  %v3688_v34 = vld [vmem:[%s6535_s2 + $0x30] sm:$0xf]  ;;  %v4168_v49 = vld [vmem:[%s6535_s2 + $0x14] sm:$0xf0]  ;;  %v4167_v50 = vld [vmem:[%s6535_s2 + $0x14] sm:$0xf] }
 0x1db   :  { %v419_v26 = vmul.f32 %v404_v51, %v4830_v31  ;;  %v3689_v39 = vor.u32 %v4172_v35, %v3688_v34  ;;  %v3672_v48 = vld [vmem:[%s6535_s2 + $0x10] sm:$0xf] }
 0x1dc   :  { %v408_v53 = vmul.f32 0.5, %v407_v52  ;;  %v3673_v51 = vor.u32 %v4168_v49, %v3672_v48  ;;  %v3674_v52 = vld [vmem:[%s6535_s2 + $0x18] sm:$0xf0] }
 0x1dd   :  { %v428_v54 = vmul.f32 %v4847_v56, %v419_v26  ;;  %689 = vmatpush.bf16.msra.mxu2 %v3689_v39  ;;  %v3677_v26 = vor.u32 %v4167_v50, %v3674_v52 }
 0x1de   :  { %v409_v55 = vsub.f32 1.5, %v408_v53 }
 0x1df   :  { %v4887_v57 = vadd.f32 %v4852_v60, %v428_v54 }
 0x1e0   :  { %v410_v58 = vmul.f32 %v4320_v46, %v409_v55  ;;  %v3664_v55 = vld [vmem:[%s6535_s2] sm:$0xf] }
 0x1e1   :  { %v485_v59 = vsel %vm222_vm0, %v4887_v57, 0.0  ;;  %690 = vmatpush.bf16.msra.mxu2 %v3681_v44 }
 0x1e2   :  { %v414_v61 = vsel %vm413_vm4, %v4320_v46, %v410_v58  ;;  %486 = vadd.xlane.f32.xlu1 %v485_v59  ;;  %v3685_v46 = vor.u32 %v4169_v43, %v3682_v45  ;;  %v4166_v58 = vld [vmem:[%s6535_s2 + $0x4] sm:$0xf0]  ;;  %v4165_v59 = vld [vmem:[%s6535_s2 + $0x4] sm:$0xf] }
 0x1e3   :  { %v420_v62 = vmul.f32 %v414_v61, %v4836_v36  ;;  %v3665_v61 = vor.u32 %v4166_v58, %v3664_v55 }
 0x1e4   :  { %714 = vmatpush.bf16.msra.mxu3 %v3685_v46 }
 0x1e5   :  { %v429_v31 = vmul.f32 %v4847_v56, %v420_v62  ;;  %691 = vmatpush.bf16.msra.mxu2 %v3673_v51  ;;  %v3666_v62 = vld [vmem:[%s6535_s2 + $0x8] sm:$0xf0] }
 0x1e7   :  { %v4894_v63 = vadd.f32 %v4852_v60, %v429_v31 }
 0x1e8   :  { %715 = vmatpush.bf16.msra.mxu3 %v3677_v26 }
 0x1e9   :  { %v488_v0 = vsel %vm222_vm0, %v4894_v63, 0.0  ;;  %692 = vmatpush.bf16.msra.mxu2 %v3665_v61 }
 0x1ea   :  { %489 = vadd.xlane.f32.xlu2 %v488_v0  ;;  %v3669_v0 = vor.u32 %v4165_v59, %v3666_v62 }
 0x1ec   :  { %716 = vmatpush.bf16.msra.mxu3 %v3669_v0 }
 0x235   :  { %v475_v1 = vpop.xlane.xlu0 %474 }
 0x236   :  { %v491_v2 = vmul.f32 %v475_v1, %v4807_v8 }
 0x238   :  { %v4900_v3 = vsub.f32 %v4857_v4, %v491_v2 }
 0x23a   :  { %v503_v5 = vmul.f32 %v4900_v3, %v4900_v3 }
 0x23c   :  { %v509_v36 = vsel %vm222_vm0, %v503_v5, 0.0 }
 0x23d   :  { %v478_v6 = vpop.xlane.xlu1 %477  ;;  %510 = vadd.xlane.f32.xlu0 %v509_v36 }
 0x23e   :  { %v492_v56 = vmul.f32 %v478_v6, %v4807_v8 }
 0x240   :  { %v4907_v60 = vsub.f32 %v4865_v20, %v492_v56 }
 0x242   :  { %v504_v7 = vmul.f32 %v4907_v60, %v4907_v60 }
 0x244   :  { %v512_v9 = vsel %vm222_vm0, %v504_v7, 0.0 }
 0x245   :  { %v481_v10 = vpop.xlane.xlu2 %480  ;;  %513 = vadd.xlane.f32.xlu1 %v512_v9 }
 0x246   :  { %v493_v11 = vmul.f32 %v481_v10, %v4807_v8 }
 0x248   :  { %v4914_v12 = vsub.f32 %v4873_v37, %v493_v11 }
 0x24a   :  { %v505_v13 = vmul.f32 %v4914_v12, %v4914_v12 }
 0x24c   :  { %v515_v14 = vsel %vm222_vm0, %v505_v13, 0.0 }
 0x24d   :  { %516 = vadd.xlane.f32.xlu2 %v515_v14  ;;  %v484_v15 = vpop.xlane.xlu0 %483 }
 0x24e   :  { %v494_v17 = vmul.f32 %v484_v15, %v4807_v8 }
 0x250   :  { %v4921_v18 = vsub.f32 %v4880_v47, %v494_v17 }
 0x252   :  { %v506_v19 = vmul.f32 %v4921_v18, %v4921_v18 }
 0x254   :  { %v518_v22 = vsel %vm222_vm0, %v506_v19, 0.0 }
 0x255   :  { %v487_v23 = vpop.xlane.xlu1 %486  ;;  %519 = vadd.xlane.f32.xlu0 %v518_v22 }
 0x256   :  { %v495_v16 = vmul.f32 %v487_v23, %v4807_v8 }
 0x258   :  { %v4928_v24 = vsub.f32 %v4887_v57, %v495_v16 }
 0x25a   :  { %v507_v25 = vmul.f32 %v4928_v24, %v4928_v24 }
 0x25c   :  { %v521_v27 = vsel %vm222_vm0, %v507_v25, 0.0 }
 0x25d   :  { %v490_v28 = vpop.xlane.xlu2 %489  ;;  %522 = vadd.xlane.f32.xlu1 %v521_v27 }
 0x25e   :  { %v496_v29 = vmul.f32 %v490_v28, %v4807_v8 }
 0x260   :  { %v4935_v30 = vsub.f32 %v4894_v63, %v496_v29 }
 0x262   :  { %v508_v32 = vmul.f32 %v4935_v30, %v4935_v30 }
 0x264   :  { %v524_v33 = vsel %vm222_vm0, %v508_v32, 0.0 }
 0x265   :  { %525 = vadd.xlane.f32.xlu2 %v524_v33  ;;  %v4996_v33 = vld [vmem:[%s6536_s4] ss:$0 sm:$0xff] }
 0x2b0   :  { %v511_v53 = vpop.xlane.xlu0 %510 }
 0x2b1   :  { %v527_v54 = vmul.f32 %v511_v53, %v4807_v8 }
 0x2b3   :  { %v533_v31 = vadd.f32 1e-05, %v527_v54 }
 0x2b5   :  { %4321 = vrsqrt.f32 %v533_v31  ;;  %vm545_vm6 = vweird.f32 %v533_v31 }
 0x2b8   :  { %v514_v1 = vpop.xlane.xlu1 %513 }
 0x2b9   :  { %v528_v2 = vmul.f32 %v514_v1, %v4807_v8 }
 0x2bb   :  { %v4322_v5 = vpop.eup %4321  ;;  %v534_v36 = vadd.f32 1e-05, %v528_v2 }
 0x2bc   :  { %v540_v6 = vmul.f32 %v4322_v5, %v533_v31  ;;  %vm546_vm5 = vweird.f32 %v4322_v5 }
 0x2bd   :  { %4323 = vrsqrt.f32 %v534_v36  ;;  %vm547_vm7 = vmor %vm545_vm6, %vm546_vm5  ;;  %vm555_vm9 = vweird.f32 %v534_v36 }
 0x2be   :  { %v541_v56 = vmul.f32 %v4322_v5, %v540_v6 }
 0x2c0   :  { %v542_v7 = vmul.f32 0.5, %v541_v56  ;;  %v517_v9 = vpop.xlane.xlu2 %516 }
 0x2c1   :  { %v529_v10 = vmul.f32 %v517_v9, %v4807_v8 }
 0x2c2   :  { %v543_v11 = vsub.f32 1.5, %v542_v7 }
 0x2c3   :  { %v4324_v13 = vpop.eup %4323  ;;  %v535_v14 = vadd.f32 1e-05, %v529_v10 }
 0x2c4   :  { %v544_v15 = vmul.f32 %v4322_v5, %v543_v11  ;;  %v550_v17 = vmul.f32 %v4324_v13, %v534_v36  ;;  %vm556_vm8 = vweird.f32 %v4324_v13 }
 0x2c5   :  { %4325 = vrsqrt.f32 %v535_v14  ;;  %vm557_vm10 = vmor %vm555_vm9, %vm556_vm8  ;;  %vm565_vm12 = vweird.f32 %v535_v14  ;;  %vm754_vm8 = vcmask 261120  }
 0x2c6   :  { %v551_v19 = vmul.f32 %v4324_v13, %v550_v17  ;;  %v548_v22 = vsel %vm547_vm7, %v4322_v5, %v544_v15 }
 0x2c7   :  { %v599_v29 = vmul.f32 %v548_v22, %v4900_v3  ;;  %v5003_v3 = vld [vmem:[%s6537_s3] ss:$0 sm:$0xff] }
 0x2c8   :  { %v552_v23 = vmul.f32 0.5, %v551_v19  ;;  %v520_v16 = vpop.xlane.xlu0 %519 }
 0x2c9   :  { %v530_v25 = vmul.f32 %v520_v16, %v4807_v8  ;;  %v606_v40 = vmul.f32 %v4996_v33, %v599_v29 }
 0x2ca   :  { %v553_v27 = vsub.f32 1.5, %v552_v23 }
 0x2cb   :  { %v4326_v28 = vpop.eup %4325  ;;  %v536_v32 = vadd.f32 1e-05, %v530_v25  ;;  %v613_v49 = vadd.f32 %v5003_v3, %v606_v40 }
 0x2cc   :  { %v554_v34 = vmul.f32 %v4324_v13, %v553_v27  ;;  %v560_v35 = vmul.f32 %v4326_v28, %v535_v14  ;;  %vm566_vm11 = vweird.f32 %v4326_v28 }
 0x2cd   :  { %4327 = vrsqrt.f32 %v536_v32  ;;  %vm567_vm13 = vmor %vm565_vm12, %vm566_vm11  ;;  %vm575_vm15 = vweird.f32 %v536_v32 }
 0x2ce   :  { %v558_v38 = vsel %vm557_vm10, %v4324_v13, %v554_v34  ;;  %v561_v39 = vmul.f32 %v4326_v28, %v560_v35  ;;  %vm803_vm10 = vcmask 392192  }
 0x2cf   :  { %v600_v21 = vmul.f32 %v558_v38, %v4907_v60 }
 0x2d0   :  { %v562_v41 = vmul.f32 0.5, %v561_v39  ;;  %v523_v42 = vpop.xlane.xlu1 %522  ;;  %v630_v39 = vld [vmem:[%s6538_s11] sm:$0x3] }
 0x2d1   :  { %v531_v43 = vmul.f32 %v523_v42, %v4807_v8  ;;  %v607_v44 = vmul.f32 %v4996_v33, %v600_v21 }
 0x2d2   :  { %v563_v45 = vsub.f32 1.5, %v562_v41 }
 0x2d3   :  { %v4328_v46 = vpop.eup %4327  ;;  %v537_v48 = vadd.f32 1e-05, %v531_v43  ;;  %v614_v60 = vadd.f32 %v5003_v3, %v607_v44 }
 0x2d4   :  { %v564_v50 = vmul.f32 %v4326_v28, %v563_v45  ;;  %v570_v51 = vmul.f32 %v4328_v46, %v536_v32  ;;  %vm576_vm14 = vweird.f32 %v4328_v46 }
 0x2d5   :  { %4329 = vrsqrt.f32 %v537_v48  ;;  %v627_v52 = vpack.c.bf16 %v614_v60, %v613_v49  ;;  %vm577_vm1 = vmor %vm575_vm15, %vm576_vm14  ;;  %vm585_vm3 = vweird.f32 %v537_v48 }
 0x2d6   :  { %v571_v26 = vmul.f32 %v4328_v46, %v570_v51  ;;  %v568_v53 = vsel %vm567_vm13, %v4326_v28, %v564_v50 }
 0x2d7   :  { %3694 = vmatmul.msk.bf16.vlgmr.msra.gmra.mxu2 %vm222_vm0, %v627_v52  ;;  %3697 = vmatmul.msk.bf16.vlgmr.msra.gmra.mxu3 %vm222_vm0, %v627_v52  ;;  %v601_v62 = vmul.f32 %v568_v53, %v4914_v12  ;;  %v633_v53 = vperm.slane %v630_v39, 1 }
 0x2d8   :  { %v572_v54 = vmul.f32 0.5, %v571_v26  ;;  %v526_v55 = vpop.xlane.xlu2 %525 }
 0x2d9   :  { %v532_v58 = vmul.f32 %v526_v55, %v4807_v8  ;;  %v608_v6 = vmul.f32 %v4996_v33, %v601_v62 }
 0x2da   :  { %v573_v59 = vsub.f32 1.5, %v572_v54 }
 0x2db   :  { %v4330_v61 = vpop.eup %4329  ;;  %v538_v31 = vadd.f32 1e-05, %v532_v58  ;;  %v615_v11 = vadd.f32 %v5003_v3, %v608_v6 }
 0x2dc   :  { %v574_v0 = vmul.f32 %v4328_v46, %v573_v59  ;;  %v580_v1 = vmul.f32 %v4330_v61, %v537_v48  ;;  %vm586_vm2 = vweird.f32 %v4330_v61 }
 0x2dd   :  { %4331 = vrsqrt.f32 %v538_v31  ;;  %vm587_vm4 = vmor %vm585_vm3, %vm586_vm2  ;;  %vm595_vm6 = vweird.f32 %v538_v31 }
 0x2de   :  { %v578_v2 = vsel %vm577_vm1, %v4328_v46, %v574_v0  ;;  %v581_v5 = vmul.f32 %v4330_v61, %v580_v1 }
 0x2df   :  { %v602_v36 = vmul.f32 %v578_v2, %v4921_v18 }
 0x2e0   :  { %v582_v56 = vmul.f32 0.5, %v581_v5 }
 0x2e1   :  { %v609_v7 = vmul.f32 %v4996_v33, %v602_v36 }
 0x2e2   :  { %v583_v9 = vsub.f32 1.5, %v582_v56 }
 0x2e3   :  { %v4332_v10 = vpop.eup %4331  ;;  %v616_v12 = vadd.f32 %v5003_v3, %v609_v7 }
 0x2e4   :  { %v584_v13 = vmul.f32 %v4330_v61, %v583_v9  ;;  %v590_v14 = vmul.f32 %v4332_v10, %v538_v31  ;;  %vm596_vm5 = vweird.f32 %v4332_v10 }
 0x2e5   :  { %v628_v15 = vpack.c.bf16 %v616_v12, %v615_v11  ;;  %vm597_vm7 = vmor %vm595_vm6, %vm596_vm5 }
 0x2e6   :  { %v591_v17 = vmul.f32 %v4332_v10, %v590_v14  ;;  %v588_v18 = vsel %vm587_vm4, %v4330_v61, %v584_v13 }
 0x2e7   :  { %3695 = vmatmul.msk.bf16.gmra.mxu2 %vm222_vm0, %v628_v15  ;;  %3698 = vmatmul.msk.bf16.gmra.mxu3 %vm222_vm0, %v628_v15  ;;  %v603_v23 = vmul.f32 %v588_v18, %v4928_v24 }
 0x2e8   :  { %v592_v19 = vmul.f32 0.5, %v591_v17 }
 0x2e9   :  { %v610_v28 = vmul.f32 %v4996_v33, %v603_v23  ;;  %v4567_v23 = vmov 0  }
 0x2ea   :  { %v593_v22 = vsub.f32 1.5, %v592_v19  ;;  %4256 = vset.pattern.permute.xlu0 %v4567_v23  ;;  %4258 = vset.pattern.permute.xlu1 %v4567_v23 }
 0x2eb   :  { %v617_v32 = vadd.f32 %v5003_v3, %v610_v28  ;;  %4257 = vset.pattern.permute.xlu2 %v4567_v23  ;;  %v444_v28 = vld [vmem:[%s6539_s7 + $0x28] sm:$0xff] }
 0x2ec   :  { %v594_v16 = vmul.f32 %v4332_v10, %v593_v22  ;;  %v439_v22 = vld [vmem:[%s6539_s7] sm:$0xff] }
 0x2ee   :  { %v598_v25 = vsel %vm597_vm7, %v4332_v10, %v594_v16 }
 0x2ef   :  { %v604_v27 = vmul.f32 %v598_v25, %v4935_v30  ;;  %v632_v30 = vperm.slane %v630_v39, 0  ;;  %v440_v39 = vld [vmem:[%s6539_s7 + $0x8] sm:$0xff] }
 0x2f1   :  { %v611_v29 = vmul.f32 %v4996_v33, %v604_v27 }
 0x2f3   :  { %v618_v34 = vadd.f32 %v5003_v3, %v611_v29 }
 0x2f5   :  { %v629_v35 = vpack.c.bf16 %v618_v34, %v617_v32 }
 0x2f7   :  { %3696 = vmatmul.msk.bf16.gmra.mxu2 %vm222_vm0, %v629_v35  ;;  %3699 = vmatmul.msk.bf16.gmra.mxu3 %vm222_vm0, %v629_v35  ;;  %v441_v35 = vld [vmem:[%s6539_s7 + $0x10] sm:$0xff] }
 0x35a   :  { %v694_v24 = vpop.f32.mrf.mxu2  ;;  %v718_v38 = vpop.f32.mrf.mxu3 }
 0x35b   :  { %v695_v41 = vadd.f32 %v694_v24, %v632_v30  ;;  %v719_v10 = vadd.f32 %v718_v38, %v633_v53 }
 0x35d   :  { %v733_v11 = vmul.f32 0.17677669, %v695_v41 }
 0x362   :  { %v696_v21 = vpop.f32.mrf.mxu2  ;;  %v720_v40 = vpop.f32.mrf.mxu3 }
 0x363   :  { %v697_v33 = vadd.f32 %v696_v21, %v632_v30  ;;  %v721_v56 = vadd.f32 %v720_v40, %v633_v53  ;;  %v442_v21 = vld [vmem:[%s6539_s7 + $0x18] sm:$0xff] }
 0x365   :  { %v742_v42 = vpack.c.bf16 %v697_v33, %v695_v41  ;;  %v734_v9 = vmul.f32 0.17677669, %v697_v33  ;;  %v5046_v12 = vpack.c.bf16 %v721_v56, %v719_v10  ;;  %v5086_v33 = vld [vmem:[%s6540_s6] ss:$0 sm:$0xff] }
 0x367   :  { %918 = vrot.lane.b32.xlu2 %v742_v42, %s6513_s9  ;;  %v739_v13 = vpack.c.bf16 %v734_v9, %v733_v11 }
 0x36a   :  { %v699_v3 = vpop.f32.mrf.mxu2  ;;  %v723_v43 = vpop.f32.mrf.mxu3 }
 0x36b   :  { %v700_v46 = vadd.f32 %v699_v3, %v632_v30  ;;  %v724_v36 = vadd.f32 %v723_v43, %v633_v53 }
 0x36d   :  { %v735_v52 = vmul.f32 0.17677669, %v700_v46 }
 0x372   :  { %v701_v44 = vpop.f32.mrf.mxu2  ;;  %v725_v45 = vpop.f32.mrf.mxu3 }
 0x373   :  { %v702_v48 = vadd.f32 %v701_v44, %v632_v30  ;;  %v726_v31 = vadd.f32 %v725_v45, %v633_v53 }
 0x375   :  { %v743_v49 = vpack.c.bf16 %v702_v48, %v700_v46  ;;  %v736_v60 = vmul.f32 0.17677669, %v702_v48  ;;  %v5043_v7 = vpack.c.bf16 %v726_v31, %v724_v36 }
 0x377   :  { %920 = vrot.lane.b32.xlu1 %v743_v49, %s6513_s9  ;;  %v5033_v26 = vpack.c.bf16 %v736_v60, %v735_v52 }
 0x37a   :  { %v704_v50 = vpop.f32.mrf.mxu2  ;;  %v728_v51 = vpop.f32.mrf.mxu3 }
 0x37b   :  { %v705_v54 = vadd.f32 %v704_v50, %v632_v30  ;;  %v729_v59 = vadd.f32 %v728_v51, %v633_v53 }
 0x37d   :  { %v737_v0 = vmul.f32 0.17677669, %v705_v54 }
 0x37f   :  { %914 = vrot.lane.b32.xlu1 %v5033_v26, %s6511_s12 }
 0x382   :  { %v706_v55 = vpop.f32.mrf.mxu2  ;;  %v730_v58 = vpop.f32.mrf.mxu3 }
 0x383   :  { %v707_v61 = vadd.f32 %v706_v55, %v632_v30  ;;  %v731_v62 = vadd.f32 %v730_v58, %v633_v53  ;;  %v443_v30 = vld [vmem:[%s6539_s7 + $0x20] sm:$0xff]  ;;  %s6558_s7 = smov 32  }
 0x385   :  { %v738_v1 = vmul.f32 0.17677669, %v707_v61  ;;  %v744_v2 = vpack.c.bf16 %v707_v61, %v705_v54  ;;  %v5037_v5 = vpack.c.bf16 %v731_v62, %v729_v59 }
 0x387   :  { %890 = vmatpush.bf16.msrb.mxu2 %v5037_v5  ;;  %752 = vrot.lane.b32.xlu2 %v744_v2, %s6509_s8  ;;  %v741_v6 = vpack.c.bf16 %v738_v1, %v737_v0 }
 0x388   :  { %922 = vrot.lane.b32.xlu0 %v744_v2, %s6513_s9 }
 0x389   :  { %916 = vrot.lane.b32.xlu1 %v741_v6, %s6511_s12 }
 0x38b   :  { %891 = vmatpush.bf16.msrb.mxu2 %v5043_v7 }
 0x38f   :  { %892 = vmatpush.bf16.msrb.mxu2 %v5046_v12  ;;  %748 = vrot.lane.b32.xlu2 %v742_v42, %s6509_s8 }
 0x390   :  { %912 = vrot.lane.b32.xlu0 %v739_v13, %s6511_s12 }
 0x391   :  { %453 = vperm.xlu1 %4258, %v441_v35  }
 0x397   :  { %450 = vperm.xlu2 %4257, %v440_v39  }
 0x398   :  { %750 = vrot.lane.b32.xlu0 %v743_v49, %s6509_s8 }
 0x399   :  { %459 = vperm.xlu1 %4258, %v443_v30  }
 0x39f   :  { %456 = vperm.xlu2 %4257, %v442_v21  }
 0x3a0   :  { %447 = vperm.xlu0 %4256, %v439_v22  }
 0x3a8   :  { %462 = vperm.xlu0 %4256, %v444_v28  }
 0x3c1   :  { %v919_v14 = vpop.permute.xlu2 %918 }
 0x3c2   :  { %v934_v34 = vsel %vm754_vm8, %v919_v14, 0 }
 0x3e1   :  { %v753_v15 = vpop.permute.xlu2 %752 }
 0x3e2   :  { %v771_v17 = vsel %vm754_vm8, %v753_v15, 0 }
 0x3e3   :  { %778 = vmatpush.bf16.xpose.msrb.mxu1 %v771_v17 }
 0x3e9   :  { %v921_v16 = vpop.permute.xlu1 %920  ;;  %v749_v24 = vpop.permute.xlu2 %748 }
 0x3ea   :  { %v937_v27 = vsel %vm754_vm8, %v921_v16, 0  ;;  %v765_v38 = vsel %vm754_vm8, %v749_v24, 0 }
 0x3f1   :  { %v915_v40 = vpop.permute.xlu1 %914  ;;  %v5102_v49 = vpop.permute.xlu2 %450 }
 0x3f2   :  { %vm466_vm11 = vcmp.eq.s32.totalorder %v5102_v49, %v5086_v33 }
 0x3f9   :  { %v5129_v62 = vpop.permute.xlu2 %456 }
 0x3fa   :  { %v923_v18 = vpop.permute.xlu0 %922  ;;  %vm6517_vm13 = vcmp.eq.s32.totalorder %v5129_v62, %v5086_v33 }
 0x3fb   :  { %v940_v19 = vsel %vm754_vm8, %v923_v18, 0  ;;  %v917_v41 = vpop.permute.xlu1 %916 }
 0x3fc   :  { %947 = vmatpush.bf16.xpose.msrb.mxu3 %v940_v19 }
 0x402   :  { %v913_v25 = vpop.permute.xlu0 %912 }
 0x404   :  { %948 = vmatpush.bf16.xpose.msrb.mxu3 %v937_v27 }
 0x40a   :  { %v751_v29 = vpop.permute.xlu0 %750 }
 0x40b   :  { %v768_v32 = vsel %vm754_vm8, %v751_v29, 0 }
 0x40c   :  { %779 = vmatpush.bf16.xpose.msrb.mxu1 %v768_v32  ;;  %949 = vmatpush.bf16.xpose.msrb.mxu3 %v934_v34 }
 0x412   :  { %v5088_v3 = vpop.permute.xlu0 %447 }
 0x413   :  { %3706 = vmatmul.msk.bf16.vlgmr.msrb.gmra.mxu3 %vm754_vm8, %v913_v25  ;;  %vm465_vm9 = vcmp.eq.s32.totalorder %v5088_v3, %v5086_v33 }
 0x414   :  { %780 = vmatpush.bf16.xpose.msrb.mxu1 %v765_v38 }
 0x41a   :  { %v5159_v15 = vpop.permute.xlu0 %462 }
 0x41b   :  { %3700 = vmatmul.msk.bf16.vlgmr.msrb.gmra.mxu1 %vm754_vm8, %v739_v13  ;;  %vm6515_vm15 = vcmp.eq.s32.totalorder %v5159_v15, %v5086_v33 }
 0x423   :  { %3707 = vmatmul.msk.bf16.gmra.mxu3 %vm754_vm8, %v915_v40 }
 0x42b   :  { %3701 = vmatmul.msk.bf16.gmra.mxu1 %vm754_vm8, %v5033_v26  ;;  %v5114_v26 = vpop.permute.xlu1 %453 }
 0x42c   :  { %vm467_vm12 = vcmp.eq.s32.totalorder %v5114_v26, %v5086_v33 }
 0x433   :  { %3708 = vmatmul.msk.bf16.gmra.mxu3 %vm754_vm8, %v917_v41  ;;  %v5141_v36 = vpop.permute.xlu1 %459 }
 0x434   :  { %vm6516_vm14 = vcmp.eq.s32.totalorder %v5141_v36, %v5086_v33 }
 0x43b   :  { %3702 = vmatmul.msk.bf16.gmra.mxu1 %vm754_vm8, %v741_v6 }
 0x496   :  { %v951_v42 = vpop.f32.mrf.mxu3 }
 0x497   :  { %v966_v48 = vsel %vm465_vm9, %v951_v42, -1e+09 }
 0x498   :  { %v782_v43 = vpop.f32.mrf.mxu1  ;;  %v972_v51 = vsel %vm803_vm10, %v966_v48, -inf }
 0x499   :  { %v5095_v44 = vsel %vm465_vm9, %v782_v43, -1e+09 }
 0x49a   :  { %v804_v45 = vsel %vm803_vm10, %v5095_v44, -inf }
 0x49b   :  { %805 = vmax.xlane.f32.xlu2 %v804_v45 }
 0x49e   :  { %v953_v46 = vpop.f32.mrf.mxu3 }
 0x49f   :  { %v967_v54 = vsel %vm466_vm11, %v953_v46, -1e+09 }
 0x4a0   :  { %v784_v60 = vpop.f32.mrf.mxu1  ;;  %v975_v59 = vsel %vm803_vm10, %v967_v54, -inf }
 0x4a1   :  { %v5109_v50 = vsel %vm466_vm11, %v784_v60, -1e+09 }
 0x4a2   :  { %v807_v52 = vsel %vm803_vm10, %v5109_v50, -inf }
 0x4a3   :  { %973 = vmax.xlane.f32.xlu2 %v972_v51  ;;  %808 = vmax.xlane.f32.xlu1 %v807_v52 }
 0x4a6   :  { %v956_v53 = vpop.f32.mrf.mxu3 }
 0x4a7   :  { %v5134_v0 = vsel %vm467_vm12, %v956_v53, -1e+09 }
 0x4a8   :  { %v787_v55 = vpop.f32.mrf.mxu1  ;;  %v978_v6 = vsel %vm803_vm10, %v5134_v0, -inf }
 0x4a9   :  { %v5124_v58 = vsel %vm467_vm12, %v787_v55, -1e+09 }
 0x4aa   :  { %v810_v61 = vsel %vm803_vm10, %v5124_v58, -inf }
 0x4ab   :  { %976 = vmax.xlane.f32.xlu1 %v975_v59  ;;  %811 = vmax.xlane.f32.xlu0 %v810_v61 }
 0x4ae   :  { %v958_v31 = vpop.f32.mrf.mxu3 }
 0x4af   :  { %v969_v11 = vsel %vm6517_vm13, %v958_v31, -1e+09 }
 0x4b0   :  { %v789_v1 = vpop.f32.mrf.mxu1  ;;  %v981_v14 = vsel %vm803_vm10, %v969_v11, -inf }
 0x4b1   :  { %v800_v2 = vsel %vm6517_vm13, %v789_v1, -1e+09 }
 0x4b2   :  { %v813_v56 = vsel %vm803_vm10, %v800_v2, -inf }
 0x4b3   :  { %979 = vmax.xlane.f32.xlu0 %v978_v6  ;;  %814 = vmax.xlane.f32.xlu2 %v813_v56 }
 0x4b6   :  { %v961_v9 = vpop.f32.mrf.mxu3 }
 0x4b7   :  { %v5151_v10 = vsel %vm6516_vm14, %v961_v9, -1e+09 }
 0x4b8   :  { %v984_v13 = vsel %vm803_vm10, %v5151_v10, -inf  ;;  %v792_v22 = vpop.f32.mrf.mxu1 }
 0x4b9   :  { %985 = vmax.xlane.f32.xlu1 %v984_v13  ;;  %v5172_v23 = vsel %vm6516_vm14, %v792_v22, -1e+09 }
 0x4ba   :  { %v816_v16 = vsel %vm803_vm10, %v5172_v23, -inf }
 0x4bb   :  { %982 = vmax.xlane.f32.xlu2 %v981_v14 }
 0x4be   :  { %v963_v17 = vpop.f32.mrf.mxu3 }
 0x4bf   :  { %v971_v18 = vsel %vm6515_vm15, %v963_v17, -1e+09 }
 0x4c0   :  { %v987_v19 = vsel %vm803_vm10, %v971_v18, -inf }
 0x4c1   :  { %988 = vmax.xlane.f32.xlu0 %v987_v19 }
 0x4d3   :  { %1048 = vrot.lane.b32.xlu2 %v5037_v5, %s6511_s12 }
 0x4fc   :  { %817 = vmax.xlane.f32.xlu2 %v816_v16 }
 0x50e   :  { %v806_v25 = vpop.xlane.xlu2 %805 }
 0x50f   :  { %v822_v42 = vsub.f32 %v5095_v44, %v806_v25 }
 0x511   :  { %v828_v45 = vmul.f32 1.442695, %v822_v42 }
 0x516   :  { %v974_v27 = vpop.xlane.xlu2 %973  ;;  %v809_v28 = vpop.xlane.xlu1 %808 }
 0x517   :  { %v990_v29 = vsub.f32 %v966_v48, %v974_v27  ;;  %v823_v19 = vsub.f32 %v5109_v50, %v809_v28 }
 0x519   :  { %v996_v32 = vmul.f32 1.442695, %v990_v29  ;;  %v830_v16 = vmul.f32 1.442695, %v823_v19 }
 0x51b   :  { %4333 = vpow2.f32 %v996_v32 }
 0x51e   :  { %v977_v34 = vpop.xlane.xlu1 %976  ;;  %v812_v55 = vpop.xlane.xlu0 %811 }
 0x51f   :  { %v991_v35 = vsub.f32 %v967_v54, %v977_v34  ;;  %v824_v14 = vsub.f32 %v5124_v58, %v812_v55 }
 0x521   :  { %v5176_v24 = vpop.eup %4333  ;;  %v998_v5 = vmul.f32 1.442695, %v991_v35 }
 0x522   :  { %v1008_v38 = vsel %vm803_vm10, %v5176_v24, 0.0 }
 0x523   :  { %4335 = vpow2.f32 %v998_v5  ;;  %1009 = vadd.xlane.f32.xlu1 %v1008_v38 }
 0x526   :  { %v815_v39 = vpop.xlane.xlu2 %814  ;;  %v980_v61 = vpop.xlane.xlu0 %979 }
 0x527   :  { %v825_v60 = vsub.f32 %v800_v2, %v815_v39 }
 0x529   :  { %v5180_v30 = vpop.eup %4335  ;;  %v834_v52 = vmul.f32 1.442695, %v825_v60 }
 0x52a   :  { %v1011_v21 = vsel %vm803_vm10, %v5180_v30, 0.0 }
 0x52b   :  { %1012 = vadd.xlane.f32.xlu0 %v1011_v21 }
 0x52c   :  { %v986_v2 = vpop.xlane.xlu1 %985 }
 0x52d   :  { %v994_v6 = vsub.f32 %v5151_v10, %v986_v2 }
 0x52e   :  { %v983_v40 = vpop.xlane.xlu2 %982 }
 0x52f   :  { %v993_v41 = vsub.f32 %v969_v11, %v983_v40  ;;  %v794_v11 = vpop.f32.mrf.mxu1  ;;  %v1004_v13 = vmul.f32 1.442695, %v994_v6 }
 0x531   :  { %v1002_v43 = vmul.f32 1.442695, %v993_v41 }
 0x533   :  { %4337 = vpow2.f32 %v1002_v43 }
 0x534   :  { %4339 = vpow2.f32 %v828_v45  ;;  %v989_v1 = vpop.xlane.xlu0 %988 }
 0x535   :  { %4341 = vpow2.f32 %v834_v52 }
 0x536   :  { %v1049_v46 = vpop.permute.xlu2 %1048 }
 0x537   :  { %1067 = vmatpush.bf16.msrb.mxu0 %v1049_v46 }
 0x539   :  { %v5185_v48 = vpop.eup %4337 }
 0x53a   :  { %v1017_v51 = vsel %vm803_vm10, %v5185_v48, 0.0  ;;  %v5191_v53 = vpop.eup %4339 }
 0x53b   :  { %1018 = vadd.xlane.f32.xlu2 %v1017_v51  ;;  %v840_v44 = vsel %vm803_vm10, %v5191_v53, 0.0  ;;  %v5197_v54 = vpop.eup %4341 }
 0x53c   :  { %1046 = vrot.lane.b32.xlu1 %v5043_v7, %s6511_s12  ;;  %v849_v59 = vsel %vm803_vm10, %v5197_v54, 0.0  ;;  %v992_v7 = vsub.f32 %v5134_v0, %v980_v61  ;;  %v802_v0 = vsel %vm6515_vm15, %v794_v11, -1e+09 }
 0x53d   :  { %v819_v10 = vsel %vm803_vm10, %v802_v0, -inf }
 0x53e   :  { %v1000_v31 = vmul.f32 1.442695, %v992_v7 }
 0x53f   :  { %1044 = vrot.lane.b32.xlu0 %v5046_v12, %s6511_s12  ;;  %v995_v12 = vsub.f32 %v971_v18, %v989_v1  ;;  %v832_v18 = vmul.f32 1.442695, %v824_v14 }
 0x540   :  { %4343 = vpow2.f32 %v1000_v31 }
 0x541   :  { %v1006_v56 = vmul.f32 1.442695, %v995_v12 }
 0x543   :  { %841 = vadd.xlane.f32.xlu2 %v840_v44  ;;  %4345 = vpow2.f32 %v1006_v56 }
 0x544   :  { %4347 = vpow2.f32 %v1004_v13 }
 0x545   :  { %4349 = vpow2.f32 %v832_v18 }
 0x546   :  { %v4344_v9 = vpop.eup %4343  ;;  %4351 = vpow2.f32 %v830_v16 }
 0x547   :  { %v1014_v17 = vsel %vm803_vm10, %v4344_v9, 0.0 }
 0x549   :  { %v5210_v22 = vpop.eup %4345 }
 0x54a   :  { %v4348_v58 = vpop.eup %4347  ;;  %v1023_v25 = vsel %vm803_vm10, %v5210_v22, 0.0 }
 0x54b   :  { %850 = vadd.xlane.f32.xlu2 %v849_v59  ;;  %v1020_v50 = vsel %vm803_vm10, %v4348_v58, 0.0  ;;  %v5216_v28 = vpop.eup %4349 }
 0x54c   :  { %v4352_v34 = vpop.eup %4351  ;;  %v846_v35 = vsel %vm803_vm10, %v5216_v28, 0.0 }
 0x54d   :  { %v843_v5 = vsel %vm803_vm10, %v4352_v34, 0.0 }
 0x566   :  { %1015 = vadd.xlane.f32.xlu1 %v1014_v17 }
 0x569   :  { %820 = vmax.xlane.f32.xlu0 %v819_v10 }
 0x56e   :  { %1024 = vadd.xlane.f32.xlu1 %v1023_v25 }
 0x56f   :  { %v818_v27 = vpop.xlane.xlu2 %817 }
 0x570   :  { %v826_v29 = vsub.f32 %v5172_v23, %v818_v27 }
 0x571   :  { %1021 = vadd.xlane.f32.xlu0 %v1020_v50 }
 0x572   :  { %v836_v32 = vmul.f32 1.442695, %v826_v29 }
 0x574   :  { %4353 = vpow2.f32 %v836_v32 }
 0x576   :  { %847 = vadd.xlane.f32.xlu1 %v846_v35 }
 0x579   :  { %844 = vadd.xlane.f32.xlu0 %v843_v5 }
 0x57a   :  { %v5221_v38 = vpop.eup %4353 }
 0x57b   :  { %v852_v23 = vsel %vm803_vm10, %v5221_v38, 0.0 }
 0x581   :  { %853 = vadd.xlane.f32.xlu0 %v852_v23 }
 0x596   :  { %v1010_v21 = vpop.xlane.xlu1 %1009 }
 0x59e   :  { %v1013_v39 = vpop.xlane.xlu0 %1012 }
 0x59f   :  { %4355 = vrcp.f32 %v1013_v39 }
 0x5a0   :  { %4357 = vrcp.f32 %v1010_v21 }
 0x5a5   :  { %v4356_v40 = vpop.eup %4355 }
 0x5a6   :  { %v4358_v42 = vpop.eup %4357  ;;  %v1033_v43 = vmul.f32 %v4356_v40, %v5180_v30 }
 0x5a7   :  { %v1032_v46 = vmul.f32 %v4358_v42, %v5176_v24 }
 0x5a9   :  { %v1038_v60 = vpack.c.bf16 %v1033_v43, %v1032_v46 }
 0x5ae   :  { %v1047_v41 = vpop.permute.xlu1 %1046  ;;  %v1019_v51 = vpop.xlane.xlu2 %1018 }
 0x5af   :  { %1068 = vmatpush.bf16.msrb.mxu0 %v1047_v41  ;;  %4359 = vrcp.f32 %v1019_v51 }
 0x5b1   :  { %v1045_v45 = vpop.permute.xlu0 %1044 }
 0x5b3   :  { %1069 = vmatpush.bf16.msrb.mxu0 %v1045_v45  ;;  %v4176_v45 = vld [vmem:[%s6541_s30 + $0x18] sm:$0xff] }
 0x5b4   :  { %1164 = vmatpush.bf16.msra.mxu1 %v4176_v45 }
 0x5b5   :  { %v4360_v59 = vpop.eup %4359 }
 0x5b6   :  { %3709 = vmatmul.msk.bf16.vlgmr.msrb.gmra.mxu0 %vm803_vm10, %v1038_v60  ;;  %v1035_v30 = vmul.f32 %v4360_v59, %v5185_v48  ;;  %v842_v6 = vpop.xlane.xlu2 %841  ;;  %v4175_v60 = vld [vmem:[%s6541_s30 + $0x10] sm:$0xff] }
 0x5b8   :  { %1165 = vmatpush.bf16.msra.mxu1 %v4175_v60 }
 0x5be   :  { %v851_v27 = vpop.xlane.xlu2 %850 }
 0x5d9   :  { %v1016_v52 = vpop.xlane.xlu1 %1015 }
 0x5da   :  { %4361 = vrcp.f32 %v1016_v52  ;;  %v4173_v52 = vld [vmem:[%s6541_s30] sm:$0xff] }
 0x5dc   :  { %v821_v44 = vpop.xlane.xlu0 %820 }
 0x5dd   :  { %v827_v55 = vsub.f32 %v802_v0, %v821_v44 }
 0x5df   :  { %v838_v61 = vmul.f32 1.442695, %v827_v55 }
 0x5e0   :  { %v4362_v7 = vpop.eup %4361 }
 0x5e1   :  { %4363 = vpow2.f32 %v838_v61  ;;  %v1034_v31 = vmul.f32 %v4362_v7, %v4344_v9  ;;  %v1025_v24 = vpop.xlane.xlu1 %1024 }
 0x5e3   :  { %v1039_v1 = vpack.c.bf16 %v1035_v30, %v1034_v31 }
 0x5e4   :  { %v1022_v2 = vpop.xlane.xlu0 %1021 }
 0x5e5   :  { %3710 = vmatmul.msk.bf16.gmra.mxu0 %vm803_vm10, %v1039_v1  ;;  %4365 = vrcp.f32 %v1022_v2 }
 0x5e6   :  { %4367 = vrcp.f32 %v1025_v24 }
 0x5e7   :  { %v4364_v12 = vpop.eup %4363  ;;  %4369 = vrcp.f32 %v842_v6 }
 0x5e8   :  { %v855_v56 = vsel %vm803_vm10, %v4364_v12, 0.0 }
 0x5e9   :  { %856 = vadd.xlane.f32.xlu1 %v855_v56  ;;  %v848_v16 = vpop.xlane.xlu1 %847 }
 0x5eb   :  { %v4366_v11 = vpop.eup %4365 }
 0x5ec   :  { %v845_v13 = vpop.xlane.xlu0 %844  ;;  %v4368_v14 = vpop.eup %4367  ;;  %v1036_v9 = vmul.f32 %v4366_v11, %v4348_v58 }
 0x5ed   :  { %4371 = vrcp.f32 %v845_v13  ;;  %v4370_v17 = vpop.eup %4369  ;;  %v1037_v48 = vmul.f32 %v4368_v14, %v5210_v22 }
 0x5ee   :  { %v864_v18 = vmul.f32 %v4370_v17, %v5191_v53  ;;  %4373 = vrcp.f32 %v848_v16 }
 0x5ef   :  { %v1040_v19 = vpack.c.bf16 %v1037_v48, %v1036_v9  ;;  %4375 = vrcp.f32 %v851_v27  ;;  %v4296_v27 = vld [vmem:[%s6484_s13] ss:$0 sm:$0xff] }
 0x5f3   :  { %v4372_v0 = vpop.eup %4371 }
 0x5f4   :  { %v865_v10 = vmul.f32 %v4372_v0, %v4352_v34  ;;  %v4374_v29 = vpop.eup %4373  ;;  %v854_v5 = vpop.xlane.xlu0 %853 }
 0x5f5   :  { %3711 = vmatmul.msk.bf16.gmra.mxu0 %vm803_vm10, %v1040_v19  ;;  %v4376_v50 = vpop.eup %4375  ;;  %v866_v58 = vmul.f32 %v4374_v29, %v5216_v28  ;;  %4377 = vrcp.f32 %v854_v5 }
 0x5f6   :  { %v870_v25 = vpack.c.bf16 %v865_v10, %v864_v18  ;;  %v867_v22 = vmul.f32 %v4376_v50, %v5197_v54 }
 0x5f8   :  { %3703 = vmatmul.msk.bf16.vlgmr.msrb.gmra.mxu2 %vm803_vm10, %v870_v25  ;;  %v871_v32 = vpack.c.bf16 %v867_v22, %v866_v58 }
 0x5fb   :  { %v4378_v39 = vpop.eup %4377 }
 0x5fc   :  { %v868_v41 = vmul.f32 %v4378_v39, %v5221_v38  ;;  %v4174_v38 = vld [vmem:[%s6541_s30 + $0x8] sm:$0xff] }
 0x5fd   :  { %1166 = vmatpush.bf16.msra.mxu1 %v4174_v38 }
 0x601   :  { %1167 = vmatpush.bf16.msra.mxu1 %v4173_v52 }
 0x608   :  { %3704 = vmatmul.msk.bf16.gmra.mxu2 %vm803_vm10, %v871_v32 }
 0x633   :  { %v1071_v53 = vpop.f32.mrf.mxu0 }
 0x63b   :  { %v1073_v34 = vpop.f32.mrf.mxu0 }
 0x63c   :  { %v4259_v35 = vpack.i.bf16 %v1073_v34, %v1071_v53 }
 0x63e   :  { %4260 = vrot.lane.b32.xlu2 %v4259_v35, %s6513_s9 }
 0x65c   :  { %v857_v23 = vpop.xlane.xlu1 %856 }
 0x65d   :  { %4379 = vrcp.f32 %v857_v23 }
 0x662   :  { %v1076_v21 = vpop.f32.mrf.mxu0 }
 0x663   :  { %v4380_v40 = vpop.eup %4379 }
 0x664   :  { %v869_v28 = vmul.f32 %v4380_v40, %v4364_v12 }
 0x666   :  { %v872_v42 = vpack.c.bf16 %v869_v28, %v868_v41 }
 0x668   :  { %3705 = vmatmul.msk.bf16.gmra.mxu2 %vm803_vm10, %v872_v42 }
 0x66a   :  { %v1078_v54 = vpop.f32.mrf.mxu0 }
 0x66b   :  { %v4264_v43 = vpack.i.bf16 %v1078_v54, %v1076_v21 }
 0x66d   :  { %4265 = vrot.lane.b32.xlu0 %v4264_v43, %s6513_s9 }
 0x672   :  { %v1081_v46 = vpop.f32.mrf.mxu0 }
 0x67a   :  { %v1083_v51 = vpop.f32.mrf.mxu0 }
 0x67b   :  { %v4269_v44 = vpack.i.bf16 %v1083_v51, %v1081_v46  ;;  %v894_v55 = vpop.f32.mrf.mxu2 }
 0x67d   :  { %4270 = vrot.lane.b32.xlu1 %v4269_v44, %s6513_s9  ;;  %s6560_s9 = smov 64  }
 0x683   :  { %v896_v31 = vpop.f32.mrf.mxu2 }
 0x68b   :  { %v899_v24 = vpop.f32.mrf.mxu2 }
 0x693   :  { %v901_v11 = vpop.f32.mrf.mxu2 }
 0x698   :  { %v4261_v59 = vpop.permute.xlu2 %4260 }
 0x699   :  { %v4263_v61 = vunpack.i.h.bf16 %v4261_v59  ;;  %v4262_v7 = vunpack.i.l.bf16 %v4261_v59 }
 0x69b   :  { %v1110_v30 = vsel %vm754_vm8, %v894_v55, %v4262_v7  ;;  %v1111_v1 = vsel %vm754_vm8, %v896_v31, %v4263_v61 }
 0x69c   :  { %v1124_v2 = vpack.c.bf16 %v1111_v1, %v1110_v30 }
 0x69e   :  { %3728 = vmatmul.msk.bf16.vlgmr.msra.gmra.mxu1 %vm222_vm0, %v1124_v2 }
 0x6df   :  { %v4266_v12 = vpop.permute.xlu0 %4265 }
 0x6e0   :  { %v4268_v6 = vunpack.i.h.bf16 %v4266_v12  ;;  %v4267_v56 = vunpack.i.l.bf16 %v4266_v12 }
 0x6e2   :  { %v1112_v13 = vsel %vm754_vm8, %v899_v24, %v4267_v56  ;;  %v1113_v14 = vsel %vm754_vm8, %v901_v11, %v4268_v6 }
 0x6e3   :  { %v1125_v9 = vpack.c.bf16 %v1113_v14, %v1112_v13 }
 0x6e5   :  { %3729 = vmatmul.msk.bf16.gmra.mxu1 %vm222_vm0, %v1125_v9 }
 0x6eb   :  { %v904_v17 = vpop.f32.mrf.mxu2 }
 0x6ef   :  { %v4271_v48 = vpop.permute.xlu1 %4270 }
 0x6f0   :  { %v4272_v0 = vunpack.i.l.bf16 %v4271_v48  ;;  %v4273_v19 = vunpack.i.h.bf16 %v4271_v48 }
 0x6f2   :  { %v1114_v10 = vsel %vm754_vm8, %v904_v17, %v4272_v0 }
 0x6f3   :  { %v906_v18 = vpop.f32.mrf.mxu2 }
 0x6f4   :  { %v1115_v16 = vsel %vm754_vm8, %v906_v18, %v4273_v19 }
 0x6f5   :  { %v1126_v25 = vpack.c.bf16 %v1115_v16, %v1114_v10 }
 0x6f7   :  { %3730 = vmatmul.msk.bf16.gmra.mxu1 %vm222_vm0, %v1126_v25  ;;  %v3757_v25 = vld [vmem:[%s6487_s16 + $0x30] sm:$0xf] }
 0x71b   :  { %v1169_v29 = vpop.f32.mrf.mxu1 }
 0x71c   :  { %v1184_v50 = vadd.f32 %v1169_v29, %v4857_v4  ;;  %v4183_v29 = vld [vmem:[%s6487_s16 + $0x34] sm:$0xf] }
 0x71e   :  { %v5268_v58 = vadd.f32 %v4296_v27, %v1184_v50 }
 0x720   :  { %v1200_v22 = vsel %vm222_vm0, %v5268_v58, 0.0 }
 0x721   :  { %1201 = vadd.xlane.f32.xlu0 %v1200_v22  ;;  %v3759_v22 = vld [vmem:[%s6487_s16 + $0x38] sm:$0xf0] }
 0x723   :  { %v1171_v32 = vpop.f32.mrf.mxu1 }
 0x724   :  { %v1185_v53 = vadd.f32 %v1171_v32, %v4865_v20  ;;  %v3762_v32 = vor.u32 %v4183_v29, %v3759_v22  ;;  %v5398_v29 = vld [vmem:[%s6486_s15] ss:$0 sm:$0xff] }
 0x726   :  { %v5273_v34 = vadd.f32 %v4296_v27, %v1185_v53  ;;  %1440 = vmatpush.bf16.msra.mxu3 %v3762_v32  ;;  %v3749_v53 = vld [vmem:[%s6487_s16 + $0x20] sm:$0xf] }
 0x728   :  { %v1203_v35 = vsel %vm222_vm0, %v5273_v34, 0.0 }
 0x729   :  { %1204 = vadd.xlane.f32.xlu2 %v1203_v35  ;;  %v4182_v35 = vld [vmem:[%s6487_s16 + $0x24] sm:$0xf0] }
 0x762   :  { %v1174_v5 = vpop.f32.mrf.mxu1 }
 0x763   :  { %v1186_v23 = vadd.f32 %v1174_v5, %v4873_v37  ;;  %v4181_v5 = vld [vmem:[%s6487_s16 + $0x24] sm:$0xf] }
 0x765   :  { %v5278_v39 = vadd.f32 %v4296_v27, %v1186_v23  ;;  %v3750_v23 = vor.u32 %v4182_v35, %v3749_v53 }
 0x767   :  { %v1206_v4 = vsel %vm222_vm0, %v5278_v39, 0.0 }
 0x768   :  { %1207 = vadd.xlane.f32.xlu1 %v1206_v4  ;;  %v3751_v4 = vld [vmem:[%s6487_s16 + $0x28] sm:$0xf0] }
 0x76a   :  { %v1176_v21 = vpop.f32.mrf.mxu1 }
 0x76b   :  { %v1187_v40 = vadd.f32 %v1176_v21, %v4880_v47  ;;  %v3754_v21 = vor.u32 %v4181_v5, %v3751_v4 }
 0x76d   :  { %v5283_v41 = vadd.f32 %v4296_v27, %v1187_v40  ;;  %1441 = vmatpush.bf16.msra.mxu3 %v3754_v21  ;;  %v3741_v40 = vld [vmem:[%s6487_s16 + $0x10] sm:$0xf] }
 0x76f   :  { %v1209_v20 = vsel %vm222_vm0, %v5283_v41, 0.0 }
 0x770   :  { %1210 = vadd.xlane.f32.xlu0 %v1209_v20  ;;  %v4180_v20 = vld [vmem:[%s6487_s16 + $0x14] sm:$0xf0] }
 0x774   :  { %v1179_v28 = vpop.f32.mrf.mxu1 }
 0x775   :  { %v1188_v42 = vadd.f32 %v1179_v28, %v4887_v57  ;;  %v4179_v28 = vld [vmem:[%s6487_s16 + $0x14] sm:$0xf] }
 0x777   :  { %v5288_v54 = vadd.f32 %v4296_v27, %v1188_v42  ;;  %v3742_v42 = vor.u32 %v4180_v20, %v3741_v40 }
 0x779   :  { %v1212_v37 = vsel %vm222_vm0, %v5288_v54, 0.0 }
 0x77a   :  { %1213 = vadd.xlane.f32.xlu2 %v1212_v37  ;;  %v3743_v37 = vld [vmem:[%s6487_s16 + $0x18] sm:$0xf0] }
 0x77c   :  { %v1181_v43 = vpop.f32.mrf.mxu1 }
 0x77d   :  { %v1189_v45 = vadd.f32 %v1181_v43, %v4894_v63 }
 0x77f   :  { %v5293_v46 = vadd.f32 %v4296_v27, %v1189_v45  ;;  %v4184_v27 = vld [vmem:[%s6487_s16 + $0x34] sm:$0xf0]  ;;  %v3746_v45 = vor.u32 %v4179_v28, %v3743_v37 }
 0x780   :  { %v3758_v50 = vor.u32 %v4184_v27, %v3757_v25 }
 0x781   :  { %v1215_v47 = vsel %vm222_vm0, %v5293_v46, 0.0  ;;  %1442 = vmatpush.bf16.msra.mxu3 %v3746_v45 }
 0x782   :  { %1216 = vadd.xlane.f32.xlu1 %v1215_v47  ;;  %1416 = vmatpush.bf16.msra.mxu2 %v3758_v50 }
 0x786   :  { %1417 = vmatpush.bf16.msra.mxu2 %v3750_v23 }
 0x78a   :  { %1418 = vmatpush.bf16.msra.mxu2 %v3742_v42 }
 0x794   :  { %v1202_v60 = vpop.xlane.xlu0 %1201 }
 0x795   :  { %v1218_v38 = vmul.f32 %v1202_v60, %v4807_v8  ;;  %v3733_v60 = vld [vmem:[%s6487_s16] sm:$0xf] }
 0x797   :  { %v5299_v57 = vsub.f32 %v5268_v58, %v1218_v38  ;;  %v4178_v38 = vld [vmem:[%s6487_s16 + $0x4] sm:$0xf0] }
 0x799   :  { %v1230_v51 = vmul.f32 %v5299_v57, %v5299_v57 }
 0x79b   :  { %v1236_v52 = vsel %vm222_vm0, %v1230_v51, 0.0  ;;  %v4177_v51 = vld [vmem:[%s6487_s16 + $0x4] sm:$0xf] }
 0x79c   :  { %v1205_v44 = vpop.xlane.xlu2 %1204  ;;  %1237 = vadd.xlane.f32.xlu0 %v1236_v52 }
 0x79d   :  { %v1219_v63 = vmul.f32 %v1205_v44, %v4807_v8  ;;  %v3734_v44 = vor.u32 %v4178_v38, %v3733_v60 }
 0x79f   :  { %v5306_v55 = vsub.f32 %v5273_v34, %v1219_v63  ;;  %v3735_v63 = vld [vmem:[%s6487_s16 + $0x8] sm:$0xf0]  ;;  %1419 = vmatpush.bf16.msra.mxu2 %v3734_v44 }
 0x7a1   :  { %v1231_v59 = vmul.f32 %v5306_v55, %v5306_v55 }
 0x7a3   :  { %v1239_v61 = vsel %vm222_vm0, %v1231_v59, 0.0  ;;  %v3738_v59 = vor.u32 %v4177_v51, %v3735_v63 }
 0x7a4   :  { %1240 = vadd.xlane.f32.xlu2 %v1239_v61 }
 0x7a5   :  { %1443 = vmatpush.bf16.msra.mxu3 %v3738_v59 }
 0x7db   :  { %v1208_v7 = vpop.xlane.xlu1 %1207 }
 0x7dc   :  { %v1220_v31 = vmul.f32 %v1208_v7, %v4807_v8 }
 0x7de   :  { %v5313_v30 = vsub.f32 %v5278_v39, %v1220_v31 }
 0x7e0   :  { %v1232_v1 = vmul.f32 %v5313_v30, %v5313_v30 }
 0x7e2   :  { %v1242_v2 = vsel %vm222_vm0, %v1232_v1, 0.0 }
 0x7e3   :  { %v1211_v24 = vpop.xlane.xlu0 %1210  ;;  %1243 = vadd.xlane.f32.xlu1 %v1242_v2 }
 0x7e4   :  { %v1221_v12 = vmul.f32 %v1211_v24, %v4807_v8 }
 0x7e6   :  { %v5320_v6 = vsub.f32 %v5283_v41, %v1221_v12 }
 0x7e8   :  { %v1233_v56 = vmul.f32 %v5320_v6, %v5320_v6 }
 0x7ea   :  { %v1245_v11 = vsel %vm222_vm0, %v1233_v56, 0.0 }
 0x7eb   :  { %1246 = vadd.xlane.f32.xlu0 %v1245_v11 }
 0x7ed   :  { %v1214_v13 = vpop.xlane.xlu2 %1213 }
 0x7ee   :  { %v1222_v14 = vmul.f32 %v1214_v13, %v4807_v8 }
 0x7f0   :  { %v5327_v9 = vsub.f32 %v5288_v54, %v1222_v14 }
 0x7f2   :  { %v1234_v17 = vmul.f32 %v5327_v9, %v5327_v9 }
 0x7f4   :  { %v1248_v48 = vsel %vm222_vm0, %v1234_v17, 0.0 }
 0x7f5   :  { %1249 = vadd.xlane.f32.xlu2 %v1248_v48  ;;  %v1217_v0 = vpop.xlane.xlu1 %1216 }
 0x7f6   :  { %v1223_v19 = vmul.f32 %v1217_v0, %v4807_v8 }
 0x7f8   :  { %v5334_v18 = vsub.f32 %v5293_v46, %v1223_v19 }
 0x7fa   :  { %v1235_v10 = vmul.f32 %v5334_v18, %v5334_v18 }
 0x7fc   :  { %v1251_v16 = vsel %vm222_vm0, %v1235_v10, 0.0  ;;  %v5392_v10 = vld [vmem:[%s6485_s14] ss:$0 sm:$0xff] }
 0x7fd   :  { %1252 = vadd.xlane.f32.xlu1 %v1251_v16 }
 0x80f   :  { %v1238_v43 = vpop.xlane.xlu0 %1237 }
 0x810   :  { %v1254_v47 = vmul.f32 %v1238_v43, %v4807_v8 }
 0x812   :  { %v1260_v52 = vadd.f32 1e-05, %v1254_v47 }
 0x814   :  { %4381 = vrsqrt.f32 %v1260_v52  ;;  %vm1272_vm2 = vweird.f32 %v1260_v52 }
 0x817   :  { %v1241_v61 = vpop.xlane.xlu2 %1240 }
 0x818   :  { %v1255_v7 = vmul.f32 %v1241_v61, %v4807_v8 }
 0x81a   :  { %v4382_v31 = vpop.eup %4381  ;;  %v1261_v1 = vadd.f32 1e-05, %v1255_v7 }
 0x81b   :  { %v1267_v2 = vmul.f32 %v4382_v31, %v1260_v52  ;;  %vm1273_vm1 = vweird.f32 %v4382_v31 }
 0x81c   :  { %4383 = vrsqrt.f32 %v1261_v1  ;;  %vm1274_vm3 = vmor %vm1272_vm2, %vm1273_vm1  ;;  %vm1282_vm5 = vweird.f32 %v1261_v1 }
 0x81d   :  { %v1268_v24 = vmul.f32 %v4382_v31, %v1267_v2 }
 0x81f   :  { %v1269_v12 = vmul.f32 0.5, %v1268_v24 }
 0x821   :  { %v1270_v56 = vsub.f32 1.5, %v1269_v12 }
 0x822   :  { %v4384_v11 = vpop.eup %4383 }
 0x823   :  { %v1271_v13 = vmul.f32 %v4382_v31, %v1270_v56  ;;  %v1277_v14 = vmul.f32 %v4384_v11, %v1261_v1  ;;  %vm1283_vm4 = vweird.f32 %v4384_v11 }
 0x824   :  { %vm1284_vm6 = vmor %vm1282_vm5, %vm1283_vm4 }
 0x825   :  { %v1278_v17 = vmul.f32 %v4384_v11, %v1277_v14  ;;  %v1275_v48 = vsel %vm1274_vm3, %v4382_v31, %v1271_v13 }
 0x826   :  { %v1326_v16 = vmul.f32 %v1275_v48, %v5299_v57 }
 0x827   :  { %v1279_v0 = vmul.f32 0.5, %v1278_v17 }
 0x828   :  { %v1333_v50 = vmul.f32 %v5392_v10, %v1326_v16 }
 0x829   :  { %v1280_v19 = vsub.f32 1.5, %v1279_v0 }
 0x82a   :  { %v1340_v53 = vadd.f32 %v5398_v29, %v1333_v50 }
 0x82b   :  { %v1281_v25 = vmul.f32 %v4384_v11, %v1280_v19 }
 0x82d   :  { %v1285_v27 = vsel %vm1284_vm6, %v4384_v11, %v1281_v25 }
 0x82e   :  { %v1327_v22 = vmul.f32 %v1285_v27, %v5306_v55 }
 0x830   :  { %v1334_v32 = vmul.f32 %v5392_v10, %v1327_v22 }
 0x832   :  { %v1341_v35 = vadd.f32 %v5398_v29, %v1334_v32 }
 0x834   :  { %v1354_v57 = vpack.c.bf16 %v1341_v35, %v1340_v53 }
 0x836   :  { %3763 = vmatmul.msk.bf16.vlgmr.msra.gmra.mxu2 %vm222_vm0, %v1354_v57  ;;  %3766 = vmatmul.msk.bf16.vlgmr.msra.gmra.mxu3 %vm222_vm0, %v1354_v57 }
 0x856   :  { %v1244_v5 = vpop.xlane.xlu1 %1243 }
 0x857   :  { %v1256_v23 = vmul.f32 %v1244_v5, %v4807_v8 }
 0x859   :  { %v1262_v4 = vadd.f32 1e-05, %v1256_v23 }
 0x85b   :  { %4385 = vrsqrt.f32 %v1262_v4  ;;  %vm1292_vm1 = vweird.f32 %v1262_v4 }
 0x85e   :  { %v1247_v21 = vpop.xlane.xlu0 %1246 }
 0x85f   :  { %v1257_v40 = vmul.f32 %v1247_v21, %v4807_v8 }
 0x861   :  { %v4386_v55 = vpop.eup %4385  ;;  %v1263_v20 = vadd.f32 1e-05, %v1257_v40 }
 0x862   :  { %v1287_v28 = vmul.f32 %v4386_v55, %v1262_v4  ;;  %vm1293_vm7 = vweird.f32 %v4386_v55 }
 0x863   :  { %4387 = vrsqrt.f32 %v1263_v20  ;;  %vm1294_vm2 = vmor %vm1292_vm1, %vm1293_vm7  ;;  %vm1302_vm4 = vweird.f32 %v1263_v20 }
 0x864   :  { %v1288_v42 = vmul.f32 %v4386_v55, %v1287_v28 }
 0x866   :  { %v1289_v37 = vmul.f32 0.5, %v1288_v42  ;;  %v4190_v42 = vld [vmem:[%s6488_s18 + $0x28] sm:$0xff] }
 0x868   :  { %v1290_v43 = vsub.f32 1.5, %v1289_v37  ;;  %v1250_v45 = vpop.xlane.xlu2 %1249  ;;  %v4198_v37 = vld [vmem:[%s6488_s18 + $0x68] sm:$0xff] }
 0x869   :  { %v4388_v47 = vpop.eup %4387  ;;  %v1258_v60 = vmul.f32 %v1250_v45, %v4807_v8  ;;  %v4189_v45 = vld [vmem:[%s6488_s18 + $0x20] sm:$0xff] }
 0x86a   :  { %v1291_v38 = vmul.f32 %v4386_v55, %v1290_v43  ;;  %v1297_v51 = vmul.f32 %v4388_v47, %v1263_v20  ;;  %vm1303_vm3 = vweird.f32 %v4388_v47  ;;  %v1357_v43 = vld [vmem:[%s6489_s17] ss:$2 sm:$0x3] }
 0x86b   :  { %v1264_v52 = vadd.f32 1e-05, %v1258_v60  ;;  %vm1304_vm5 = vmor %vm1302_vm4, %vm1303_vm3  ;;  %v5454_v60 = vperm.slane %v1357_v43, 0 }
 0x86c   :  { %v1298_v44 = vmul.f32 %v4388_v47, %v1297_v51  ;;  %v1295_v63 = vsel %vm1294_vm2, %v4386_v55, %v1291_v38  ;;  %v5456_v38 = vperm.slane %v1357_v43, 1 }
 0x86d   :  { %4389 = vrsqrt.f32 %v1264_v52  ;;  %v1328_v31 = vmul.f32 %v1295_v63, %v5313_v30  ;;  %vm1312_vm7 = vweird.f32 %v1264_v52  ;;  %v4196_v63 = vld [vmem:[%s6488_s18 + $0x58] sm:$0xff] }
 0x86e   :  { %v1299_v59 = vmul.f32 0.5, %v1298_v44  ;;  %v4188_v44 = vld [vmem:[%s6488_s18 + $0x18] sm:$0xff] }
 0x86f   :  { %v1335_v14 = vmul.f32 %v5392_v10, %v1328_v31 }
 0x870   :  { %v1300_v61 = vsub.f32 1.5, %v1299_v59  ;;  %v1253_v7 = vpop.xlane.xlu1 %1252 }
 0x871   :  { %v1259_v1 = vmul.f32 %v1253_v7, %v4807_v8  ;;  %v1342_v30 = vadd.f32 %v5398_v29, %v1335_v14  ;;  %v4194_v14 = vld [vmem:[%s6488_s18 + $0x48] sm:$0xff] }
 0x872   :  { %v1301_v2 = vmul.f32 %v4388_v47, %v1300_v61 }
 0x873   :  { %v4390_v24 = vpop.eup %4389  ;;  %v1265_v12 = vadd.f32 1e-05, %v1259_v1  ;;  %v4187_v1 = vld [vmem:[%s6488_s18 + $0x10] sm:$0xff] }
 0x874   :  { %v1305_v56 = vsel %vm1304_vm5, %v4388_v47, %v1301_v2  ;;  %v1307_v11 = vmul.f32 %v4390_v24, %v1264_v52  ;;  %vm1313_vm6 = vweird.f32 %v4390_v24  ;;  %v4197_v47 = vld [vmem:[%s6488_s18 + $0x60] sm:$0xff]  ;;  %v4195_v2 = vld [vmem:[%s6488_s18 + $0x50] sm:$0xff] }
 0x875   :  { %v1329_v13 = vmul.f32 %v1305_v56, %v5320_v6  ;;  %4391 = vrsqrt.f32 %v1265_v12  ;;  %vm1314_vm1 = vmor %vm1312_vm7, %vm1313_vm6  ;;  %vm1322_vm3 = vweird.f32 %v1265_v12 }
 0x876   :  { %v1308_v17 = vmul.f32 %v4390_v24, %v1307_v11 }
 0x877   :  { %v1336_v48 = vmul.f32 %v5392_v10, %v1329_v13  ;;  %v4186_v13 = vld [vmem:[%s6488_s18 + $0x8] sm:$0xff] }
 0x878   :  { %v1309_v0 = vmul.f32 0.5, %v1308_v17 }
 0x879   :  { %v1343_v19 = vadd.f32 %v5398_v29, %v1336_v48 }
 0x87a   :  { %v1310_v16 = vsub.f32 1.5, %v1309_v0 }
 0x87b   :  { %v4392_v25 = vpop.eup %4391  ;;  %v1355_v27 = vpack.c.bf16 %v1343_v19, %v1342_v30  ;;  %v4185_v19 = vld [vmem:[%s6488_s18] sm:$0xff] }
 0x87c   :  { %v1311_v50 = vmul.f32 %v4390_v24, %v1310_v16  ;;  %v1317_v22 = vmul.f32 %v4392_v25, %v1265_v12  ;;  %vm1323_vm2 = vweird.f32 %v4392_v25  ;;  %v4193_v16 = vld [vmem:[%s6488_s18 + $0x40] sm:$0xff] }
 0x87d   :  { %3764 = vmatmul.msk.bf16.gmra.mxu2 %vm222_vm0, %v1355_v27  ;;  %3767 = vmatmul.msk.bf16.gmra.mxu3 %vm222_vm0, %v1355_v27  ;;  %vm1324_vm4 = vmor %vm1322_vm3, %vm1323_vm2 }
 0x87e   :  { %v1318_v6 = vmul.f32 %v4392_v25, %v1317_v22  ;;  %v1315_v32 = vsel %vm1314_vm1, %v4390_v24, %v1311_v50 }
 0x87f   :  { %v1330_v57 = vmul.f32 %v1315_v32, %v5327_v9  ;;  %v4192_v9 = vld [vmem:[%s6488_s18 + $0x38] sm:$0xff] }
 0x880   :  { %v1319_v53 = vmul.f32 0.5, %v1318_v6  ;;  %1846 = vmatpush.bf16.msra.mxu0 %v4192_v9 }
 0x881   :  { %v1337_v21 = vmul.f32 %v5392_v10, %v1330_v57 }
 0x882   :  { %v1320_v35 = vsub.f32 1.5, %v1319_v53 }
 0x883   :  { %v1344_v55 = vadd.f32 %v5398_v29, %v1337_v21 }
 0x884   :  { %v1321_v5 = vmul.f32 %v4392_v25, %v1320_v35 }
 0x886   :  { %v1325_v23 = vsel %vm1324_vm4, %v4392_v25, %v1321_v5 }
 0x887   :  { %v1331_v4 = vmul.f32 %v1325_v23, %v5334_v18  ;;  %v4200_v18 = vld [vmem:[%s6488_s18 + $0x78] sm:$0xff] }
 0x888   :  { %1870 = vmatpush.bf16.msrb.mxu1 %v4200_v18 }
 0x889   :  { %v1338_v40 = vmul.f32 %v5392_v10, %v1331_v4  ;;  %v4191_v10 = vld [vmem:[%s6488_s18 + $0x30] sm:$0xff] }
 0x88a   :  { %1847 = vmatpush.bf16.msra.mxu0 %v4191_v10 }
 0x88b   :  { %v1345_v20 = vadd.f32 %v5398_v29, %v1338_v40  ;;  %v4199_v29 = vld [vmem:[%s6488_s18 + $0x70] sm:$0xff] }
 0x88c   :  { %1871 = vmatpush.bf16.msrb.mxu1 %v4199_v29 }
 0x88d   :  { %v1356_v28 = vpack.c.bf16 %v1345_v20, %v1344_v55 }
 0x88e   :  { %1848 = vmatpush.bf16.msra.mxu0 %v4190_v42 }
 0x88f   :  { %3765 = vmatmul.msk.bf16.gmra.mxu2 %vm222_vm0, %v1356_v28  ;;  %3768 = vmatmul.msk.bf16.gmra.mxu3 %vm222_vm0, %v1356_v28 }
 0x890   :  { %1872 = vmatpush.bf16.msrb.mxu1 %v4198_v37 }
 0x892   :  { %1849 = vmatpush.bf16.msra.mxu0 %v4189_v45 }
 0x894   :  { %1873 = vmatpush.bf16.msrb.mxu1 %v4197_v47 }
 0x896   :  { %1850 = vmatpush.bf16.msra.mxu0 %v4188_v44 }
 0x898   :  { %1874 = vmatpush.bf16.msrb.mxu1 %v4196_v63 }
 0x89a   :  { %1851 = vmatpush.bf16.msra.mxu0 %v4187_v1 }
 0x89c   :  { %1875 = vmatpush.bf16.msrb.mxu1 %v4195_v2 }
 0x89e   :  { %1852 = vmatpush.bf16.msra.mxu0 %v4186_v13 }
 0x8a0   :  { %1876 = vmatpush.bf16.msrb.mxu1 %v4194_v14 }
 0x8a2   :  { %1853 = vmatpush.bf16.msra.mxu0 %v4185_v19 }
 0x8a4   :  { %1877 = vmatpush.bf16.msrb.mxu1 %v4193_v16 }
 0x8b9   :  { %v1421_v51 = vpop.f32.mrf.mxu2  ;;  %v1445_v52 = vpop.f32.mrf.mxu3 }
 0x8ba   :  { %v5465_v59 = vadd.f32 %v1421_v51, %v5454_v60  ;;  %v5468_v61 = vadd.f32 %v1445_v52, %v5456_v38 }
 0x8bc   :  { %v3769_v7 = vmul.f32 -1.702, %v5465_v59  ;;  %v3770_v31 = vmul.f32 -1.702, %v5468_v61 }
 0x8be   :  { %v1484_v24 = vmul.f32 1.442695, %v3769_v7  ;;  %v1486_v12 = vmul.f32 1.442695, %v3770_v31 }
 0x8c0   :  { %4393 = vpow2.f32 %v1484_v24 }
 0x8c1   :  { %4395 = vpow2.f32 %v1486_v12  ;;  %v1423_v56 = vpop.f32.mrf.mxu2  ;;  %v1447_v11 = vpop.f32.mrf.mxu3 }
 0x8c2   :  { %v5485_v17 = vadd.f32 %v1423_v56, %v5454_v60  ;;  %v5488_v48 = vadd.f32 %v1447_v11, %v5456_v38 }
 0x8c4   :  { %v3771_v0 = vmul.f32 -1.702, %v5485_v17  ;;  %v3772_v30 = vmul.f32 -1.702, %v5488_v48 }
 0x8c6   :  { %v4394_v25 = vpop.eup %4393  ;;  %v1488_v27 = vmul.f32 1.442695, %v3771_v0  ;;  %v1490_v6 = vmul.f32 1.442695, %v3772_v30 }
 0x8c7   :  { %v4396_v50 = vpop.eup %4395  ;;  %v1508_v22 = vadd.f32 1.0, %v4394_v25 }
 0x8c8   :  { %v1509_v32 = vadd.f32 1.0, %v4396_v50  ;;  %4397 = vpow2.f32 %v1488_v27 }
 0x8c9   :  { %4399 = vrcp.f32 %v1508_v22  ;;  %vm1525_vm6 = vweird.f32 %v1508_v22  ;;  %v1529_v42 = vand.u32 2147483647, %v1508_v22  ;;  %v1531_v37 = vand.u32 2147483648, %v1508_v22 }
 0x8ca   :  { %4401 = vrcp.f32 %v1509_v32  ;;  %vm1540_vm7 = vweird.f32 %v1509_v32  ;;  %v1544_v45 = vand.u32 2147483647, %v1509_v32  ;;  %v1546_v63 = vand.u32 2147483648, %v1509_v32 }
 0x8cb   :  { %4403 = vpow2.f32 %v1490_v6  ;;  %vm1530_vm4 = vcmp.eq.f32.partialorder %v1529_v42, 8.507059e+37  ;;  %v1532_v24 = vor.u32 1.1754944e-38, %v1531_v37 }
 0x8cc   :  { %v1547_v25 = vor.u32 1.1754944e-38, %v1546_v63  ;;  %vm1545_vm13 = vcmp.eq.f32.partialorder %v1544_v45, 8.507059e+37 }
 0x8ce   :  { %v4398_v53 = vpop.eup %4397 }
 0x8cf   :  { %v4400_v35 = vpop.eup %4399  ;;  %v1510_v57 = vadd.f32 1.0, %v4398_v53 }
 0x8d0   :  { %v4402_v5 = vpop.eup %4401  ;;  %v1521_v23 = vmul.f32 %v4400_v35, %v1508_v22  ;;  %vm1526_vm5 = vweird.f32 %v4400_v35 }
 0x8d1   :  { %v4404_v4 = vpop.eup %4403  ;;  %v1536_v21 = vmul.f32 %v4402_v5, %v1509_v32  ;;  %4405 = vrcp.f32 %v1510_v57  ;;  %v1561_v51 = vand.u32 2147483648, %v1510_v57  ;;  %vm5498_vm1 = vmor %vm1525_vm6, %vm1526_vm5  ;;  %vm1541_vm2 = vweird.f32 %v4402_v5 }
 0x8d2   :  { %v1522_v40 = vsub.f32 1.0, %v1521_v23  ;;  %v1511_v55 = vadd.f32 1.0, %v4404_v4  ;;  %v1559_v2 = vand.u32 2147483647, %v1510_v57  ;;  %vm1555_vm15 = vweird.f32 %v1510_v57  ;;  %vm5505_vm14 = vmor %vm1540_vm7, %vm1541_vm2 }
 0x8d3   :  { %v1537_v20 = vsub.f32 1.0, %v1536_v21  ;;  %v1562_v13 = vor.u32 1.1754944e-38, %v1561_v51 }
 0x8d4   :  { %v1523_v28 = vmul.f32 %v4400_v35, %v1522_v40  ;;  %4407 = vrcp.f32 %v1511_v55  ;;  %v1574_v14 = vand.u32 2147483647, %v1511_v55  ;;  %v1576_v0 = vand.u32 2147483648, %v1511_v55 }
 0x8d5   :  { %v1538_v18 = vmul.f32 %v4402_v5, %v1537_v20  ;;  %vm1570_vm7 = vweird.f32 %v1511_v55 }
 0x8d6   :  { %v1524_v10 = vadd.f32 %v4400_v35, %v1523_v28 }
 0x8d7   :  { %v4406_v9 = vpop.eup %4405  ;;  %v1539_v44 = vadd.f32 %v4402_v5, %v1538_v18 }
 0x8d8   :  { %v1551_v29 = vmul.f32 %v4406_v9, %v1510_v57  ;;  %v1528_v31 = vsel %vm5498_vm1, %v4400_v35, %v1524_v10  ;;  %vm1556_vm3 = vweird.f32 %v4406_v9  ;;  %vm1560_vm1 = vcmp.eq.f32.partialorder %v1559_v2, 8.507059e+37 }
 0x8d9   :  { %v1533_v30 = vsel %vm1530_vm4, %v1532_v24, %v1528_v31  ;;  %v1543_v19 = vsel %vm5505_vm14, %v4402_v5, %v1539_v44  ;;  %vm1557_vm5 = vmor %vm1555_vm15, %vm1556_vm3  ;;  %v1577_v35 = vor.u32 1.1754944e-38, %v1576_v0  ;;  %vm1575_vm4 = vcmp.eq.f32.partialorder %v1574_v14, 8.507059e+37 }
 0x8da   :  { %v4408_v43 = vpop.eup %4407  ;;  %v1552_v47 = vsub.f32 1.0, %v1551_v29  ;;  %v1700_v6 = vmul.f32 %v1533_v30, %v5465_v59  ;;  %v1548_v32 = vsel %vm1545_vm13, %v1547_v25, %v1543_v19 }
 0x8db   :  { %v1566_v7 = vmul.f32 %v4408_v43, %v1511_v55  ;;  %vm1571_vm6 = vweird.f32 %v4408_v43  ;;  %v1701_v4 = vmul.f32 %v1548_v32, %v5468_v61 }
 0x8dc   :  { %v1553_v1 = vmul.f32 %v4406_v9, %v1552_v47  ;;  %vm1572_vm2 = vmor %vm1570_vm7, %vm1571_vm6 }
 0x8dd   :  { %v1567_v12 = vsub.f32 1.0, %v1566_v7 }
 0x8de   :  { %v1554_v11 = vadd.f32 %v4406_v9, %v1553_v1 }
 0x8df   :  { %v1568_v16 = vmul.f32 %v4408_v43, %v1567_v12 }
 0x8e0   :  { %v1558_v27 = vsel %vm1557_vm5, %v4406_v9, %v1554_v11 }
 0x8e1   :  { %v1563_v50 = vsel %vm1560_vm1, %v1562_v13, %v1558_v27  ;;  %v1569_v22 = vadd.f32 %v4408_v43, %v1568_v16 }
 0x8e2   :  { %v1702_v53 = vmul.f32 %v1563_v50, %v5485_v17 }
 0x8e3   :  { %v1573_v57 = vsel %vm1572_vm2, %v4408_v43, %v1569_v22 }
 0x8e4   :  { %v1744_v5 = vpack.c.bf16 %v1702_v53, %v1700_v6  ;;  %v1578_v23 = vsel %vm1575_vm4, %v1577_v35, %v1573_v57 }
 0x8e5   :  { %v1703_v21 = vmul.f32 %v1578_v23, %v5488_v48 }
 0x8e6   :  { %1854 = vmatmul.bf16.vlgmr.msra.gmra.mxu0 %v1744_v5 }
 0x8e7   :  { %v1745_v40 = vpack.c.bf16 %v1703_v21, %v1701_v4 }
 0x8e9   :  { %1878 = vmatmul.bf16.vlgmr.msrb.gmra.mxu1 %v1745_v40 }
 0x900   :  { %v1426_v20 = vpop.f32.mrf.mxu2  ;;  %v1450_v55 = vpop.f32.mrf.mxu3 }
 0x901   :  { %v5516_v59 = vadd.f32 %v1426_v20, %v5454_v60  ;;  %v5519_v17 = vadd.f32 %v1450_v55, %v5456_v38 }
 0x903   :  { %v3773_v28 = vmul.f32 -1.702, %v5516_v59  ;;  %v3774_v9 = vmul.f32 -1.702, %v5519_v17 }
 0x905   :  { %v1492_v18 = vmul.f32 1.442695, %v3773_v28  ;;  %v1494_v10 = vmul.f32 1.442695, %v3774_v9 }
 0x907   :  { %4409 = vpow2.f32 %v1492_v18 }
 0x908   :  { %4411 = vpow2.f32 %v1494_v10  ;;  %v1428_v61 = vpop.f32.mrf.mxu2  ;;  %v1452_v48 = vpop.f32.mrf.mxu3 }
 0x909   :  { %v5524_v29 = vadd.f32 %v1428_v61, %v5454_v60  ;;  %v5527_v42 = vadd.f32 %v1452_v48, %v5456_v38 }
 0x90b   :  { %v3775_v37 = vmul.f32 -1.702, %v5524_v29  ;;  %v3776_v43 = vmul.f32 -1.702, %v5527_v42 }
 0x90d   :  { %v4410_v45 = vpop.eup %4409  ;;  %v1496_v47 = vmul.f32 1.442695, %v3775_v37  ;;  %v1498_v44 = vmul.f32 1.442695, %v3776_v43 }
 0x90e   :  { %v4412_v51 = vpop.eup %4411  ;;  %v1512_v52 = vadd.f32 1.0, %v4410_v45 }
 0x90f   :  { %v5531_v63 = vadd.f32 1.0, %v4412_v51  ;;  %4413 = vpow2.f32 %v1496_v47 }
 0x910   :  { %4415 = vrcp.f32 %v1512_v52  ;;  %v1589_v35 = vand.u32 2147483647, %v1512_v52  ;;  %v1591_v57 = vand.u32 2147483648, %v1512_v52  ;;  %vm1585_vm13 = vweird.f32 %v1512_v52 }
 0x911   :  { %4417 = vrcp.f32 %v5531_v63  ;;  %vm1600_vm14 = vweird.f32 %v5531_v63  ;;  %v1604_v40 = vand.u32 2147483647, %v5531_v63  ;;  %v1606_v20 = vand.u32 2147483648, %v5531_v63 }
 0x912   :  { %4419 = vpow2.f32 %v1498_v44  ;;  %v1431_v7 = vpop.f32.mrf.mxu2  ;;  %v1455_v31 = vpop.f32.mrf.mxu3  ;;  %vm5570_vm3 = vcmp.eq.f32.partialorder %v1589_v35, 8.507059e+37  ;;  %v1592_v18 = vor.u32 1.1754944e-38, %v1591_v57 }
 0x913   :  { %v5535_v1 = vadd.f32 %v1431_v7, %v5454_v60  ;;  %v5538_v2 = vadd.f32 %v1455_v31, %v5456_v38 }
 0x915   :  { %v4414_v24 = vpop.eup %4413  ;;  %v3777_v12 = vmul.f32 -1.702, %v5535_v1  ;;  %v3778_v56 = vmul.f32 -1.702, %v5538_v2 }
 0x916   :  { %v5542_v11 = vpop.eup %4415  ;;  %v5544_v13 = vadd.f32 1.0, %v4414_v24 }
 0x917   :  { %v5546_v14 = vpop.eup %4417  ;;  %v1581_v0 = vmul.f32 %v5542_v11, %v1512_v52  ;;  %v1500_v30 = vmul.f32 1.442695, %v3777_v12  ;;  %v1502_v50 = vmul.f32 1.442695, %v3778_v56  ;;  %vm1586_vm15 = vweird.f32 %v5542_v11 }
 0x918   :  { %v4420_v19 = vpop.eup %4419  ;;  %v1596_v16 = vmul.f32 %v5546_v14, %v5531_v63  ;;  %4421 = vrcp.f32 %v5544_v13  ;;  %vm1601_vm5 = vweird.f32 %v5546_v14  ;;  %v1621_v10 = vand.u32 2147483648, %v5544_v13  ;;  %vm5581_vm1 = vmor %vm1585_vm13, %vm1586_vm15 }
 0x919   :  { %v1582_v25 = vsub.f32 1.0, %v1581_v0  ;;  %v5552_v27 = vadd.f32 1.0, %v4420_v19  ;;  %4423 = vpow2.f32 %v1500_v30  ;;  %vm1615_vm6 = vweird.f32 %v5544_v13  ;;  %vm5598_vm2 = vmor %vm1600_vm14, %vm1601_vm5 }
 0x91a   :  { %v1597_v22 = vsub.f32 1.0, %v1596_v16  ;;  %v1433_v6 = vpop.f32.mrf.mxu2  ;;  %v1457_v32 = vpop.f32.mrf.mxu3  ;;  %v1619_v51 = vand.u32 2147483647, %v5544_v13  ;;  %v1622_v52 = vor.u32 1.1754944e-38, %v1621_v10 }
 0x91b   :  { %v1583_v53 = vmul.f32 %v5542_v11, %v1582_v25  ;;  %4425 = vrcp.f32 %v5552_v27  ;;  %v5557_v5 = vadd.f32 %v1433_v6, %v5454_v60  ;;  %v5560_v23 = vadd.f32 %v1457_v32, %v5456_v38 }
 0x91c   :  { %4427 = vpow2.f32 %v1502_v50  ;;  %v1598_v21 = vmul.f32 %v5546_v14, %v1597_v22  ;;  %v1636_v16 = vand.u32 2147483648, %v5552_v27  ;;  %vm1620_vm14 = vcmp.eq.f32.partialorder %v1619_v51, 8.507059e+37 }
 0x91d   :  { %v1584_v55 = vadd.f32 %v5542_v11, %v1583_v53  ;;  %v3779_v60 = vmul.f32 -1.702, %v5557_v5  ;;  %v3780_v43 = vmul.f32 -1.702, %v5560_v23  ;;  %v1607_v32 = vor.u32 1.1754944e-38, %v1606_v20 }
 0x91e   :  { %v4422_v4 = vpop.eup %4421  ;;  %v1599_v47 = vadd.f32 %v5546_v14, %v1598_v21  ;;  %vm1630_vm15 = vweird.f32 %v5552_v27 }
 0x91f   :  { %v1611_v28 = vmul.f32 %v4422_v4, %v5544_v13  ;;  %v4424_v9 = vpop.eup %4423  ;;  %v1504_v7 = vmul.f32 1.442695, %v3779_v60  ;;  %v1588_v24 = vsel %vm5581_vm1, %v5542_v11, %v1584_v55  ;;  %vm1616_vm7 = vweird.f32 %v4422_v4 }
 0x920   :  { %v5577_v37 = vadd.f32 1.0, %v4424_v9  ;;  %v1634_v11 = vand.u32 2147483647, %v5552_v27  ;;  %v1506_v25 = vmul.f32 1.442695, %v3780_v43  ;;  %v1593_v50 = vsel %vm5570_vm3, %v1592_v18, %v1588_v24  ;;  %vm1617_vm4 = vmor %vm1615_vm6, %vm1616_vm7 }
 0x921   :  { %v4426_v61 = vpop.eup %4425  ;;  %v1612_v48 = vsub.f32 1.0, %v1611_v28  ;;  %v1603_v63 = vsel %vm5598_vm2, %v5546_v14, %v1599_v47  ;;  %v1704_v13 = vmul.f32 %v1593_v50, %v5516_v59  ;;  %vm1605_vm3 = vcmp.eq.f32.partialorder %v1604_v40, 8.507059e+37 }
 0x922   :  { %v1626_v44 = vmul.f32 %v4426_v61, %v5552_v27  ;;  %v4428_v31 = vpop.eup %4427  ;;  %4429 = vrcp.f32 %v5577_v37  ;;  %vm1631_vm13 = vweird.f32 %v4426_v61  ;;  %v1637_v55 = vor.u32 1.1754944e-38, %v1636_v16 }
 0x923   :  { %v1613_v12 = vmul.f32 %v4422_v4, %v1612_v48  ;;  %v5592_v0 = vadd.f32 1.0, %v4428_v31  ;;  %4431 = vpow2.f32 %v1504_v7  ;;  %vm1632_vm5 = vmor %vm1630_vm15, %vm1631_vm13  ;;  %v1608_v60 = vsel %vm1605_vm3, %v1607_v32, %v1603_v63 }
 0x924   :  { %v1627_v56 = vsub.f32 1.0, %v1626_v44  ;;  %vm1635_vm6 = vcmp.eq.f32.partialorder %v1634_v11, 8.507059e+37  ;;  %v1705_v59 = vmul.f32 %v1608_v60, %v5519_v17  ;;  %v1649_v47 = vand.u32 2147483647, %v5577_v37 }
 0x925   :  { %v1614_v19 = vadd.f32 %v4422_v4, %v1613_v12  ;;  %4433 = vrcp.f32 %v5592_v0  ;;  %v1651_v51 = vand.u32 2147483648, %v5577_v37  ;;  %vm1645_vm7 = vweird.f32 %v5577_v37 }
 0x926   :  { %v1628_v22 = vmul.f32 %v4426_v61, %v1627_v56  ;;  %4435 = vpow2.f32 %v1506_v25  ;;  %vm5622_vm2 = vcmp.eq.f32.partialorder %v1649_v47, 8.507059e+37  ;;  %v1666_v11 = vand.u32 2147483648, %v5592_v0 }
 0x927   :  { %v1618_v6 = vsel %vm1617_vm4, %v4422_v4, %v1614_v19  ;;  %v1652_v12 = vor.u32 1.1754944e-38, %v1651_v51  ;;  %vm1660_vm15 = vweird.f32 %v5592_v0 }
 0x928   :  { %v1623_v53 = vsel %vm1620_vm14, %v1622_v52, %v1618_v6  ;;  %v1629_v35 = vadd.f32 %v4426_v61, %v1628_v22  ;;  %v4430_v57 = vpop.eup %4429  ;;  %v1664_v22 = vand.u32 2147483647, %v5592_v0 }
 0x929   :  { %v1706_v21 = vmul.f32 %v1623_v53, %v5524_v29  ;;  %v4432_v28 = vpop.eup %4431  ;;  %v1641_v14 = vmul.f32 %v4430_v57, %v5577_v37  ;;  %vm1646_vm1 = vweird.f32 %v4430_v57 }
 0x92a   :  { %v1633_v9 = vsel %vm1632_vm5, %v4426_v61, %v1629_v35  ;;  %v1518_v20 = vadd.f32 1.0, %v4432_v28  ;;  %vm5626_vm4 = vmor %vm1645_vm7, %vm1646_vm1 }
 0x92b   :  { %v1638_v4 = vsel %vm1635_vm6, %v1637_v55, %v1633_v9  ;;  %v1746_v38 = vpack.c.bf16 %v1706_v21, %v1704_v13  ;;  %v4434_v18 = vpop.eup %4433  ;;  %v1642_v10 = vsub.f32 1.0, %v1641_v14 }
 0x92c   :  { %v1707_v27 = vmul.f32 %v1638_v4, %v5527_v42  ;;  %v4436_v48 = vpop.eup %4435  ;;  %v1656_v29 = vmul.f32 %v4434_v18, %v5592_v0  ;;  %4437 = vrcp.f32 %v1518_v20  ;;  %v1681_v56 = vand.u32 2147483648, %v1518_v20 }
 0x92d   :  { %1859 = vmatmul.bf16.gmra.mxu0 %v1746_v38  ;;  %v1519_v40 = vadd.f32 1.0, %v4436_v48  ;;  %v1643_v45 = vmul.f32 %v4430_v57, %v1642_v10  ;;  %vm1661_vm13 = vweird.f32 %v4434_v18  ;;  %v1679_v50 = vand.u32 2147483647, %v1518_v20 }
 0x92e   :  { %v1657_v43 = vsub.f32 1.0, %v1656_v29  ;;  %v1747_v61 = vpack.c.bf16 %v1707_v27, %v1705_v59  ;;  %vm1675_vm3 = vweird.f32 %v1518_v20  ;;  %vm5635_vm5 = vmor %vm1660_vm15, %vm1661_vm13  ;;  %v1682_v53 = vor.u32 1.1754944e-38, %v1681_v56 }
 0x92f   :  { %4439 = vrcp.f32 %v1519_v40  ;;  %v1644_v7 = vadd.f32 %v4430_v57, %v1643_v45  ;;  %v1694_v35 = vand.u32 2147483647, %v1519_v40  ;;  %v1696_v13 = vand.u32 2147483648, %v1519_v40 }
 0x930   :  { %1883 = vmatmul.bf16.gmra.mxu1 %v1747_v61  ;;  %v1658_v42 = vmul.f32 %v4434_v18, %v1657_v43  ;;  %v1667_v0 = vor.u32 1.1754944e-38, %v1666_v11  ;;  %vm1680_vm7 = vcmp.eq.f32.partialorder %v1679_v50, 8.507059e+37  ;;  %vm1690_vm13 = vweird.f32 %v1519_v40 }
 0x931   :  { %v1648_v37 = vsel %vm5626_vm4, %v4430_v57, %v1644_v7  ;;  %vm1665_vm4 = vcmp.eq.f32.partialorder %v1664_v22, 8.507059e+37  ;;  %v1697_v38 = vor.u32 1.1754944e-38, %v1696_v13 }
 0x932   :  { %v4438_v44 = vpop.eup %4437  ;;  %v1659_v19 = vadd.f32 %v4434_v18, %v1658_v42  ;;  %v1653_v57 = vsel %vm5622_vm2, %v1652_v12, %v1648_v37  ;;  %vm1695_vm2 = vcmp.eq.f32.partialorder %v1694_v35, 8.507059e+37 }
 0x933   :  { %v1671_v31 = vmul.f32 %v4438_v44, %v1518_v20  ;;  %vm1676_vm14 = vweird.f32 %v4438_v44  ;;  %v1708_v14 = vmul.f32 %v1653_v57, %v5535_v1  ;;  %v4299_v1 = vld [vmem:[%s6490_s19] ss:$0 sm:$0xff] }
 0x934   :  { %v1663_v21 = vsel %vm5635_vm5, %v4434_v18, %v1659_v19  ;;  %vm1677_vm6 = vmor %vm1675_vm3, %vm1676_vm14 }
 0x935   :  { %v4440_v17 = vpop.eup %4439  ;;  %v1672_v52 = vsub.f32 1.0, %v1671_v31  ;;  %v1668_v4 = vsel %vm1665_vm4, %v1667_v0, %v1663_v21 }
 0x936   :  { %v1686_v16 = vmul.f32 %v4440_v17, %v1519_v40  ;;  %vm1691_vm1 = vweird.f32 %v4440_v17  ;;  %v1709_v48 = vmul.f32 %v1668_v4, %v5538_v2 }
 0x937   :  { %v1673_v25 = vmul.f32 %v4438_v44, %v1672_v52  ;;  %vm1692_vm15 = vmor %vm1690_vm13, %vm1691_vm1 }
 0x938   :  { %v1687_v63 = vsub.f32 1.0, %v1686_v16 }
 0x939   :  { %v1674_v32 = vadd.f32 %v4438_v44, %v1673_v25 }
 0x93a   :  { %v1688_v55 = vmul.f32 %v4440_v17, %v1687_v63 }
 0x93b   :  { %v1678_v28 = vsel %vm1677_vm6, %v4438_v44, %v1674_v32 }
 0x93c   :  { %v1683_v60 = vsel %vm1680_vm7, %v1682_v53, %v1678_v28  ;;  %v1689_v9 = vadd.f32 %v4440_v17, %v1688_v55 }
 0x93d   :  { %v1710_v20 = vmul.f32 %v1683_v60, %v5557_v5 }
 0x93e   :  { %v1693_v27 = vsel %vm1692_vm15, %v4440_v17, %v1689_v9 }
 0x93f   :  { %v1698_v18 = vsel %vm1695_vm2, %v1697_v38, %v1693_v27  ;;  %v1748_v10 = vpack.c.bf16 %v1710_v20, %v1708_v14 }
 0x940   :  { %v1711_v59 = vmul.f32 %v1698_v18, %v5560_v23 }
 0x941   :  { %1864 = vmatmul.bf16.gmra.mxu0 %v1748_v10 }
 0x942   :  { %v1749_v29 = vpack.c.bf16 %v1711_v59, %v1709_v48 }
 0x944   :  { %1888 = vmatmul.bf16.gmra.mxu1 %v1749_v29 }
 0x963   :  { %v1855_v43 = vpop.f32.mrf.mxu0 }
 0x966   :  { %v1879_v40 = vpop.f32.mrf.mxu1 }
 0x967   :  { %v1880_v61 = vadd.f32 %v1879_v40, %v1855_v43 }
 0x969   :  { %v1894_v5 = vadd.f32 %v1880_v61, %v5268_v58 }
 0x96b   :  { %v5651_v45 = vadd.f32 %v4299_v1, %v1894_v5  ;;  %v1857_v47 = vpop.f32.mrf.mxu0 }
 0x96d   :  { %v1910_v2 = vsel %vm222_vm0, %v5651_v45, 0.0 }
 0x96e   :  { %v1881_v51 = vpop.f32.mrf.mxu1  ;;  %1911 = vadd.xlane.f32.xlu0 %v1910_v2 }
 0x96f   :  { %v1882_v23 = vadd.f32 %v1881_v51, %v1857_v47 }
 0x971   :  { %v1895_v44 = vadd.f32 %v1882_v23, %v5273_v34 }
 0x973   :  { %v5656_v42 = vadd.f32 %v4299_v1, %v1895_v44 }
 0x975   :  { %v1913_v7 = vsel %vm222_vm0, %v5656_v42, 0.0 }
 0x976   :  { %1914 = vadd.xlane.f32.xlu2 %v1913_v7 }
 0x9aa   :  { %v1860_v31 = vpop.f32.mrf.mxu0 }
 0x9ad   :  { %v1884_v17 = vpop.f32.mrf.mxu1 }
 0x9ae   :  { %v1885_v58 = vadd.f32 %v1884_v17, %v1860_v31  ;;  %v3880_v31 = vld [vmem:[%s6535_s2 + $0x70] sm:$0xf]  ;;  %v4208_v17 = vld [vmem:[%s6535_s2 + $0x74] sm:$0xf0] }
 0x9b0   :  { %v1896_v24 = vadd.f32 %v1885_v58, %v5278_v39  ;;  %v4207_v58 = vld [vmem:[%s6535_s2 + $0x74] sm:$0xf] }
 0x9b2   :  { %v5661_v12 = vadd.f32 %v4299_v1, %v1896_v24  ;;  %v1862_v52 = vpop.f32.mrf.mxu0  ;;  %v3881_v24 = vor.u32 %v4208_v17, %v3880_v31 }
 0x9b4   :  { %v1916_v56 = vsel %vm222_vm0, %v5661_v12, 0.0  ;;  %2128 = vmatpush.bf16.msrb.mxu2 %v3881_v24 }
 0x9b5   :  { %v1886_v30 = vpop.f32.mrf.mxu1  ;;  %1917 = vadd.xlane.f32.xlu1 %v1916_v56 }
 0x9b6   :  { %v1887_v34 = vadd.f32 %v1886_v30, %v1862_v52  ;;  %v3882_v52 = vld [vmem:[%s6535_s2 + $0x78] sm:$0xf0]  ;;  %v3872_v30 = vld [vmem:[%s6535_s2 + $0x60] sm:$0xf] }
 0x9b7   :  { %v3885_v56 = vor.u32 %v4207_v58, %v3882_v52  ;;  %v5781_v58 = vld [vmem:[%s6537_s3 + $0x1] ss:$0 sm:$0xff] }
 0x9b8   :  { %v1897_v19 = vadd.f32 %v1887_v34, %v5283_v41  ;;  %v4206_v34 = vld [vmem:[%s6535_s2 + $0x64] sm:$0xf0] }
 0x9b9   :  { %2152 = vmatpush.bf16.msrb.mxu3 %v3885_v56 }
 0x9ba   :  { %v5666_v11 = vadd.f32 %v4299_v1, %v1897_v19  ;;  %v4205_v19 = vld [vmem:[%s6535_s2 + $0x64] sm:$0xf] }
 0x9bc   :  { %v1919_v16 = vsel %vm222_vm0, %v5666_v11, 0.0 }
 0x9bd   :  { %1920 = vadd.xlane.f32.xlu0 %v1919_v16  ;;  %v3873_v16 = vor.u32 %v4206_v34, %v3872_v30 }
 0x9be   :  { %v1865_v37 = vpop.f32.mrf.mxu0 }
 0x9bf   :  { %2129 = vmatpush.bf16.msrb.mxu2 %v3873_v16 }
 0x9c1   :  { %v1889_v25 = vpop.f32.mrf.mxu1 }
 0x9c2   :  { %v1890_v39 = vadd.f32 %v1889_v25, %v1865_v37  ;;  %v3874_v37 = vld [vmem:[%s6535_s2 + $0x68] sm:$0xf0] }
 0x9c3   :  { %v3877_v25 = vor.u32 %v4205_v19, %v3874_v37 }
 0x9c4   :  { %v1898_v50 = vadd.f32 %v1890_v39, %v5288_v54 }
 0x9c5   :  { %2153 = vmatpush.bf16.msrb.mxu3 %v3877_v25 }
 0x9c6   :  { %v5671_v22 = vadd.f32 %v4299_v1, %v1898_v50  ;;  %v1867_v63 = vpop.f32.mrf.mxu0 }
 0x9c8   :  { %v1922_v6 = vsel %vm222_vm0, %v5671_v22, 0.0 }
 0x9c9   :  { %v1891_v32 = vpop.f32.mrf.mxu1  ;;  %1923 = vadd.xlane.f32.xlu2 %v1922_v6  ;;  %v4204_v6 = vld [vmem:[%s6535_s2 + $0x54] sm:$0xf0] }
 0x9ca   :  { %v1892_v41 = vadd.f32 %v1891_v32, %v1867_v63  ;;  %v3864_v63 = vld [vmem:[%s6535_s2 + $0x50] sm:$0xf]  ;;  %v4203_v32 = vld [vmem:[%s6535_s2 + $0x54] sm:$0xf] }
 0x9cc   :  { %v1899_v53 = vadd.f32 %v1892_v41, %v5293_v46  ;;  %v3865_v41 = vor.u32 %v4204_v6, %v3864_v63 }
 0x9ce   :  { %v5676_v35 = vadd.f32 %v4299_v1, %v1899_v53  ;;  %v3866_v53 = vld [vmem:[%s6535_s2 + $0x58] sm:$0xf0]  ;;  %2130 = vmatpush.bf16.msrb.mxu2 %v3865_v41 }
 0x9d0   :  { %v1925_v13 = vsel %vm222_vm0, %v5676_v35, 0.0 }
 0x9d1   :  { %1926 = vadd.xlane.f32.xlu1 %v1925_v13 }
 0x9e1   :  { %v1912_v57 = vpop.xlane.xlu0 %1911 }
 0x9e2   :  { %v1928_v54 = vmul.f32 %v1912_v57, %v4807_v8  ;;  %v3869_v57 = vor.u32 %v4203_v32, %v3866_v53 }
 0x9e4   :  { %v5682_v21 = vsub.f32 %v5651_v45, %v1928_v54  ;;  %v3856_v54 = vld [vmem:[%s6535_s2 + $0x40] sm:$0xf]  ;;  %2154 = vmatpush.bf16.msrb.mxu3 %v3869_v57 }
 0x9e6   :  { %v1940_v55 = vmul.f32 %v5682_v21, %v5682_v21 }
 0x9e8   :  { %v1946_v0 = vsel %vm222_vm0, %v1940_v55, 0.0  ;;  %v4202_v55 = vld [vmem:[%s6535_s2 + $0x44] sm:$0xf0] }
 0x9e9   :  { %v1915_v28 = vpop.xlane.xlu2 %1914  ;;  %1947 = vadd.xlane.f32.xlu0 %v1946_v0  ;;  %v3857_v0 = vor.u32 %v4202_v55, %v3856_v54 }
 0x9ea   :  { %v1929_v46 = vmul.f32 %v1915_v28, %v4807_v8  ;;  %v4201_v28 = vld [vmem:[%s6535_s2 + $0x44] sm:$0xf] }
 0x9eb   :  { %2131 = vmatpush.bf16.msrb.mxu2 %v3857_v0 }
 0x9ec   :  { %v5689_v60 = vsub.f32 %v5656_v42, %v1929_v46  ;;  %v3858_v46 = vld [vmem:[%s6535_s2 + $0x48] sm:$0xf0] }
 0x9ee   :  { %v1941_v9 = vmul.f32 %v5689_v60, %v5689_v60 }
 0x9f0   :  { %v1949_v14 = vsel %vm222_vm0, %v1941_v9, 0.0  ;;  %v3861_v9 = vor.u32 %v4201_v28, %v3858_v46 }
 0x9f1   :  { %1950 = vadd.xlane.f32.xlu2 %v1949_v14 }
 0x9f2   :  { %2155 = vmatpush.bf16.msrb.mxu3 %v3861_v9 }
 0xa28   :  { %v1918_v4 = vpop.xlane.xlu1 %1917 }
 0xa29   :  { %v1930_v20 = vmul.f32 %v1918_v4, %v4807_v8 }
 0xa2b   :  { %v5696_v38 = vsub.f32 %v5661_v12, %v1930_v20 }
 0xa2d   :  { %v1942_v27 = vmul.f32 %v5696_v38, %v5696_v38 }
 0xa2f   :  { %v1952_v18 = vsel %vm222_vm0, %v1942_v27, 0.0 }
 0xa30   :  { %v1921_v10 = vpop.xlane.xlu0 %1920  ;;  %1953 = vadd.xlane.f32.xlu1 %v1952_v18 }
 0xa31   :  { %v1931_v48 = vmul.f32 %v1921_v10, %v4807_v8 }
 0xa33   :  { %v5703_v59 = vsub.f32 %v5666_v11, %v1931_v48 }
 0xa35   :  { %v1943_v29 = vmul.f32 %v5703_v59, %v5703_v59 }
 0xa37   :  { %v1955_v43 = vsel %vm222_vm0, %v1943_v29, 0.0 }
 0xa38   :  { %1956 = vadd.xlane.f32.xlu0 %v1955_v43 }
 0xa3c   :  { %v1924_v40 = vpop.xlane.xlu2 %1923 }
 0xa3d   :  { %v1932_v61 = vmul.f32 %v1924_v40, %v4807_v8 }
 0xa3f   :  { %v5710_v1 = vsub.f32 %v5671_v22, %v1932_v61 }
 0xa41   :  { %v1944_v5 = vmul.f32 %v5710_v1, %v5710_v1 }
 0xa43   :  { %v1958_v47 = vsel %vm222_vm0, %v1944_v5, 0.0 }
 0xa44   :  { %1959 = vadd.xlane.f32.xlu2 %v1958_v47  ;;  %v1927_v2 = vpop.xlane.xlu1 %1926 }
 0xa45   :  { %v1933_v51 = vmul.f32 %v1927_v2, %v4807_v8 }
 0xa47   :  { %v5717_v23 = vsub.f32 %v5676_v35, %v1933_v51 }
 0xa49   :  { %v1945_v44 = vmul.f32 %v5717_v23, %v5717_v23 }
 0xa4b   :  { %v1961_v7 = vsel %vm222_vm0, %v1945_v44, 0.0  ;;  %v5775_v44 = vld [vmem:[%s6536_s4 + $0x1] ss:$0 sm:$0xff] }
 0xa4c   :  { %1962 = vadd.xlane.f32.xlu1 %v1961_v7 }
 0xa5c   :  { %v1948_v39 = vpop.xlane.xlu0 %1947 }
 0xa5d   :  { %v1964_v50 = vmul.f32 %v1948_v39, %v4807_v8 }
 0xa5f   :  { %v1970_v13 = vadd.f32 1e-05, %v1964_v50 }
 0xa61   :  { %4441 = vrsqrt.f32 %v1970_v13  ;;  %vm1982_vm3 = vweird.f32 %v1970_v13 }
 0xa64   :  { %v1951_v14 = vpop.xlane.xlu2 %1950 }
 0xa65   :  { %v1965_v4 = vmul.f32 %v1951_v14, %v4807_v8 }
 0xa67   :  { %v4442_v20 = vpop.eup %4441  ;;  %v1971_v27 = vadd.f32 1e-05, %v1965_v4 }
 0xa68   :  { %v1977_v18 = vmul.f32 %v4442_v20, %v1970_v13  ;;  %vm1983_vm14 = vweird.f32 %v4442_v20 }
 0xa69   :  { %4443 = vrsqrt.f32 %v1971_v27  ;;  %vm1984_vm5 = vmor %vm1982_vm3, %vm1983_vm14  ;;  %vm1992_vm1 = vweird.f32 %v1971_v27 }
 0xa6a   :  { %v1978_v10 = vmul.f32 %v4442_v20, %v1977_v18 }
 0xa6c   :  { %v1979_v48 = vmul.f32 0.5, %v1978_v10 }
 0xa6e   :  { %v1980_v29 = vsub.f32 1.5, %v1979_v48 }
 0xa6f   :  { %v4444_v43 = vpop.eup %4443 }
 0xa70   :  { %v1981_v40 = vmul.f32 %v4442_v20, %v1980_v29  ;;  %v1987_v61 = vmul.f32 %v4444_v43, %v1971_v27  ;;  %vm1993_vm6 = vweird.f32 %v4444_v43 }
 0xa71   :  { %vm1994_vm7 = vmor %vm1992_vm1, %vm1993_vm6 }
 0xa72   :  { %v1988_v5 = vmul.f32 %v4444_v43, %v1987_v61  ;;  %v1985_v47 = vsel %vm1984_vm5, %v4442_v20, %v1981_v40 }
 0xa73   :  { %v2036_v7 = vmul.f32 %v1985_v47, %v5682_v21 }
 0xa74   :  { %v1989_v2 = vmul.f32 0.5, %v1988_v5 }
 0xa75   :  { %v2043_v24 = vmul.f32 %v5775_v44, %v2036_v7 }
 0xa76   :  { %v1990_v51 = vsub.f32 1.5, %v1989_v2 }
 0xa77   :  { %v2050_v30 = vadd.f32 %v5781_v58, %v2043_v24 }
 0xa78   :  { %v1991_v31 = vmul.f32 %v4444_v43, %v1990_v51 }
 0xa7a   :  { %v1995_v17 = vsel %vm1994_vm7, %v4444_v43, %v1991_v31 }
 0xa7b   :  { %v2037_v52 = vmul.f32 %v1995_v17, %v5689_v60 }
 0xa7d   :  { %v2044_v56 = vmul.f32 %v5775_v44, %v2037_v52 }
 0xa7f   :  { %v2051_v34 = vadd.f32 %v5781_v58, %v2044_v56 }
 0xa81   :  { %v2065_v21 = vpack.c.bf16 %v2051_v34, %v2050_v30 }
 0xa83   :  { %3886 = vmatmul.msk.bf16.vlgmr.msrb.gmra.mxu2 %vm222_vm0, %v2065_v21  ;;  %3889 = vmatmul.msk.bf16.vlgmr.msrb.gmra.mxu3 %vm222_vm0, %v2065_v21 }
 0xaa3   :  { %v1954_v19 = vpop.xlane.xlu1 %1953 }
 0xaa4   :  { %v1966_v16 = vmul.f32 %v1954_v19, %v4807_v8 }
 0xaa6   :  { %v1972_v37 = vadd.f32 1e-05, %v1966_v16 }
 0xaa8   :  { %4445 = vrsqrt.f32 %v1972_v37  ;;  %vm2002_vm13 = vweird.f32 %v1972_v37 }
 0xaab   :  { %v1957_v25 = vpop.xlane.xlu0 %1956 }
 0xaac   :  { %v1967_v39 = vmul.f32 %v1957_v25, %v4807_v8 }
 0xaae   :  { %v4446_v60 = vpop.eup %4445  ;;  %v1973_v50 = vadd.f32 1e-05, %v1967_v39 }
 0xaaf   :  { %v1997_v63 = vmul.f32 %v4446_v60, %v1972_v37  ;;  %vm2003_vm4 = vweird.f32 %v4446_v60 }
 0xab0   :  { %4447 = vrsqrt.f32 %v1973_v50  ;;  %vm2004_vm15 = vmor %vm2002_vm13, %vm2003_vm4  ;;  %vm2012_vm14 = vweird.f32 %v1973_v50 }
 0xab1   :  { %v1998_v6 = vmul.f32 %v4446_v60, %v1997_v63 }
 0xab3   :  { %v1999_v32 = vmul.f32 0.5, %v1998_v6 }
 0xab5   :  { %v2000_v41 = vsub.f32 1.5, %v1999_v32 }
 0xab6   :  { %v4448_v53 = vpop.eup %4447 }
 0xab7   :  { %v2001_v13 = vmul.f32 %v4446_v60, %v2000_v41  ;;  %v2007_v57 = vmul.f32 %v4448_v53, %v1973_v50  ;;  %v1960_v54 = vpop.xlane.xlu2 %1959  ;;  %vm2013_vm2 = vweird.f32 %v4448_v53 }
 0xab8   :  { %v1968_v55 = vmul.f32 %v1960_v54, %v4807_v8  ;;  %vm2014_vm3 = vmor %vm2012_vm14, %vm2013_vm2 }
 0xab9   :  { %v2008_v0 = vmul.f32 %v4448_v53, %v2007_v57  ;;  %v2005_v46 = vsel %vm2004_vm15, %v4446_v60, %v2001_v13  ;;  %vm6561_vm15 = vcmp.eq.s32.totalorder %v5129_v62, %v5086_v33 }
 0xaba   :  { %v1974_v28 = vadd.f32 1e-05, %v1968_v55  ;;  %v2038_v4 = vmul.f32 %v2005_v46, %v5696_v38 }
 0xabb   :  { %v2009_v9 = vmul.f32 0.5, %v2008_v0 }
 0xabc   :  { %4449 = vrsqrt.f32 %v1974_v28  ;;  %v2045_v40 = vmul.f32 %v5775_v44, %v2038_v4  ;;  %vm2022_vm6 = vweird.f32 %v1974_v28 }
 0xabd   :  { %v2010_v14 = vsub.f32 1.5, %v2009_v9 }
 0xabe   :  { %v2052_v38 = vadd.f32 %v5781_v58, %v2045_v40 }
 0xabf   :  { %v2011_v20 = vmul.f32 %v4448_v53, %v2010_v14  ;;  %v1963_v27 = vpop.xlane.xlu1 %1962 }
 0xac0   :  { %v1969_v18 = vmul.f32 %v1963_v27, %v4807_v8 }
 0xac1   :  { %v2015_v10 = vsel %vm2014_vm3, %v4448_v53, %v2011_v20 }
 0xac2   :  { %v4450_v48 = vpop.eup %4449  ;;  %v2039_v29 = vmul.f32 %v2015_v10, %v5703_v59  ;;  %v1975_v43 = vadd.f32 1e-05, %v1969_v18 }
 0xac3   :  { %v2017_v61 = vmul.f32 %v4450_v48, %v1974_v28  ;;  %vm2023_vm5 = vweird.f32 %v4450_v48 }
 0xac4   :  { %4451 = vrsqrt.f32 %v1975_v43  ;;  %v2046_v5 = vmul.f32 %v5775_v44, %v2039_v29  ;;  %vm2024_vm1 = vmor %vm2022_vm6, %vm2023_vm5  ;;  %vm2032_vm4 = vweird.f32 %v1975_v43 }
 0xac5   :  { %v2018_v47 = vmul.f32 %v4450_v48, %v2017_v61 }
 0xac6   :  { %v2053_v2 = vadd.f32 %v5781_v58, %v2046_v5 }
 0xac7   :  { %v2019_v51 = vmul.f32 0.5, %v2018_v47 }
 0xac8   :  { %v2066_v7 = vpack.c.bf16 %v2053_v2, %v2052_v38 }
 0xac9   :  { %v2020_v31 = vsub.f32 1.5, %v2019_v51 }
 0xaca   :  { %v4452_v17 = vpop.eup %4451  ;;  %3887 = vmatmul.msk.bf16.gmra.mxu2 %vm222_vm0, %v2066_v7  ;;  %3890 = vmatmul.msk.bf16.gmra.mxu3 %vm222_vm0, %v2066_v7 }
 0xacb   :  { %v2021_v59 = vmul.f32 %v4450_v48, %v2020_v31  ;;  %v2027_v24 = vmul.f32 %v4452_v17, %v1975_v43  ;;  %vm2033_vm7 = vweird.f32 %v4452_v17 }
 0xacc   :  { %vm2034_vm13 = vmor %vm2032_vm4, %vm2033_vm7 }
 0xacd   :  { %v2028_v52 = vmul.f32 %v4452_v17, %v2027_v24  ;;  %v2025_v56 = vsel %vm2024_vm1, %v4450_v48, %v2021_v59 }
 0xace   :  { %v2040_v21 = vmul.f32 %v2025_v56, %v5710_v1  ;;  %v3853_v1 = vld [vmem:[%s6538_s11 + $0x2] sm:$0x3]  ;;  %s6559_s11 = smov 96  }
 0xacf   :  { %v2029_v30 = vmul.f32 0.5, %v2028_v52  ;;  %v2071_v32 = vperm.slane %v3853_v1, 0  ;;  %v2072_v43 = vperm.slane %v3853_v1, 1 }
 0xad0   :  { %v2047_v25 = vmul.f32 %v5775_v44, %v2040_v21 }
 0xad1   :  { %v2030_v34 = vsub.f32 1.5, %v2029_v30 }
 0xad2   :  { %v2054_v60 = vadd.f32 %v5781_v58, %v2047_v25 }
 0xad3   :  { %v2031_v19 = vmul.f32 %v4452_v17, %v2030_v34 }
 0xad5   :  { %v2035_v16 = vsel %vm2034_vm13, %v4452_v17, %v2031_v19 }
 0xad6   :  { %v2041_v37 = vmul.f32 %v2035_v16, %v5717_v23 }
 0xad8   :  { %v2048_v39 = vmul.f32 %v5775_v44, %v2041_v37 }
 0xada   :  { %v2055_v50 = vadd.f32 %v5781_v58, %v2048_v39 }
 0xadc   :  { %v2067_v63 = vpack.c.bf16 %v2055_v50, %v2054_v60 }
 0xade   :  { %3888 = vmatmul.msk.bf16.gmra.mxu2 %vm222_vm0, %v2067_v63  ;;  %3891 = vmatmul.msk.bf16.gmra.mxu3 %vm222_vm0, %v2067_v63 }
 0xb06   :  { %v2133_v6 = vpop.f32.mrf.mxu2  ;;  %v2157_v54 = vpop.f32.mrf.mxu3 }
 0xb07   :  { %v2134_v23 = vadd.f32 %v2133_v6, %v2071_v32  ;;  %v2158_v34 = vadd.f32 %v2157_v54, %v2072_v43 }
 0xb09   :  { %v2172_v13 = vmul.f32 0.17677669, %v2134_v23 }
 0xb0e   :  { %v2135_v41 = vpop.f32.mrf.mxu2  ;;  %v2159_v55 = vpop.f32.mrf.mxu3 }
 0xb0f   :  { %v2136_v53 = vadd.f32 %v2135_v41, %v2071_v32  ;;  %v2160_v56 = vadd.f32 %v2159_v55, %v2072_v43 }
 0xb11   :  { %v2173_v44 = vmul.f32 0.17677669, %v2136_v53  ;;  %v2181_v57 = vpack.c.bf16 %v2136_v53, %v2134_v23  ;;  %v5827_v21 = vpack.c.bf16 %v2160_v56, %v2158_v34 }
 0xb13   :  { %2355 = vrot.lane.b32.xlu1 %v2181_v57, %s6558_s7  ;;  %v5814_v58 = vpack.c.bf16 %v2173_v44, %v2172_v13 }
 0xb4d   :  { %v2138_v0 = vpop.f32.mrf.mxu2  ;;  %v2162_v28 = vpop.f32.mrf.mxu3 }
 0xb4e   :  { %v2139_v9 = vadd.f32 %v2138_v0, %v2071_v32  ;;  %v2163_v24 = vadd.f32 %v2162_v28, %v2072_v43 }
 0xb50   :  { %v2174_v18 = vmul.f32 0.17677669, %v2139_v9 }
 0xb55   :  { %v2140_v46 = vpop.f32.mrf.mxu2  ;;  %v2164_v20 = vpop.f32.mrf.mxu3 }
 0xb56   :  { %v2141_v14 = vadd.f32 %v2140_v46, %v2071_v32  ;;  %v2165_v51 = vadd.f32 %v2164_v20, %v2072_v43 }
 0xb58   :  { %v2182_v4 = vpack.c.bf16 %v2141_v14, %v2139_v9  ;;  %v2175_v27 = vmul.f32 0.17677669, %v2141_v14  ;;  %v5823_v30 = vpack.c.bf16 %v2165_v51, %v2163_v24 }
 0xb5a   :  { %2357 = vrot.lane.b32.xlu2 %v2182_v4, %s6558_s7  ;;  %v2179_v10 = vpack.c.bf16 %v2175_v27, %v2174_v18 }
 0xb61   :  { %v2143_v48 = vpop.f32.mrf.mxu2  ;;  %v2167_v29 = vpop.f32.mrf.mxu3 }
 0xb62   :  { %2351 = vrot.lane.b32.xlu2 %v2179_v10, %s6559_s11  ;;  %v2144_v40 = vadd.f32 %v2143_v48, %v2071_v32  ;;  %v2168_v47 = vadd.f32 %v2167_v29, %v2072_v43 }
 0xb64   :  { %v2176_v7 = vmul.f32 0.17677669, %v2144_v40 }
 0xb69   :  { %v2145_v61 = vpop.f32.mrf.mxu2  ;;  %v2169_v5 = vpop.f32.mrf.mxu3 }
 0xb6a   :  { %v2146_v38 = vadd.f32 %v2145_v61, %v2071_v32  ;;  %v2170_v2 = vadd.f32 %v2169_v5, %v2072_v43  ;;  %2189 = vrot.lane.b32.xlu2 %v2182_v4, %s6560_s9 }
 0xb6c   :  { %v2177_v31 = vmul.f32 0.17677669, %v2146_v38  ;;  %v2183_v17 = vpack.c.bf16 %v2146_v38, %v2144_v40  ;;  %v5819_v59 = vpack.c.bf16 %v2170_v2, %v2168_v47 }
 0xb6e   :  { %2327 = vmatpush.bf16.msra.mxu1 %v5819_v59  ;;  %2359 = vrot.lane.b32.xlu0 %v2183_v17, %s6558_s7  ;;  %v2180_v52 = vpack.c.bf16 %v2177_v31, %v2176_v7 }
 0xb70   :  { %2353 = vrot.lane.b32.xlu1 %v2180_v52, %s6559_s11 }
 0xb72   :  { %2328 = vmatpush.bf16.msra.mxu1 %v5823_v30 }
 0xb76   :  { %2329 = vmatpush.bf16.msra.mxu1 %v5827_v21  ;;  %2349 = vrot.lane.b32.xlu0 %v5814_v58, %s6559_s11 }
 0xb7e   :  { %2191 = vrot.lane.b32.xlu0 %v2183_v17, %s6560_s9 }
 0xb85   :  { %v2356_v50 = vpop.permute.xlu1 %2355 }
 0xb86   :  { %2187 = vrot.lane.b32.xlu0 %v2181_v57, %s6560_s9  ;;  %v2371_v1 = vsel %vm754_vm8, %v2356_v50, 0 }
 0xbb4   :  { %v2358_v37 = vpop.permute.xlu2 %2357 }
 0xbb5   :  { %v2374_v39 = vsel %vm754_vm8, %v2358_v37, 0 }
 0xbbc   :  { %v2352_v60 = vpop.permute.xlu2 %2351 }
 0xbc4   :  { %v2190_v32 = vpop.permute.xlu2 %2189 }
 0xbc5   :  { %v2206_v23 = vsel %vm754_vm8, %v2190_v32, 0 }
 0xbe0   :  { %v2360_v19 = vpop.permute.xlu0 %2359 }
 0xbe1   :  { %v2377_v16 = vsel %vm754_vm8, %v2360_v19, 0 }
 0xbe2   :  { %2384 = vmatpush.bf16.xpose.msra.mxu2 %v2377_v16  ;;  %v2354_v13 = vpop.permute.xlu1 %2353 }
 0xbe8   :  { %v2350_v25 = vpop.permute.xlu0 %2349 }
 0xbea   :  { %2385 = vmatpush.bf16.xpose.msra.mxu2 %v2374_v39 }
 0xbf0   :  { %v2192_v63 = vpop.permute.xlu0 %2191 }
 0xbf1   :  { %v2209_v6 = vsel %vm754_vm8, %v2192_v63, 0 }
 0xbf2   :  { %2216 = vmatpush.bf16.xpose.msrb.mxu0 %v2209_v6  ;;  %2386 = vmatpush.bf16.xpose.msra.mxu2 %v2371_v1 }
 0xbf8   :  { %v2188_v41 = vpop.permute.xlu0 %2187 }
 0xbf9   :  { %3898 = vmatmul.msk.bf16.vlgmr.msra.gmra.mxu2 %vm754_vm8, %v2350_v25  ;;  %v2203_v53 = vsel %vm754_vm8, %v2188_v41, 0 }
 0xbfa   :  { %2217 = vmatpush.bf16.xpose.msrb.mxu0 %v2206_v23 }
 0xc02   :  { %2218 = vmatpush.bf16.xpose.msrb.mxu0 %v2203_v53 }
 0xc09   :  { %3892 = vmatmul.msk.bf16.vlgmr.msrb.gmra.mxu0 %vm754_vm8, %v5814_v58  ;;  %3899 = vmatmul.msk.bf16.gmra.mxu2 %vm754_vm8, %v2352_v60 }
 0xc19   :  { %3893 = vmatmul.msk.bf16.gmra.mxu0 %vm754_vm8, %v2179_v10  ;;  %3900 = vmatmul.msk.bf16.gmra.mxu2 %vm754_vm8, %v2354_v13 }
 0xc29   :  { %3894 = vmatmul.msk.bf16.gmra.mxu0 %vm754_vm8, %v2180_v52 }
 0xc7c   :  { %v2388_v44 = vpop.f32.mrf.mxu2 }
 0xc7d   :  { %v2403_v57 = vsel %vm465_vm9, %v2388_v44, -1e+09 }
 0xc7e   :  { %v2409_v54 = vsel %vm803_vm10, %v2403_v57, -inf }
 0xc7f   :  { %2410 = vmax.xlane.f32.xlu1 %v2409_v54 }
 0xc84   :  { %v2390_v55 = vpop.f32.mrf.mxu2 }
 0xc85   :  { %v2404_v58 = vsel %vm466_vm11, %v2390_v55, -1e+09 }
 0xc86   :  { %v2220_v0 = vpop.f32.mrf.mxu0  ;;  %v2412_v28 = vsel %vm803_vm10, %v2404_v58, -inf }
 0xc87   :  { %2413 = vmax.xlane.f32.xlu2 %v2412_v28  ;;  %v5873_v29 = vsel %vm465_vm9, %v2220_v0, -1e+09  ;;  %vm6563_vm9 = vmmov %vm6561_vm15 }
 0xc88   :  { %v2241_v61 = vsel %vm803_vm10, %v5873_v29, -inf }
 0xc8c   :  { %v2393_v46 = vpop.f32.mrf.mxu2 }
 0xc8d   :  { %v2405_v9 = vsel %vm467_vm12, %v2393_v46, -1e+09 }
 0xc8e   :  { %v2222_v14 = vpop.f32.mrf.mxu0  ;;  %v2415_v4 = vsel %vm803_vm10, %v2405_v9, -inf }
 0xc8f   :  { %v5862_v20 = vsel %vm466_vm11, %v2222_v14, -1e+09  ;;  %2416 = vmax.xlane.f32.xlu0 %v2415_v4  ;;  %vm6562_vm11 = vcmp.eq.s32.totalorder %v5141_v36, %v5086_v33 }
 0xc90   :  { %v2244_v27 = vsel %vm803_vm10, %v5862_v20, -inf  ;;  %vm6566_vm14 = vmmov %vm6562_vm11 }
 0xc91   :  { %2245 = vmax.xlane.f32.xlu2 %v2244_v27 }
 0xc94   :  { %v2395_v18 = vpop.f32.mrf.mxu2 }
 0xc95   :  { %v2406_v10 = vsel %vm6561_vm15, %v2395_v18, -1e+09 }
 0xc96   :  { %v2418_v48 = vsel %vm803_vm10, %v2406_v10, -inf  ;;  %v2225_v40 = vpop.f32.mrf.mxu0 }
 0xc97   :  { %2419 = vmax.xlane.f32.xlu1 %v2418_v48  ;;  %v2237_v47 = vsel %vm467_vm12, %v2225_v40, -1e+09  ;;  %vm6564_vm12 = vcmp.eq.s32.totalorder %v5159_v15, %v5086_v33 }
 0xc98   :  { %v2247_v3 = vsel %vm803_vm10, %v2237_v47, -inf  ;;  %vm6565_vm2 = vmmov %vm6564_vm12 }
 0xc9c   :  { %v2398_v49 = vpop.f32.mrf.mxu2 }
 0xc9d   :  { %v2407_v43 = vsel %vm6562_vm11, %v2398_v49, -1e+09 }
 0xc9e   :  { %v2421_v5 = vsel %vm803_vm10, %v2407_v43, -inf  ;;  %v2227_v38 = vpop.f32.mrf.mxu0 }
 0xc9f   :  { %2242 = vmax.xlane.f32.xlu1 %v2241_v61  ;;  %2422 = vmax.xlane.f32.xlu2 %v2421_v5  ;;  %v5890_v2 = vsel %vm6563_vm9, %v2227_v38, -1e+09 }
 0xca0   :  { %v2250_v51 = vsel %vm803_vm10, %v5890_v2, -inf }
 0xca3   :  { %2483 = vrot.lane.b32.xlu0 %v5823_v30, %s6559_s11 }
 0xca4   :  { %v2400_v26 = vpop.f32.mrf.mxu2 }
 0xca5   :  { %v5899_v7 = vsel %vm6564_vm12, %v2400_v26, -1e+09 }
 0xca6   :  { %v2424_v31 = vsel %vm803_vm10, %v5899_v7, -inf  ;;  %v2230_v39 = vpop.f32.mrf.mxu0 }
 0xca7   :  { %2248 = vmax.xlane.f32.xlu1 %v2247_v3 }
 0xcae   :  { %v2232_v41 = vpop.f32.mrf.mxu0 }
 0xcaf   :  { %2251 = vmax.xlane.f32.xlu1 %v2250_v51  ;;  %v5918_v44 = vsel %vm6565_vm2, %v2232_v41, -1e+09 }
 0xcb7   :  { %2485 = vrot.lane.b32.xlu2 %v5819_v59, %s6559_s11 }
 0xccd   :  { %2425 = vmax.xlane.f32.xlu0 %v2424_v31 }
 0xcf2   :  { %v2411_v62 = vpop.xlane.xlu1 %2410 }
 0xcf3   :  { %v2427_v17 = vsub.f32 %v2403_v57, %v2411_v62 }
 0xcf5   :  { %v2433_v24 = vmul.f32 1.442695, %v2427_v17 }
 0xcf7   :  { %4453 = vpow2.f32 %v2433_v24 }
 0xcfa   :  { %v2414_v52 = vpop.xlane.xlu2 %2413 }
 0xcfb   :  { %v2428_v56 = vsub.f32 %v2404_v58, %v2414_v52  ;;  %v2256_v58 = vsel %vm803_vm10, %v5918_v44, -inf }
 0xcfd   :  { %v5903_v30 = vpop.eup %4453  ;;  %v2435_v34 = vmul.f32 1.442695, %v2428_v56 }
 0xcfe   :  { %v2445_v59 = vsel %vm803_vm10, %v5903_v30, 0.0 }
 0xcff   :  { %4455 = vpow2.f32 %v2435_v34  ;;  %2446 = vadd.xlane.f32.xlu0 %v2445_v59 }
 0xd02   :  { %v2417_v19 = vpop.xlane.xlu0 %2416 }
 0xd03   :  { %v2429_v16 = vsub.f32 %v2405_v9, %v2417_v19 }
 0xd04   :  { %v2246_v50 = vpop.xlane.xlu2 %2245 }
 0xd05   :  { %v5907_v37 = vpop.eup %4455  ;;  %v2437_v25 = vmul.f32 1.442695, %v2429_v16  ;;  %v2260_v3 = vsub.f32 %v5862_v20, %v2246_v50 }
 0xd06   :  { %v2448_v60 = vsel %vm803_vm10, %v5907_v37, 0.0 }
 0xd07   :  { %4457 = vpow2.f32 %v2437_v25  ;;  %2449 = vadd.xlane.f32.xlu1 %v2448_v60  ;;  %v2267_v36 = vmul.f32 1.442695, %v2260_v3 }
 0xd0a   :  { %v2420_v63 = vpop.xlane.xlu1 %2419 }
 0xd0b   :  { %v2430_v1 = vsub.f32 %v2406_v10, %v2420_v63  ;;  %v2239_v10 = vsel %vm6566_vm14, %v2230_v39, -1e+09 }
 0xd0c   :  { %v2253_v48 = vsel %vm803_vm10, %v2239_v10, -inf }
 0xd0d   :  { %v5911_v6 = vpop.eup %4457  ;;  %v2439_v32 = vmul.f32 1.442695, %v2430_v1 }
 0xd0e   :  { %v2451_v23 = vsel %vm803_vm10, %v5911_v6, 0.0 }
 0xd0f   :  { %4459 = vpow2.f32 %v2439_v32  ;;  %2452 = vadd.xlane.f32.xlu1 %v2451_v23 }
 0xd12   :  { %v2423_v53 = vpop.xlane.xlu2 %2422  ;;  %v2243_v13 = vpop.xlane.xlu1 %2242 }
 0xd13   :  { %v2431_v57 = vsub.f32 %v2407_v43, %v2423_v53  ;;  %2481 = vrot.lane.b32.xlu0 %v5827_v21, %s6559_s11  ;;  %v2259_v40 = vsub.f32 %v5873_v29, %v2243_v13 }
 0xd15   :  { %v5922_v54 = vpop.eup %4459  ;;  %v2441_v55 = vmul.f32 1.442695, %v2431_v57  ;;  %v2484_v21 = vpop.permute.xlu0 %2483  ;;  %v2265_v5 = vmul.f32 1.442695, %v2259_v40 }
 0xd16   :  { %v2454_v0 = vsel %vm803_vm10, %v5922_v54, 0.0 }
 0xd17   :  { %4461 = vpow2.f32 %v2441_v55  ;;  %2257 = vmax.xlane.f32.xlu1 %v2256_v58  ;;  %2455 = vadd.xlane.f32.xlu2 %v2454_v0 }
 0xd1a   :  { %v2486_v28 = vpop.permute.xlu2 %2485  ;;  %v2249_v15 = vpop.xlane.xlu1 %2248 }
 0xd1b   :  { %v2261_v46 = vsub.f32 %v2237_v47, %v2249_v15  ;;  %2504 = vmatpush.bf16.msra.mxu3 %v2486_v28 }
 0xd1d   :  { %v5928_v9 = vpop.eup %4461  ;;  %v2269_v14 = vmul.f32 1.442695, %v2261_v46 }
 0xd1e   :  { %v2457_v4 = vsel %vm803_vm10, %v5928_v9, 0.0 }
 0xd1f   :  { %4463 = vpow2.f32 %v2269_v14  ;;  %2458 = vadd.xlane.f32.xlu1 %v2457_v4  ;;  %2505 = vmatpush.bf16.msra.mxu3 %v2484_v21 }
 0xd22   :  { %v2252_v38 = vpop.xlane.xlu1 %2251 }
 0xd23   :  { %v2262_v26 = vsub.f32 %v5890_v2, %v2252_v38 }
 0xd25   :  { %v5932_v27 = vpop.eup %4463 }
 0xd26   :  { %v2283_v18 = vsel %vm803_vm10, %v5932_v27, 0.0 }
 0xd27   :  { %2284 = vadd.xlane.f32.xlu2 %v2283_v18 }
 0xd3d   :  { %2254 = vmax.xlane.f32.xlu0 %v2253_v48 }
 0xd40   :  { %v2426_v49 = vpop.xlane.xlu0 %2425 }
 0xd41   :  { %v2432_v43 = vsub.f32 %v5899_v7, %v2426_v49  ;;  %v2271_v7 = vmul.f32 1.442695, %v2262_v26 }
 0xd43   :  { %v2443_v61 = vmul.f32 1.442695, %v2432_v43 }
 0xd45   :  { %4465 = vpow2.f32 %v2443_v61 }
 0xd46   :  { %4467 = vpow2.f32 %v2265_v5 }
 0xd47   :  { %4469 = vpow2.f32 %v2267_v36 }
 0xd48   :  { %4471 = vpow2.f32 %v2271_v7 }
 0xd4b   :  { %v5942_v47 = vpop.eup %4465 }
 0xd4c   :  { %v2460_v33 = vsel %vm803_vm10, %v5942_v47, 0.0  ;;  %v5947_v51 = vpop.eup %4467 }
 0xd4d   :  { %2461 = vadd.xlane.f32.xlu1 %v2460_v33  ;;  %v2277_v29 = vsel %vm803_vm10, %v5947_v51, 0.0  ;;  %v4470_v31 = vpop.eup %4469 }
 0xd4e   :  { %v2280_v20 = vsel %vm803_vm10, %v4470_v31, 0.0  ;;  %v5953_v62 = vpop.eup %4471 }
 0xd4f   :  { %v2286_v17 = vsel %vm803_vm10, %v5953_v62, 0.0 }
 0xd55   :  { %2278 = vadd.xlane.f32.xlu1 %v2277_v29 }
 0xd5d   :  { %2281 = vadd.xlane.f32.xlu1 %v2280_v20 }
 0xd65   :  { %2287 = vadd.xlane.f32.xlu1 %v2286_v17 }
 0xd72   :  { %v2447_v24 = vpop.xlane.xlu0 %2446 }
 0xd7a   :  { %v2450_v52 = vpop.xlane.xlu1 %2449 }
 0xd7b   :  { %4473 = vrcp.f32 %v2450_v52 }
 0xd7c   :  { %4475 = vrcp.f32 %v2447_v24 }
 0xd81   :  { %v4474_v2 = vpop.eup %4473 }
 0xd82   :  { %v4476_v56 = vpop.eup %4475  ;;  %v2453_v34 = vpop.xlane.xlu1 %2452  ;;  %v2470_v59 = vmul.f32 %v4474_v2, %v5907_v37 }
 0xd83   :  { %v2469_v19 = vmul.f32 %v4476_v56, %v5903_v30  ;;  %v4212_v56 = vld [vmem:[%s6541_s30 + $0x38] sm:$0xff] }
 0xd84   :  { %2602 = vmatpush.bf16.msra.mxu0 %v4212_v56 }
 0xd85   :  { %v2482_v16 = vpop.permute.xlu0 %2481  ;;  %v2475_v25 = vpack.c.bf16 %v2470_v59, %v2469_v19  ;;  %v4211_v19 = vld [vmem:[%s6541_s30 + $0x30] sm:$0xff] }
 0xd86   :  { %2506 = vmatpush.bf16.msra.mxu3 %v2482_v16  ;;  %v4210_v16 = vld [vmem:[%s6541_s30 + $0x28] sm:$0xff] }
 0xd88   :  { %2603 = vmatpush.bf16.msra.mxu0 %v4211_v19 }
 0xd89   :  { %3901 = vmatmul.msk.bf16.vlgmr.msra.gmra.mxu3 %vm803_vm10, %v2475_v25  ;;  %v4209_v25 = vld [vmem:[%s6541_s30 + $0x20] sm:$0xff] }
 0xd8a   :  { %v2456_v39 = vpop.xlane.xlu2 %2455  ;;  %v2258_v60 = vpop.xlane.xlu1 %2257 }
 0xd8b   :  { %4477 = vrcp.f32 %v2456_v39  ;;  %v2264_v50 = vsub.f32 %v5918_v44, %v2258_v60 }
 0xd8c   :  { %4479 = vrcp.f32 %v2453_v34  ;;  %2604 = vmatpush.bf16.msra.mxu0 %v4210_v16 }
 0xd8d   :  { %v2275_v63 = vmul.f32 1.442695, %v2264_v50 }
 0xd8f   :  { %4481 = vpow2.f32 %v2275_v63 }
 0xd90   :  { %2605 = vmatpush.bf16.msra.mxu0 %v4209_v25 }
 0xd91   :  { %v4478_v1 = vpop.eup %4477 }
 0xd92   :  { %v4480_v32 = vpop.eup %4479  ;;  %v2472_v23 = vmul.f32 %v4478_v1, %v5922_v54  ;;  %v2459_v44 = vpop.xlane.xlu1 %2458 }
 0xd93   :  { %v2471_v30 = vmul.f32 %v4480_v32, %v5911_v6 }
 0xd95   :  { %v4482_v37 = vpop.eup %4481  ;;  %v2476_v53 = vpack.c.bf16 %v2472_v23, %v2471_v30 }
 0xd96   :  { %v2292_v41 = vsel %vm803_vm10, %v4482_v37, 0.0 }
 0xd97   :  { %2293 = vadd.xlane.f32.xlu0 %v2292_v41 }
 0xd99   :  { %3902 = vmatmul.msk.bf16.gmra.mxu3 %vm803_vm10, %v2476_v53 }
 0xd9a   :  { %v2285_v61 = vpop.xlane.xlu2 %2284 }
 0xdb0   :  { %v2255_v13 = vpop.xlane.xlu0 %2254 }
 0xdb1   :  { %v2263_v57 = vsub.f32 %v2239_v10, %v2255_v13 }
 0xdb3   :  { %v2273_v55 = vmul.f32 1.442695, %v2263_v57 }
 0xdb5   :  { %4483 = vpow2.f32 %v2273_v55 }
 0xdb6   :  { %4485 = vrcp.f32 %v2459_v44 }
 0xdbb   :  { %v4484_v58 = vpop.eup %4483 }
 0xdbc   :  { %v2289_v0 = vsel %vm803_vm10, %v4484_v58, 0.0  ;;  %v4486_v28 = vpop.eup %4485 }
 0xdbd   :  { %2290 = vadd.xlane.f32.xlu2 %v2289_v0  ;;  %v2473_v15 = vmul.f32 %v4486_v28, %v5928_v9 }
 0xdc0   :  { %v2462_v54 = vpop.xlane.xlu1 %2461 }
 0xdc1   :  { %4487 = vrcp.f32 %v2462_v54 }
 0xdc7   :  { %v4488_v6 = vpop.eup %4487 }
 0xdc8   :  { %v2474_v46 = vmul.f32 %v4488_v6, %v5942_v47  ;;  %v2279_v14 = vpop.xlane.xlu1 %2278 }
 0xdc9   :  { %4489 = vrcp.f32 %v2279_v14 }
 0xdca   :  { %v2477_v21 = vpack.c.bf16 %v2474_v46, %v2473_v15 }
 0xdcc   :  { %3903 = vmatmul.msk.bf16.gmra.mxu3 %vm803_vm10, %v2477_v21 }
 0xdcf   :  { %v4490_v18 = vpop.eup %4489 }
 0xdd0   :  { %v2282_v4 = vpop.xlane.xlu1 %2281  ;;  %v2301_v48 = vmul.f32 %v4490_v18, %v5947_v51 }
 0xdd1   :  { %4491 = vrcp.f32 %v2282_v4  ;;  %v4300_v4 = vld [vmem:[%s6484_s13 + $0x1] ss:$0 sm:$0xff] }
 0xdd7   :  { %v4492_v10 = vpop.eup %4491 }
 0xdd8   :  { %v2302_v49 = vmul.f32 %v4492_v10, %v4470_v31  ;;  %v2288_v40 = vpop.xlane.xlu1 %2287 }
 0xdd9   :  { %4493 = vrcp.f32 %v2288_v40 }
 0xdda   :  { %v2307_v43 = vpack.c.bf16 %v2302_v49, %v2301_v48  ;;  %4495 = vrcp.f32 %v2285_v61 }
 0xddc   :  { %3895 = vmatmul.msk.bf16.vlgmr.msra.gmra.mxu1 %vm803_vm10, %v2307_v43 }
 0xddf   :  { %v4494_v9 = vpop.eup %4493 }
 0xde0   :  { %v4496_v5 = vpop.eup %4495  ;;  %v2304_v47 = vmul.f32 %v4494_v9, %v5953_v62 }
 0xde1   :  { %v2303_v3 = vmul.f32 %v4496_v5, %v5932_v27 }
 0xde3   :  { %v2308_v33 = vpack.c.bf16 %v2304_v47, %v2303_v3 }
 0xdec   :  { %3896 = vmatmul.msk.bf16.gmra.mxu1 %vm803_vm10, %v2308_v33 }
 0xe0a   :  { %v2294_v31 = vpop.xlane.xlu0 %2293 }
 0xe0b   :  { %4497 = vrcp.f32 %v2294_v31 }
 0xe0c   :  { %v2508_v36 = vpop.f32.mrf.mxu3 }
 0xe11   :  { %v4498_v62 = vpop.eup %4497 }
 0xe12   :  { %v2306_v27 = vmul.f32 %v4498_v62, %v4482_v37 }
 0xe14   :  { %v2510_v38 = vpop.f32.mrf.mxu3 }
 0xe15   :  { %v4274_v51 = vpack.i.bf16 %v2510_v38, %v2508_v36 }
 0xe17   :  { %4275 = vrot.lane.b32.xlu1 %v4274_v51, %s6558_s7 }
 0xe1c   :  { %v2513_v26 = vpop.f32.mrf.mxu3 }
 0xe24   :  { %v2515_v29 = vpop.f32.mrf.mxu3 }
 0xe25   :  { %v4279_v7 = vpack.i.bf16 %v2515_v29, %v2513_v26 }
 0xe27   :  { %4280 = vrot.lane.b32.xlu2 %v4279_v7, %s6558_s7 }
 0xe30   :  { %v2291_v20 = vpop.xlane.xlu2 %2290 }
 0xe31   :  { %4499 = vrcp.f32 %v2291_v20 }
 0xe37   :  { %v4500_v17 = vpop.eup %4499 }
 0xe38   :  { %v2305_v24 = vmul.f32 %v4500_v17, %v4484_v58 }
 0xe3a   :  { %v2309_v52 = vpack.c.bf16 %v2306_v27, %v2305_v24 }
 0xe3c   :  { %3897 = vmatmul.msk.bf16.gmra.mxu1 %vm803_vm10, %v2309_v52 }
 0xe4f   :  { %v2518_v2 = vpop.f32.mrf.mxu3 }
 0xe57   :  { %v2520_v34 = vpop.f32.mrf.mxu3 }
 0xe58   :  { %v4284_v59 = vpack.i.bf16 %v2520_v34, %v2518_v2 }
 0xe59   :  { %v2331_v39 = vpop.f32.mrf.mxu1 }
 0xe5a   :  { %4285 = vrot.lane.b32.xlu0 %v4284_v59, %s6558_s7 }
 0xe61   :  { %v2333_v60 = vpop.f32.mrf.mxu1 }
 0xe69   :  { %v2336_v30 = vpop.f32.mrf.mxu1 }
 0xe71   :  { %v2338_v57 = vpop.f32.mrf.mxu1 }
 0xe81   :  { %v4281_v41 = vpop.permute.xlu2 %4280 }
 0xe82   :  { %v4283_v53 = vunpack.i.h.bf16 %v4281_v41  ;;  %v4282_v13 = vunpack.i.l.bf16 %v4281_v41 }
 0xe84   :  { %v2549_v55 = vsel %vm754_vm8, %v2336_v30, %v4282_v13  ;;  %v2550_v44 = vsel %vm754_vm8, %v2338_v57, %v4283_v53 }
 0xe85   :  { %v2563_v58 = vpack.c.bf16 %v2550_v44, %v2549_v55 }
 0xe89   :  { %v4276_v50 = vpop.permute.xlu1 %4275 }
 0xe8a   :  { %v4278_v63 = vunpack.i.h.bf16 %v4276_v50  ;;  %v4277_v1 = vunpack.i.l.bf16 %v4276_v50 }
 0xe8c   :  { %v2548_v32 = vsel %vm754_vm8, %v2333_v60, %v4278_v63  ;;  %v2547_v23 = vsel %vm754_vm8, %v2331_v39, %v4277_v1 }
 0xe8d   :  { %v2562_v37 = vpack.c.bf16 %v2548_v32, %v2547_v23 }
 0xe8f   :  { %3928 = vmatmul.msk.bf16.vlgmr.msra.gmra.mxu0 %vm222_vm0, %v2562_v37 }
 0xe9f   :  { %3929 = vmatmul.msk.bf16.gmra.mxu0 %vm222_vm0, %v2563_v58 }
 0xeb9   :  { %v2341_v0 = vpop.f32.mrf.mxu1 }
 0xec1   :  { %v2343_v15 = vpop.f32.mrf.mxu1 }
 0xecc   :  { %v4286_v54 = vpop.permute.xlu0 %4285 }
 0xecd   :  { %v4288_v28 = vunpack.i.h.bf16 %v4286_v54  ;;  %v4287_v6 = vunpack.i.l.bf16 %v4286_v54  ;;  %v4220_v54 = vld [vmem:[%s6487_s16 + $0x74] sm:$0xf0] }
 0xecf   :  { %v2551_v46 = vsel %vm754_vm8, %v2341_v0, %v4287_v6  ;;  %v2552_v14 = vsel %vm754_vm8, %v2343_v15, %v4288_v28  ;;  %v3966_v0 = vld [vmem:[%s6487_s16 + $0x70] sm:$0xf]  ;;  %v4219_v28 = vld [vmem:[%s6487_s16 + $0x74] sm:$0xf]  ;;  %v3968_v15 = vld [vmem:[%s6487_s16 + $0x78] sm:$0xf0] }
 0xed0   :  { %v2564_v21 = vpack.c.bf16 %v2552_v14, %v2551_v46  ;;  %v3967_v6 = vor.u32 %v4220_v54, %v3966_v0  ;;  %v3971_v46 = vor.u32 %v4219_v28, %v3968_v15  ;;  %v3958_v14 = vld [vmem:[%s6487_s16 + $0x60] sm:$0xf] }
 0xed1   :  { %v6135_v15 = vld [vmem:[%s6486_s15 + $0x1] ss:$0 sm:$0xff] }
 0xed2   :  { %3930 = vmatmul.msk.bf16.gmra.mxu0 %vm222_vm0, %v2564_v21  ;;  %2856 = vmatpush.bf16.msrb.mxu1 %v3967_v6  ;;  %v4218_v21 = vld [vmem:[%s6487_s16 + $0x64] sm:$0xf0] }
 0xed3   :  { %2880 = vmatpush.bf16.msrb.mxu2 %v3971_v46 }
 0xf0c   :  { %v2607_v18 = vpop.f32.mrf.mxu0 }
 0xf0d   :  { %v2622_v10 = vadd.f32 %v2607_v18, %v5651_v45  ;;  %v3959_v18 = vor.u32 %v4218_v21, %v3958_v14 }
 0xf0f   :  { %v6003_v48 = vadd.f32 %v4300_v4, %v2622_v10  ;;  %v3960_v10 = vld [vmem:[%s6487_s16 + $0x68] sm:$0xf0]  ;;  %2857 = vmatpush.bf16.msrb.mxu1 %v3959_v18 }
 0xf11   :  { %v2638_v49 = vsel %vm222_vm0, %v6003_v48, 0.0 }
 0xf12   :  { %2639 = vadd.xlane.f32.xlu0 %v2638_v49 }
 0xf14   :  { %v2609_v43 = vpop.f32.mrf.mxu0 }
 0xf15   :  { %v2623_v40 = vadd.f32 %v2609_v43, %v5656_v42  ;;  %v3950_v43 = vld [vmem:[%s6487_s16 + $0x50] sm:$0xf] }
 0xf17   :  { %v6008_v61 = vadd.f32 %v4300_v4, %v2623_v40  ;;  %v4216_v40 = vld [vmem:[%s6487_s16 + $0x54] sm:$0xf0] }
 0xf19   :  { %v2641_v9 = vsel %vm222_vm0, %v6008_v61, 0.0 }
 0xf1a   :  { %2642 = vadd.xlane.f32.xlu1 %v2641_v9  ;;  %v4215_v9 = vld [vmem:[%s6487_s16 + $0x54] sm:$0xf] }
 0xf1c   :  { %v2612_v5 = vpop.f32.mrf.mxu0 }
 0xf1d   :  { %v2624_v47 = vadd.f32 %v2612_v5, %v5661_v12  ;;  %v3951_v5 = vor.u32 %v4216_v40, %v3950_v43 }
 0xf1f   :  { %v6013_v3 = vadd.f32 %v4300_v4, %v2624_v47  ;;  %v3952_v47 = vld [vmem:[%s6487_s16 + $0x58] sm:$0xf0]  ;;  %2858 = vmatpush.bf16.msrb.mxu1 %v3951_v5 }
 0xf21   :  { %v2644_v45 = vsel %vm222_vm0, %v6013_v3, 0.0 }
 0xf22   :  { %2645 = vadd.xlane.f32.xlu2 %v2644_v45 }
 0xf24   :  { %v2614_v33 = vpop.f32.mrf.mxu0 }
 0xf25   :  { %v2625_v36 = vadd.f32 %v2614_v33, %v5666_v11  ;;  %v3955_v33 = vor.u32 %v4215_v9, %v3952_v47 }
 0xf27   :  { %v6018_v38 = vadd.f32 %v4300_v4, %v2625_v36 }
 0xf29   :  { %v2647_v42 = vsel %vm222_vm0, %v6018_v38, 0.0 }
 0xf2a   :  { %2648 = vadd.xlane.f32.xlu0 %v2647_v42  ;;  %v3942_v42 = vld [vmem:[%s6487_s16 + $0x40] sm:$0xf] }
 0xf4f   :  { %v2617_v51 = vpop.f32.mrf.mxu0 }
 0xf50   :  { %v2626_v26 = vadd.f32 %v2617_v51, %v5671_v22  ;;  %v4214_v51 = vld [vmem:[%s6487_s16 + $0x44] sm:$0xf0] }
 0xf52   :  { %v6023_v29 = vadd.f32 %v4300_v4, %v2626_v26  ;;  %v4213_v26 = vld [vmem:[%s6487_s16 + $0x44] sm:$0xf] }
 0xf54   :  { %v2650_v12 = vsel %vm222_vm0, %v6023_v29, 0.0 }
 0xf55   :  { %2651 = vadd.xlane.f32.xlu2 %v2650_v12 }
 0xf57   :  { %v2619_v7 = vpop.f32.mrf.mxu0 }
 0xf58   :  { %v2627_v31 = vadd.f32 %v2619_v7, %v5676_v35  ;;  %v3943_v7 = vor.u32 %v4214_v51, %v3942_v42 }
 0xf5a   :  { %v6028_v20 = vadd.f32 %v4300_v4, %v2627_v31  ;;  %v4217_v4 = vld [vmem:[%s6487_s16 + $0x64] sm:$0xf]  ;;  %v3944_v31 = vld [vmem:[%s6487_s16 + $0x48] sm:$0xf0]  ;;  %2859 = vmatpush.bf16.msrb.mxu1 %v3943_v7 }
 0xf5b   :  { %v3963_v49 = vor.u32 %v4217_v4, %v3960_v10 }
 0xf5c   :  { %v2653_v11 = vsel %vm222_vm0, %v6028_v20, 0.0 }
 0xf5d   :  { %2654 = vadd.xlane.f32.xlu1 %v2653_v11  ;;  %2881 = vmatpush.bf16.msrb.mxu2 %v3963_v49  ;;  %v3947_v11 = vor.u32 %v4213_v26, %v3944_v31 }
 0xf61   :  { %2882 = vmatpush.bf16.msrb.mxu2 %v3955_v33 }
 0xf65   :  { %2883 = vmatpush.bf16.msrb.mxu2 %v3947_v11 }
 0xf85   :  { %v2640_v62 = vpop.xlane.xlu0 %2639 }
 0xf86   :  { %v2656_v17 = vmul.f32 %v2640_v62, %v4807_v8 }
 0xf88   :  { %v6034_v22 = vsub.f32 %v6003_v48, %v2656_v17 }
 0xf8a   :  { %v2668_v27 = vmul.f32 %v6034_v22, %v6034_v22 }
 0xf8c   :  { %v2674_v24 = vsel %vm222_vm0, %v2668_v27, 0.0 }
 0xf8d   :  { %v2643_v52 = vpop.xlane.xlu1 %2642  ;;  %2675 = vadd.xlane.f32.xlu0 %v2674_v24 }
 0xf8e   :  { %v2657_v35 = vmul.f32 %v2643_v52, %v4807_v8 }
 0xf90   :  { %v6041_v2 = vsub.f32 %v6008_v61, %v2657_v35 }
 0xf92   :  { %v2669_v56 = vmul.f32 %v6041_v2, %v6041_v2 }
 0xf94   :  { %v2677_v34 = vsel %vm222_vm0, %v2669_v56, 0.0 }
 0xf95   :  { %v2646_v59 = vpop.xlane.xlu2 %2645  ;;  %2678 = vadd.xlane.f32.xlu2 %v2677_v34 }
 0xf96   :  { %v2658_v19 = vmul.f32 %v2646_v59, %v4807_v8 }
 0xf98   :  { %v6048_v16 = vsub.f32 %v6013_v3, %v2658_v19 }
 0xf9a   :  { %v2670_v25 = vmul.f32 %v6048_v16, %v6048_v16 }
 0xf9c   :  { %v2680_v39 = vsel %vm222_vm0, %v2670_v25, 0.0 }
 0xf9d   :  { %v2649_v60 = vpop.xlane.xlu0 %2648  ;;  %2681 = vadd.xlane.f32.xlu1 %v2680_v39 }
 0xf9e   :  { %v2659_v50 = vmul.f32 %v2649_v60, %v4807_v8 }
 0xfa0   :  { %v6055_v63 = vsub.f32 %v6018_v38, %v2659_v50 }
 0xfa2   :  { %v2671_v1 = vmul.f32 %v6055_v63, %v6055_v63 }
 0xfa4   :  { %v2683_v32 = vsel %vm222_vm0, %v2671_v1, 0.0 }
 0xfa5   :  { %2684 = vadd.xlane.f32.xlu0 %v2683_v32 }
 0xfc8   :  { %v2652_v23 = vpop.xlane.xlu2 %2651 }
 0xfc9   :  { %v2660_v37 = vmul.f32 %v2652_v23, %v4807_v8 }
 0xfcb   :  { %v6062_v30 = vsub.f32 %v6023_v29, %v2660_v37 }
 0xfcd   :  { %v2672_v41 = vmul.f32 %v6062_v30, %v6062_v30 }
 0xfcf   :  { %v2686_v53 = vsel %vm222_vm0, %v2672_v41, 0.0 }
 0xfd0   :  { %2687 = vadd.xlane.f32.xlu2 %v2686_v53  ;;  %v2655_v13 = vpop.xlane.xlu1 %2654 }
 0xfd1   :  { %v2661_v57 = vmul.f32 %v2655_v13, %v4807_v8 }
 0xfd3   :  { %v6069_v55 = vsub.f32 %v6028_v20, %v2661_v57  ;;  %v6129_v57 = vld [vmem:[%s6485_s14 + $0x1] ss:$0 sm:$0xff] }
 0xfd5   :  { %v2673_v44 = vmul.f32 %v6069_v55, %v6069_v55 }
 0xfd7   :  { %v2689_v58 = vsel %vm222_vm0, %v2673_v44, 0.0 }
 0xfd8   :  { %2690 = vadd.xlane.f32.xlu1 %v2689_v58 }
0x1000   :  { %v2676_v45 = vpop.xlane.xlu0 %2675 }
0x1001   :  { %v2692_v36 = vmul.f32 %v2676_v45, %v4807_v8 }
0x1003   :  { %v2698_v12 = vadd.f32 1e-05, %v2692_v36 }
0x1005   :  { %4501 = vrsqrt.f32 %v2698_v12  ;;  %vm2710_vm5 = vweird.f32 %v2698_v12 }
0x1008   :  { %v2679_v62 = vpop.xlane.xlu2 %2678 }
0x1009   :  { %v2693_v17 = vmul.f32 %v2679_v62, %v4807_v8 }
0x100b   :  { %v4502_v27 = vpop.eup %4501  ;;  %v2699_v24 = vadd.f32 1e-05, %v2693_v17 }
0x100c   :  { %v2705_v52 = vmul.f32 %v4502_v27, %v2698_v12  ;;  %vm2711_vm3 = vweird.f32 %v4502_v27 }
0x100d   :  { %4503 = vrsqrt.f32 %v2699_v24  ;;  %vm2712_vm6 = vmor %vm2710_vm5, %vm2711_vm3  ;;  %vm2720_vm7 = vweird.f32 %v2699_v24 }
0x100e   :  { %v2706_v35 = vmul.f32 %v4502_v27, %v2705_v52 }
0x1010   :  { %v2707_v56 = vmul.f32 0.5, %v2706_v35  ;;  %v2682_v34 = vpop.xlane.xlu1 %2681 }
0x1011   :  { %v2694_v59 = vmul.f32 %v2682_v34, %v4807_v8 }
0x1012   :  { %v2708_v19 = vsub.f32 1.5, %v2707_v56 }
0x1013   :  { %v4504_v25 = vpop.eup %4503  ;;  %v2700_v39 = vadd.f32 1e-05, %v2694_v59 }
0x1014   :  { %v2709_v60 = vmul.f32 %v4502_v27, %v2708_v19  ;;  %v2715_v50 = vmul.f32 %v4504_v25, %v2699_v24  ;;  %vm2721_vm1 = vweird.f32 %v4504_v25 }
0x1015   :  { %4505 = vrsqrt.f32 %v2700_v39  ;;  %vm2722_vm4 = vmor %vm2720_vm7, %vm2721_vm1  ;;  %vm2730_vm15 = vweird.f32 %v2700_v39 }
0x1016   :  { %v2716_v1 = vmul.f32 %v4504_v25, %v2715_v50  ;;  %v2713_v32 = vsel %vm2712_vm6, %v4502_v27, %v2709_v60 }
0x1017   :  { %v2764_v44 = vmul.f32 %v2713_v32, %v6034_v22 }
0x1018   :  { %v2717_v23 = vmul.f32 0.5, %v2716_v1  ;;  %v2685_v37 = vpop.xlane.xlu0 %2684 }
0x1019   :  { %v2695_v41 = vmul.f32 %v2685_v37, %v4807_v8  ;;  %v2771_v46 = vmul.f32 %v6129_v57, %v2764_v44 }
0x101a   :  { %v2718_v53 = vsub.f32 1.5, %v2717_v23 }
0x101b   :  { %v4506_v13 = vpop.eup %4505  ;;  %v2701_v58 = vadd.f32 1e-05, %v2695_v41  ;;  %v2778_v10 = vadd.f32 %v6135_v15, %v2771_v46  ;;  %v4235_v46 = vld [vmem:[%s6488_s18 + $0xf0] sm:$0xff] }
0x101c   :  { %v2719_v0 = vmul.f32 %v4504_v25, %v2718_v53  ;;  %v2725_v54 = vmul.f32 %v4506_v13, %v2700_v39  ;;  %vm2731_vm13 = vweird.f32 %v4506_v13 }
0x101d   :  { %4507 = vrsqrt.f32 %v2701_v58  ;;  %vm2732_vm11 = vmor %vm2730_vm15, %vm2731_vm13  ;;  %vm2740_vm12 = vweird.f32 %v2701_v58 }
0x101e   :  { %v2723_v28 = vsel %vm2722_vm4, %v4504_v25, %v2719_v0  ;;  %v2726_v6 = vmul.f32 %v4506_v13, %v2725_v54 }
0x101f   :  { %v2765_v14 = vmul.f32 %v2723_v28, %v6041_v2  ;;  %v4226_v28 = vld [vmem:[%s6488_s18 + $0xa8] sm:$0xff] }
0x1020   :  { %v2727_v21 = vmul.f32 0.5, %v2726_v6  ;;  %v3939_v6 = vld [vmem:[%s6489_s17 + $0x1] ss:$2 sm:$0x3] }
0x1021   :  { %v2772_v22 = vmul.f32 %v6129_v57, %v2765_v14 }
0x1022   :  { %v2728_v4 = vsub.f32 1.5, %v2727_v21  ;;  %v4225_v21 = vld [vmem:[%s6488_s18 + $0xa0] sm:$0xff] }
0x1023   :  { %v4508_v18 = vpop.eup %4507  ;;  %v2779_v49 = vadd.f32 %v6135_v15, %v2772_v22 }
0x1024   :  { %v2729_v43 = vmul.f32 %v4506_v13, %v2728_v4  ;;  %v2735_v40 = vmul.f32 %v4508_v18, %v2701_v58  ;;  %vm2741_vm9 = vweird.f32 %v4508_v18  ;;  %v4234_v4 = vld [vmem:[%s6488_s18 + $0xe8] sm:$0xff] }
0x1025   :  { %v2793_v9 = vpack.c.bf16 %v2779_v49, %v2778_v10  ;;  %vm2742_vm2 = vmor %vm2740_vm12, %vm2741_vm9  ;;  %v6192_v10 = vperm.slane %v3939_v6, 1  ;;  %v4224_v49 = vld [vmem:[%s6488_s18 + $0x98] sm:$0xff] }
0x1026   :  { %v2736_v5 = vmul.f32 %v4508_v18, %v2735_v40  ;;  %v2733_v2 = vsel %vm2732_vm11, %v4506_v13, %v2729_v43 }
0x1027   :  { %3972 = vmatmul.msk.bf16.vlgmr.msrb.gmra.mxu1 %vm222_vm0, %v2793_v9  ;;  %3975 = vmatmul.msk.bf16.vlgmr.msrb.gmra.mxu2 %vm222_vm0, %v2793_v9  ;;  %v2766_v33 = vmul.f32 %v2733_v2, %v6048_v16  ;;  %v4233_v9 = vld [vmem:[%s6488_s18 + $0xe0] sm:$0xff] }
0x1028   :  { %v2737_v47 = vmul.f32 0.5, %v2736_v5 }
0x1029   :  { %v2773_v26 = vmul.f32 %v6129_v57, %v2766_v33 }
0x102a   :  { %v2738_v45 = vsub.f32 1.5, %v2737_v47  ;;  %v4223_v47 = vld [vmem:[%s6488_s18 + $0x90] sm:$0xff] }
0x102b   :  { %v2780_v7 = vadd.f32 %v6135_v15, %v2773_v26  ;;  %v4222_v26 = vld [vmem:[%s6488_s18 + $0x88] sm:$0xff] }
0x102c   :  { %v2739_v36 = vmul.f32 %v4508_v18, %v2738_v45 }
0x102e   :  { %v2743_v42 = vsel %vm2742_vm2, %v4508_v18, %v2739_v36  ;;  %v4232_v36 = vld [vmem:[%s6488_s18 + $0xd8] sm:$0xff] }
0x102f   :  { %v2767_v51 = vmul.f32 %v2743_v42, %v6055_v63 }
0x1031   :  { %v2774_v12 = vmul.f32 %v6129_v57, %v2767_v51 }
0x1033   :  { %v2781_v31 = vadd.f32 %v6135_v15, %v2774_v12 }
0x1035   :  { %v2794_v11 = vpack.c.bf16 %v2781_v31, %v2780_v7 }
0x1037   :  { %3973 = vmatmul.msk.bf16.gmra.mxu1 %vm222_vm0, %v2794_v11  ;;  %3976 = vmatmul.msk.bf16.gmra.mxu2 %vm222_vm0, %v2794_v11 }
0x1043   :  { %v2688_v16 = vpop.xlane.xlu2 %2687 }
0x1044   :  { %v2696_v62 = vmul.f32 %v2688_v16, %v4807_v8  ;;  %v4231_v16 = vld [vmem:[%s6488_s18 + $0xd0] sm:$0xff] }
0x1046   :  { %v2702_v17 = vadd.f32 1e-05, %v2696_v62 }
0x1048   :  { %4509 = vrsqrt.f32 %v2702_v17  ;;  %vm2750_vm3 = vweird.f32 %v2702_v17 }
0x104b   :  { %v2691_v27 = vpop.xlane.xlu1 %2690 }
0x104c   :  { %v2697_v63 = vmul.f32 %v2691_v27, %v4807_v8  ;;  %v4221_v27 = vld [vmem:[%s6488_s18 + $0x80] sm:$0xff] }
0x104e   :  { %v4510_v24 = vpop.eup %4509  ;;  %v2703_v52 = vadd.f32 1e-05, %v2697_v63 }
0x104f   :  { %v2745_v35 = vmul.f32 %v4510_v24, %v2702_v17  ;;  %vm2751_vm14 = vweird.f32 %v4510_v24 }
0x1050   :  { %4511 = vrsqrt.f32 %v2703_v52  ;;  %vm2752_vm5 = vmor %vm2750_vm3, %vm2751_vm14  ;;  %vm2760_vm1 = vweird.f32 %v2703_v52 }
0x1051   :  { %v2746_v56 = vmul.f32 %v4510_v24, %v2745_v35 }
0x1053   :  { %v2747_v34 = vmul.f32 0.5, %v2746_v56 }
0x1055   :  { %v2748_v59 = vsub.f32 1.5, %v2747_v34 }
0x1056   :  { %v4512_v19 = vpop.eup %4511 }
0x1057   :  { %v2749_v25 = vmul.f32 %v4510_v24, %v2748_v59  ;;  %v2755_v39 = vmul.f32 %v4512_v19, %v2703_v52  ;;  %vm2761_vm6 = vweird.f32 %v4512_v19  ;;  %v4230_v52 = vld [vmem:[%s6488_s18 + $0xc8] sm:$0xff] }
0x1058   :  { %vm2762_vm7 = vmor %vm2760_vm1, %vm2761_vm6 }
0x1059   :  { %v2756_v60 = vmul.f32 %v4512_v19, %v2755_v39  ;;  %v2753_v50 = vsel %vm2752_vm5, %v4510_v24, %v2749_v25 }
0x105a   :  { %v2768_v23 = vmul.f32 %v2753_v50, %v6062_v30  ;;  %v4228_v30 = vld [vmem:[%s6488_s18 + $0xb8] sm:$0xff]  ;;  %v4229_v50 = vld [vmem:[%s6488_s18 + $0xc0] sm:$0xff] }
0x105b   :  { %v2757_v1 = vmul.f32 0.5, %v2756_v60  ;;  %3287 = vmatpush.bf16.msrb.mxu3 %v4228_v30 }
0x105c   :  { %v2775_v13 = vmul.f32 %v6129_v57, %v2768_v23 }
0x105d   :  { %v2758_v32 = vsub.f32 1.5, %v2757_v1 }
0x105e   :  { %v2782_v58 = vadd.f32 %v6135_v15, %v2775_v13 }
0x105f   :  { %v2759_v37 = vmul.f32 %v4512_v19, %v2758_v32 }
0x1061   :  { %v2763_v41 = vsel %vm2762_vm7, %v4512_v19, %v2759_v37 }
0x1062   :  { %v2769_v53 = vmul.f32 %v2763_v41, %v6069_v55  ;;  %v4227_v55 = vld [vmem:[%s6488_s18 + $0xb0] sm:$0xff] }
0x1063   :  { %3288 = vmatpush.bf16.msrb.mxu3 %v4227_v55 }
0x1064   :  { %v2776_v44 = vmul.f32 %v6129_v57, %v2769_v53  ;;  %v4236_v57 = vld [vmem:[%s6488_s18 + $0xf8] sm:$0xff] }
0x1065   :  { %3311 = vmatpush.bf16.msrb.mxu0 %v4236_v57 }
0x1066   :  { %v2783_v0 = vadd.f32 %v6135_v15, %v2776_v44  ;;  %v6177_v15 = vperm.slane %v3939_v6, 0 }
0x1067   :  { %3289 = vmatpush.bf16.msrb.mxu3 %v4226_v28 }
0x1068   :  { %v2795_v54 = vpack.c.bf16 %v2783_v0, %v2782_v58 }
0x1069   :  { %3312 = vmatpush.bf16.msrb.mxu0 %v4235_v46 }
0x106a   :  { %3974 = vmatmul.msk.bf16.gmra.mxu1 %vm222_vm0, %v2795_v54  ;;  %3977 = vmatmul.msk.bf16.gmra.mxu2 %vm222_vm0, %v2795_v54 }
0x106b   :  { %3290 = vmatpush.bf16.msrb.mxu3 %v4225_v21 }
0x106d   :  { %3313 = vmatpush.bf16.msrb.mxu0 %v4234_v4 }
0x106f   :  { %3291 = vmatpush.bf16.msrb.mxu3 %v4224_v49 }
0x1071   :  { %3314 = vmatpush.bf16.msrb.mxu0 %v4233_v9 }
0x1073   :  { %3292 = vmatpush.bf16.msrb.mxu3 %v4223_v47 }
0x1075   :  { %3315 = vmatpush.bf16.msrb.mxu0 %v4232_v36 }
0x1077   :  { %3293 = vmatpush.bf16.msrb.mxu3 %v4222_v26 }
0x1079   :  { %3316 = vmatpush.bf16.msrb.mxu0 %v4231_v16 }
0x107b   :  { %3294 = vmatpush.bf16.msrb.mxu3 %v4221_v27 }
0x107d   :  { %3317 = vmatpush.bf16.msrb.mxu0 %v4230_v52 }
0x1081   :  { %3318 = vmatpush.bf16.msrb.mxu0 %v4229_v50 }
0x10a4   :  { %v2861_v14 = vpop.f32.mrf.mxu1 }
0x10a5   :  { %v6186_v22 = vadd.f32 %v2861_v14, %v6177_v15 }
0x10a7   :  { %v3978_v18 = vmul.f32 -1.702, %v6186_v22 }
0x10a9   :  { %v2924_v43 = vmul.f32 1.442695, %v3978_v18 }
0x10aa   :  { %v2885_v40 = vpop.f32.mrf.mxu2 }
0x10ab   :  { %4513 = vpow2.f32 %v2924_v43  ;;  %v6201_v5 = vadd.f32 %v2885_v40, %v6192_v10 }
0x10ac   :  { %v2863_v2 = vpop.f32.mrf.mxu1 }
0x10ad   :  { %v3979_v45 = vmul.f32 -1.702, %v6201_v5  ;;  %v6208_v33 = vadd.f32 %v2863_v2, %v6177_v15 }
0x10af   :  { %v2926_v42 = vmul.f32 1.442695, %v3979_v45  ;;  %v3980_v51 = vmul.f32 -1.702, %v6208_v33 }
0x10b1   :  { %v4514_v12 = vpop.eup %4513  ;;  %4515 = vpow2.f32 %v2926_v42  ;;  %v2928_v7 = vmul.f32 1.442695, %v3980_v51 }
0x10b2   :  { %v6217_v31 = vadd.f32 1.0, %v4514_v12  ;;  %v2887_v11 = vpop.f32.mrf.mxu2 }
0x10b3   :  { %4517 = vpow2.f32 %v2928_v7  ;;  %v6223_v62 = vadd.f32 %v2887_v11, %v6192_v10 }
0x10b4   :  { %4519 = vrcp.f32 %v6217_v31  ;;  %v2866_v17 = vpop.f32.mrf.mxu1  ;;  %v2969_v57 = vand.u32 2147483647, %v6217_v31  ;;  %v2971_v28 = vand.u32 2147483648, %v6217_v31  ;;  %vm2965_vm4 = vweird.f32 %v6217_v31 }
0x10b5   :  { %v3981_v63 = vmul.f32 -1.702, %v6223_v62  ;;  %v6231_v24 = vadd.f32 %v2866_v17, %v6177_v15 }
0x10b6   :  { %vm6270_vm15 = vcmp.eq.f32.partialorder %v2969_v57, 8.507059e+37  ;;  %v2972_v9 = vor.u32 1.1754944e-38, %v2971_v28 }
0x10b7   :  { %v4516_v35 = vpop.eup %4515  ;;  %v2930_v56 = vmul.f32 1.442695, %v3981_v63  ;;  %v3982_v34 = vmul.f32 -1.702, %v6231_v24 }
0x10b8   :  { %v6237_v59 = vadd.f32 1.0, %v4516_v35 }
0x10b9   :  { %v4518_v19 = vpop.eup %4517  ;;  %4521 = vpow2.f32 %v2930_v56  ;;  %v2932_v25 = vmul.f32 1.442695, %v3982_v34 }
0x10ba   :  { %v6239_v39 = vpop.eup %4519  ;;  %4523 = vrcp.f32 %v6237_v59  ;;  %v2890_v60 = vpop.f32.mrf.mxu2  ;;  %v2950_v32 = vadd.f32 1.0, %v4518_v19  ;;  %vm2980_vm11 = vweird.f32 %v6237_v59  ;;  %v2984_v47 = vand.u32 2147483647, %v6237_v59 }
0x10bb   :  { %v2961_v1 = vmul.f32 %v6239_v39, %v6217_v31  ;;  %4525 = vpow2.f32 %v2932_v25  ;;  %v6248_v23 = vadd.f32 %v2890_v60, %v6192_v10  ;;  %vm2966_vm13 = vweird.f32 %v6239_v39 }
0x10bc   :  { %v2868_v37 = vpop.f32.mrf.mxu1  ;;  %4527 = vrcp.f32 %v2950_v32  ;;  %v2999_v36 = vand.u32 2147483647, %v2950_v32  ;;  %vm6278_vm9 = vmor %vm2965_vm4, %vm2966_vm13  ;;  %v3001_v51 = vand.u32 2147483648, %v2950_v32  ;;  %v2986_v27 = vand.u32 2147483648, %v6237_v59 }
0x10bd   :  { %v2962_v41 = vsub.f32 1.0, %v2961_v1  ;;  %v3983_v53 = vmul.f32 -1.702, %v6248_v23  ;;  %v6252_v44 = vadd.f32 %v2868_v37, %v6177_v15  ;;  %vm2995_vm14 = vweird.f32 %v2950_v32 }
0x10be   :  { %vm3000_vm5 = vcmp.eq.f32.partialorder %v2999_v36, 8.507059e+37  ;;  %vm2985_vm7 = vcmp.eq.f32.partialorder %v2984_v47, 8.507059e+37 }
0x10bf   :  { %v4522_v13 = vpop.eup %4521  ;;  %v2963_v0 = vmul.f32 %v6239_v39, %v2962_v41  ;;  %v2934_v30 = vmul.f32 1.442695, %v3983_v53  ;;  %v3984_v4 = vmul.f32 -1.702, %v6252_v44 }
0x10c0   :  { %v6254_v58 = vpop.eup %4523  ;;  %v6257_v54 = vadd.f32 1.0, %v4522_v13 }
0x10c1   :  { %v4526_v55 = vpop.eup %4525  ;;  %v2976_v6 = vmul.f32 %v6254_v58, %v6237_v59  ;;  %v2964_v18 = vadd.f32 %v6239_v39, %v2963_v0  ;;  %vm2981_vm12 = vweird.f32 %v6254_v58  ;;  %v2936_v26 = vmul.f32 1.442695, %v3984_v4 }
0x10c2   :  { %4529 = vrcp.f32 %v6257_v54  ;;  %v4528_v46 = vpop.eup %4527  ;;  %v6264_v21 = vadd.f32 1.0, %v4526_v55  ;;  %v2892_v43 = vpop.f32.mrf.mxu2  ;;  %vm6294_vm3 = vmor %vm2980_vm11, %vm2981_vm12  ;;  %v3014_v59 = vand.u32 2147483647, %v6257_v54  ;;  %v2987_v0 = vor.u32 1.1754944e-38, %v2986_v27 }
0x10c3   :  { %v2977_v14 = vsub.f32 1.0, %v2976_v6  ;;  %4531 = vpow2.f32 %v2934_v30  ;;  %v2991_v49 = vmul.f32 %v4528_v46, %v2950_v32  ;;  %v6284_v12 = vadd.f32 %v2892_v43, %v6192_v10 }
0x10c4   :  { %4533 = vrcp.f32 %v6264_v21  ;;  %v2968_v31 = vsel %vm6278_vm9, %v6239_v39, %v2964_v18  ;;  %vm2996_vm2 = vweird.f32 %v4528_v46  ;;  %v3002_v39 = vor.u32 1.1754944e-38, %v3001_v51 }
0x10c5   :  { %v2978_v2 = vmul.f32 %v6254_v58, %v2977_v14  ;;  %v2992_v45 = vsub.f32 1.0, %v2991_v49  ;;  %4535 = vpow2.f32 %v2936_v26  ;;  %v3985_v34 = vmul.f32 -1.702, %v6284_v12  ;;  %vm2997_vm6 = vmor %vm2995_vm14, %vm2996_vm2 }
0x10c6   :  { %v2973_v25 = vsel %vm6270_vm15, %v2972_v9, %v2968_v31  ;;  %v3016_v32 = vand.u32 2147483648, %v6257_v54  ;;  %vm3010_vm4 = vweird.f32 %v6257_v54  ;;  %vm3015_vm15 = vcmp.eq.f32.partialorder %v3014_v59, 8.507059e+37 }
0x10c7   :  { %v2979_v11 = vadd.f32 %v6254_v58, %v2978_v2  ;;  %v2993_v16 = vmul.f32 %v4528_v46, %v2992_v45  ;;  %v3140_v13 = vmul.f32 %v2973_v25, %v6186_v22  ;;  %v2938_v55 = vmul.f32 1.442695, %v3985_v34 }
0x10c8   :  { %v4530_v7 = vpop.eup %4529  ;;  %vm3025_vm9 = vweird.f32 %v6264_v21 }
0x10c9   :  { %v4532_v17 = vpop.eup %4531  ;;  %v3006_v63 = vmul.f32 %v4530_v7, %v6257_v54  ;;  %v2994_v35 = vadd.f32 %v4528_v46, %v2993_v16  ;;  %v2983_v50 = vsel %vm6294_vm3, %v6254_v58, %v2979_v11  ;;  %vm3011_vm1 = vweird.f32 %v4530_v7 }
0x10ca   :  { %v6298_v56 = vadd.f32 1.0, %v4532_v17  ;;  %v6301_v19 = vpop.eup %4533  ;;  %v2988_v28 = vsel %vm2985_vm7, %v2987_v0, %v2983_v50  ;;  %vm3012_vm13 = vmor %vm3010_vm4, %vm3011_vm1 }
0x10cb   :  { %v3007_v60 = vsub.f32 1.0, %v3006_v63  ;;  %v2998_v1 = vsel %vm2997_vm6, %v4528_v46, %v2994_v35  ;;  %v3021_v53 = vmul.f32 %v6301_v19, %v6264_v21  ;;  %v4536_v57 = vpop.eup %4535  ;;  %v3017_v46 = vor.u32 1.1754944e-38, %v3016_v32 }
0x10cc   :  { %4537 = vrcp.f32 %v6298_v56  ;;  %v3003_v37 = vsel %vm3000_vm5, %v3002_v39, %v2998_v1  ;;  %v2954_v14 = vadd.f32 1.0, %v4536_v57  ;;  %vm3026_vm11 = vweird.f32 %v6301_v19 }
0x10cd   :  { %v3008_v41 = vmul.f32 %v4530_v7, %v3007_v60  ;;  %v3142_v30 = vmul.f32 %v3003_v37, %v6208_v33  ;;  %v3022_v18 = vsub.f32 1.0, %v3021_v53  ;;  %4539 = vpow2.f32 %v2938_v55  ;;  %vm3027_vm12 = vmor %vm3025_vm9, %vm3026_vm11 }
0x10ce   :  { %4541 = vrcp.f32 %v2954_v14  ;;  %v3141_v33 = vmul.f32 %v2988_v28, %v6201_v5  ;;  %v3031_v5 = vand.u32 2147483648, %v6264_v21  ;;  %v3061_v31 = vand.u32 2147483648, %v2954_v14 }
0x10cf   :  { %v3009_v58 = vadd.f32 %v4530_v7, %v3008_v41  ;;  %v3185_v6 = vpack.c.bf16 %v3142_v30, %v3140_v13  ;;  %v3023_v54 = vmul.f32 %v6301_v19, %v3022_v18  ;;  %vm3055_vm3 = vweird.f32 %v2954_v14 }
0x10d0   :  { %v3032_v27 = vor.u32 1.1754944e-38, %v3031_v5  ;;  %vm3040_vm7 = vweird.f32 %v6298_v56  ;;  %v3044_v50 = vand.u32 2147483647, %v6298_v56 }
0x10d1   :  { %v3013_v4 = vsel %vm3012_vm13, %v4530_v7, %v3009_v58  ;;  %3295 = vmatmul.bf16.vlgmr.msrb.gmra.mxu3 %v3185_v6  ;;  %v3024_v36 = vadd.f32 %v6301_v19, %v3023_v54  ;;  %v3059_v7 = vand.u32 2147483647, %v2954_v14 }
0x10d2   :  { %v6316_v49 = vpop.eup %4537  ;;  %v3018_v22 = vsel %vm3015_vm15, %v3017_v46, %v3013_v4  ;;  %vm3045_vm15 = vcmp.eq.f32.partialorder %v3044_v50, 8.507059e+37 }
0x10d3   :  { %v3143_v43 = vmul.f32 %v3018_v22, %v6223_v62  ;;  %v3036_v9 = vmul.f32 %v6316_v49, %v6298_v56  ;;  %v4540_v2 = vpop.eup %4539  ;;  %v3029_v62 = vand.u32 2147483647, %v6264_v21  ;;  %v3028_v11 = vsel %vm3027_vm12, %v6301_v19, %v3024_v36 }
0x10d4   :  { %v4542_v47 = vpop.eup %4541  ;;  %v2955_v45 = vadd.f32 1.0, %v4540_v2  ;;  %vm3041_vm5 = vweird.f32 %v6316_v49  ;;  %v3062_v21 = vor.u32 1.1754944e-38, %v3061_v31  ;;  %vm3060_vm1 = vcmp.eq.f32.partialorder %v3059_v7, 8.507059e+37 }
0x10d5   :  { %v3186_v40 = vpack.c.bf16 %v3143_v43, %v3141_v33  ;;  %v3037_v42 = vsub.f32 1.0, %v3036_v9  ;;  %v3051_v51 = vmul.f32 %v4542_v47, %v2954_v14  ;;  %vm3056_vm2 = vweird.f32 %v4542_v47  ;;  %vm3042_vm4 = vmor %vm3040_vm7, %vm3041_vm5 }
0x10d6   :  { %4543 = vrcp.f32 %v2955_v45  ;;  %vm3030_vm14 = vcmp.eq.f32.partialorder %v3029_v62, 8.507059e+37  ;;  %vm3057_vm6 = vmor %vm3055_vm3, %vm3056_vm2  ;;  %v3046_v19 = vand.u32 2147483648, %v6298_v56  ;;  %v3074_v37 = vand.u32 2147483647, %v2955_v45 }
0x10d7   :  { %3319 = vmatmul.bf16.vlgmr.msrb.gmra.mxu0 %v3186_v40  ;;  %v3052_v26 = vsub.f32 1.0, %v3051_v51  ;;  %v3038_v16 = vmul.f32 %v6316_v49, %v3037_v42  ;;  %v3033_v35 = vsel %vm3030_vm14, %v3032_v27, %v3028_v11  ;;  %v3076_v41 = vand.u32 2147483648, %v2955_v45 }
0x10d8   :  { %v3144_v59 = vmul.f32 %v3033_v35, %v6231_v24  ;;  %v3047_v30 = vor.u32 1.1754944e-38, %v3046_v19  ;;  %vm3070_vm11 = vweird.f32 %v2955_v45  ;;  %vm3075_vm12 = vcmp.eq.f32.partialorder %v3074_v37, 8.507059e+37 }
0x10d9   :  { %v3053_v17 = vmul.f32 %v4542_v47, %v3052_v26  ;;  %v3039_v34 = vadd.f32 %v6316_v49, %v3038_v16  ;;  %v3077_v56 = vor.u32 1.1754944e-38, %v3076_v41 }
0x10db   :  { %v3054_v63 = vadd.f32 %v4542_v47, %v3053_v17  ;;  %v3043_v53 = vsel %vm3042_vm4, %v6316_v49, %v3039_v34 }
0x10dc   :  { %v4544_v52 = vpop.eup %4543  ;;  %v3048_v24 = vsel %vm3045_vm15, %v3047_v30, %v3043_v53 }
0x10dd   :  { %v3058_v25 = vsel %vm3057_vm6, %v4542_v47, %v3054_v63  ;;  %v3066_v39 = vmul.f32 %v4544_v52, %v2955_v45  ;;  %vm3071_vm13 = vweird.f32 %v4544_v52  ;;  %v3145_v46 = vmul.f32 %v3048_v24, %v6248_v23 }
0x10de   :  { %v3063_v60 = vsel %vm3060_vm1, %v3062_v21, %v3058_v25  ;;  %vm3072_vm9 = vmor %vm3070_vm11, %vm3071_vm13 }
0x10df   :  { %v3146_v1 = vmul.f32 %v3063_v60, %v6252_v44  ;;  %v3067_v32 = vsub.f32 1.0, %v3066_v39 }
0x10e1   :  { %v3068_v13 = vmul.f32 %v4544_v52, %v3067_v32  ;;  %v3187_v0 = vpack.c.bf16 %v3146_v1, %v3144_v59 }
0x10e3   :  { %v3069_v55 = vadd.f32 %v4544_v52, %v3068_v13  ;;  %3300 = vmatmul.bf16.gmra.mxu3 %v3187_v0 }
0x10e5   :  { %v3073_v58 = vsel %vm3072_vm9, %v4544_v52, %v3069_v55 }
0x10e6   :  { %v3078_v28 = vsel %vm3075_vm12, %v3077_v56, %v3073_v58  ;;  %v4240_v58 = vld [vmem:[%s6494_s22 + $0x18] sm:$0xff] }
0x10e7   :  { %v2871_v57 = vpop.f32.mrf.mxu1  ;;  %v3147_v14 = vmul.f32 %v3078_v28, %v6284_v12  ;;  %3443 = vmatpush.bf16.msra.mxu2 %v4240_v58 }
0x10e8   :  { %v6339_v44 = vadd.f32 %v2871_v57, %v6177_v15 }
0x10e9   :  { %v3188_v18 = vpack.c.bf16 %v3147_v14, %v3145_v46 }
0x10ea   :  { %v3986_v6 = vmul.f32 -1.702, %v6339_v44 }
0x10eb   :  { %3324 = vmatmul.bf16.gmra.mxu0 %v3188_v18 }
0x10ec   :  { %v2940_v4 = vmul.f32 1.442695, %v3986_v6 }
0x10ed   :  { %v2895_v49 = vpop.f32.mrf.mxu2 }
0x10ee   :  { %4545 = vpow2.f32 %v2940_v4  ;;  %v6345_v22 = vadd.f32 %v2895_v49, %v6192_v10 }
0x10ef   :  { %v2873_v33 = vpop.f32.mrf.mxu1 }
0x10f0   :  { %v3987_v43 = vmul.f32 -1.702, %v6345_v22  ;;  %v6349_v40 = vadd.f32 %v2873_v33, %v6177_v15 }
0x10f2   :  { %v2942_v54 = vmul.f32 1.442695, %v3987_v43  ;;  %v3988_v9 = vmul.f32 -1.702, %v6349_v40 }
0x10f4   :  { %v4546_v23 = vpop.eup %4545  ;;  %4547 = vpow2.f32 %v2942_v54  ;;  %v2944_v12 = vmul.f32 1.442695, %v3988_v9 }
0x10f5   :  { %v2956_v2 = vadd.f32 1.0, %v4546_v23  ;;  %v2897_v47 = vpop.f32.mrf.mxu2 }
0x10f6   :  { %4549 = vpow2.f32 %v2944_v12  ;;  %v6353_v45 = vadd.f32 %v2897_v47, %v6192_v10 }
0x10f7   :  { %4551 = vrcp.f32 %v2956_v2  ;;  %v3089_v52 = vand.u32 2147483647, %v2956_v2  ;;  %v3091_v25 = vand.u32 2147483648, %v2956_v2  ;;  %vm3085_vm14 = vweird.f32 %v2956_v2 }
0x10f8   :  { %v3989_v36 = vmul.f32 -1.702, %v6353_v45 }
0x10f9   :  { %vm3090_vm5 = vcmp.eq.f32.partialorder %v3089_v52, 8.507059e+37  ;;  %v3092_v41 = vor.u32 1.1754944e-38, %v3091_v25 }
0x10fa   :  { %v4548_v42 = vpop.eup %4547  ;;  %v2946_v51 = vmul.f32 1.442695, %v3989_v36 }
0x10fb   :  { %v2957_v5 = vadd.f32 1.0, %v4548_v42 }
0x10fc   :  { %v4550_v15 = vpop.eup %4549  ;;  %4553 = vpow2.f32 %v2946_v51 }
0x10fd   :  { %v4552_v62 = vpop.eup %4551  ;;  %4555 = vrcp.f32 %v2957_v5  ;;  %v2958_v7 = vadd.f32 1.0, %v4550_v15  ;;  %vm3100_vm7 = vweird.f32 %v2957_v5  ;;  %v3106_v0 = vand.u32 2147483648, %v2957_v5 }
0x10fe   :  { %v3081_v26 = vmul.f32 %v4552_v62, %v2956_v2  ;;  %vm3086_vm2 = vweird.f32 %v4552_v62  ;;  %v3104_v57 = vand.u32 2147483647, %v2957_v5 }
0x10ff   :  { %4557 = vrcp.f32 %v2958_v7  ;;  %vm6356_vm3 = vmor %vm3085_vm14, %vm3086_vm2  ;;  %v3121_v59 = vand.u32 2147483648, %v2958_v7  ;;  %v3119_v37 = vand.u32 2147483647, %v2958_v7  ;;  %vm3115_vm4 = vweird.f32 %v2958_v7 }
0x1100   :  { %v3082_v31 = vsub.f32 1.0, %v3081_v26  ;;  %v3107_v33 = vor.u32 1.1754944e-38, %v3106_v0  ;;  %vm3105_vm12 = vcmp.eq.f32.partialorder %v3104_v57, 8.507059e+37 }
0x1101   :  { %v3122_v24 = vor.u32 1.1754944e-38, %v3121_v59  ;;  %vm3120_vm11 = vcmp.eq.f32.partialorder %v3119_v37, 8.507059e+37 }
0x1102   :  { %v4554_v11 = vpop.eup %4553  ;;  %v3083_v17 = vmul.f32 %v4552_v62, %v3082_v31 }
0x1103   :  { %v4556_v16 = vpop.eup %4555  ;;  %v2959_v27 = vadd.f32 1.0, %v4554_v11 }
0x1104   :  { %v3096_v10 = vmul.f32 %v4556_v16, %v2957_v5  ;;  %v3084_v21 = vadd.f32 %v4552_v62, %v3083_v17  ;;  %vm3101_vm1 = vweird.f32 %v4556_v16 }
0x1105   :  { %4559 = vrcp.f32 %v2959_v27  ;;  %v4558_v63 = vpop.eup %4557  ;;  %vm6362_vm15 = vmor %vm3100_vm7, %vm3101_vm1  ;;  %v3134_v6 = vand.u32 2147483647, %v2959_v27  ;;  %v3136_v46 = vand.u32 2147483648, %v2959_v27  ;;  %vm3130_vm2 = vweird.f32 %v2959_v27 }
0x1106   :  { %v3097_v35 = vsub.f32 1.0, %v3096_v10  ;;  %v3111_v34 = vmul.f32 %v4558_v63, %v2958_v7  ;;  %v3088_v1 = vsel %vm6356_vm3, %v4552_v62, %v3084_v21  ;;  %vm3116_vm6 = vweird.f32 %v4558_v63 }
0x1107   :  { %v3093_v55 = vsel %vm3090_vm5, %v3092_v41, %v3088_v1  ;;  %vm3117_vm13 = vmor %vm3115_vm4, %vm3116_vm6  ;;  %v3137_v23 = vor.u32 1.1754944e-38, %v3136_v46  ;;  %vm3135_vm3 = vcmp.eq.f32.partialorder %v3134_v6, 8.507059e+37  ;;  %vm3372_vm5 = vcmask 517120   ;;  %v4238_v6 = vld [vmem:[%s6494_s22 + $0x8] sm:$0xff]  ;;  %v4237_v46 = vld [vmem:[%s6494_s22] sm:$0xff] }
0x1108   :  { %v3098_v39 = vmul.f32 %v4556_v16, %v3097_v35  ;;  %v3112_v19 = vsub.f32 1.0, %v3111_v34  ;;  %v3148_v49 = vmul.f32 %v3093_v55, %v6339_v44  ;;  %v4303_v35 = vld [vmem:[%s6490_s19 + $0x1] ss:$0 sm:$0xff] }
0x110a   :  { %v3113_v32 = vmul.f32 %v4558_v63, %v3112_v19  ;;  %v3099_v53 = vadd.f32 %v4556_v16, %v3098_v39 }
0x110b   :  { %v4560_v50 = vpop.eup %4559 }
0x110c   :  { %v3126_v13 = vmul.f32 %v4560_v50, %v2959_v27  ;;  %v3114_v30 = vadd.f32 %v4558_v63, %v3113_v32  ;;  %v3103_v14 = vsel %vm6362_vm15, %v4556_v16, %v3099_v53  ;;  %vm3131_vm9 = vweird.f32 %v4560_v50 }
0x110d   :  { %v3108_v9 = vsel %vm3105_vm12, %v3107_v33, %v3103_v14  ;;  %vm3132_vm14 = vmor %vm3130_vm2, %vm3131_vm9  ;;  %v4242_v14 = vld [vmem:[%s6495_s23 + $0x8] sm:$0xff] }
0x110e   :  { %v3127_v56 = vsub.f32 1.0, %v3126_v13  ;;  %v3118_v28 = vsel %vm3117_vm13, %v4558_v63, %v3114_v30  ;;  %v3149_v36 = vmul.f32 %v3108_v9, %v6345_v22  ;;  %3482 = vmatpush.bf16.msra.mxu3 %v4242_v14 }
0x110f   :  { %v3123_v4 = vsel %vm3120_vm11, %v3122_v24, %v3118_v28  ;;  %v4239_v28 = vld [vmem:[%s6494_s22 + $0x10] sm:$0xff] }
0x1110   :  { %v3128_v18 = vmul.f32 %v4560_v50, %v3127_v56  ;;  %v3150_v43 = vmul.f32 %v3123_v4, %v6349_v40  ;;  %3444 = vmatpush.bf16.msra.mxu2 %v4239_v28 }
0x1112   :  { %v3129_v54 = vadd.f32 %v4560_v50, %v3128_v18  ;;  %v3189_v12 = vpack.c.bf16 %v3150_v43, %v3148_v49 }
0x1114   :  { %v3133_v2 = vsel %vm3132_vm14, %v4560_v50, %v3129_v54  ;;  %3305 = vmatmul.bf16.gmra.mxu3 %v3189_v12  ;;  %3445 = vmatpush.bf16.msra.mxu2 %v4238_v6 }
0x1115   :  { %v3138_v47 = vsel %vm3135_vm3, %v3137_v23, %v3133_v2  ;;  %v4304_v2 = vld [vmem:[%s6492_s20] ss:$0 sm:$0xff] }
0x1116   :  { %v3151_v42 = vmul.f32 %v3138_v47, %v6353_v45 }
0x1118   :  { %v3190_v51 = vpack.c.bf16 %v3151_v42, %v3149_v36  ;;  %3446 = vmatpush.bf16.msra.mxu2 %v4237_v46 }
0x111a   :  { %3329 = vmatmul.bf16.gmra.mxu0 %v3190_v51 }
0x1154   :  { %v3320_v44 = vpop.f32.mrf.mxu0  ;;  %v3296_v5 = vpop.f32.mrf.mxu3 }
0x1155   :  { %v3321_v39 = vadd.f32 %v3320_v44, %v3296_v5  ;;  %v4241_v5 = vld [vmem:[%s6495_s23] sm:$0xff] }
0x1156   :  { %3483 = vmatpush.bf16.msra.mxu3 %v4241_v5 }
0x115c   :  { %v3322_v40 = vpop.f32.mrf.mxu0  ;;  %v3298_v15 = vpop.f32.mrf.mxu3 }
0x115d   :  { %v3323_v21 = vadd.f32 %v3322_v40, %v3298_v15  ;;  %v4139_v40 = vld [vmem:[%s6497_s25 + $0x30] sm:$0xf]  ;;  %v4250_v15 = vld [vmem:[%s6497_s25 + $0x34] sm:$0xf0] }
0x115f   :  { %v3336_v50 = vadd.f32 %v3323_v21, %v6008_v61  ;;  %v4246_v21 = vld [vmem:[%s6497_s25 + $0x14] sm:$0xf0] }
0x1161   :  { %v3344_v41 = vadd.f32 %v4303_v35, %v3336_v50  ;;  %v4243_v50 = vld [vmem:[%s6497_s25 + $0x4] sm:$0xf] }
0x1166   :  { %v3301_v26 = vpop.f32.mrf.mxu3 }
0x1168   :  { %v3325_v62 = vpop.f32.mrf.mxu0 }
0x1169   :  { %v3326_v52 = vadd.f32 %v3325_v62, %v3301_v26  ;;  %v4249_v62 = vld [vmem:[%s6497_s25 + $0x34] sm:$0xf]  ;;  %v4140_v26 = vor.u32 %v4250_v15, %v4139_v40 }
0x116b   :  { %v3337_v19 = vadd.f32 %v3326_v52, %v6013_v3  ;;  %3552 = vmatpush.bf16.msra.mxu0 %v4140_v26 }
0x116d   :  { %v3345_v37 = vadd.f32 %v4303_v35, %v3337_v19  ;;  %v4115_v19 = vld [vmem:[%s6497_s25] sm:$0xf] }
0x116e   :  { %v3303_v31 = vpop.f32.mrf.mxu3 }
0x1170   :  { %v3327_v7 = vpop.f32.mrf.mxu0 }
0x1171   :  { %v3328_v27 = vadd.f32 %v3327_v7, %v3303_v31  ;;  %v4141_v7 = vld [vmem:[%s6497_s25 + $0x38] sm:$0xf0]  ;;  %v4131_v31 = vld [vmem:[%s6497_s25 + $0x20] sm:$0xf] }
0x1173   :  { %v3338_v34 = vadd.f32 %v3328_v27, %v6018_v38  ;;  %v3349_v38 = vld [vmem:[%s6491_s5] sm:$0x3]  ;;  %v4133_v27 = vld [vmem:[%s6497_s25 + $0x28] sm:$0xf0] }
0x1174   :  { %v3350_v3 = vpack.c.bf16 %v3349_v38, %v3349_v38 }
0x1175   :  { %v3346_v1 = vadd.f32 %v4303_v35, %v3338_v34  ;;  %v4245_v34 = vld [vmem:[%s6497_s25 + $0x14] sm:$0xf] }
0x1177   :  { %v3352_v53 = vpack.c.bf16 %v3346_v1, %v3345_v37  ;;  %v4117_v1 = vld [vmem:[%s6497_s25 + $0x8] sm:$0xf0]  ;;  %v4306_v37 = vld [vmem:[%s6496_s24] ss:$0 sm:$0xff] }
0x1197   :  { %v3330_v11 = vpop.f32.mrf.mxu0  ;;  %v3306_v16 = vpop.f32.mrf.mxu3 }
0x1198   :  { %v3331_v17 = vadd.f32 %v3330_v11, %v3306_v16  ;;  %v4248_v11 = vld [vmem:[%s6497_s25 + $0x24] sm:$0xf0]  ;;  %v4144_v16 = vor.u32 %v4249_v62, %v4141_v7 }
0x119a   :  { %v3339_v22 = vadd.f32 %v3331_v17, %v6023_v29  ;;  %v3335_v29 = vadd.f32 %v3321_v39, %v6003_v48  ;;  %v4247_v17 = vld [vmem:[%s6497_s25 + $0x24] sm:$0xf]  ;;  %v4125_v39 = vld [vmem:[%s6497_s25 + $0x18] sm:$0xf0] }
0x119c   :  { %v3347_v60 = vadd.f32 %v4303_v35, %v3339_v22  ;;  %v3343_v13 = vadd.f32 %v4303_v35, %v3335_v29  ;;  %v4120_v29 = vor.u32 %v4243_v50, %v4117_v1 }
0x119f   :  { %v3332_v10 = vpop.f32.mrf.mxu0  ;;  %v3308_v63 = vpop.f32.mrf.mxu3 }
0x11a0   :  { %v3333_v45 = vadd.f32 %v3332_v10, %v3308_v63  ;;  %v4132_v10 = vor.u32 %v4248_v11, %v4131_v31  ;;  %v4136_v63 = vor.u32 %v4247_v17, %v4133_v27 }
0x11a2   :  { %v3340_v25 = vadd.f32 %v3333_v45, %v6028_v20  ;;  %v3351_v20 = vpack.c.bf16 %v3344_v41, %v3343_v13  ;;  %3553 = vmatpush.bf16.msra.mxu0 %v4132_v10 }
0x11a4   :  { %v3348_v59 = vadd.f32 %v4303_v35, %v3340_v25  ;;  %v4123_v35 = vld [vmem:[%s6497_s25 + $0x10] sm:$0xf] }
0x11a5   :  { %v4124_v25 = vor.u32 %v4246_v21, %v4123_v35 }
0x11a6   :  { %v3353_v32 = vpack.c.bf16 %v3348_v59, %v3347_v60  ;;  %v4244_v60 = vld [vmem:[%s6497_s25 + $0x4] sm:$0xf0]  ;;  %v4128_v59 = vor.u32 %v4245_v34, %v4125_v39 }
0x11a7   :  { %3554 = vmatpush.bf16.msra.mxu0 %v4124_v25 }
0x11a8   :  { %3362 = vmatpush.bf16.msra.mxu1 %v3353_v32  ;;  %v4116_v32 = vor.u32 %v4244_v60, %v4115_v19 }
0x11ab   :  { %3555 = vmatpush.bf16.msra.mxu0 %v4116_v32 }
0x11ac   :  { %3363 = vmatpush.bf16.msra.mxu1 %v3352_v53 }
0x11b0   :  { %3364 = vmatpush.bf16.msra.mxu1 %v3351_v20 }
0x11b3   :  { %4086 = vmatmul.msk.bf16.vlgmr.msra.gmra.mxu1 %vm803_vm10, %v3350_v3  ;;  %v3499_v3 = vld [vmem:[%s6498_s26] sm:$0x3] }
0x11b4   :  { %3565 = vmatpush.bf16.msrb.mxu1 %v4144_v16 }
0x11b8   :  { %3566 = vmatpush.bf16.msrb.mxu1 %v4136_v63 }
0x11bc   :  { %3567 = vmatpush.bf16.msrb.mxu1 %v4128_v59 }
0x11c0   :  { %3568 = vmatpush.bf16.msrb.mxu1 %v4120_v29 }
0x1230   :  { %v3366_v61 = vpop.f32.mrf.mxu1 }
0x1231   :  { %v3373_v0 = vsel %vm3372_vm5, %v3366_v61, 0.0 }
0x1232   :  { %3374 = vadd.xlane.f32.xlu0 %v3373_v0  ;;  %v3502_v0 = vperm.slane %v3499_v3, 1 }
0x1238   :  { %v3368_v48 = vpop.f32.mrf.mxu1 }
0x12a5   :  { %v3375_v30 = vpop.xlane.xlu0 %3374 }
0x12a6   :  { %v3376_v55 = vmul.f32 %v3375_v30, %v4807_v8 }
0x12a8   :  { %v3377_v57 = vsub.f32 %v3366_v61, %v3376_v55  ;;  %v3501_v61 = vperm.slane %v3499_v3, 0 }
0x12aa   :  { %v3378_v24 = vmul.f32 %v3377_v57, %v3377_v57 }
0x12ac   :  { %v3379_v56 = vsel %vm3372_vm5, %v3378_v24, 0.0 }
0x12ad   :  { %3380 = vadd.xlane.f32.xlu2 %v3379_v56 }
0x1320   :  { %v3381_v4 = vpop.xlane.xlu2 %3380 }
0x1321   :  { %v3382_v18 = vmul.f32 %v3381_v4, %v4807_v8  ;;  %v4305_v8 = vld [vmem:[%s6493_s21] ss:$0 sm:$0xff] }
0x1323   :  { %v3383_v49 = vadd.f32 1e-05, %v3382_v18 }
0x1325   :  { %4561 = vrsqrt.f32 %v3383_v49  ;;  %vm3390_vm6 = vweird.f32 %v3383_v49 }
0x132b   :  { %v4562_v33 = vpop.eup %4561 }
0x132c   :  { %v3385_v43 = vmul.f32 %v4562_v33, %v3383_v49  ;;  %vm3391_vm10 = vweird.f32 %v4562_v33 }
0x132d   :  { %vm3392_vm1 = vmor %vm3390_vm6, %vm3391_vm10 }
0x132e   :  { %v3386_v54 = vmul.f32 %v4562_v33, %v3385_v43 }
0x1330   :  { %v3387_v9 = vmul.f32 0.5, %v3386_v54 }
0x1332   :  { %v3388_v23 = vsub.f32 1.5, %v3387_v9 }
0x1334   :  { %v3389_v12 = vmul.f32 %v4562_v33, %v3388_v23 }
0x1336   :  { %v3393_v47 = vsel %vm3392_vm1, %v4562_v33, %v3389_v12 }
0x1337   :  { %v3394_v36 = vmul.f32 %v3393_v47, %v3377_v57 }
0x1339   :  { %v3398_v42 = vmul.f32 %v4304_v2, %v3394_v36 }
0x133b   :  { %v3402_v51 = vadd.f32 %v4305_v8, %v3398_v42 }
0x133d   :  { %v3411_v44 = vpack.c.bf16 %v3402_v51, %v3402_v51 }
0x133f   :  { %4103 = vmatmul.msk.bf16.vlgmr.msra.gmra.mxu2 %vm222_vm0, %v3411_v44 }
0x13c2   :  { %v3448_v52 = vpop.f32.mrf.mxu2 }
0x13c3   :  { %v3456_v22 = vpack.c.bf16 %v3448_v52, %v3448_v52 }
0x13c5   :  { %4112 = vmatmul.msk.bf16.vlgmr.msra.gmra.mxu3 %vm754_vm8, %v3456_v22  ;;  %vm3577_vm8 = vcmask 1040384  }
0x13ca   :  { %v3450_v45 = vpop.f32.mrf.mxu2 }
0x1448   :  { %v3485_v41 = vpop.f32.mrf.mxu3 }
0x1449   :  { %v3486_v53 = vadd.f32 %v4306_v37, %v3485_v41 }
0x144b   :  { %v3489_v13 = vmax.f32 %v3486_v53, 0.0 }
0x144d   :  { %v3498_v38 = vpack.c.bf16 %v3489_v13, %v3489_v13 }
0x144f   :  { %4145 = vmatmul.msk.bf16.vlgmr.msra.gmra.mxu0 %vm222_vm0, %v3498_v38  ;;  %4146 = vmatmul.msk.bf16.vlgmr.msrb.gmra.mxu1 %vm222_vm0, %v3498_v38 }
0x1450   :  { %v3487_v20 = vpop.f32.mrf.mxu3 }
0x14cc   :  { %v3557_v48 = vpop.f32.mrf.mxu0  ;;  %v3570_v30 = vpop.f32.mrf.mxu1 }
0x14cd   :  { %v3558_v55 = vadd.f32 %v3557_v48, %v3501_v61  ;;  %v3571_v57 = vadd.f32 %v3570_v30, %v3502_v0 }
0x14cf   :  { %v3574_v24 = vpack.c.bf16 %v3571_v57, %v3558_v55 }
0x14d1   :  { %v3576_v56 = vrot.slane %v3574_v24, 3 }
0x14d3   :  { %v3580_v58 = vsel %vm3577_vm8, %v3574_v24, %v3576_v56 }
0x14d4   :  { %3582 = vst [vmem:[%s6499_s27] sm:$0x3] %v3580_v58  ;;  %v3559_v28 = vpop.f32.mrf.mxu0  ;;  %v3572_v6 = vpop.f32.mrf.mxu1 }

</bundles_post_ra>
